<compile_context>
chip_gen: v5e
topology: v5e:2x2
jax: 0.10.0
libtpu: 0.0.40
codegen_flags: <defaults>
</compile_context>

<pallas_src>
import jax
import jax.numpy as jnp
from jax import lax
from jax.experimental import pallas as pl
from jax.experimental.pallas import tpu as pltpu

IN_FEATURES = 196608
OUT_FEATURES = 10


def _linear_kernel(x_ref, w_ref, b_ref, o_ref):
    """One grid step: x slab (B, tk) × W slab (N, tk) contracted over tk."""
    # Grid index read ONLY at the top level of the body (never inside pl.when),
    # so both the Mosaic path and the interpret fallback handle it.
    k = pl.program_id(0)

    @pl.when(k == 0)
    def _():
        # The output block is resident across the K reduction (its index_map
        # ignores k); seed it with the bias so no scratch / wrapper add needed.
        o_ref[...] = jnp.broadcast_to(b_ref[...], o_ref.shape).astype(o_ref.dtype)

    # Contract the last dim of x (B, tk) with the last dim of W (N, tk) -> (B, N).
    # W stays in its lane-dense PyTorch (out_features, in_features) layout.
    o_ref[...] += lax.dot_general(
        x_ref[...],
        w_ref[...],
        dimension_numbers=(((1,), (1,)), ((), ())),
        preferred_element_type=jnp.float32,
    ).astype(o_ref.dtype)


def pallas_linear(x, w, bias, *, tk=98304):
    """y = x @ w.T + bias.

    x:    (B, K)  activations
    w:    (N, K)  weight in PyTorch (out_features, in_features) layout (lane-dense)
    bias: (N,)
    """
    B, K = x.shape
    N, Kw = w.shape
    assert Kw == K, f"weight K={Kw} must match input K={K}"
    tk = min(tk, K)
    assert K % tk == 0, f"K={K} not divisible by tk={tk}"
    assert tk == K or tk % 128 == 0, "K tile must be lane-aligned"
    steps = K // tk  # keep >= 2 so MXU work overlaps the next tile's DMA

    bias2d = bias.reshape(1, N)

    itemsize = jnp.dtype(x.dtype).itemsize
    cost = pl.CostEstimate(
        flops=2 * B * K * N,
        transcendentals=0,
        bytes_accessed=(
            B * K * itemsize              # x
            + N * K * w.dtype.itemsize    # W (dominant stream)
            + N * bias.dtype.itemsize     # bias
            + B * N * itemsize            # output
        ),
    )

    return pl.pallas_call(
        _linear_kernel,
        out_shape=jax.ShapeDtypeStruct((B, N), x.dtype),
        grid=(steps,),
        in_specs=[
            # x slab: (B, tk), walk K
            pl.BlockSpec((B, tk), lambda k: (0, k)),
            # W slab: lane-dense (N, tk), same K walk
            pl.BlockSpec((N, tk), lambda k: (0, k)),
            # bias: resident
            pl.BlockSpec((1, N), lambda k: (0, 0)),
        ],
        # Output block resident across the whole reduction.
        out_specs=pl.BlockSpec((B, N), lambda k: (0, 0)),
        compiler_params=pltpu.CompilerParams(
            dimension_semantics=("arbitrary",),   # K walk is a reduction
            # (10, tk) W tile pads 10 -> 16 sublanes; double-buffered x+W at
            # tk=98304 is ~15-18 MiB, over v5e's 16 MiB default scoped limit.
            vmem_limit_bytes=28 * 1024 * 1024,
        ),
        cost_estimate=cost,
    )(x, w, bias2d)


if __name__ == "__main__":
    key = jax.random.PRNGKey(0)
    k_x, k_w, k_b = jax.random.split(key, 3)

    B = 4  # small batch; 196608 in_features is inherent to the module
    x = jax.random.normal(k_x, (B, IN_FEATURES), dtype=jnp.float32)

    # nn.Linear-style init; weight kept in PyTorch (out, in) layout.
    bound = 1.0 / (IN_FEATURES ** 0.5)
    w = jax.random.uniform(
        k_w, (OUT_FEATURES, IN_FEATURES), dtype=jnp.float32, minval=-bound, maxval=bound
    )
    b = jax.random.uniform(
        k_b, (OUT_FEATURES,), dtype=jnp.float32, minval=-bound, maxval=bound
    )

    y = pallas_linear(x, w, b)
    y = jax.block_until_ready(y)

    # Reference check against plain JAX (same default MXU precision class).
    y_ref = x @ w.T + b
    assert y.shape == (B, OUT_FEATURES)
    assert jnp.allclose(y, y_ref, atol=2e-2, rtol=1e-2), (
        f"mismatch vs reference, max abs diff = {jnp.max(jnp.abs(y - y_ref))}"
    )

    print("KERNEL_OK")
</pallas_src>

<mosaic_0001>
module attributes {stable_mosaic.version = 11 : i64} {
  func.func @_linear_kernel(%arg0: i32, %arg1: memref<4x98304xf32, #tpu.memory_space<vmem>>, %arg2: memref<10x98304xf32, #tpu.memory_space<vmem>>, %arg3: memref<1x10xf32, #tpu.memory_space<vmem>>, %arg4: memref<4x10xf32, #tpu.memory_space<vmem>>) attributes {dimension_semantics = [#tpu.dimension_semantics<arbitrary>], iteration_bounds = array<i64: 2>, scalar_prefetch = 0 : i64, scratch_operands = 0 : i64, tpu.core_type = #tpu.core_type<tc>, window_params = [{transform_indices = @transform_0, window_bounds = array<i64: 4, 98304>}, {transform_indices = @transform_1, window_bounds = array<i64: 10, 98304>}, {pipeline_mode = #tpu.pipeline_mode<synchronous>, transform_indices = @transform_2, window_bounds = array<i64: 1, 10>}, {pipeline_mode = #tpu.pipeline_mode<synchronous>, transform_indices = @transform_3, window_bounds = array<i64: 4, 10>}]} {
    %c0_i32 = arith.constant 0 : i32
    %0 = arith.cmpi eq, %arg0, %c0_i32 : i32
    %1 = arith.extui %0 : i1 to i32
    %c0_i32_0 = arith.constant 0 : i32
    %2 = arith.cmpi ne, %1, %c0_i32_0 : i32
    scf.if %2 {
      %c0_8 = arith.constant 0 : index
      %c0_9 = arith.constant 0 : index
      %9 = vector.load %arg3[%c0_8, %c0_9] : memref<1x10xf32, #tpu.memory_space<vmem>>, vector<1x10xf32>
      %10 = vector.shape_cast %9 : vector<1x10xf32> to vector<1x10xf32>
      %11 = vector.broadcast %10 : vector<1x10xf32> to vector<4x10xf32>
      %c0_10 = arith.constant 0 : index
      %c0_11 = arith.constant 0 : index
      %12 = vector.load %arg4[%c0_10, %c0_11] : memref<4x10xf32, #tpu.memory_space<vmem>>, vector<4x10xf32>
      tpu.vector_store %arg4[%c0_10, %c0_11], %11 {strides = array<i32>} : memref<4x10xf32, #tpu.memory_space<vmem>>, vector<4x10xf32>,
    } else {
    }
    %c0 = arith.constant 0 : index
    %c0_1 = arith.constant 0 : index
    %3 = vector.load %arg4[%c0, %c0_1] : memref<4x10xf32, #tpu.memory_space<vmem>>, vector<4x10xf32>
    %c0_2 = arith.constant 0 : index
    %c0_3 = arith.constant 0 : index
    %4 = vector.load %arg1[%c0_2, %c0_3] : memref<4x98304xf32, #tpu.memory_space<vmem>>, vector<4x98304xf32>
    %c0_4 = arith.constant 0 : index
    %c0_5 = arith.constant 0 : index
    %5 = vector.load %arg2[%c0_4, %c0_5] : memref<10x98304xf32, #tpu.memory_space<vmem>>, vector<10x98304xf32>
    %cst = arith.constant dense<0.000000e+00> : vector<4x10xf32>
    %6 = tpu.matmul %4, %5, %cst {dimension_numbers = #tpu.dot_dimension_numbers<[1], [1], [0], [0], [0, 0, 1, 0], [], []>} : vector<4x98304xf32>, vector<10x98304xf32>, vector<4x10xf32> -> vector<4x10xf32>
    %7 = arith.addf %3, %6 : vector<4x10xf32>
    %c0_6 = arith.constant 0 : index
    %c0_7 = arith.constant 0 : index
    %8 = vector.load %arg4[%c0_6, %c0_7] : memref<4x10xf32, #tpu.memory_space<vmem>>, vector<4x10xf32>
    tpu.vector_store %arg4[%c0_6, %c0_7], %7 {strides = array<i32>} : memref<4x10xf32, #tpu.memory_space<vmem>>, vector<4x10xf32>,
    return
  }
  func.func @transform_0(%arg0: i32) -> (i32, i32) {
    %c0_i32 = arith.constant 0 : i32
    %c0_i32_0 = arith.constant 0 : i32
    return %c0_i32, %arg0 : i32, i32
  }
  func.func @transform_1(%arg0: i32) -> (i32, i32) {
    %c0_i32 = arith.constant 0 : i32
    %c0_i32_0 = arith.constant 0 : i32
    return %c0_i32, %arg0 : i32, i32
  }
  func.func @transform_2(%arg0: i32) -> (i32, i32) {
    %c0_i32 = arith.constant 0 : i32
    %c0_i32_0 = arith.constant 0 : i32
    %c0_i32_1 = arith.constant 0 : i32
    return %c0_i32, %c0_i32_0 : i32, i32
  }
  func.func @transform_3(%arg0: i32) -> (i32, i32) {
    %c0_i32 = arith.constant 0 : i32
    %c0_i32_0 = arith.constant 0 : i32
    %c0_i32_1 = arith.constant 0 : i32
    return %c0_i32, %c0_i32_0 : i32, i32
  }
}

</mosaic_0001>

<bundles_post_ra>
// kernel: tpu_custom_call.1
= control target key start
LH: loop header
LB: loop body
LE: loop exit
PB: predicated region body
PF: predicated region fallthrough
CT: control target
= control target key end

     0   :  { %8 = vsyncpa [#allocation3], 0  ;;  %s24437_s0 = inlined_call_operand.hbm [shape: f32[4,196608], index: 0, kind: input, shape index: {}]   ;;  %s24438_s1 = inlined_call_operand.hbm [shape: f32[10,196608], index: 1, kind: input, shape index: {}]   ;;  %s24439_s2 = inlined_call_operand.hbm [shape: f32[1,10], index: 2, kind: input, shape index: {}]   ;;  %s24440_s3 = inlined_call_operand.hbm [shape: f32[4,10], index: 3, kind: output, shape index: {}]  }
   0x1   :  { %10 = vsyncpa [#allocation3 + $0x1], 0 }
   0x2   :  { %11 = vsyncpa [#allocation6], 0 }
   0x3   :  { %13 = vsyncpa [#allocation6 + $0x1], 0 }
   0x4   :  { %14 = vsyncpa [#allocation4], 0  ;;  %s20203_s12 = smov 0   ;;  %s20205_s13 = smov 0  }
   0x5   :  { %s20207_s14 = smov 0   ;;  %s20209_s15 = smov 0  }
   0x6 LB: > { %s20222_s16 = sadd.s32 4294967295, %s20176_s15   ;;  %p40_p0 = scmp.ne.s32.totalorder %s20168_s13, %s20164_s12  ;;  %s20176_s15 = sphi %s20209_s15, %s24447_s15   ;;  %s20172_s14 = sphi %s20207_s14, %s24446_s14   ;;  %s20168_s13 = sphi %s20205_s13, %s24445_s13   ;;  %s20164_s12 = sphi %s20203_s12, %s24444_s12  }
   0x7   : > { %p41_p1 = scmp.eq.s32.totalorder %s20222_s16, 0  ;;  %p19928_p2 = scmp.ge.s32.totalorder %s20176_s15, 1 }
   0x8   : > { %p119_p3 = scmp.lt.s32.totalorder %s20176_s15, 3  ;;  %p19929_p4 = scmp.ne.s32.totalorder %s20222_s16, 0 }
   0x9   : > { %p20231_p5 = por %p41_p1, %p40_p0  ;;  %s131_s20 = sshll.u32 %s24439_s2, 4  ;;  %s132_s20 = int_to_ptr.hbm [resolvable:$true] %s131_s20 }
   0xa   : > { %p20238_p6 = pnand %p19928_p2, %p119_p3  ;;  %s20178_s22 = smov [#allocation7]  }
   0xb   : > { %s133_s23 = sshll.u32 %s20178_s22, 4  ;;  %s20247_s24 = sadd.s32 1, %s20176_s15   ;;  %s134_s23 = int_to_ptr.vmem [resolvable:$true] %s133_s23 }
   0xc   : > { %p19958_p7 = pneg %p20238_p6  ;;  %s27_s25 = sadd.s32 1, %s20172_s14 }
   0xd   : > { %s24_s26 = ssub.s32 %s20176_s15, %s20247_s24  ;;  %p34_p10 = scmp.ne.s32.totalorder %s20172_s14, %s20168_s13 }
   0xe   : > { %p19959_p8 = pnand %p19958_p7, %p41_p1  ;;  %p25_p9 = scmp.eq.s32.totalorder %s24_s26, 0 }
   0xf   : > { %p35_p11 = scmp.eq.s32.totalorder %s20176_s15, 0  ;;  %p19970_p12 = scmp.lt.s32.totalorder %s20176_s15, 2 }
  0x10   : > { %19961 = dma.hbm_to_vmem [thread:$0]  (!%p19959_p8), %s132_s20, 16, %s134_s23, [#allocation6]  }
  0x11   : > { %s20257_s27 = scalar_select %p25_p9, %s20172_s14, %s27_s25  }
  0x12   : > { %p36_p13 = por %p35_p11, %p34_p10  ;;  %s144_s28 = sand.u32 1, %s20172_s14  }
  0x13   : > { %s19942_s29 = smul.u32 3072, %s144_s28  ;;  %s145_s12 = scalar_lea.sflag [#allocation3], %s144_s28 }
  0x14   : > { %s19940_s30 = smul.u32 3072, %s20176_s15  ;;  %p20261_p0 = pnand %p19970_p12, %p36_p13 }
  0x15   : > { %s19943_s5 = smul.u32 12288, %s144_s28  ;;  %s148_s9 = scalar_lea.vmem [#allocation2], %s19942_s29 }
  0x16   : > { %s153_s8 = scalar_lea.hbm %s24437_s0, %s19940_s30  ;;  %s157_s10 = sshll.u32 %s148_s9, 4  ;;  %s158_s10 = int_to_ptr.vmem [resolvable:$true] %s157_s10 }
  0x17   : > { %s155_s11 = sshll.u32 %s153_s8, 4  ;;  %p20046_p3 = pneg %p20261_p0  ;;  %s156_s11 = int_to_ptr.hbm [resolvable:$true] %s155_s11 }
  0x18   : > { %s20042_s18 = sshra.s32 %s156_s11, 4  ;;  %s20049_s23 = scalar_lea.hbm %s24437_s0, 6144  ;;  %s20043_s18 = int_to_ptr.hbm [resolvable:$true] %s20042_s18 }
  0x19   : > { %s20044_s19 = scalar_lea.hbm %s20043_s18, 3072  ;;  %p20050_p9 = scmp.lt.s32.totalorder %s20043_s18, %s24437_s0 }
  0x1a   : > { %p20045_p2 = scmp.ne.s32.totalorder %s20043_s18, %s20044_s19  ;;  %p20051_p10 = scmp.lt.s32.totalorder %s20049_s23, %s20044_s19 }
  0x1c   : > { %p20047_p7 = pnand %p20046_p3, %p20045_p2  ;;  %p20052_p11 = por %p20051_p10, %p20050_p9 }
  0x1e   : > { %p20048_p8 = pneg %p20047_p7 }
  0x20   : > { %p20053_p12 = pnand %p20052_p11, %p20048_p8 }
  0x22   : > { %20056 = shalt.err (!%p20053_p12)
}
  0x23   : > { %19965 = dma.hbm_to_vmem [thread:$0]  (!%p20261_p0), %s156_s11, 49152, %s158_s10, %s145_s12  }
  0x24   : > { %s164_s28 = sand.u32 1, %s20176_s15   ;;  %s168_s29 = scalar_lea.vmem [#allocation5], %s19943_s5 }
  0x25   : > { %s176_s30 = sshll.u32 %s168_s29, 4  ;;  %s19941_s6 = smul.u32 6144, %s20176_s15  ;;  %s177_s30 = int_to_ptr.vmem [resolvable:$true] %s176_s30 }
  0x26   : > { %s165_s19 = scalar_lea.sflag [#allocation6], %s164_s28  ;;  %s20079_s11 = scalar_lea.hbm %s24438_s1, 24576 }
  0x27   : > { %s173_s9 = scalar_lea.hbm %s24438_s1, %s19941_s6 }
  0x28   : > { %s174_s18 = sshll.u32 %s173_s9, 4  ;;  %s175_s18 = int_to_ptr.hbm [resolvable:$true] %s174_s18 }
  0x29   : > { %s20072_s20 = sshra.s32 %s175_s18, 4  ;;  %s20073_s20 = int_to_ptr.hbm [resolvable:$true] %s20072_s20 }
  0x2a   : > { %s20074_s22 = scalar_lea.hbm %s20073_s20, 12288  ;;  %p20080_p8 = scmp.lt.s32.totalorder %s20073_s20, %s24438_s1 }
  0x2b   : > { %p20075_p13 = scmp.ne.s32.totalorder %s20073_s20, %s20074_s22  ;;  %p20081_p9 = scmp.lt.s32.totalorder %s20079_s11, %s20074_s22 }
  0x2d   : > { %p20077_p2 = pnand %p20075_p13, %p20046_p3  ;;  %p20082_p10 = por %p20081_p9, %p20080_p8 }
  0x2f   : > { %p20078_p7 = pneg %p20077_p2 }
  0x31   : > { %p20083_p11 = pnand %p20082_p10, %p20078_p7 }
  0x33   : > { %20086 = shalt.err (!%p20083_p11)
}
  0x34   : > { %s20179_s23 = smov 196608   ;;  %s20180_s25 = smov 98304  }
  0x35   : > { %s20181_s26 = smov 6144   ;;  %188 = sbr.rel (%p20238_p6) target bundleno = 1754 (0x6da), region = 32 }
  0x36   : > { %19968 = dma.hbm_to_vmem [thread:$0]  (!%p20261_p0), %s175_s18, 196608, %s177_s30, %s165_s19, %s20179_s23, %s20180_s25, %s20181_s26  }
  0x37   : > { %s190_s28 = sand.u32 (!%p20238_p6), 1, %s20168_s13  }
  0x38   : > { %s19944_s29 = smul.u32 (!%p20238_p6), 3072, %s190_s28  ;;  %s191_s6 = scalar_lea.sflag (!%p20238_p6), [#allocation3], %s190_s28 }
  0x3a   : > { %s20300_s7 = scalar_lea.vmem [#allocation2], %s19944_s29 }
  0x3b   : > { %20147 = dma.done.wait (%p20231_p5), %s191_s6, 49152  }
  0x3c   : > { %20149 = vsyncadd (%p20231_p5), %s191_s6, 4294918144  ;;  %s200_s8 = sand.u32 1, %s20222_s16   ;;  %s19945_s4 = smul.u32 12288, %s190_s28 }
  0x3d   : > { %s201_s30 = scalar_lea.sflag [#allocation6], %s200_s8 }
  0x3e   : > { %s20307_s9 = scalar_lea.vmem [#allocation5], %s19945_s4 }
  0x3f   : > { %20151 = dma.done.wait (%p20231_p5), %s201_s30, 196608  }
  0x40   : > { %20153 = vsyncadd (%p20231_p5), %s201_s30, 4294770688 }
  0x41   : > { %20155 = dma.done.wait (%p41_p1), [#allocation6], 16  }
  0x42   : > { %20157 = vsyncadd (%p41_p1), [#allocation6], 4294967280  ;;  %238 = sbr.rel (%p19929_p4) target bundleno = 73 (0x49), region = 48 }
  0x47   : > { %v20011_v0 = vld [vmem:[#allocation7] ss:$0 sm:$0xff]  ;;  %vm243_vm0 = vcmask 76800  }
  0x48   : > { %244 = vst.msk [vmem:[#allocation8] sm:$0xf] %vm243_vm0, %v20011_v0 }
  0x49 PF: > { %v1400_v1 = vld [vmem:[%s20307_s9 + $0x1810] sm:$0x3]  ;;  %v1398_v2 = vld [vmem:[%s20307_s9 + $0x1800] sm:$0x3]  ;;  %v1399_v3 = vld [vmem:[%s20307_s9 + $0x1808] sm:$0x3] }
  0x4a   : > { %4527 = vmatpush.xpose.msra.mxu2 %v1400_v1  ;;  %4487 = vmatpush.xpose.msra.mxu0 %v1398_v2  ;;  %v1401_v4 = vld [vmem:[%s20307_s9 + $0x1818] sm:$0x3]  ;;  %v632_v5 = vld [vmem:[%s20307_s9 + $0x10] sm:$0xff]  ;;  %v630_v6 = vld [vmem:[%s20307_s9] sm:$0xff]  ;;  %s20182_s17 = smov [#allocation8]   ;;  %s19844_s20 = sshll.u32 %s24440_s3, 4  ;;  %s19845_s20 = int_to_ptr.hbm [resolvable:$true] %s19844_s20 }
  0x4b   : > { %4507 = vmatpush.xpose.msra.mxu1 %v1399_v3  ;;  %4547 = vmatpush.xpose.msra.mxu3 %v1401_v4  ;;  %v247_v7 = vld [vmem:[%s20300_s7 + $0x8] sm:$0xff]  ;;  %v633_v9 = vld [vmem:[%s20307_s9 + $0x18] sm:$0xff]  ;;  %v246_v10 = vld [vmem:[%s20300_s7] sm:$0xff]  ;;  %s19842_s21 = sshll.u32 %s20182_s17, 4  ;;  %vm19834_vm1 = vcmask 76800   ;;  %p19972_p1 = scmp.eq.s32.totalorder %s20222_s16, 1  ;;  %s19843_s21 = int_to_ptr.vmem [resolvable:$true] %s19842_s21 }
  0x4c   : > { %v631_v8 = vld [vmem:[%s20307_s9 + $0x8] sm:$0xff]  ;;  %2552 = vst [vmem:[#allocation1 + $0x10] ss:$2 sm:$0xff] %v247_v7  ;;  %v1404_v11 = vld [vmem:[%s20307_s9 + $0x1830] sm:$0x3]  ;;  %v249_v15 = vld [vmem:[%s20300_s7 + $0x18] sm:$0xff] }
  0x4d   : > { %2550 = vst [vmem:[#allocation1] ss:$2 sm:$0xff] %v246_v10  ;;  %v1402_v12 = vld [vmem:[%s20307_s9 + $0x1820] sm:$0x3]  ;;  %v1405_v13 = vld [vmem:[%s20307_s9 + $0x1838] sm:$0x3] }
  0x4e   : > { %4528 = vmatpush.xpose.msra.mxu2 %v632_v5  ;;  %4488 = vmatpush.xpose.msra.mxu0 %v630_v6  ;;  %v1403_v14 = vld [vmem:[%s20307_s9 + $0x1828] sm:$0x3]  ;;  %2556 = vst [vmem:[#allocation1 + $0x30] ss:$2 sm:$0xff] %v249_v15  ;;  %v248_v16 = vld [vmem:[%s20300_s7 + $0x10] sm:$0xff]  ;;  %v634_v18 = vld [vmem:[%s20307_s9 + $0x20] sm:$0xff] }
  0x4f   : > { %4508 = vmatpush.xpose.msra.mxu1 %v631_v8  ;;  %4548 = vmatpush.xpose.msra.mxu3 %v633_v9  ;;  %v636_v17 = vld [vmem:[%s20307_s9 + $0x30] sm:$0xff]  ;;  %2554 = vst [vmem:[#allocation1 + $0x20] ss:$2 sm:$0xff] %v248_v16  ;;  %v637_v19 = vld [vmem:[%s20307_s9 + $0x38] sm:$0xff]  ;;  %v635_v20 = vld [vmem:[%s20307_s9 + $0x28] sm:$0xff] }
  0x50   : > { %v1408_v23 = vld [vmem:[%s20307_s9 + $0x1850] sm:$0x3]  ;;  %v1406_v26 = vld [vmem:[%s20307_s9 + $0x1840] sm:$0x3]  ;;  %v1409_v27 = vld [vmem:[%s20307_s9 + $0x1858] sm:$0x3] }
  0x51   : > { %v251_v28 = vld [vmem:[%s20300_s7 + $0x28] sm:$0xff]  ;;  %v250_v30 = vld [vmem:[%s20300_s7 + $0x20] sm:$0xff]  ;;  %v253_v35 = vld [vmem:[%s20300_s7 + $0x38] sm:$0xff] }
  0x52   : > { %4607 = vmatpush.xpose.msrb.mxu2 %v1404_v11  ;;  %4567 = vmatpush.xpose.msrb.mxu0 %v1402_v12  ;;  %v1407_v29 = vld [vmem:[%s20307_s9 + $0x1848] sm:$0x3]  ;;  %v640_v36 = vld [vmem:[%s20307_s9 + $0x50] sm:$0xff]  ;;  %v638_v37 = vld [vmem:[%s20307_s9 + $0x40] sm:$0xff] }
  0x53   : > { %4627 = vmatpush.xpose.msrb.mxu3 %v1405_v13  ;;  %4587 = vmatpush.xpose.msrb.mxu1 %v1403_v14  ;;  %v2559_v21 = vld.sshfl [vmem:[#allocation1 + $0x10] sm:$0xff pattern:$0x75316420]  ;;  %v2560_v22 = vld.sshfl [vmem:[#allocation1 + $0x18] sm:$0xff pattern:$0x75316420] }
  0x54   : > { %4529 = vmatmul.f32.vlgmr.msra.gmra.mxu2 %v2559_v21  ;;  %v2557_v24 = vld.sshfl [vmem:[#allocation1] sm:$0xff pattern:$0x75316420]  ;;  %v2558_v25 = vld.sshfl [vmem:[#allocation1 + $0x8] sm:$0xff pattern:$0x75316420]  ;;  %4549 = vmatmul.f32.vlgmr.msra.gmra.mxu3 %v2560_v22 }
  0x55   : > { %4489 = vmatmul.f32.vlgmr.msra.gmra.mxu0 %v2557_v24  ;;  %4509 = vmatmul.f32.vlgmr.msra.gmra.mxu1 %v2558_v25  ;;  %2566 = vst [vmem:[#allocation1 + $0x10] ss:$2 sm:$0xff] %v251_v28  ;;  %v2563_v31 = vld.sshfl [vmem:[#allocation1 + $0x30] sm:$0xff pattern:$0x75316420]  ;;  %v252_v38 = vld [vmem:[%s20300_s7 + $0x30] sm:$0xff] }
  0x56   : > { %4608 = vmatpush.xpose.msrb.mxu2 %v636_v17  ;;  %4568 = vmatpush.xpose.msrb.mxu0 %v634_v18  ;;  %v2564_v32 = vld.sshfl [vmem:[#allocation1 + $0x38] sm:$0xff pattern:$0x75316420]  ;;  %v2561_v33 = vld.sshfl [vmem:[#allocation1 + $0x20] sm:$0xff pattern:$0x75316420] }
  0x57   : > { %4628 = vmatpush.xpose.msrb.mxu3 %v637_v19  ;;  %4588 = vmatpush.xpose.msrb.mxu1 %v635_v20  ;;  %2565 = vst [vmem:[#allocation1] ss:$2 sm:$0xff] %v250_v30  ;;  %v2562_v34 = vld.sshfl [vmem:[#allocation1 + $0x28] sm:$0xff pattern:$0x75316420]  ;;  %v641_v39 = vld [vmem:[%s20307_s9 + $0x58] sm:$0xff] }
  0x58   : > { %2568 = vst [vmem:[#allocation1 + $0x30] ss:$2 sm:$0xff] %v253_v35  ;;  %v639_v40 = vld [vmem:[%s20307_s9 + $0x48] sm:$0xff]  ;;  %v1412_v41 = vld [vmem:[%s20307_s9 + $0x1870] sm:$0x3]  ;;  %v642_v49 = vld [vmem:[%s20307_s9 + $0x60] sm:$0xff] }
  0x59   : > { %2567 = vst [vmem:[#allocation1 + $0x20] ss:$2 sm:$0xff] %v252_v38  ;;  %v1410_v42 = vld [vmem:[%s20307_s9 + $0x1860] sm:$0x3]  ;;  %v1413_v43 = vld [vmem:[%s20307_s9 + $0x1878] sm:$0x3] }
  0x5a   : > { %4687 = vmatpush.xpose.msra.mxu2 %v1408_v23  ;;  %4647 = vmatpush.xpose.msra.mxu0 %v1406_v26  ;;  %v1411_v44 = vld [vmem:[%s20307_s9 + $0x1868] sm:$0x3]  ;;  %v644_v48 = vld [vmem:[%s20307_s9 + $0x70] sm:$0xff]  ;;  %v254_v50 = vld [vmem:[%s20300_s7 + $0x40] sm:$0xff] }
  0x5b   : > { %4707 = vmatpush.xpose.msra.mxu3 %v1409_v27  ;;  %4667 = vmatpush.xpose.msra.mxu1 %v1407_v29  ;;  %v255_v45 = vld [vmem:[%s20300_s7 + $0x48] sm:$0xff]  ;;  %v645_v53 = vld [vmem:[%s20307_s9 + $0x78] sm:$0xff]  ;;  %v1416_v55 = vld [vmem:[%s20307_s9 + $0x1890] sm:$0x3] }
  0x5c   : > { %4609 = vmatmul.f32.vlgmr.msrb.gmra.mxu2 %v2563_v31  ;;  %4629 = vmatmul.f32.vlgmr.msrb.gmra.mxu3 %v2564_v32  ;;  %v2571_v46 = vld.sshfl [vmem:[#allocation1 + $0x10] sm:$0xff pattern:$0x75316420]  ;;  %v2572_v47 = vld.sshfl [vmem:[#allocation1 + $0x18] sm:$0xff pattern:$0x75316420] }
  0x5d   : > { %4569 = vmatmul.f32.vlgmr.msrb.gmra.mxu0 %v2561_v33  ;;  %4589 = vmatmul.f32.vlgmr.msrb.gmra.mxu1 %v2562_v34  ;;  %2578 = vst [vmem:[#allocation1 + $0x10] ss:$2 sm:$0xff] %v255_v45  ;;  %v643_v54 = vld [vmem:[%s20307_s9 + $0x68] sm:$0xff]  ;;  %v1414_v56 = vld [vmem:[%s20307_s9 + $0x1880] sm:$0x3]  ;;  %v257_v61 = vld [vmem:[%s20300_s7 + $0x58] sm:$0xff] }
  0x5e   : > { %4688 = vmatpush.xpose.msra.mxu2 %v640_v36  ;;  %4648 = vmatpush.xpose.msra.mxu0 %v638_v37  ;;  %v2569_v51 = vld.sshfl [vmem:[#allocation1] sm:$0xff pattern:$0x75316420]  ;;  %v2570_v52 = vld.sshfl [vmem:[#allocation1 + $0x8] sm:$0xff pattern:$0x75316420] }
  0x5f   : > { %4708 = vmatpush.xpose.msra.mxu3 %v641_v39  ;;  %4668 = vmatpush.xpose.msra.mxu1 %v639_v40  ;;  %v1417_v57 = vld [vmem:[%s20307_s9 + $0x1898] sm:$0x3]  ;;  %2577 = vst [vmem:[#allocation1] ss:$2 sm:$0xff] %v254_v50  ;;  %v1415_v59 = vld [vmem:[%s20307_s9 + $0x1888] sm:$0x3] }
  0x60   : > { %v2575_v58 = vld.sshfl [vmem:[#allocation1 + $0x30] sm:$0xff pattern:$0x75316420]  ;;  %v2576_v60 = vld.sshfl [vmem:[#allocation1 + $0x38] sm:$0xff pattern:$0x75316420] }
  0x61   : > { %v256_v62 = vld [vmem:[%s20300_s7 + $0x50] sm:$0xff]  ;;  %2580 = vst [vmem:[#allocation1 + $0x30] ss:$2 sm:$0xff] %v257_v61  ;;  %v2573_v63 = vld.sshfl [vmem:[#allocation1 + $0x20] sm:$0xff pattern:$0x75316420] }
  0x62   : > { %4767 = vmatpush.xpose.msrb.mxu2 %v1412_v41  ;;  %4727 = vmatpush.xpose.msrb.mxu0 %v1410_v42  ;;  %v2574_v0 = vld.sshfl [vmem:[#allocation1 + $0x28] sm:$0xff pattern:$0x75316420]  ;;  %v648_v1 = vld [vmem:[%s20307_s9 + $0x90] sm:$0xff]  ;;  %v649_v3 = vld [vmem:[%s20307_s9 + $0x98] sm:$0xff] }
  0x63   : > { %4787 = vmatpush.xpose.msrb.mxu3 %v1413_v43  ;;  %4747 = vmatpush.xpose.msrb.mxu1 %v1411_v44  ;;  %v646_v2 = vld [vmem:[%s20307_s9 + $0x80] sm:$0xff]  ;;  %2579 = vst [vmem:[#allocation1 + $0x20] ss:$2 sm:$0xff] %v256_v62  ;;  %v647_v4 = vld [vmem:[%s20307_s9 + $0x88] sm:$0xff]  ;;  %v1420_v11 = vld [vmem:[%s20307_s9 + $0x18b0] sm:$0x3] }
  0x64   : > { %4689 = vmatmul.f32.vlgmr.msra.gmra.mxu2 %v2571_v46  ;;  %4709 = vmatmul.f32.vlgmr.msra.gmra.mxu3 %v2572_v47  ;;  %v2583_v5 = vld.sshfl [vmem:[#allocation1 + $0x10] sm:$0xff pattern:$0x75316420]  ;;  %v2584_v8 = vld.sshfl [vmem:[#allocation1 + $0x18] sm:$0xff pattern:$0x75316420] }
  0x65   : > { %4649 = vmatmul.f32.vlgmr.msra.gmra.mxu0 %v2569_v51  ;;  %4669 = vmatmul.f32.vlgmr.msra.gmra.mxu1 %v2570_v52  ;;  %v259_v6 = vld [vmem:[%s20300_s7 + $0x68] sm:$0xff]  ;;  %v258_v10 = vld [vmem:[%s20300_s7 + $0x60] sm:$0xff]  ;;  %v1421_v13 = vld [vmem:[%s20307_s9 + $0x18b8] sm:$0x3] }
  0x66   : > { %4768 = vmatpush.xpose.msrb.mxu2 %v644_v48  ;;  %4728 = vmatpush.xpose.msrb.mxu0 %v642_v49  ;;  %v2581_v7 = vld.sshfl [vmem:[#allocation1] sm:$0xff pattern:$0x75316420]  ;;  %v2582_v9 = vld.sshfl [vmem:[#allocation1 + $0x8] sm:$0xff pattern:$0x75316420] }
  0x67   : > { %4788 = vmatpush.xpose.msrb.mxu3 %v645_v53  ;;  %4748 = vmatpush.xpose.msrb.mxu1 %v643_v54  ;;  %2590 = vst [vmem:[#allocation1 + $0x10] ss:$2 sm:$0xff] %v259_v6  ;;  %v1418_v12 = vld [vmem:[%s20307_s9 + $0x18a0] sm:$0x3]  ;;  %v1419_v14 = vld [vmem:[%s20307_s9 + $0x18a8] sm:$0x3] }
  0x68   : > { %2589 = vst [vmem:[#allocation1] ss:$2 sm:$0xff] %v258_v10  ;;  %v2587_v15 = vld.sshfl [vmem:[#allocation1 + $0x30] sm:$0xff pattern:$0x75316420]  ;;  %v261_v17 = vld [vmem:[%s20300_s7 + $0x78] sm:$0xff] }
  0x69   : > { %v2588_v16 = vld.sshfl [vmem:[#allocation1 + $0x38] sm:$0xff pattern:$0x75316420]  ;;  %v650_v19 = vld [vmem:[%s20307_s9 + $0xa0] sm:$0xff]  ;;  %v653_v21 = vld [vmem:[%s20307_s9 + $0xb8] sm:$0xff] }
  0x6a   : > { %4847 = vmatpush.xpose.msra.mxu2 %v1416_v55  ;;  %4807 = vmatpush.xpose.msra.mxu0 %v1414_v56  ;;  %v652_v18 = vld [vmem:[%s20307_s9 + $0xb0] sm:$0xff]  ;;  %2592 = vst [vmem:[#allocation1 + $0x30] ss:$2 sm:$0xff] %v261_v17  ;;  %v651_v22 = vld [vmem:[%s20307_s9 + $0xa8] sm:$0xff]  ;;  %v1422_v26 = vld [vmem:[%s20307_s9 + $0x18c0] sm:$0x3] }
  0x6b   : > { %4867 = vmatpush.xpose.msra.mxu3 %v1417_v57  ;;  %4827 = vmatpush.xpose.msra.mxu1 %v1415_v59  ;;  %v260_v20 = vld [vmem:[%s20300_s7 + $0x70] sm:$0xff]  ;;  %v2585_v24 = vld.sshfl [vmem:[#allocation1 + $0x20] sm:$0xff pattern:$0x75316420]  ;;  %v1423_v28 = vld [vmem:[%s20307_s9 + $0x18c8] sm:$0x3] }
  0x6c   : > { %4769 = vmatmul.f32.vlgmr.msrb.gmra.mxu2 %v2575_v58  ;;  %4789 = vmatmul.f32.vlgmr.msrb.gmra.mxu3 %v2576_v60  ;;  %v1424_v23 = vld [vmem:[%s20307_s9 + $0x18d0] sm:$0x3]  ;;  %v2586_v25 = vld.sshfl [vmem:[#allocation1 + $0x28] sm:$0xff pattern:$0x75316420]  ;;  %v263_v31 = vld [vmem:[%s20300_s7 + $0x88] sm:$0xff] }
  0x6d   : > { %4729 = vmatmul.f32.vlgmr.msrb.gmra.mxu0 %v2573_v63  ;;  %4749 = vmatmul.f32.vlgmr.msrb.gmra.mxu1 %v2574_v0  ;;  %v1425_v27 = vld [vmem:[%s20307_s9 + $0x18d8] sm:$0x3]  ;;  %2591 = vst [vmem:[#allocation1 + $0x20] ss:$2 sm:$0xff] %v260_v20  ;;  %v262_v32 = vld [vmem:[%s20300_s7 + $0x80] sm:$0xff]  ;;  %v656_v33 = vld [vmem:[%s20307_s9 + $0xd0] sm:$0xff] }
  0x6e   : > { %4848 = vmatpush.xpose.msra.mxu2 %v648_v1  ;;  %4808 = vmatpush.xpose.msra.mxu0 %v646_v2  ;;  %v2595_v29 = vld.sshfl [vmem:[#allocation1 + $0x10] sm:$0xff pattern:$0x75316420]  ;;  %v2596_v30 = vld.sshfl [vmem:[#allocation1 + $0x18] sm:$0xff pattern:$0x75316420] }
  0x6f   : > { %4868 = vmatpush.xpose.msra.mxu3 %v649_v3  ;;  %4828 = vmatpush.xpose.msra.mxu1 %v647_v4  ;;  %2602 = vst [vmem:[#allocation1 + $0x10] ss:$2 sm:$0xff] %v263_v31  ;;  %v2593_v34 = vld.sshfl [vmem:[#allocation1] sm:$0xff pattern:$0x75316420]  ;;  %v654_v36 = vld [vmem:[%s20307_s9 + $0xc0] sm:$0xff] }
  0x70   : > { %v2594_v35 = vld.sshfl [vmem:[#allocation1 + $0x8] sm:$0xff pattern:$0x75316420]  ;;  %v657_v37 = vld [vmem:[%s20307_s9 + $0xd8] sm:$0xff]  ;;  %v655_v38 = vld [vmem:[%s20307_s9 + $0xc8] sm:$0xff] }
  0x71   : > { %2601 = vst [vmem:[#allocation1] ss:$2 sm:$0xff] %v262_v32  ;;  %v1428_v39 = vld [vmem:[%s20307_s9 + $0x18f0] sm:$0x3]  ;;  %v1426_v40 = vld [vmem:[%s20307_s9 + $0x18e0] sm:$0x3] }
  0x72   : > { %4927 = vmatpush.xpose.msrb.mxu2 %v1420_v11  ;;  %4887 = vmatpush.xpose.msrb.mxu0 %v1418_v12  ;;  %v2599_v41 = vld.sshfl [vmem:[#allocation1 + $0x30] sm:$0xff pattern:$0x75316420]  ;;  %v265_v42 = vld [vmem:[%s20300_s7 + $0x98] sm:$0xff]  ;;  %v264_v46 = vld [vmem:[%s20300_s7 + $0x90] sm:$0xff] }
  0x73   : > { %4947 = vmatpush.xpose.msrb.mxu3 %v1421_v13  ;;  %4907 = vmatpush.xpose.msrb.mxu1 %v1419_v14  ;;  %v2600_v44 = vld.sshfl [vmem:[#allocation1 + $0x38] sm:$0xff pattern:$0x75316420]  ;;  %v1429_v47 = vld [vmem:[%s20307_s9 + $0x18f8] sm:$0x3]  ;;  %v267_v52 = vld [vmem:[%s20300_s7 + $0xa8] sm:$0xff] }
  0x74   : > { %4849 = vmatmul.f32.vlgmr.msra.gmra.mxu2 %v2583_v5  ;;  %4869 = vmatmul.f32.vlgmr.msra.gmra.mxu3 %v2584_v8  ;;  %v20396_v43 = vld.sshfl [vmem:[#allocation1 + $0x20] sm:$0xff pattern:$0x75316420]  ;;  %v2598_v45 = vld.sshfl [vmem:[#allocation1 + $0x28] sm:$0xff pattern:$0x75316420] }
  0x75   : > { %4809 = vmatmul.f32.vlgmr.msra.gmra.mxu0 %v2581_v7  ;;  %4829 = vmatmul.f32.vlgmr.msra.gmra.mxu1 %v2582_v9  ;;  %2604 = vst [vmem:[#allocation1 + $0x30] ss:$2 sm:$0xff] %v265_v42  ;;  %v1427_v48 = vld [vmem:[%s20307_s9 + $0x18e8] sm:$0x3]  ;;  %v660_v50 = vld [vmem:[%s20307_s9 + $0xf0] sm:$0xff]  ;;  %v658_v53 = vld [vmem:[%s20307_s9 + $0xe0] sm:$0xff] }
  0x76   : > { %4928 = vmatpush.xpose.msrb.mxu2 %v652_v18  ;;  %4888 = vmatpush.xpose.msrb.mxu0 %v650_v19  ;;  %2603 = vst [vmem:[#allocation1 + $0x20] ss:$2 sm:$0xff] %v264_v46  ;;  %v20401_v49 = vld.sshfl [vmem:[#allocation1 + $0x10] sm:$0xff pattern:$0x75316420]  ;;  %v661_v54 = vld [vmem:[%s20307_s9 + $0xf8] sm:$0xff] }
  0x77   : > { %4948 = vmatpush.xpose.msrb.mxu3 %v653_v21  ;;  %4908 = vmatpush.xpose.msrb.mxu1 %v651_v22  ;;  %v20404_v51 = vld.sshfl [vmem:[#allocation1 + $0x18] sm:$0xff pattern:$0x75316420]  ;;  %v266_v55 = vld [vmem:[%s20300_s7 + $0xa0] sm:$0xff]  ;;  %v659_v56 = vld [vmem:[%s20307_s9 + $0xe8] sm:$0xff] }
  0x78   : > { %2614 = vst [vmem:[#allocation1 + $0x10] ss:$2 sm:$0xff] %v267_v52  ;;  %v1432_v57 = vld [vmem:[%s20307_s9 + $0x1910] sm:$0x3]  ;;  %v1430_v59 = vld [vmem:[%s20307_s9 + $0x1900] sm:$0x3] }
  0x79   : > { %v2605_v58 = vld.sshfl [vmem:[#allocation1] sm:$0xff pattern:$0x75316420]  ;;  %v2606_v60 = vld.sshfl [vmem:[#allocation1 + $0x8] sm:$0xff pattern:$0x75316420] }
  0x7a   : > { %5007 = vmatpush.xpose.msra.mxu2 %v1424_v23  ;;  %4967 = vmatpush.xpose.msra.mxu0 %v1422_v26  ;;  %v269_v61 = vld [vmem:[%s20300_s7 + $0xb8] sm:$0xff]  ;;  %v1431_v63 = vld [vmem:[%s20307_s9 + $0x1908] sm:$0x3]  ;;  %2613 = vst [vmem:[#allocation1] ss:$2 sm:$0xff] %v266_v55  ;;  %v664_v2 = vld [vmem:[%s20307_s9 + $0x110] sm:$0xff] }
  0x7b   : > { %5027 = vmatpush.xpose.msra.mxu3 %v1425_v27  ;;  %4987 = vmatpush.xpose.msra.mxu1 %v1423_v28  ;;  %v1433_v62 = vld [vmem:[%s20307_s9 + $0x1918] sm:$0x3]  ;;  %v662_v3 = vld [vmem:[%s20307_s9 + $0x100] sm:$0xff]  ;;  %v268_v5 = vld [vmem:[%s20300_s7 + $0xb0] sm:$0xff] }
  0x7c   : > { %4929 = vmatmul.f32.vlgmr.msrb.gmra.mxu2 %v2587_v15  ;;  %4949 = vmatmul.f32.vlgmr.msrb.gmra.mxu3 %v2588_v16  ;;  %v20416_v0 = vld.sshfl [vmem:[#allocation1 + $0x30] sm:$0xff pattern:$0x75316420]  ;;  %v20418_v1 = vld.sshfl [vmem:[#allocation1 + $0x38] sm:$0xff pattern:$0x75316420] }
  0x7d   : > { %4889 = vmatmul.f32.vlgmr.msrb.gmra.mxu0 %v2585_v24  ;;  %4909 = vmatmul.f32.vlgmr.msrb.gmra.mxu1 %v2586_v25  ;;  %2616 = vst [vmem:[#allocation1 + $0x30] ss:$2 sm:$0xff] %v269_v61  ;;  %v20422_v4 = vld.sshfl [vmem:[#allocation1 + $0x20] sm:$0xff pattern:$0x75316420]  ;;  %v271_v9 = vld [vmem:[%s20300_s7 + $0xc8] sm:$0xff] }
  0x7e   : > { %5008 = vmatpush.xpose.msra.mxu2 %v656_v33  ;;  %4968 = vmatpush.xpose.msra.mxu0 %v654_v36  ;;  %v20425_v6 = vld.sshfl [vmem:[#allocation1 + $0x28] sm:$0xff pattern:$0x75316420]  ;;  %v665_v10 = vld [vmem:[%s20307_s9 + $0x118] sm:$0xff]  ;;  %v663_v11 = vld [vmem:[%s20307_s9 + $0x108] sm:$0xff] }
  0x7f   : > { %5028 = vmatpush.xpose.msra.mxu3 %v657_v37  ;;  %4988 = vmatpush.xpose.msra.mxu1 %v655_v38  ;;  %v20427_v7 = vld.sshfl [vmem:[#allocation1 + $0x10] sm:$0xff pattern:$0x75316420]  ;;  %v20429_v8 = vld.sshfl [vmem:[#allocation1 + $0x18] sm:$0xff pattern:$0x75316420] }
  0x80   : > { %2615 = vst [vmem:[#allocation1 + $0x20] ss:$2 sm:$0xff] %v268_v5  ;;  %v1436_v12 = vld [vmem:[%s20307_s9 + $0x1930] sm:$0x3]  ;;  %v1434_v13 = vld [vmem:[%s20307_s9 + $0x1920] sm:$0x3] }
  0x81   : > { %2626 = vst [vmem:[#allocation1 + $0x10] ss:$2 sm:$0xff] %v271_v9  ;;  %v1437_v14 = vld [vmem:[%s20307_s9 + $0x1938] sm:$0x3]  ;;  %v1435_v15 = vld [vmem:[%s20307_s9 + $0x1928] sm:$0x3] }
  0x82   : > { %5087 = vmatpush.xpose.msrb.mxu2 %v1428_v39  ;;  %5047 = vmatpush.xpose.msrb.mxu0 %v1426_v40  ;;  %v668_v16 = vld [vmem:[%s20307_s9 + $0x130] sm:$0xff]  ;;  %v666_v17 = vld [vmem:[%s20307_s9 + $0x120] sm:$0xff]  ;;  %v20441_v18 = vld.sshfl [vmem:[#allocation1] sm:$0xff pattern:$0x75316420] }
  0x83   : > { %5107 = vmatpush.xpose.msrb.mxu3 %v1429_v47  ;;  %5067 = vmatpush.xpose.msrb.mxu1 %v1427_v48  ;;  %v270_v19 = vld [vmem:[%s20300_s7 + $0xc0] sm:$0xff]  ;;  %v273_v23 = vld [vmem:[%s20300_s7 + $0xd8] sm:$0xff]  ;;  %v667_v25 = vld [vmem:[%s20307_s9 + $0x128] sm:$0xff] }
  0x84   : > { %5009 = vmatmul.f32.vlgmr.msra.gmra.mxu2 %v2595_v29  ;;  %5029 = vmatmul.f32.vlgmr.msra.gmra.mxu3 %v2596_v30  ;;  %v20444_v20 = vld.sshfl [vmem:[#allocation1 + $0x8] sm:$0xff pattern:$0x75316420]  ;;  %v20446_v21 = vld.sshfl [vmem:[#allocation1 + $0x30] sm:$0xff pattern:$0x75316420] }
  0x85   : > { %4969 = vmatmul.f32.vlgmr.msra.gmra.mxu0 %v2593_v34  ;;  %4989 = vmatmul.f32.vlgmr.msra.gmra.mxu1 %v2594_v35  ;;  %v20448_v22 = vld.sshfl [vmem:[#allocation1 + $0x38] sm:$0xff pattern:$0x75316420]  ;;  %2625 = vst [vmem:[#allocation1] ss:$2 sm:$0xff] %v270_v19  ;;  %v669_v24 = vld [vmem:[%s20307_s9 + $0x138] sm:$0xff] }
  0x86   : > { %5088 = vmatpush.xpose.msrb.mxu2 %v660_v50  ;;  %5048 = vmatpush.xpose.msrb.mxu0 %v658_v53  ;;  %2628 = vst [vmem:[#allocation1 + $0x30] ss:$2 sm:$0xff] %v273_v23  ;;  %v1440_v26 = vld [vmem:[%s20307_s9 + $0x1950] sm:$0x3]  ;;  %v1438_v27 = vld [vmem:[%s20307_s9 + $0x1940] sm:$0x3] }
  0x87   : > { %5108 = vmatpush.xpose.msrb.mxu3 %v661_v54  ;;  %5068 = vmatpush.xpose.msrb.mxu1 %v659_v56  ;;  %v1441_v28 = vld [vmem:[%s20307_s9 + $0x1958] sm:$0x3]  ;;  %v1439_v29 = vld [vmem:[%s20307_s9 + $0x1948] sm:$0x3]  ;;  %v272_v32 = vld [vmem:[%s20300_s7 + $0xd0] sm:$0xff] }
  0x88   : > { %v20459_v30 = vld.sshfl [vmem:[#allocation1 + $0x20] sm:$0xff pattern:$0x75316420]  ;;  %v20461_v31 = vld.sshfl [vmem:[#allocation1 + $0x28] sm:$0xff pattern:$0x75316420] }
  0x89   : > { %2627 = vst [vmem:[#allocation1 + $0x20] ss:$2 sm:$0xff] %v272_v32  ;;  %v672_v33 = vld [vmem:[%s20307_s9 + $0x150] sm:$0xff]  ;;  %v20465_v34 = vld.sshfl [vmem:[#allocation1 + $0x10] sm:$0xff pattern:$0x75316420] }
  0x8a   : > { %5167 = vmatpush.xpose.msra.mxu2 %v1432_v57  ;;  %5127 = vmatpush.xpose.msra.mxu0 %v1430_v59  ;;  %v670_v35 = vld [vmem:[%s20307_s9 + $0x140] sm:$0xff]  ;;  %v20468_v36 = vld.sshfl [vmem:[#allocation1 + $0x18] sm:$0xff pattern:$0x75316420]  ;;  %v275_v37 = vld [vmem:[%s20300_s7 + $0xe8] sm:$0xff] }
  0x8b   : > { %5187 = vmatpush.xpose.msra.mxu3 %v1433_v62  ;;  %5147 = vmatpush.xpose.msra.mxu1 %v1431_v63  ;;  %v673_v38 = vld [vmem:[%s20307_s9 + $0x158] sm:$0xff]  ;;  %v671_v39 = vld [vmem:[%s20307_s9 + $0x148] sm:$0xff]  ;;  %2638 = vst [vmem:[#allocation1 + $0x10] ss:$2 sm:$0xff] %v275_v37  ;;  %v1444_v40 = vld [vmem:[%s20307_s9 + $0x1970] sm:$0x3] }
  0x8c   : > { %5089 = vmatmul.f32.vlgmr.msrb.gmra.mxu2 %v2599_v41  ;;  %5109 = vmatmul.f32.vlgmr.msrb.gmra.mxu3 %v2600_v44  ;;  %v1442_v41 = vld [vmem:[%s20307_s9 + $0x1960] sm:$0x3]  ;;  %v1445_v42 = vld [vmem:[%s20307_s9 + $0x1978] sm:$0x3]  ;;  %v676_v47 = vld [vmem:[%s20307_s9 + $0x170] sm:$0xff] }
  0x8d   : > { %5049 = vmatmul.f32.vlgmr.msrb.gmra.mxu0 %v20396_v43  ;;  %5069 = vmatmul.f32.vlgmr.msrb.gmra.mxu1 %v2598_v45  ;;  %v1443_v43 = vld [vmem:[%s20307_s9 + $0x1968] sm:$0x3]  ;;  %v20481_v44 = vld.sshfl [vmem:[#allocation1] sm:$0xff pattern:$0x75316420]  ;;  %v274_v46 = vld [vmem:[%s20300_s7 + $0xe0] sm:$0xff] }
  0x8e   : > { %5168 = vmatpush.xpose.msra.mxu2 %v664_v2  ;;  %5128 = vmatpush.xpose.msra.mxu0 %v662_v3  ;;  %v20483_v45 = vld.sshfl [vmem:[#allocation1 + $0x8] sm:$0xff pattern:$0x75316420]  ;;  %v20487_v48 = vld.sshfl [vmem:[#allocation1 + $0x30] sm:$0xff pattern:$0x75316420] }
  0x8f   : > { %5188 = vmatpush.xpose.msra.mxu3 %v665_v10  ;;  %5148 = vmatpush.xpose.msra.mxu1 %v663_v11  ;;  %2637 = vst [vmem:[#allocation1] ss:$2 sm:$0xff] %v274_v46  ;;  %v20490_v50 = vld.sshfl [vmem:[#allocation1 + $0x38] sm:$0xff pattern:$0x75316420]  ;;  %v677_v52 = vld [vmem:[%s20307_s9 + $0x178] sm:$0xff] }
  0x90   : > { %v675_v53 = vld [vmem:[%s20307_s9 + $0x168] sm:$0xff]  ;;  %v1448_v54 = vld [vmem:[%s20307_s9 + $0x1990] sm:$0x3]  ;;  %v1446_v55 = vld [vmem:[%s20307_s9 + $0x1980] sm:$0x3] }
  0x91   : > { %v1449_v56 = vld [vmem:[%s20307_s9 + $0x1998] sm:$0x3]  ;;  %v1447_v57 = vld [vmem:[%s20307_s9 + $0x1988] sm:$0x3]  ;;  %v680_v61 = vld [vmem:[%s20307_s9 + $0x190] sm:$0xff] }
  0x92   : > { %5247 = vmatpush.xpose.msrb.mxu2 %v1436_v12  ;;  %5207 = vmatpush.xpose.msrb.mxu0 %v1434_v13  ;;  %v20504_v59 = vld.sshfl [vmem:[#allocation1 + $0x20] sm:$0xff pattern:$0x75316420]  ;;  %v20509_v62 = vld.sshfl [vmem:[#allocation1 + $0x10] sm:$0xff pattern:$0x75316420] }
  0x93   : > { %5267 = vmatpush.xpose.msrb.mxu3 %v1437_v14  ;;  %5227 = vmatpush.xpose.msrb.mxu1 %v1435_v15  ;;  %v678_v63 = vld [vmem:[%s20307_s9 + $0x180] sm:$0xff]  ;;  %v681_v2 = vld [vmem:[%s20307_s9 + $0x198] sm:$0xff]  ;;  %v679_v3 = vld [vmem:[%s20307_s9 + $0x188] sm:$0xff] }
  0x94   : > { %5169 = vmatmul.f32.vlgmr.msra.gmra.mxu2 %v20401_v49  ;;  %5189 = vmatmul.f32.vlgmr.msra.gmra.mxu3 %v20404_v51  ;;  %v674_v49 = vld [vmem:[%s20307_s9 + $0x160] sm:$0xff]  ;;  %v277_v51 = vld [vmem:[%s20300_s7 + $0xf8] sm:$0xff]  ;;  %v684_v11 = vld [vmem:[%s20307_s9 + $0x1b0] sm:$0xff] }
  0x95   : > { %5129 = vmatmul.f32.vlgmr.msra.gmra.mxu0 %v2605_v58  ;;  %5149 = vmatmul.f32.vlgmr.msra.gmra.mxu1 %v2606_v60  ;;  %2640 = vst [vmem:[#allocation1 + $0x30] ss:$2 sm:$0xff] %v277_v51  ;;  %v276_v58 = vld [vmem:[%s20300_s7 + $0xf0] sm:$0xff]  ;;  %v20506_v60 = vld.sshfl [vmem:[#allocation1 + $0x28] sm:$0xff pattern:$0x75316420] }
  0x96   : > { %5248 = vmatpush.xpose.msrb.mxu2 %v668_v16  ;;  %5208 = vmatpush.xpose.msrb.mxu0 %v666_v17  ;;  %2639 = vst [vmem:[#allocation1 + $0x20] ss:$2 sm:$0xff] %v276_v58  ;;  %v1450_v5 = vld [vmem:[%s20307_s9 + $0x19a0] sm:$0x3]  ;;  %v685_v13 = vld [vmem:[%s20307_s9 + $0x1b8] sm:$0xff] }
  0x97   : > { %5268 = vmatpush.xpose.msrb.mxu3 %v669_v24  ;;  %5228 = vmatpush.xpose.msrb.mxu1 %v667_v25  ;;  %v20526_v9 = vld.sshfl [vmem:[#allocation1] sm:$0xff pattern:$0x75316420]  ;;  %v20528_v10 = vld.sshfl [vmem:[#allocation1 + $0x8] sm:$0xff pattern:$0x75316420] }
  0x98   : > { %v682_v12 = vld [vmem:[%s20307_s9 + $0x1a0] sm:$0xff]  ;;  %v1456_v15 = vld [vmem:[%s20307_s9 + $0x19d0] sm:$0x3]  ;;  %v281_v17 = vld [vmem:[%s20300_s7 + $0x118] sm:$0xff] }
  0x99   : > { %v1457_v23 = vld [vmem:[%s20307_s9 + $0x19d8] sm:$0x3]  ;;  %v1455_v24 = vld [vmem:[%s20307_s9 + $0x19c8] sm:$0x3]  ;;  %v688_v25 = vld [vmem:[%s20307_s9 + $0x1d0] sm:$0xff] }
  0x9a   : > { %5327 = vmatpush.xpose.msra.mxu2 %v1440_v26  ;;  %5287 = vmatpush.xpose.msra.mxu0 %v1438_v27  ;;  %v686_v26 = vld [vmem:[%s20307_s9 + $0x1c0] sm:$0xff]  ;;  %v689_v27 = vld [vmem:[%s20307_s9 + $0x1d8] sm:$0xff]  ;;  %v1460_v32 = vld [vmem:[%s20307_s9 + $0x19f0] sm:$0x3] }
  0x9b   : > { %5347 = vmatpush.xpose.msra.mxu3 %v1441_v28  ;;  %5307 = vmatpush.xpose.msra.mxu1 %v1439_v29  ;;  %v687_v29 = vld [vmem:[%s20307_s9 + $0x1c8] sm:$0xff]  ;;  %v1464_v46 = vld [vmem:[%s20307_s9 + $0x1a10] sm:$0x3] }
  0x9c   : > { %5249 = vmatmul.f32.vlgmr.msrb.gmra.mxu2 %v20416_v0  ;;  %5269 = vmatmul.f32.vlgmr.msrb.gmra.mxu3 %v20418_v1  ;;  %v20512_v0 = vld.sshfl [vmem:[#allocation1 + $0x18] sm:$0xff pattern:$0x75316420]  ;;  %v279_v1 = vld [vmem:[%s20300_s7 + $0x108] sm:$0xff] }
  0x9d   : > { %5209 = vmatmul.f32.vlgmr.msrb.gmra.mxu0 %v20422_v4  ;;  %5229 = vmatmul.f32.vlgmr.msrb.gmra.mxu1 %v20425_v6  ;;  %2650 = vst [vmem:[#allocation1 + $0x10] ss:$2 sm:$0xff] %v279_v1  ;;  %v1452_v4 = vld [vmem:[%s20307_s9 + $0x19b0] sm:$0x3]  ;;  %v1453_v6 = vld [vmem:[%s20307_s9 + $0x19b8] sm:$0x3] }
  0x9e   : > { %5328 = vmatpush.xpose.msra.mxu2 %v672_v33  ;;  %5288 = vmatpush.xpose.msra.mxu0 %v670_v35  ;;  %v20533_v14 = vld.sshfl [vmem:[#allocation1 + $0x30] sm:$0xff pattern:$0x75316420]  ;;  %v20536_v16 = vld.sshfl [vmem:[#allocation1 + $0x38] sm:$0xff pattern:$0x75316420] }
  0x9f   : > { %5348 = vmatpush.xpose.msra.mxu3 %v673_v38  ;;  %5308 = vmatpush.xpose.msra.mxu1 %v671_v39  ;;  %v20542_v19 = vld.sshfl [vmem:[#allocation1 + $0x20] sm:$0xff pattern:$0x75316420]  ;;  %2652 = vst [vmem:[#allocation1 + $0x30] ss:$2 sm:$0xff] %v281_v17  ;;  %v282_v38 = vld [vmem:[%s20300_s7 + $0x120] sm:$0xff] }
  0xa0   : > { %v1458_v33 = vld [vmem:[%s20307_s9 + $0x19e0] sm:$0x3]  ;;  %v692_v39 = vld [vmem:[%s20307_s9 + $0x1f0] sm:$0xff]  ;;  %v1469_v1 = vld [vmem:[%s20307_s9 + $0x1a38] sm:$0x3] }
  0xa1   : > { %v1471_v17 = vld [vmem:[%s20307_s9 + $0x1a48] sm:$0x3] }
  0xa2   : > { %5407 = vmatpush.xpose.msrb.mxu2 %v1444_v40  ;;  %5367 = vmatpush.xpose.msrb.mxu0 %v1442_v41  ;;  %v690_v41 = vld [vmem:[%s20307_s9 + $0x1e0] sm:$0xff] }
  0xa3   : > { %5427 = vmatpush.xpose.msrb.mxu3 %v1445_v42  ;;  %5387 = vmatpush.xpose.msrb.mxu1 %v1443_v43  ;;  %v285_v43 = vld [vmem:[%s20300_s7 + $0x138] sm:$0xff] }
  0xa4   : > { %5329 = vmatmul.f32.vlgmr.msra.gmra.mxu2 %v20427_v7  ;;  %5349 = vmatmul.f32.vlgmr.msra.gmra.mxu3 %v20429_v8  ;;  %v1451_v7 = vld [vmem:[%s20307_s9 + $0x19a8] sm:$0x3]  ;;  %v278_v8 = vld [vmem:[%s20300_s7 + $0x100] sm:$0xff] }
  0xa5   : > { %5289 = vmatmul.f32.vlgmr.msra.gmra.mxu0 %v20441_v18  ;;  %5309 = vmatmul.f32.vlgmr.msra.gmra.mxu1 %v20444_v20  ;;  %2649 = vst [vmem:[#allocation1] ss:$2 sm:$0xff] %v278_v8  ;;  %v683_v18 = vld [vmem:[%s20307_s9 + $0x1a8] sm:$0xff]  ;;  %v1454_v20 = vld [vmem:[%s20307_s9 + $0x19c0] sm:$0x3] }
  0xa6   : > { %5408 = vmatpush.xpose.msrb.mxu2 %v676_v47  ;;  %5368 = vmatpush.xpose.msrb.mxu0 %v674_v49  ;;  %v20555_v28 = vld.sshfl [vmem:[#allocation1 + $0x10] sm:$0xff pattern:$0x75316420]  ;;  %v20578_v42 = vld.sshfl [vmem:[#allocation1 + $0x38] sm:$0xff pattern:$0x75316420] }
  0xa7   : > { %5428 = vmatpush.xpose.msrb.mxu3 %v677_v52  ;;  %5388 = vmatpush.xpose.msrb.mxu1 %v675_v53  ;;  %v20575_v40 = vld.sshfl [vmem:[#allocation1 + $0x30] sm:$0xff pattern:$0x75316420]  ;;  %v1462_v47 = vld [vmem:[%s20307_s9 + $0x1a00] sm:$0x3]  ;;  %v696_v53 = vld [vmem:[%s20307_s9 + $0x210] sm:$0xff] }
  0xa8   : > { %2664 = vst [vmem:[#allocation1 + $0x30] ss:$2 sm:$0xff] %v285_v43  ;;  %v1465_v49 = vld [vmem:[%s20307_s9 + $0x1a18] sm:$0x3] }
  0xaa   : > { %5487 = vmatpush.xpose.msra.mxu2 %v1448_v54  ;;  %5447 = vmatpush.xpose.msra.mxu0 %v1446_v55  ;;  %v694_v54 = vld [vmem:[%s20307_s9 + $0x200] sm:$0xff]  ;;  %v697_v55 = vld [vmem:[%s20307_s9 + $0x218] sm:$0xff] }
  0xab   : > { %5507 = vmatpush.xpose.msra.mxu3 %v1449_v56  ;;  %5467 = vmatpush.xpose.msra.mxu1 %v1447_v57  ;;  %v1468_v57 = vld [vmem:[%s20307_s9 + $0x1a30] sm:$0x3] }
  0xac   : > { %5409 = vmatmul.f32.vlgmr.msrb.gmra.mxu2 %v20446_v21  ;;  %5429 = vmatmul.f32.vlgmr.msrb.gmra.mxu3 %v20448_v22  ;;  %v20547_v21 = vld.sshfl [vmem:[#allocation1 + $0x28] sm:$0xff pattern:$0x75316420]  ;;  %v280_v22 = vld [vmem:[%s20300_s7 + $0x110] sm:$0xff] }
  0xad   : > { %5369 = vmatmul.f32.vlgmr.msrb.gmra.mxu0 %v20459_v30  ;;  %5389 = vmatmul.f32.vlgmr.msrb.gmra.mxu1 %v20461_v31  ;;  %2651 = vst [vmem:[#allocation1 + $0x20] ss:$2 sm:$0xff] %v280_v22  ;;  %v20558_v30 = vld.sshfl [vmem:[#allocation1 + $0x18] sm:$0xff pattern:$0x75316420]  ;;  %v283_v31 = vld [vmem:[%s20300_s7 + $0x128] sm:$0xff] }
  0xae   : > { %5488 = vmatpush.xpose.msra.mxu2 %v680_v61  ;;  %5448 = vmatpush.xpose.msra.mxu0 %v678_v63  ;;  %2662 = vst [vmem:[#allocation1 + $0x10] ss:$2 sm:$0xff] %v283_v31  ;;  %v20568_v35 = vld.sshfl [vmem:[#allocation1] sm:$0xff pattern:$0x75316420] }
  0xaf   : > { %5508 = vmatpush.xpose.msra.mxu3 %v681_v2  ;;  %5468 = vmatpush.xpose.msra.mxu1 %v679_v3  ;;  %v20571_v37 = vld.sshfl [vmem:[#allocation1 + $0x8] sm:$0xff pattern:$0x75316420]  ;;  %v1467_v2 = vld [vmem:[%s20307_s9 + $0x1a28] sm:$0x3]  ;;  %v700_v3 = vld [vmem:[%s20307_s9 + $0x230] sm:$0xff] }
  0xb0   : > { %2661 = vst [vmem:[#allocation1] ss:$2 sm:$0xff] %v282_v38  ;;  %v20621_v8 = vld.sshfl [vmem:[#allocation1 + $0x30] sm:$0xff pattern:$0x75316420] }
  0xb1   : > { %v1477_v38 = vld [vmem:[%s20307_s9 + $0x1a78] sm:$0x3] }
  0xb2   : > { %5567 = vmatpush.xpose.msrb.mxu2 %v1452_v4  ;;  %5527 = vmatpush.xpose.msrb.mxu0 %v1450_v5 }
  0xb3   : > { %5587 = vmatpush.xpose.msrb.mxu3 %v1453_v6  ;;  %5547 = vmatpush.xpose.msrb.mxu1 %v1451_v7  ;;  %v698_v6 = vld [vmem:[%s20307_s9 + $0x220] sm:$0xff]  ;;  %v701_v7 = vld [vmem:[%s20307_s9 + $0x238] sm:$0xff] }
  0xb4   : > { %5489 = vmatmul.f32.vlgmr.msra.gmra.mxu2 %v20465_v34  ;;  %5509 = vmatmul.f32.vlgmr.msra.gmra.mxu3 %v20468_v36  ;;  %v1461_v34 = vld [vmem:[%s20307_s9 + $0x19f8] sm:$0x3]  ;;  %v1459_v36 = vld [vmem:[%s20307_s9 + $0x19e8] sm:$0x3] }
  0xb5   : > { %5449 = vmatmul.f32.vlgmr.msra.gmra.mxu0 %v20481_v44  ;;  %5469 = vmatmul.f32.vlgmr.msra.gmra.mxu1 %v20483_v45  ;;  %v693_v44 = vld [vmem:[%s20307_s9 + $0x1f8] sm:$0xff]  ;;  %v691_v45 = vld [vmem:[%s20307_s9 + $0x1e8] sm:$0xff]  ;;  %v20594_v52 = vld.sshfl [vmem:[#allocation1 + $0x28] sm:$0xff pattern:$0x75316420] }
  0xb6   : > { %5568 = vmatpush.xpose.msrb.mxu2 %v684_v11  ;;  %5528 = vmatpush.xpose.msrb.mxu0 %v682_v12  ;;  %v20592_v51 = vld.sshfl [vmem:[#allocation1 + $0x20] sm:$0xff pattern:$0x75316420]  ;;  %v20599_v56 = vld.sshfl [vmem:[#allocation1 + $0x10] sm:$0xff pattern:$0x75316420] }
  0xb7   : > { %5588 = vmatpush.xpose.msrb.mxu3 %v685_v13  ;;  %5548 = vmatpush.xpose.msrb.mxu1 %v683_v18  ;;  %v20602_v58 = vld.sshfl [vmem:[#allocation1 + $0x18] sm:$0xff pattern:$0x75316420]  ;;  %v20608_v61 = vld.sshfl [vmem:[#allocation1] sm:$0xff pattern:$0x75316420] }
  0xb8   : > { %v20613_v63 = vld.sshfl [vmem:[#allocation1 + $0x8] sm:$0xff pattern:$0x75316420]  ;;  %v289_v11 = vld [vmem:[%s20300_s7 + $0x158] sm:$0xff]  ;;  %v1472_v12 = vld [vmem:[%s20307_s9 + $0x1a50] sm:$0x3] }
  0xb9   : > { %v1470_v13 = vld [vmem:[%s20307_s9 + $0x1a40] sm:$0x3] }
  0xba   : > { %5647 = vmatpush.xpose.msra.mxu2 %v1456_v15  ;;  %5607 = vmatpush.xpose.msra.mxu0 %v1454_v20 }
  0xbb   : > { %5667 = vmatpush.xpose.msra.mxu3 %v1457_v23  ;;  %5627 = vmatpush.xpose.msra.mxu1 %v1455_v24 }
  0xbc   : > { %5569 = vmatmul.f32.vlgmr.msrb.gmra.mxu2 %v20487_v48  ;;  %5589 = vmatmul.f32.vlgmr.msrb.gmra.mxu3 %v20490_v50  ;;  %v284_v48 = vld [vmem:[%s20300_s7 + $0x130] sm:$0xff]  ;;  %v1463_v50 = vld [vmem:[%s20307_s9 + $0x1a08] sm:$0x3] }
  0xbd   : > { %5529 = vmatmul.f32.vlgmr.msrb.gmra.mxu0 %v20504_v59  ;;  %5549 = vmatmul.f32.vlgmr.msrb.gmra.mxu1 %v20506_v60  ;;  %2663 = vst [vmem:[#allocation1 + $0x20] ss:$2 sm:$0xff] %v284_v48  ;;  %v287_v59 = vld [vmem:[%s20300_s7 + $0x148] sm:$0xff] }
  0xbe   : > { %5648 = vmatpush.xpose.msra.mxu2 %v688_v25  ;;  %5608 = vmatpush.xpose.msra.mxu0 %v686_v26  ;;  %v695_v60 = vld [vmem:[%s20307_s9 + $0x208] sm:$0xff]  ;;  %2674 = vst [vmem:[#allocation1 + $0x10] ss:$2 sm:$0xff] %v287_v59  ;;  %v704_v26 = vld [vmem:[%s20307_s9 + $0x250] sm:$0xff] }
  0xbf   : > { %5668 = vmatpush.xpose.msra.mxu3 %v689_v27  ;;  %5628 = vmatpush.xpose.msra.mxu1 %v687_v29 }
  0xc2   : > { %5727 = vmatpush.xpose.msrb.mxu2 %v1460_v32  ;;  %5687 = vmatpush.xpose.msrb.mxu0 %v1458_v33  ;;  %v705_v32 = vld [vmem:[%s20307_s9 + $0x258] sm:$0xff]  ;;  %v703_v33 = vld [vmem:[%s20307_s9 + $0x248] sm:$0xff] }
  0xc3   : > { %5747 = vmatpush.xpose.msrb.mxu3 %v1461_v34  ;;  %5707 = vmatpush.xpose.msrb.mxu1 %v1459_v36  ;;  %v1476_v34 = vld [vmem:[%s20307_s9 + $0x1a70] sm:$0x3]  ;;  %v290_v36 = vld [vmem:[%s20300_s7 + $0x160] sm:$0xff] }
  0xc4   : > { %5649 = vmatmul.f32.vlgmr.msra.gmra.mxu2 %v20509_v62  ;;  %5669 = vmatmul.f32.vlgmr.msra.gmra.mxu3 %v20512_v0  ;;  %v1466_v62 = vld [vmem:[%s20307_s9 + $0x1a20] sm:$0x3]  ;;  %v20634_v15 = vld.sshfl [vmem:[#allocation1 + $0x20] sm:$0xff pattern:$0x75316420] }
  0xc5   : > { %5609 = vmatmul.f32.vlgmr.msra.gmra.mxu0 %v20526_v9  ;;  %5629 = vmatmul.f32.vlgmr.msra.gmra.mxu1 %v20528_v10  ;;  %v286_v0 = vld [vmem:[%s20300_s7 + $0x140] sm:$0xff]  ;;  %v699_v9 = vld [vmem:[%s20307_s9 + $0x228] sm:$0xff]  ;;  %v20624_v10 = vld.sshfl [vmem:[#allocation1 + $0x38] sm:$0xff pattern:$0x75316420] }
  0xc6   : > { %5728 = vmatpush.xpose.msrb.mxu2 %v692_v39  ;;  %5688 = vmatpush.xpose.msrb.mxu0 %v690_v41  ;;  %2673 = vst [vmem:[#allocation1] ss:$2 sm:$0xff] %v286_v0  ;;  %v20637_v18 = vld.sshfl [vmem:[#allocation1 + $0x28] sm:$0xff pattern:$0x75316420]  ;;  %v292_v0 = vld [vmem:[%s20300_s7 + $0x170] sm:$0xff] }
  0xc7   : > { %5748 = vmatpush.xpose.msrb.mxu3 %v693_v44  ;;  %5708 = vmatpush.xpose.msrb.mxu1 %v691_v45  ;;  %2676 = vst [vmem:[#allocation1 + $0x30] ss:$2 sm:$0xff] %v289_v11  ;;  %v20641_v27 = vld.sshfl [vmem:[#allocation1 + $0x10] sm:$0xff pattern:$0x75316420]  ;;  %v708_v45 = vld [vmem:[%s20307_s9 + $0x270] sm:$0xff] }
  0xc8   : > { %v20644_v29 = vld.sshfl [vmem:[#allocation1 + $0x18] sm:$0xff pattern:$0x75316420]  ;;  %v1475_v39 = vld [vmem:[%s20307_s9 + $0x1a68] sm:$0x3] }
  0xca   : > { %5807 = vmatpush.xpose.msra.mxu2 %v1464_v46  ;;  %5767 = vmatpush.xpose.msra.mxu0 %v1462_v47 }
  0xcb   : > { %5827 = vmatpush.xpose.msra.mxu3 %v1465_v49  ;;  %5787 = vmatpush.xpose.msra.mxu1 %v1463_v50  ;;  %v706_v49 = vld [vmem:[%s20307_s9 + $0x260] sm:$0xff]  ;;  %v709_v50 = vld [vmem:[%s20307_s9 + $0x278] sm:$0xff] }
  0xcc   : > { %5729 = vmatmul.f32.vlgmr.msrb.gmra.mxu2 %v20533_v14  ;;  %5749 = vmatmul.f32.vlgmr.msrb.gmra.mxu3 %v20536_v16  ;;  %v1473_v14 = vld [vmem:[%s20307_s9 + $0x1a58] sm:$0x3] }
  0xcd   : > { %5689 = vmatmul.f32.vlgmr.msrb.gmra.mxu0 %v20542_v19  ;;  %5709 = vmatmul.f32.vlgmr.msrb.gmra.mxu1 %v20547_v21  ;;  %v288_v19 = vld [vmem:[%s20300_s7 + $0x150] sm:$0xff]  ;;  %v20660_v43 = vld.sshfl [vmem:[#allocation1 + $0x8] sm:$0xff pattern:$0x75316420] }
  0xce   : > { %5808 = vmatpush.xpose.msra.mxu2 %v696_v53  ;;  %5768 = vmatpush.xpose.msra.mxu0 %v694_v54  ;;  %2675 = vst [vmem:[#allocation1 + $0x20] ss:$2 sm:$0xff] %v288_v19  ;;  %v20668_v53 = vld.sshfl [vmem:[#allocation1 + $0x38] sm:$0xff pattern:$0x75316420]  ;;  %v293_v54 = vld [vmem:[%s20300_s7 + $0x178] sm:$0xff] }
  0xcf   : > { %5828 = vmatpush.xpose.msra.mxu3 %v697_v55  ;;  %5788 = vmatpush.xpose.msra.mxu1 %v695_v60  ;;  %v1478_v60 = vld [vmem:[%s20307_s9 + $0x1a80] sm:$0x3] }
  0xd0   : > { %v1482_v19 = vld [vmem:[%s20307_s9 + $0x1aa0] sm:$0x3] }
  0xd2   : > { %5887 = vmatpush.xpose.msrb.mxu2 %v1468_v57  ;;  %5847 = vmatpush.xpose.msrb.mxu0 %v1466_v62  ;;  %v4490_v4 = vpop.f32.mrf.mxu0  ;;  %v4510_v5 = vpop.f32.mrf.mxu1  ;;  %v707_v57 = vld [vmem:[%s20307_s9 + $0x268] sm:$0xff] }
  0xd3   : > { %5907 = vmatpush.xpose.msrb.mxu3 %v1469_v1  ;;  %5867 = vmatpush.xpose.msrb.mxu1 %v1467_v2  ;;  %v4511_v16 = vadd.f32 %v4510_v5, %v4490_v4  ;;  %v1481_v2 = vld [vmem:[%s20307_s9 + $0x1a98] sm:$0x3] }
  0xd4   : > { %5809 = vmatmul.f32.vlgmr.msra.gmra.mxu2 %v20555_v28  ;;  %5829 = vmatmul.f32.vlgmr.msra.gmra.mxu3 %v20558_v30  ;;  %v702_v28 = vld [vmem:[%s20307_s9 + $0x240] sm:$0xff]  ;;  %v291_v30 = vld [vmem:[%s20300_s7 + $0x168] sm:$0xff] }
  0xd5   : > { %5769 = vmatmul.f32.vlgmr.msra.gmra.mxu0 %v20568_v35  ;;  %5789 = vmatmul.f32.vlgmr.msra.gmra.mxu1 %v20571_v37  ;;  %2686 = vst [vmem:[#allocation1 + $0x10] ss:$2 sm:$0xff] %v291_v30  ;;  %v1474_v35 = vld [vmem:[%s20307_s9 + $0x1a60] sm:$0x3]  ;;  %v716_v30 = vld [vmem:[%s20307_s9 + $0x2b0] sm:$0xff] }
  0xd6   : > { %5888 = vmatpush.xpose.msrb.mxu2 %v700_v3  ;;  %5848 = vmatpush.xpose.msrb.mxu0 %v698_v6  ;;  %v20674_v59 = vld.sshfl [vmem:[#allocation1 + $0x20] sm:$0xff pattern:$0x75316420]  ;;  %v20679_v62 = vld.sshfl [vmem:[#allocation1 + $0x28] sm:$0xff pattern:$0x75316420] }
  0xd7   : > { %v4530_v20 = vpop.f32.mrf.mxu2  ;;  %v4550_v21 = vpop.f32.mrf.mxu3  ;;  %5908 = vmatpush.xpose.msrb.mxu3 %v701_v7  ;;  %5868 = vmatpush.xpose.msrb.mxu1 %v699_v9  ;;  %2687 = vst [vmem:[#allocation1 + $0x20] ss:$2 sm:$0xff] %v292_v0  ;;  %v710_v7 = vld [vmem:[%s20307_s9 + $0x280] sm:$0xff]  ;;  %v713_v9 = vld [vmem:[%s20307_s9 + $0x298] sm:$0xff]  ;;  %v299_v0 = vld [vmem:[%s20300_s7 + $0x1a8] sm:$0xff] }
  0xd8   : > { %v4531_v22 = vadd.f32 %v4530_v20, %v4511_v16  ;;  %v1485_v20 = vld [vmem:[%s20307_s9 + $0x1ab8] sm:$0x3] }
  0xda   : > { %5967 = vmatpush.xpose.msra.mxu2 %v1472_v12  ;;  %5927 = vmatpush.xpose.msra.mxu0 %v1470_v13  ;;  %v4551_v23 = vadd.f32 %v4550_v21, %v4531_v22  ;;  %v4570_v24 = vpop.f32.mrf.mxu0  ;;  %v4590_v25 = vpop.f32.mrf.mxu1  ;;  %v711_v12 = vld [vmem:[%s20307_s9 + $0x288] sm:$0xff] }
  0xdb   : > { %5987 = vmatpush.xpose.msra.mxu3 %v1473_v14  ;;  %5947 = vmatpush.xpose.msra.mxu1 %v1471_v17  ;;  %v295_v14 = vld [vmem:[%s20300_s7 + $0x188] sm:$0xff]  ;;  %v1484_v17 = vld [vmem:[%s20307_s9 + $0x1ab0] sm:$0x3] }
  0xdc   : > { %v4571_v31 = vadd.f32 %v4570_v24, %v4551_v23  ;;  %5889 = vmatmul.f32.vlgmr.msrb.gmra.mxu2 %v20575_v40  ;;  %5909 = vmatmul.f32.vlgmr.msrb.gmra.mxu3 %v20578_v42  ;;  %v20658_v42 = vld.sshfl [vmem:[#allocation1] sm:$0xff pattern:$0x75316420]  ;;  %v20687_v11 = vld.sshfl [vmem:[#allocation1 + $0x10] sm:$0xff pattern:$0x75316420] }
  0xdd   : > { %5849 = vmatmul.f32.vlgmr.msrb.gmra.mxu0 %v20592_v51  ;;  %5869 = vmatmul.f32.vlgmr.msrb.gmra.mxu1 %v20594_v52  ;;  %2685 = vst [vmem:[#allocation1] ss:$2 sm:$0xff] %v290_v36  ;;  %v20665_v51 = vld.sshfl [vmem:[#allocation1 + $0x30] sm:$0xff pattern:$0x75316420]  ;;  %v717_v36 = vld [vmem:[%s20307_s9 + $0x2b8] sm:$0xff] }
  0xde   : > { %v4591_v37 = vadd.f32 %v4590_v25, %v4571_v31  ;;  %5968 = vmatpush.xpose.msra.mxu2 %v704_v26  ;;  %5928 = vmatpush.xpose.msra.mxu0 %v702_v28  ;;  %v1480_v52 = vld [vmem:[%s20307_s9 + $0x1a90] sm:$0x3]  ;;  %2688 = vst [vmem:[#allocation1 + $0x30] ss:$2 sm:$0xff] %v293_v54  ;;  %v1483_v23 = vld [vmem:[%s20307_s9 + $0x1aa8] sm:$0x3] }
  0xdf   : > { %v4610_v41 = vpop.f32.mrf.mxu2  ;;  %v4630_v40 = vpop.f32.mrf.mxu3  ;;  %5988 = vmatpush.xpose.msra.mxu3 %v705_v32  ;;  %5948 = vmatpush.xpose.msra.mxu1 %v703_v33  ;;  %v20690_v13 = vld.sshfl [vmem:[#allocation1 + $0x18] sm:$0xff pattern:$0x75316420]  ;;  %v714_v32 = vld [vmem:[%s20307_s9 + $0x2a0] sm:$0xff]  ;;  %v721_v54 = vld [vmem:[%s20307_s9 + $0x2d8] sm:$0xff] }
  0xe0   : > { %v4611_v44 = vadd.f32 %v4610_v41, %v4591_v37  ;;  %2698 = vst [vmem:[#allocation1 + $0x10] ss:$2 sm:$0xff] %v295_v14  ;;  %v715_v37 = vld [vmem:[%s20307_s9 + $0x2a8] sm:$0xff]  ;;  %v296_v41 = vld [vmem:[%s20300_s7 + $0x190] sm:$0xff]  ;;  %v725_v14 = vld [vmem:[%s20307_s9 + $0x2f8] sm:$0xff] }
  0xe2   : > { %6047 = vmatpush.xpose.msrb.mxu2 %v1476_v34  ;;  %6007 = vmatpush.xpose.msrb.mxu0 %v1474_v35  ;;  %v4631_v46 = vadd.f32 %v4630_v40, %v4611_v44  ;;  %v4650_v47 = vpop.f32.mrf.mxu0  ;;  %v4670_v48 = vpop.f32.mrf.mxu1  ;;  %v297_v34 = vld [vmem:[%s20300_s7 + $0x198] sm:$0xff] }
  0xe3   : > { %6067 = vmatpush.xpose.msrb.mxu3 %v1477_v38  ;;  %6027 = vmatpush.xpose.msrb.mxu1 %v1475_v39  ;;  %v1488_v38 = vld [vmem:[%s20307_s9 + $0x1ad0] sm:$0x3]  ;;  %v1486_v39 = vld [vmem:[%s20307_s9 + $0x1ac0] sm:$0x3]  ;;  %v1489_v44 = vld [vmem:[%s20307_s9 + $0x1ad8] sm:$0x3] }
  0xe4   : > { %v4651_v55 = vadd.f32 %v4650_v47, %v4631_v46  ;;  %5969 = vmatmul.f32.vlgmr.msra.gmra.mxu2 %v20599_v56  ;;  %5989 = vmatmul.f32.vlgmr.msra.gmra.mxu3 %v20602_v58  ;;  %v1479_v56 = vld [vmem:[%s20307_s9 + $0x1a88] sm:$0x3]  ;;  %v20700_v21 = vld.sshfl [vmem:[#allocation1] sm:$0xff pattern:$0x75316420]  ;;  %v720_v47 = vld [vmem:[%s20307_s9 + $0x2d0] sm:$0xff] }
  0xe5   : > { %5929 = vmatmul.f32.vlgmr.msra.gmra.mxu0 %v20608_v61  ;;  %5949 = vmatmul.f32.vlgmr.msra.gmra.mxu1 %v20613_v63  ;;  %v712_v63 = vld [vmem:[%s20307_s9 + $0x290] sm:$0xff]  ;;  %v20703_v24 = vld.sshfl [vmem:[#allocation1 + $0x8] sm:$0xff pattern:$0x75316420] }
  0xe6   : > { %v4671_v1 = vadd.f32 %v4670_v48, %v4651_v55  ;;  %6048 = vmatpush.xpose.msrb.mxu2 %v708_v45  ;;  %6008 = vmatpush.xpose.msrb.mxu0 %v706_v49  ;;  %v20707_v31 = vld.sshfl [vmem:[#allocation1 + $0x30] sm:$0xff pattern:$0x75316420]  ;;  %v20710_v33 = vld.sshfl [vmem:[#allocation1 + $0x38] sm:$0xff pattern:$0x75316420] }
  0xe7   : > { %v4690_v58 = vpop.f32.mrf.mxu2  ;;  %v4710_v3 = vpop.f32.mrf.mxu3  ;;  %6068 = vmatpush.xpose.msrb.mxu3 %v709_v50  ;;  %6028 = vmatpush.xpose.msrb.mxu1 %v707_v57  ;;  %2700 = vst [vmem:[#allocation1 + $0x30] ss:$2 sm:$0xff] %v297_v34  ;;  %v1487_v45 = vld [vmem:[%s20307_s9 + $0x1ac8] sm:$0x3]  ;;  %v1492_v57 = vld [vmem:[%s20307_s9 + $0x1af0] sm:$0x3] }
  0xe8   : > { %v4691_v61 = vadd.f32 %v4690_v58, %v4671_v1  ;;  %v20731_v55 = vld.sshfl [vmem:[#allocation1 + $0x10] sm:$0xff pattern:$0x75316420]  ;;  %v1490_v58 = vld [vmem:[%s20307_s9 + $0x1ae0] sm:$0x3]  ;;  %v728_v34 = vld [vmem:[%s20307_s9 + $0x310] sm:$0xff] }
  0xea   : > { %6127 = vmatpush.xpose.msra.mxu2 %v1480_v52  ;;  %6087 = vmatpush.xpose.msra.mxu0 %v1478_v60  ;;  %v4711_v4 = vadd.f32 %v4710_v3, %v4691_v61  ;;  %v4730_v5 = vpop.f32.mrf.mxu0  ;;  %v4750_v6 = vpop.f32.mrf.mxu1  ;;  %v718_v52 = vld [vmem:[%s20307_s9 + $0x2c0] sm:$0xff]  ;;  %v20734_v60 = vld.sshfl [vmem:[#allocation1 + $0x18] sm:$0xff pattern:$0x75316420] }
  0xeb   : > { %6147 = vmatpush.xpose.msra.mxu3 %v1481_v2  ;;  %6107 = vmatpush.xpose.msra.mxu1 %v1479_v56  ;;  %v719_v2 = vld [vmem:[%s20307_s9 + $0x2c8] sm:$0xff]  ;;  %2710 = vst [vmem:[#allocation1 + $0x10] ss:$2 sm:$0xff] %v299_v0  ;;  %v298_v61 = vld [vmem:[%s20300_s7 + $0x1a0] sm:$0xff]  ;;  %v733_v0 = vld [vmem:[%s20307_s9 + $0x338] sm:$0xff] }
  0xec   : > { %v4731_v16 = vadd.f32 %v4730_v5, %v4711_v4  ;;  %6049 = vmatmul.f32.vlgmr.msrb.gmra.mxu2 %v20621_v8  ;;  %6069 = vmatmul.f32.vlgmr.msrb.gmra.mxu3 %v20624_v10  ;;  %v294_v8 = vld [vmem:[%s20300_s7 + $0x180] sm:$0xff]  ;;  %v1493_v4 = vld [vmem:[%s20307_s9 + $0x1af8] sm:$0x3] }
  0xed   : > { %6009 = vmatmul.f32.vlgmr.msrb.gmra.mxu0 %v20634_v15  ;;  %6029 = vmatmul.f32.vlgmr.msrb.gmra.mxu1 %v20637_v18  ;;  %2697 = vst [vmem:[#allocation1] ss:$2 sm:$0xff] %v294_v8  ;;  %v1494_v8 = vld [vmem:[%s20307_s9 + $0x1b00] sm:$0x3] }
  0xee   : > { %v4751_v22 = vadd.f32 %v4750_v6, %v4731_v16  ;;  %6128 = vmatpush.xpose.msra.mxu2 %v712_v63  ;;  %6088 = vmatpush.xpose.msra.mxu0 %v710_v7  ;;  %v20753_v16 = vld.sshfl [vmem:[#allocation1 + $0x30] sm:$0xff pattern:$0x75316420] }
  0xef   : > { %v4770_v10 = vpop.f32.mrf.mxu2  ;;  %v4790_v25 = vpop.f32.mrf.mxu3  ;;  %6148 = vmatpush.xpose.msra.mxu3 %v713_v9  ;;  %6108 = vmatpush.xpose.msra.mxu1 %v711_v12  ;;  %v722_v12 = vld [vmem:[%s20307_s9 + $0x2e0] sm:$0xff] }
  0xf0   : > { %v4771_v15 = vadd.f32 %v4770_v10, %v4751_v22  ;;  %v1497_v10 = vld [vmem:[%s20307_s9 + $0x1b18] sm:$0x3] }
  0xf2   : > { %6207 = vmatpush.xpose.msrb.mxu2 %v1484_v17  ;;  %6167 = vmatpush.xpose.msrb.mxu0 %v1482_v19  ;;  %v4791_v18 = vadd.f32 %v4790_v25, %v4771_v15  ;;  %v4810_v26 = vpop.f32.mrf.mxu0  ;;  %v4830_v28 = vpop.f32.mrf.mxu1  ;;  %v723_v17 = vld [vmem:[%s20307_s9 + $0x2e8] sm:$0xff]  ;;  %v20756_v19 = vld.sshfl [vmem:[#allocation1 + $0x38] sm:$0xff pattern:$0x75316420] }
  0xf3   : > { %6227 = vmatpush.xpose.msrb.mxu3 %v1485_v20  ;;  %6187 = vmatpush.xpose.msrb.mxu1 %v1483_v23  ;;  %v301_v20 = vld [vmem:[%s20300_s7 + $0x1b8] sm:$0xff]  ;;  %v1496_v23 = vld [vmem:[%s20307_s9 + $0x1b10] sm:$0x3] }
  0xf4   : > { %v4811_v35 = vadd.f32 %v4810_v26, %v4791_v18  ;;  %6129 = vmatmul.f32.vlgmr.msra.gmra.mxu2 %v20641_v27  ;;  %6149 = vmatmul.f32.vlgmr.msra.gmra.mxu3 %v20644_v29  ;;  %v20724_v29 = vld.sshfl [vmem:[#allocation1 + $0x20] sm:$0xff pattern:$0x75316420]  ;;  %v20745_v3 = vld.sshfl [vmem:[#allocation1 + $0x8] sm:$0xff pattern:$0x75316420] }
  0xf5   : > { %6089 = vmatmul.f32.vlgmr.msra.gmra.mxu0 %v20658_v42  ;;  %6109 = vmatmul.f32.vlgmr.msra.gmra.mxu1 %v20660_v43  ;;  %v20726_v42 = vld.sshfl [vmem:[#allocation1 + $0x28] sm:$0xff pattern:$0x75316420]  ;;  %v20740_v56 = vld.sshfl [vmem:[#allocation1] sm:$0xff pattern:$0x75316420] }
  0xf6   : > { %v4831_v40 = vadd.f32 %v4830_v28, %v4811_v35  ;;  %6208 = vmatpush.xpose.msrb.mxu2 %v716_v30  ;;  %6168 = vmatpush.xpose.msrb.mxu0 %v714_v32  ;;  %2699 = vst [vmem:[#allocation1 + $0x20] ss:$2 sm:$0xff] %v296_v41  ;;  %v1495_v18 = vld [vmem:[%s20307_s9 + $0x1b08] sm:$0x3]  ;;  %v729_v41 = vld [vmem:[%s20307_s9 + $0x318] sm:$0xff] }
  0xf7   : > { %v4850_v46 = vpop.f32.mrf.mxu2  ;;  %v4870_v27 = vpop.f32.mrf.mxu3  ;;  %6228 = vmatpush.xpose.msrb.mxu3 %v717_v36  ;;  %6188 = vmatpush.xpose.msrb.mxu1 %v715_v37  ;;  %2709 = vst [vmem:[#allocation1] ss:$2 sm:$0xff] %v298_v61  ;;  %v20773_v35 = vld.sshfl [vmem:[#allocation1 + $0x10] sm:$0xff pattern:$0x75316420]  ;;  %v726_v36 = vld [vmem:[%s20307_s9 + $0x300] sm:$0xff] }
  0xf8   : > { %v4851_v43 = vadd.f32 %v4850_v46, %v4831_v40  ;;  %2712 = vst [vmem:[#allocation1 + $0x30] ss:$2 sm:$0xff] %v301_v20  ;;  %v20776_v37 = vld.sshfl [vmem:[#allocation1 + $0x18] sm:$0xff pattern:$0x75316420]  ;;  %v727_v40 = vld [vmem:[%s20307_s9 + $0x308] sm:$0xff] }
  0xf9   : > { %v302_v46 = vld [vmem:[%s20300_s7 + $0x1c0] sm:$0xff]  ;;  %v305_v61 = vld [vmem:[%s20300_s7 + $0x1d8] sm:$0xff] }
  0xfa   : > { %6287 = vmatpush.xpose.msra.mxu2 %v1488_v38  ;;  %6247 = vmatpush.xpose.msra.mxu0 %v1486_v39  ;;  %v4871_v48 = vadd.f32 %v4870_v27, %v4851_v43  ;;  %v4890_v49 = vpop.f32.mrf.mxu0  ;;  %v4910_v50 = vpop.f32.mrf.mxu1  ;;  %v303_v38 = vld [vmem:[%s20300_s7 + $0x1c8] sm:$0xff]  ;;  %v1501_v43 = vld [vmem:[%s20307_s9 + $0x1b38] sm:$0x3] }
  0xfb   : > { %6307 = vmatpush.xpose.msra.mxu3 %v1489_v44  ;;  %6267 = vmatpush.xpose.msra.mxu1 %v1487_v45  ;;  %2722 = vst [vmem:[#allocation1 + $0x10] ss:$2 sm:$0xff] %v303_v38  ;;  %v1500_v44 = vld [vmem:[%s20307_s9 + $0x1b30] sm:$0x3]  ;;  %v1498_v45 = vld [vmem:[%s20307_s9 + $0x1b20] sm:$0x3] }
  0xfc   : > { %v4891_v1 = vadd.f32 %v4890_v49, %v4871_v48  ;;  %6209 = vmatmul.f32.vlgmr.msrb.gmra.mxu2 %v20665_v51  ;;  %6229 = vmatmul.f32.vlgmr.msrb.gmra.mxu3 %v20668_v53  ;;  %v1491_v51 = vld [vmem:[%s20307_s9 + $0x1ae8] sm:$0x3]  ;;  %v732_v49 = vld [vmem:[%s20307_s9 + $0x330] sm:$0xff]  ;;  %v737_v20 = vld [vmem:[%s20307_s9 + $0x358] sm:$0xff] }
  0xfd   : > { %6169 = vmatmul.f32.vlgmr.msrb.gmra.mxu0 %v20674_v59  ;;  %6189 = vmatmul.f32.vlgmr.msrb.gmra.mxu1 %v20679_v62  ;;  %v724_v62 = vld [vmem:[%s20307_s9 + $0x2f0] sm:$0xff]  ;;  %v20766_v25 = vld.sshfl [vmem:[#allocation1 + $0x20] sm:$0xff pattern:$0x75316420] }
  0xfe   : > { %v4911_v63 = vadd.f32 %v4910_v50, %v4891_v1  ;;  %6288 = vmatpush.xpose.msra.mxu2 %v720_v47  ;;  %6248 = vmatpush.xpose.msra.mxu0 %v718_v52  ;;  %v20769_v26 = vld.sshfl [vmem:[#allocation1 + $0x28] sm:$0xff pattern:$0x75316420]  ;;  %v1499_v47 = vld [vmem:[%s20307_s9 + $0x1b28] sm:$0x3]  ;;  %v740_v38 = vld [vmem:[%s20307_s9 + $0x370] sm:$0xff] }
  0xff   : > { %v4930_v53 = vpop.f32.mrf.mxu2  ;;  %v4950_v5 = vpop.f32.mrf.mxu3  ;;  %6308 = vmatpush.xpose.msra.mxu3 %v721_v54  ;;  %6268 = vmatpush.xpose.msra.mxu1 %v719_v2  ;;  %v20797_v1 = vld.sshfl [vmem:[#allocation1 + $0x30] sm:$0xff pattern:$0x75316420]  ;;  %v1504_v2 = vld [vmem:[%s20307_s9 + $0x1b50] sm:$0x3] }
 0x100   : > { %v4931_v59 = vadd.f32 %v4930_v53, %v4911_v63  ;;  %v1502_v53 = vld [vmem:[%s20307_s9 + $0x1b40] sm:$0x3] }
 0x102   : > { %6367 = vmatpush.xpose.msrb.mxu2 %v1492_v57  ;;  %6327 = vmatpush.xpose.msrb.mxu0 %v1490_v58  ;;  %v4951_v6 = vadd.f32 %v4950_v5, %v4931_v59  ;;  %v4970_v7 = vpop.f32.mrf.mxu0  ;;  %v4990_v9 = vpop.f32.mrf.mxu1  ;;  %v730_v57 = vld [vmem:[%s20307_s9 + $0x320] sm:$0xff]  ;;  %v20800_v58 = vld.sshfl [vmem:[#allocation1 + $0x38] sm:$0xff pattern:$0x75316420] }
 0x103   : > { %6387 = vmatpush.xpose.msrb.mxu3 %v1493_v4  ;;  %6347 = vmatpush.xpose.msrb.mxu1 %v1491_v51  ;;  %v731_v4 = vld [vmem:[%s20307_s9 + $0x328] sm:$0xff]  ;;  %2724 = vst [vmem:[#allocation1 + $0x30] ss:$2 sm:$0xff] %v305_v61  ;;  %v304_v59 = vld [vmem:[%s20300_s7 + $0x1d0] sm:$0xff]  ;;  %v745_v61 = vld [vmem:[%s20307_s9 + $0x398] sm:$0xff] }
 0x104   : > { %v4971_v22 = vadd.f32 %v4970_v7, %v4951_v6  ;;  %6289 = vmatmul.f32.vlgmr.msra.gmra.mxu2 %v20687_v11  ;;  %6309 = vmatmul.f32.vlgmr.msra.gmra.mxu3 %v20690_v13  ;;  %v300_v11 = vld [vmem:[%s20300_s7 + $0x1b0] sm:$0xff]  ;;  %v1505_v6 = vld [vmem:[%s20307_s9 + $0x1b58] sm:$0x3] }
 0x105   : > { %6249 = vmatmul.f32.vlgmr.msra.gmra.mxu0 %v20700_v21  ;;  %6269 = vmatmul.f32.vlgmr.msra.gmra.mxu1 %v20703_v24  ;;  %2711 = vst [vmem:[#allocation1 + $0x20] ss:$2 sm:$0xff] %v300_v11  ;;  %v1506_v11 = vld [vmem:[%s20307_s9 + $0x1b60] sm:$0x3] }
 0x106   : > { %v4991_v15 = vadd.f32 %v4990_v9, %v4971_v22  ;;  %6368 = vmatpush.xpose.msrb.mxu2 %v724_v62  ;;  %6328 = vmatpush.xpose.msrb.mxu0 %v722_v12  ;;  %v20819_v22 = vld.sshfl [vmem:[#allocation1 + $0x10] sm:$0xff pattern:$0x75316420] }
 0x107   : > { %v5010_v13 = vpop.f32.mrf.mxu2  ;;  %v5030_v28 = vpop.f32.mrf.mxu3  ;;  %6388 = vmatpush.xpose.msrb.mxu3 %v725_v14  ;;  %6348 = vmatpush.xpose.msrb.mxu1 %v723_v17  ;;  %v734_v17 = vld [vmem:[%s20307_s9 + $0x340] sm:$0xff] }
 0x108   : > { %v5011_v21 = vadd.f32 %v5010_v13, %v4991_v15  ;;  %v1509_v13 = vld [vmem:[%s20307_s9 + $0x1b78] sm:$0x3] }
 0x10a   : > { %6447 = vmatpush.xpose.msra.mxu2 %v1496_v23  ;;  %6407 = vmatpush.xpose.msra.mxu0 %v1494_v8  ;;  %v5031_v24 = vadd.f32 %v5030_v28, %v5011_v21  ;;  %v5050_v30 = vpop.f32.mrf.mxu0  ;;  %v5070_v32 = vpop.f32.mrf.mxu1  ;;  %v735_v23 = vld [vmem:[%s20307_s9 + $0x348] sm:$0xff]  ;;  %v20822_v8 = vld.sshfl [vmem:[#allocation1 + $0x18] sm:$0xff pattern:$0x75316420] }
 0x10b   : > { %6467 = vmatpush.xpose.msra.mxu3 %v1497_v10  ;;  %6427 = vmatpush.xpose.msra.mxu1 %v1495_v18  ;;  %v307_v10 = vld [vmem:[%s20300_s7 + $0x1e8] sm:$0xff]  ;;  %v1508_v18 = vld [vmem:[%s20307_s9 + $0x1b70] sm:$0x3] }
 0x10c   : > { %v5051_v39 = vadd.f32 %v5050_v30, %v5031_v24  ;;  %6369 = vmatmul.f32.vlgmr.msrb.gmra.mxu2 %v20707_v31  ;;  %6389 = vmatmul.f32.vlgmr.msrb.gmra.mxu3 %v20710_v33  ;;  %v20790_v33 = vld.sshfl [vmem:[#allocation1] sm:$0xff pattern:$0x75316420]  ;;  %v20811_v5 = vld.sshfl [vmem:[#allocation1 + $0x28] sm:$0xff pattern:$0x75316420] }
 0x10d   : > { %6329 = vmatmul.f32.vlgmr.msrb.gmra.mxu0 %v20724_v29  ;;  %6349 = vmatmul.f32.vlgmr.msrb.gmra.mxu1 %v20726_v42  ;;  %v20792_v29 = vld.sshfl [vmem:[#allocation1 + $0x8] sm:$0xff pattern:$0x75316420]  ;;  %v20806_v51 = vld.sshfl [vmem:[#allocation1 + $0x20] sm:$0xff pattern:$0x75316420] }
 0x10e   : > { %v5071_v27 = vadd.f32 %v5070_v32, %v5051_v39  ;;  %6448 = vmatpush.xpose.msra.mxu2 %v728_v34  ;;  %6408 = vmatpush.xpose.msra.mxu0 %v726_v36  ;;  %2721 = vst [vmem:[#allocation1] ss:$2 sm:$0xff] %v302_v46  ;;  %v1507_v24 = vld [vmem:[%s20307_s9 + $0x1b68] sm:$0x3]  ;;  %v741_v46 = vld [vmem:[%s20307_s9 + $0x378] sm:$0xff] }
 0x10f   : > { %v5090_v48 = vpop.f32.mrf.mxu2  ;;  %v5110_v31 = vpop.f32.mrf.mxu3  ;;  %6468 = vmatpush.xpose.msra.mxu3 %v729_v41  ;;  %6428 = vmatpush.xpose.msra.mxu1 %v727_v40  ;;  %2723 = vst [vmem:[#allocation1 + $0x20] ss:$2 sm:$0xff] %v304_v59  ;;  %v20839_v39 = vld.sshfl [vmem:[#allocation1 + $0x30] sm:$0xff pattern:$0x75316420]  ;;  %v738_v41 = vld [vmem:[%s20307_s9 + $0x360] sm:$0xff] }
 0x110   : > { %v5091_v42 = vadd.f32 %v5090_v48, %v5071_v27  ;;  %2734 = vst [vmem:[#allocation1 + $0x10] ss:$2 sm:$0xff] %v307_v10  ;;  %v20842_v40 = vld.sshfl [vmem:[#allocation1 + $0x38] sm:$0xff pattern:$0x75316420]  ;;  %v739_v27 = vld [vmem:[%s20307_s9 + $0x368] sm:$0xff] }
 0x111   : > { %v308_v48 = vld [vmem:[%s20300_s7 + $0x1f0] sm:$0xff]  ;;  %v311_v59 = vld [vmem:[%s20300_s7 + $0x208] sm:$0xff]  ;;  %v749_v10 = vld [vmem:[%s20307_s9 + $0x3b8] sm:$0xff] }
 0x112   : > { %6527 = vmatpush.xpose.msrb.mxu2 %v1500_v44  ;;  %6487 = vmatpush.xpose.msrb.mxu0 %v1498_v45  ;;  %v5111_v50 = vadd.f32 %v5110_v31, %v5091_v42  ;;  %v5130_v52 = vpop.f32.mrf.mxu0  ;;  %v5150_v54 = vpop.f32.mrf.mxu1  ;;  %v309_v44 = vld [vmem:[%s20300_s7 + $0x1f8] sm:$0xff] }
 0x113   : > { %6547 = vmatpush.xpose.msrb.mxu3 %v1501_v43  ;;  %6507 = vmatpush.xpose.msrb.mxu1 %v1499_v47  ;;  %2736 = vst [vmem:[#allocation1 + $0x30] ss:$2 sm:$0xff] %v309_v44  ;;  %v1512_v43 = vld [vmem:[%s20307_s9 + $0x1b90] sm:$0x3]  ;;  %v1510_v47 = vld [vmem:[%s20307_s9 + $0x1b80] sm:$0x3] }
 0x114   : > { %v5131_v63 = vadd.f32 %v5130_v52, %v5111_v50  ;;  %6449 = vmatmul.f32.vlgmr.msra.gmra.mxu2 %v20731_v55  ;;  %6469 = vmatmul.f32.vlgmr.msra.gmra.mxu3 %v20734_v60  ;;  %v1503_v55 = vld [vmem:[%s20307_s9 + $0x1b48] sm:$0x3]  ;;  %v1513_v42 = vld [vmem:[%s20307_s9 + $0x1b98] sm:$0x3]  ;;  %v744_v52 = vld [vmem:[%s20307_s9 + $0x390] sm:$0xff] }
 0x115   : > { %6409 = vmatmul.f32.vlgmr.msra.gmra.mxu0 %v20740_v56  ;;  %6429 = vmatmul.f32.vlgmr.msra.gmra.mxu1 %v20745_v3  ;;  %v736_v3 = vld [vmem:[%s20307_s9 + $0x350] sm:$0xff]  ;;  %v20832_v28 = vld.sshfl [vmem:[#allocation1] sm:$0xff pattern:$0x75316420] }
 0x116   : > { %v5151_v62 = vadd.f32 %v5150_v54, %v5131_v63  ;;  %6528 = vmatpush.xpose.msrb.mxu2 %v732_v49  ;;  %6488 = vmatpush.xpose.msrb.mxu0 %v730_v57  ;;  %v20835_v30 = vld.sshfl [vmem:[#allocation1 + $0x8] sm:$0xff pattern:$0x75316420]  ;;  %v1511_v49 = vld [vmem:[%s20307_s9 + $0x1b88] sm:$0x3]  ;;  %v752_v44 = vld [vmem:[%s20307_s9 + $0x3d0] sm:$0xff] }
 0x117   : > { %v5170_v60 = vpop.f32.mrf.mxu2  ;;  %v5190_v7 = vpop.f32.mrf.mxu3  ;;  %6548 = vmatpush.xpose.msrb.mxu3 %v733_v0  ;;  %6508 = vmatpush.xpose.msrb.mxu1 %v731_v4  ;;  %v20863_v63 = vld.sshfl [vmem:[#allocation1 + $0x10] sm:$0xff pattern:$0x75316420]  ;;  %v1516_v4 = vld [vmem:[%s20307_s9 + $0x1bb0] sm:$0x3] }
 0x118   : > { %v5171_v56 = vadd.f32 %v5170_v60, %v5151_v62  ;;  %v1514_v60 = vld [vmem:[%s20307_s9 + $0x1ba0] sm:$0x3] }
 0x11a   : > { %6607 = vmatpush.xpose.msra.mxu2 %v1504_v2  ;;  %6567 = vmatpush.xpose.msra.mxu0 %v1502_v53  ;;  %v5191_v9 = vadd.f32 %v5190_v7, %v5171_v56  ;;  %v5210_v12 = vpop.f32.mrf.mxu0  ;;  %v5230_v14 = vpop.f32.mrf.mxu1  ;;  %v742_v2 = vld [vmem:[%s20307_s9 + $0x380] sm:$0xff]  ;;  %v20866_v53 = vld.sshfl [vmem:[#allocation1 + $0x18] sm:$0xff pattern:$0x75316420] }
 0x11b   : > { %6627 = vmatpush.xpose.msra.mxu3 %v1505_v6  ;;  %6587 = vmatpush.xpose.msra.mxu1 %v1503_v55  ;;  %v743_v6 = vld [vmem:[%s20307_s9 + $0x388] sm:$0xff]  ;;  %2746 = vst [vmem:[#allocation1 + $0x10] ss:$2 sm:$0xff] %v311_v59  ;;  %v310_v56 = vld [vmem:[%s20300_s7 + $0x200] sm:$0xff]  ;;  %v757_v59 = vld [vmem:[%s20307_s9 + $0x3f8] sm:$0xff] }
 0x11c   : > { %v5211_v15 = vadd.f32 %v5210_v12, %v5191_v9  ;;  %6529 = vmatmul.f32.vlgmr.msrb.gmra.mxu2 %v20753_v16  ;;  %6549 = vmatmul.f32.vlgmr.msrb.gmra.mxu3 %v20756_v19  ;;  %v306_v16 = vld [vmem:[%s20300_s7 + $0x1e0] sm:$0xff]  ;;  %v1517_v9 = vld [vmem:[%s20307_s9 + $0x1bb8] sm:$0x3] }
 0x11d   : > { %6489 = vmatmul.f32.vlgmr.msrb.gmra.mxu0 %v20766_v25  ;;  %6509 = vmatmul.f32.vlgmr.msrb.gmra.mxu1 %v20769_v26  ;;  %2733 = vst [vmem:[#allocation1] ss:$2 sm:$0xff] %v306_v16  ;;  %v1518_v16 = vld [vmem:[%s20307_s9 + $0x1bc0] sm:$0x3] }
 0x11e   : > { %v5231_v21 = vadd.f32 %v5230_v14, %v5211_v15  ;;  %6608 = vmatpush.xpose.msra.mxu2 %v736_v3  ;;  %6568 = vmatpush.xpose.msra.mxu0 %v734_v17  ;;  %v20885_v15 = vld.sshfl [vmem:[#allocation1 + $0x30] sm:$0xff pattern:$0x75316420] }
 0x11f   : > { %v5250_v19 = vpop.f32.mrf.mxu2  ;;  %v5270_v32 = vpop.f32.mrf.mxu3  ;;  %6628 = vmatpush.xpose.msra.mxu3 %v737_v20  ;;  %6588 = vmatpush.xpose.msra.mxu1 %v735_v23  ;;  %v746_v23 = vld [vmem:[%s20307_s9 + $0x3a0] sm:$0xff] }
 0x120   : > { %v5251_v25 = vadd.f32 %v5250_v19, %v5231_v21  ;;  %v1521_v19 = vld [vmem:[%s20307_s9 + $0x1bd8] sm:$0x3] }
 0x122   : > { %6687 = vmatpush.xpose.msrb.mxu2 %v1508_v18  ;;  %6647 = vmatpush.xpose.msrb.mxu0 %v1506_v11  ;;  %v5271_v26 = vadd.f32 %v5270_v32, %v5251_v25  ;;  %v5290_v34 = vpop.f32.mrf.mxu0  ;;  %v5310_v36 = vpop.f32.mrf.mxu1  ;;  %v747_v18 = vld [vmem:[%s20307_s9 + $0x3a8] sm:$0xff]  ;;  %v20888_v11 = vld.sshfl [vmem:[#allocation1 + $0x38] sm:$0xff pattern:$0x75316420] }
 0x123   : > { %6707 = vmatpush.xpose.msrb.mxu3 %v1509_v13  ;;  %6667 = vmatpush.xpose.msrb.mxu1 %v1507_v24  ;;  %v313_v13 = vld [vmem:[%s20300_s7 + $0x218] sm:$0xff]  ;;  %v1520_v24 = vld [vmem:[%s20307_s9 + $0x1bd0] sm:$0x3] }
 0x124   : > { %v5291_v45 = vadd.f32 %v5290_v34, %v5271_v26  ;;  %6609 = vmatmul.f32.vlgmr.msra.gmra.mxu2 %v20773_v35  ;;  %6629 = vmatmul.f32.vlgmr.msra.gmra.mxu3 %v20776_v37  ;;  %v20856_v37 = vld.sshfl [vmem:[#allocation1 + $0x20] sm:$0xff pattern:$0x75316420]  ;;  %v20877_v7 = vld.sshfl [vmem:[#allocation1 + $0x8] sm:$0xff pattern:$0x75316420] }
 0x125   : > { %6569 = vmatmul.f32.vlgmr.msra.gmra.mxu0 %v20790_v33  ;;  %6589 = vmatmul.f32.vlgmr.msra.gmra.mxu1 %v20792_v29  ;;  %v20858_v33 = vld.sshfl [vmem:[#allocation1 + $0x28] sm:$0xff pattern:$0x75316420]  ;;  %v20872_v55 = vld.sshfl [vmem:[#allocation1] sm:$0xff pattern:$0x75316420] }
 0x126   : > { %v5311_v31 = vadd.f32 %v5310_v36, %v5291_v45  ;;  %6688 = vmatpush.xpose.msrb.mxu2 %v740_v38  ;;  %6648 = vmatpush.xpose.msrb.mxu0 %v738_v41  ;;  %2735 = vst [vmem:[#allocation1 + $0x20] ss:$2 sm:$0xff] %v308_v48  ;;  %v1519_v26 = vld [vmem:[%s20307_s9 + $0x1bc8] sm:$0x3]  ;;  %v753_v48 = vld [vmem:[%s20307_s9 + $0x3d8] sm:$0xff] }
 0x127   : > { %v5330_v50 = vpop.f32.mrf.mxu2  ;;  %v5350_v35 = vpop.f32.mrf.mxu3  ;;  %6708 = vmatpush.xpose.msrb.mxu3 %v741_v46  ;;  %6668 = vmatpush.xpose.msrb.mxu1 %v739_v27  ;;  %2745 = vst [vmem:[#allocation1] ss:$2 sm:$0xff] %v310_v56  ;;  %v20905_v45 = vld.sshfl [vmem:[#allocation1 + $0x10] sm:$0xff pattern:$0x75316420]  ;;  %v750_v46 = vld [vmem:[%s20307_s9 + $0x3c0] sm:$0xff] }
 0x128   : > { %v5331_v29 = vadd.f32 %v5330_v50, %v5311_v31  ;;  %2748 = vst [vmem:[#allocation1 + $0x30] ss:$2 sm:$0xff] %v313_v13  ;;  %v20908_v27 = vld.sshfl [vmem:[#allocation1 + $0x18] sm:$0xff pattern:$0x75316420]  ;;  %v751_v31 = vld [vmem:[%s20307_s9 + $0x3c8] sm:$0xff] }
 0x129   : > { %v314_v50 = vld [vmem:[%s20300_s7 + $0x220] sm:$0xff]  ;;  %v317_v56 = vld [vmem:[%s20300_s7 + $0x238] sm:$0xff] }
 0x12a   : > { %6767 = vmatpush.xpose.msra.mxu2 %v1512_v43  ;;  %6727 = vmatpush.xpose.msra.mxu0 %v1510_v47  ;;  %v5351_v54 = vadd.f32 %v5350_v35, %v5331_v29  ;;  %v5370_v57 = vpop.f32.mrf.mxu0  ;;  %v5390_v0 = vpop.f32.mrf.mxu1  ;;  %v315_v43 = vld [vmem:[%s20300_s7 + $0x228] sm:$0xff]  ;;  %v1525_v29 = vld [vmem:[%s20307_s9 + $0x1bf8] sm:$0x3] }
 0x12b   : > { %6787 = vmatpush.xpose.msra.mxu3 %v1513_v42  ;;  %6747 = vmatpush.xpose.msra.mxu1 %v1511_v49  ;;  %2758 = vst [vmem:[#allocation1 + $0x10] ss:$2 sm:$0xff] %v315_v43  ;;  %v1524_v42 = vld [vmem:[%s20307_s9 + $0x1bf0] sm:$0x3]  ;;  %v1522_v49 = vld [vmem:[%s20307_s9 + $0x1be0] sm:$0x3] }
 0x12c   : > { %v5371_v62 = vadd.f32 %v5370_v57, %v5351_v54  ;;  %6689 = vmatmul.f32.vlgmr.msrb.gmra.mxu2 %v20797_v1  ;;  %6709 = vmatmul.f32.vlgmr.msrb.gmra.mxu3 %v20800_v58  ;;  %v1515_v1 = vld [vmem:[%s20307_s9 + $0x1ba8] sm:$0x3]  ;;  %v756_v57 = vld [vmem:[%s20307_s9 + $0x3f0] sm:$0xff]  ;;  %v761_v13 = vld [vmem:[%s20307_s9 + $0x418] sm:$0xff] }
 0x12d   : > { %6649 = vmatmul.f32.vlgmr.msrb.gmra.mxu0 %v20806_v51  ;;  %6669 = vmatmul.f32.vlgmr.msrb.gmra.mxu1 %v20811_v5  ;;  %v748_v5 = vld [vmem:[%s20307_s9 + $0x3b0] sm:$0xff]  ;;  %v20898_v32 = vld.sshfl [vmem:[#allocation1 + $0x20] sm:$0xff pattern:$0x75316420] }
 0x12e   : > { %v5391_v3 = vadd.f32 %v5390_v0, %v5371_v62  ;;  %6768 = vmatpush.xpose.msra.mxu2 %v744_v52  ;;  %6728 = vmatpush.xpose.msra.mxu0 %v742_v2  ;;  %v20901_v34 = vld.sshfl [vmem:[#allocation1 + $0x28] sm:$0xff pattern:$0x75316420]  ;;  %v1523_v52 = vld [vmem:[%s20307_s9 + $0x1be8] sm:$0x3]  ;;  %v764_v43 = vld [vmem:[%s20307_s9 + $0x430] sm:$0xff] }
 0x12f   : > { %v5410_v58 = vpop.f32.mrf.mxu2  ;;  %v5430_v12 = vpop.f32.mrf.mxu3  ;;  %6788 = vmatpush.xpose.msra.mxu3 %v745_v61  ;;  %6748 = vmatpush.xpose.msra.mxu1 %v743_v6  ;;  %v20929_v62 = vld.sshfl [vmem:[#allocation1 + $0x30] sm:$0xff pattern:$0x75316420]  ;;  %v1528_v6 = vld [vmem:[%s20307_s9 + $0x1c10] sm:$0x3] }
 0x130   : > { %v5411_v51 = vadd.f32 %v5410_v58, %v5391_v3  ;;  %v1526_v58 = vld [vmem:[%s20307_s9 + $0x1c00] sm:$0x3] }
 0x132   : > { %6847 = vmatpush.xpose.msrb.mxu2 %v1516_v4  ;;  %6807 = vmatpush.xpose.msrb.mxu0 %v1514_v60  ;;  %v5431_v14 = vadd.f32 %v5430_v12, %v5411_v51  ;;  %v5450_v17 = vpop.f32.mrf.mxu0  ;;  %v5470_v20 = vpop.f32.mrf.mxu1  ;;  %v754_v4 = vld [vmem:[%s20307_s9 + $0x3e0] sm:$0xff]  ;;  %v20932_v60 = vld.sshfl [vmem:[#allocation1 + $0x38] sm:$0xff pattern:$0x75316420] }
 0x133   : > { %6867 = vmatpush.xpose.msrb.mxu3 %v1517_v9  ;;  %6827 = vmatpush.xpose.msrb.mxu1 %v1515_v1  ;;  %v755_v9 = vld [vmem:[%s20307_s9 + $0x3e8] sm:$0xff]  ;;  %2760 = vst [vmem:[#allocation1 + $0x30] ss:$2 sm:$0xff] %v317_v56  ;;  %v316_v51 = vld [vmem:[%s20300_s7 + $0x230] sm:$0xff]  ;;  %v769_v56 = vld [vmem:[%s20307_s9 + $0x458] sm:$0xff] }
 0x134   : > { %v5451_v21 = vadd.f32 %v5450_v17, %v5431_v14  ;;  %6769 = vmatmul.f32.vlgmr.msra.gmra.mxu2 %v20819_v22  ;;  %6789 = vmatmul.f32.vlgmr.msra.gmra.mxu3 %v20822_v8  ;;  %v312_v22 = vld [vmem:[%s20300_s7 + $0x210] sm:$0xff]  ;;  %v1529_v14 = vld [vmem:[%s20307_s9 + $0x1c18] sm:$0x3] }
 0x135   : > { %6729 = vmatmul.f32.vlgmr.msra.gmra.mxu0 %v20832_v28  ;;  %6749 = vmatmul.f32.vlgmr.msra.gmra.mxu1 %v20835_v30  ;;  %2747 = vst [vmem:[#allocation1 + $0x20] ss:$2 sm:$0xff] %v312_v22  ;;  %v1530_v22 = vld [vmem:[%s20307_s9 + $0x1c20] sm:$0x3] }
 0x136   : > { %v5471_v25 = vadd.f32 %v5470_v20, %v5451_v21  ;;  %6848 = vmatpush.xpose.msrb.mxu2 %v748_v5  ;;  %6808 = vmatpush.xpose.msrb.mxu0 %v746_v23  ;;  %v20951_v21 = vld.sshfl [vmem:[#allocation1 + $0x10] sm:$0xff pattern:$0x75316420] }
 0x137   : > { %v5490_v8 = vpop.f32.mrf.mxu2  ;;  %v5510_v36 = vpop.f32.mrf.mxu3  ;;  %6868 = vmatpush.xpose.msrb.mxu3 %v749_v10  ;;  %6828 = vmatpush.xpose.msrb.mxu1 %v747_v18  ;;  %v758_v18 = vld [vmem:[%s20307_s9 + $0x400] sm:$0xff] }
 0x138   : > { %v5491_v28 = vadd.f32 %v5490_v8, %v5471_v25  ;;  %v1533_v8 = vld [vmem:[%s20307_s9 + $0x1c38] sm:$0x3] }
 0x13a   : > { %6927 = vmatpush.xpose.msra.mxu2 %v1520_v24  ;;  %6887 = vmatpush.xpose.msra.mxu0 %v1518_v16  ;;  %v5511_v30 = vadd.f32 %v5510_v36, %v5491_v28  ;;  %v5530_v38 = vpop.f32.mrf.mxu0  ;;  %v5550_v41 = vpop.f32.mrf.mxu1  ;;  %v759_v24 = vld [vmem:[%s20307_s9 + $0x408] sm:$0xff]  ;;  %v20954_v16 = vld.sshfl [vmem:[#allocation1 + $0x18] sm:$0xff pattern:$0x75316420] }
 0x13b   : > { %6947 = vmatpush.xpose.msra.mxu3 %v1521_v19  ;;  %6907 = vmatpush.xpose.msra.mxu1 %v1519_v26  ;;  %v319_v19 = vld [vmem:[%s20300_s7 + $0x248] sm:$0xff]  ;;  %v1532_v26 = vld [vmem:[%s20307_s9 + $0x1c30] sm:$0x3] }
 0x13c   : > { %v5531_v47 = vadd.f32 %v5530_v38, %v5511_v30  ;;  %6849 = vmatmul.f32.vlgmr.msrb.gmra.mxu2 %v20839_v39  ;;  %6869 = vmatmul.f32.vlgmr.msrb.gmra.mxu3 %v20842_v40  ;;  %v20922_v40 = vld.sshfl [vmem:[#allocation1] sm:$0xff pattern:$0x75316420]  ;;  %v20943_v12 = vld.sshfl [vmem:[#allocation1 + $0x28] sm:$0xff pattern:$0x75316420] }
 0x13d   : > { %6809 = vmatmul.f32.vlgmr.msrb.gmra.mxu0 %v20856_v37  ;;  %6829 = vmatmul.f32.vlgmr.msrb.gmra.mxu1 %v20858_v33  ;;  %v20924_v37 = vld.sshfl [vmem:[#allocation1 + $0x8] sm:$0xff pattern:$0x75316420]  ;;  %v20938_v1 = vld.sshfl [vmem:[#allocation1 + $0x20] sm:$0xff pattern:$0x75316420] }
 0x13e   : > { %v5551_v35 = vadd.f32 %v5550_v41, %v5531_v47  ;;  %6928 = vmatpush.xpose.msra.mxu2 %v752_v44  ;;  %6888 = vmatpush.xpose.msra.mxu0 %v750_v46  ;;  %2757 = vst [vmem:[#allocation1] ss:$2 sm:$0xff] %v314_v50  ;;  %v1531_v30 = vld [vmem:[%s20307_s9 + $0x1c28] sm:$0x3]  ;;  %v765_v50 = vld [vmem:[%s20307_s9 + $0x438] sm:$0xff] }
 0x13f   : > { %v5570_v54 = vpop.f32.mrf.mxu2  ;;  %v5590_v39 = vpop.f32.mrf.mxu3  ;;  %6948 = vmatpush.xpose.msra.mxu3 %v753_v48  ;;  %6908 = vmatpush.xpose.msra.mxu1 %v751_v31  ;;  %2759 = vst [vmem:[#allocation1 + $0x20] ss:$2 sm:$0xff] %v316_v51  ;;  %v20971_v47 = vld.sshfl [vmem:[#allocation1 + $0x30] sm:$0xff pattern:$0x75316420]  ;;  %v762_v48 = vld [vmem:[%s20307_s9 + $0x420] sm:$0xff] }
 0x140   : > { %v5571_v33 = vadd.f32 %v5570_v54, %v5551_v35  ;;  %2770 = vst [vmem:[#allocation1 + $0x10] ss:$2 sm:$0xff] %v319_v19  ;;  %v20974_v31 = vld.sshfl [vmem:[#allocation1 + $0x38] sm:$0xff pattern:$0x75316420]  ;;  %v763_v35 = vld [vmem:[%s20307_s9 + $0x428] sm:$0xff] }
 0x141   : > { %v320_v54 = vld [vmem:[%s20300_s7 + $0x250] sm:$0xff]  ;;  %v323_v51 = vld [vmem:[%s20300_s7 + $0x268] sm:$0xff]  ;;  %v773_v19 = vld [vmem:[%s20307_s9 + $0x478] sm:$0xff] }
 0x142   : > { %7007 = vmatpush.xpose.msrb.mxu2 %v1524_v42  ;;  %6967 = vmatpush.xpose.msrb.mxu0 %v1522_v49  ;;  %v5591_v0 = vadd.f32 %v5590_v39, %v5571_v33  ;;  %v5610_v2 = vpop.f32.mrf.mxu0  ;;  %v5630_v61 = vpop.f32.mrf.mxu1  ;;  %v321_v42 = vld [vmem:[%s20300_s7 + $0x258] sm:$0xff] }
 0x143   : > { %7027 = vmatpush.xpose.msrb.mxu3 %v1525_v29  ;;  %6987 = vmatpush.xpose.msrb.mxu1 %v1523_v52  ;;  %2772 = vst [vmem:[#allocation1 + $0x30] ss:$2 sm:$0xff] %v321_v42  ;;  %v1536_v29 = vld [vmem:[%s20307_s9 + $0x1c50] sm:$0x3]  ;;  %v1534_v52 = vld [vmem:[%s20307_s9 + $0x1c40] sm:$0x3] }
 0x144   : > { %v5611_v3 = vadd.f32 %v5610_v2, %v5591_v0  ;;  %6929 = vmatmul.f32.vlgmr.msra.gmra.mxu2 %v20863_v63  ;;  %6949 = vmatmul.f32.vlgmr.msra.gmra.mxu3 %v20866_v53  ;;  %v1527_v63 = vld [vmem:[%s20307_s9 + $0x1c08] sm:$0x3]  ;;  %v1537_v33 = vld [vmem:[%s20307_s9 + $0x1c58] sm:$0x3]  ;;  %v768_v2 = vld [vmem:[%s20307_s9 + $0x450] sm:$0xff] }
 0x145   : > { %6889 = vmatmul.f32.vlgmr.msra.gmra.mxu0 %v20872_v55  ;;  %6909 = vmatmul.f32.vlgmr.msra.gmra.mxu1 %v20877_v7  ;;  %v760_v7 = vld [vmem:[%s20307_s9 + $0x410] sm:$0xff]  ;;  %v20964_v36 = vld.sshfl [vmem:[#allocation1] sm:$0xff pattern:$0x75316420] }
 0x146   : > { %v5631_v5 = vadd.f32 %v5630_v61, %v5611_v3  ;;  %7008 = vmatpush.xpose.msrb.mxu2 %v756_v57  ;;  %6968 = vmatpush.xpose.msrb.mxu0 %v754_v4  ;;  %v20967_v38 = vld.sshfl [vmem:[#allocation1 + $0x8] sm:$0xff pattern:$0x75316420]  ;;  %v1535_v57 = vld [vmem:[%s20307_s9 + $0x1c48] sm:$0x3]  ;;  %v776_v42 = vld [vmem:[%s20307_s9 + $0x490] sm:$0xff] }
 0x147   : > { %v5650_v53 = vpop.f32.mrf.mxu2  ;;  %v5670_v17 = vpop.f32.mrf.mxu3  ;;  %7028 = vmatpush.xpose.msrb.mxu3 %v757_v59  ;;  %6988 = vmatpush.xpose.msrb.mxu1 %v755_v9  ;;  %v20995_v3 = vld.sshfl [vmem:[#allocation1 + $0x10] sm:$0xff pattern:$0x75316420]  ;;  %v1540_v9 = vld [vmem:[%s20307_s9 + $0x1c70] sm:$0x3] }
 0x148   : > { %v5651_v55 = vadd.f32 %v5650_v53, %v5631_v5  ;;  %v1538_v53 = vld [vmem:[%s20307_s9 + $0x1c60] sm:$0x3] }
 0x14a   : > { %7087 = vmatpush.xpose.msra.mxu2 %v1528_v6  ;;  %7047 = vmatpush.xpose.msra.mxu0 %v1526_v58  ;;  %v5671_v20 = vadd.f32 %v5670_v17, %v5651_v55  ;;  %v5690_v23 = vpop.f32.mrf.mxu0  ;;  %v5710_v10 = vpop.f32.mrf.mxu1  ;;  %v766_v6 = vld [vmem:[%s20307_s9 + $0x440] sm:$0xff]  ;;  %v20998_v58 = vld.sshfl [vmem:[#allocation1 + $0x18] sm:$0xff pattern:$0x75316420] }
 0x14b   : > { %7107 = vmatpush.xpose.msra.mxu3 %v1529_v14  ;;  %7067 = vmatpush.xpose.msra.mxu1 %v1527_v63  ;;  %v767_v14 = vld [vmem:[%s20307_s9 + $0x448] sm:$0xff]  ;;  %2782 = vst [vmem:[#allocation1 + $0x10] ss:$2 sm:$0xff] %v323_v51  ;;  %v322_v55 = vld [vmem:[%s20300_s7 + $0x260] sm:$0xff]  ;;  %v781_v51 = vld [vmem:[%s20307_s9 + $0x4b8] sm:$0xff] }
 0x14c   : > { %v5691_v25 = vadd.f32 %v5690_v23, %v5671_v20  ;;  %7009 = vmatmul.f32.vlgmr.msrb.gmra.mxu2 %v20885_v15  ;;  %7029 = vmatmul.f32.vlgmr.msrb.gmra.mxu3 %v20888_v11  ;;  %v318_v15 = vld [vmem:[%s20300_s7 + $0x240] sm:$0xff]  ;;  %v1541_v20 = vld [vmem:[%s20307_s9 + $0x1c78] sm:$0x3] }
 0x14d   : > { %6969 = vmatmul.f32.vlgmr.msrb.gmra.mxu0 %v20898_v32  ;;  %6989 = vmatmul.f32.vlgmr.msrb.gmra.mxu1 %v20901_v34  ;;  %2769 = vst [vmem:[#allocation1] ss:$2 sm:$0xff] %v318_v15  ;;  %v1542_v15 = vld [vmem:[%s20307_s9 + $0x1c80] sm:$0x3] }
 0x14e   : > { %v5711_v28 = vadd.f32 %v5710_v10, %v5691_v25  ;;  %7088 = vmatpush.xpose.msra.mxu2 %v760_v7  ;;  %7048 = vmatpush.xpose.msra.mxu0 %v758_v18  ;;  %v21017_v25 = vld.sshfl [vmem:[#allocation1 + $0x30] sm:$0xff pattern:$0x75316420] }
 0x14f   : > { %v5730_v11 = vpop.f32.mrf.mxu2  ;;  %v5750_v41 = vpop.f32.mrf.mxu3  ;;  %7108 = vmatpush.xpose.msra.mxu3 %v761_v13  ;;  %7068 = vmatpush.xpose.msra.mxu1 %v759_v24  ;;  %v770_v24 = vld [vmem:[%s20307_s9 + $0x460] sm:$0xff] }
 0x150   : > { %v5731_v32 = vadd.f32 %v5730_v11, %v5711_v28  ;;  %v1545_v11 = vld [vmem:[%s20307_s9 + $0x1c98] sm:$0x3] }
 0x152   : > { %7167 = vmatpush.xpose.msrb.mxu2 %v1532_v26  ;;  %7127 = vmatpush.xpose.msrb.mxu0 %v1530_v22  ;;  %v5751_v34 = vadd.f32 %v5750_v41, %v5731_v32  ;;  %v5770_v44 = vpop.f32.mrf.mxu0  ;;  %v5790_v46 = vpop.f32.mrf.mxu1  ;;  %v771_v26 = vld [vmem:[%s20307_s9 + $0x468] sm:$0xff]  ;;  %v21020_v22 = vld.sshfl [vmem:[#allocation1 + $0x38] sm:$0xff pattern:$0x75316420] }
 0x153   : > { %7187 = vmatpush.xpose.msrb.mxu3 %v1533_v8  ;;  %7147 = vmatpush.xpose.msrb.mxu1 %v1531_v30  ;;  %v325_v8 = vld [vmem:[%s20300_s7 + $0x278] sm:$0xff]  ;;  %v1544_v30 = vld [vmem:[%s20307_s9 + $0x1c90] sm:$0x3] }
 0x154   : > { %v5771_v49 = vadd.f32 %v5770_v44, %v5751_v34  ;;  %7089 = vmatmul.f32.vlgmr.msra.gmra.mxu2 %v20905_v45  ;;  %7109 = vmatmul.f32.vlgmr.msra.gmra.mxu3 %v20908_v27  ;;  %v20988_v27 = vld.sshfl [vmem:[#allocation1 + $0x20] sm:$0xff pattern:$0x75316420]  ;;  %v21009_v17 = vld.sshfl [vmem:[#allocation1 + $0x8] sm:$0xff pattern:$0x75316420] }
 0x155   : > { %7049 = vmatmul.f32.vlgmr.msra.gmra.mxu0 %v20922_v40  ;;  %7069 = vmatmul.f32.vlgmr.msra.gmra.mxu1 %v20924_v37  ;;  %v20990_v40 = vld.sshfl [vmem:[#allocation1 + $0x28] sm:$0xff pattern:$0x75316420]  ;;  %v21004_v63 = vld.sshfl [vmem:[#allocation1] sm:$0xff pattern:$0x75316420] }
 0x156   : > { %v5791_v39 = vadd.f32 %v5790_v46, %v5771_v49  ;;  %7168 = vmatpush.xpose.msrb.mxu2 %v764_v43  ;;  %7128 = vmatpush.xpose.msrb.mxu0 %v762_v48  ;;  %2771 = vst [vmem:[#allocation1 + $0x20] ss:$2 sm:$0xff] %v320_v54  ;;  %v1543_v34 = vld [vmem:[%s20307_s9 + $0x1c88] sm:$0x3]  ;;  %v777_v54 = vld [vmem:[%s20307_s9 + $0x498] sm:$0xff] }
 0x157   : > { %v5810_v0 = vpop.f32.mrf.mxu2  ;;  %v5830_v45 = vpop.f32.mrf.mxu3  ;;  %7188 = vmatpush.xpose.msrb.mxu3 %v765_v50  ;;  %7148 = vmatpush.xpose.msrb.mxu1 %v763_v35  ;;  %2781 = vst [vmem:[#allocation1] ss:$2 sm:$0xff] %v322_v55  ;;  %v21037_v49 = vld.sshfl [vmem:[#allocation1 + $0x10] sm:$0xff pattern:$0x75316420]  ;;  %v774_v50 = vld [vmem:[%s20307_s9 + $0x480] sm:$0xff] }
 0x158   : > { %v5811_v37 = vadd.f32 %v5810_v0, %v5791_v39  ;;  %2784 = vst [vmem:[#allocation1 + $0x30] ss:$2 sm:$0xff] %v325_v8  ;;  %v21040_v35 = vld.sshfl [vmem:[#allocation1 + $0x18] sm:$0xff pattern:$0x75316420]  ;;  %v775_v39 = vld [vmem:[%s20307_s9 + $0x488] sm:$0xff] }
 0x159   : > { %v326_v0 = vld [vmem:[%s20300_s7 + $0x280] sm:$0xff]  ;;  %v329_v55 = vld [vmem:[%s20300_s7 + $0x298] sm:$0xff] }
 0x15a   : > { %7247 = vmatpush.xpose.msra.mxu2 %v1536_v29  ;;  %7207 = vmatpush.xpose.msra.mxu0 %v1534_v52  ;;  %v5831_v61 = vadd.f32 %v5830_v45, %v5811_v37  ;;  %v5850_v4 = vpop.f32.mrf.mxu0  ;;  %v5870_v59 = vpop.f32.mrf.mxu1  ;;  %v327_v29 = vld [vmem:[%s20300_s7 + $0x288] sm:$0xff]  ;;  %v1549_v37 = vld [vmem:[%s20307_s9 + $0x1cb8] sm:$0x3] }
 0x15b   : > { %7267 = vmatpush.xpose.msra.mxu3 %v1537_v33  ;;  %7227 = vmatpush.xpose.msra.mxu1 %v1535_v57  ;;  %2794 = vst [vmem:[#allocation1 + $0x10] ss:$2 sm:$0xff] %v327_v29  ;;  %v1548_v33 = vld [vmem:[%s20307_s9 + $0x1cb0] sm:$0x3]  ;;  %v1546_v57 = vld [vmem:[%s20307_s9 + $0x1ca0] sm:$0x3] }
 0x15c   : > { %v5851_v5 = vadd.f32 %v5850_v4, %v5831_v61  ;;  %7169 = vmatmul.f32.vlgmr.msrb.gmra.mxu2 %v20929_v62  ;;  %7189 = vmatmul.f32.vlgmr.msrb.gmra.mxu3 %v20932_v60  ;;  %v1539_v62 = vld [vmem:[%s20307_s9 + $0x1c68] sm:$0x3]  ;;  %v780_v4 = vld [vmem:[%s20307_s9 + $0x4b0] sm:$0xff]  ;;  %v785_v8 = vld [vmem:[%s20307_s9 + $0x4d8] sm:$0xff] }
 0x15d   : > { %7129 = vmatmul.f32.vlgmr.msrb.gmra.mxu0 %v20938_v1  ;;  %7149 = vmatmul.f32.vlgmr.msrb.gmra.mxu1 %v20943_v12  ;;  %v772_v12 = vld [vmem:[%s20307_s9 + $0x470] sm:$0xff]  ;;  %v21030_v41 = vld.sshfl [vmem:[#allocation1 + $0x20] sm:$0xff pattern:$0x75316420] }
 0x15e   : > { %v5871_v7 = vadd.f32 %v5870_v59, %v5851_v5  ;;  %7248 = vmatpush.xpose.msra.mxu2 %v768_v2  ;;  %7208 = vmatpush.xpose.msra.mxu0 %v766_v6  ;;  %v21033_v44 = vld.sshfl [vmem:[#allocation1 + $0x28] sm:$0xff pattern:$0x75316420]  ;;  %v1547_v2 = vld [vmem:[%s20307_s9 + $0x1ca8] sm:$0x3]  ;;  %v788_v29 = vld [vmem:[%s20307_s9 + $0x4f0] sm:$0xff] }
 0x15f   : > { %v5890_v60 = vpop.f32.mrf.mxu2  ;;  %v5910_v23 = vpop.f32.mrf.mxu3  ;;  %7268 = vmatpush.xpose.msra.mxu3 %v769_v56  ;;  %7228 = vmatpush.xpose.msra.mxu1 %v767_v14  ;;  %v21061_v5 = vld.sshfl [vmem:[#allocation1 + $0x30] sm:$0xff pattern:$0x75316420]  ;;  %v1552_v14 = vld [vmem:[%s20307_s9 + $0x1cd0] sm:$0x3] }
 0x160   : > { %v5891_v1 = vadd.f32 %v5890_v60, %v5871_v7  ;;  %v1550_v60 = vld [vmem:[%s20307_s9 + $0x1cc0] sm:$0x3] }
 0x162   : > { %7327 = vmatpush.xpose.msrb.mxu2 %v1540_v9  ;;  %7287 = vmatpush.xpose.msrb.mxu0 %v1538_v53  ;;  %v5911_v10 = vadd.f32 %v5910_v23, %v5891_v1  ;;  %v5930_v18 = vpop.f32.mrf.mxu0  ;;  %v5950_v13 = vpop.f32.mrf.mxu1  ;;  %v778_v9 = vld [vmem:[%s20307_s9 + $0x4a0] sm:$0xff]  ;;  %v21064_v53 = vld.sshfl [vmem:[#allocation1 + $0x38] sm:$0xff pattern:$0x75316420] }
 0x163   : > { %7347 = vmatpush.xpose.msrb.mxu3 %v1541_v20  ;;  %7307 = vmatpush.xpose.msrb.mxu1 %v1539_v62  ;;  %v779_v20 = vld [vmem:[%s20307_s9 + $0x4a8] sm:$0xff]  ;;  %2796 = vst [vmem:[#allocation1 + $0x30] ss:$2 sm:$0xff] %v329_v55  ;;  %v328_v1 = vld [vmem:[%s20300_s7 + $0x290] sm:$0xff]  ;;  %v793_v55 = vld [vmem:[%s20307_s9 + $0x518] sm:$0xff] }
 0x164   : > { %v5931_v28 = vadd.f32 %v5930_v18, %v5911_v10  ;;  %7249 = vmatmul.f32.vlgmr.msra.gmra.mxu2 %v20951_v21  ;;  %7269 = vmatmul.f32.vlgmr.msra.gmra.mxu3 %v20954_v16  ;;  %v324_v21 = vld [vmem:[%s20300_s7 + $0x270] sm:$0xff]  ;;  %v1553_v10 = vld [vmem:[%s20307_s9 + $0x1cd8] sm:$0x3] }
 0x165   : > { %7209 = vmatmul.f32.vlgmr.msra.gmra.mxu0 %v20964_v36  ;;  %7229 = vmatmul.f32.vlgmr.msra.gmra.mxu1 %v20967_v38  ;;  %2783 = vst [vmem:[#allocation1 + $0x20] ss:$2 sm:$0xff] %v324_v21  ;;  %v1554_v21 = vld [vmem:[%s20307_s9 + $0x1ce0] sm:$0x3] }
 0x166   : > { %v5951_v32 = vadd.f32 %v5950_v13, %v5931_v28  ;;  %7328 = vmatpush.xpose.msrb.mxu2 %v772_v12  ;;  %7288 = vmatpush.xpose.msrb.mxu0 %v770_v24  ;;  %v21083_v28 = vld.sshfl [vmem:[#allocation1 + $0x10] sm:$0xff pattern:$0x75316420] }
 0x167   : > { %v5970_v16 = vpop.f32.mrf.mxu2  ;;  %v5990_v46 = vpop.f32.mrf.mxu3  ;;  %7348 = vmatpush.xpose.msrb.mxu3 %v773_v19  ;;  %7308 = vmatpush.xpose.msrb.mxu1 %v771_v26  ;;  %v782_v26 = vld [vmem:[%s20307_s9 + $0x4c0] sm:$0xff] }
 0x168   : > { %v5971_v36 = vadd.f32 %v5970_v16, %v5951_v32  ;;  %v1557_v16 = vld [vmem:[%s20307_s9 + $0x1cf8] sm:$0x3] }
 0x16a   : > { %7407 = vmatpush.xpose.msra.mxu2 %v1544_v30  ;;  %7367 = vmatpush.xpose.msra.mxu0 %v1542_v15  ;;  %v5991_v38 = vadd.f32 %v5990_v46, %v5971_v36  ;;  %v6010_v43 = vpop.f32.mrf.mxu0  ;;  %v6030_v48 = vpop.f32.mrf.mxu1  ;;  %v783_v30 = vld [vmem:[%s20307_s9 + $0x4c8] sm:$0xff]  ;;  %v21086_v15 = vld.sshfl [vmem:[#allocation1 + $0x18] sm:$0xff pattern:$0x75316420] }
 0x16b   : > { %7427 = vmatpush.xpose.msra.mxu3 %v1545_v11  ;;  %7387 = vmatpush.xpose.msra.mxu1 %v1543_v34  ;;  %v331_v11 = vld [vmem:[%s20300_s7 + $0x2a8] sm:$0xff]  ;;  %v1556_v34 = vld [vmem:[%s20307_s9 + $0x1cf0] sm:$0x3] }
 0x16c   : > { %v6011_v52 = vadd.f32 %v6010_v43, %v5991_v38  ;;  %7329 = vmatmul.f32.vlgmr.msrb.gmra.mxu2 %v20971_v47  ;;  %7349 = vmatmul.f32.vlgmr.msrb.gmra.mxu3 %v20974_v31  ;;  %v21054_v31 = vld.sshfl [vmem:[#allocation1] sm:$0xff pattern:$0x75316420]  ;;  %v21075_v23 = vld.sshfl [vmem:[#allocation1 + $0x28] sm:$0xff pattern:$0x75316420] }
 0x16d   : > { %7289 = vmatmul.f32.vlgmr.msrb.gmra.mxu0 %v20988_v27  ;;  %7309 = vmatmul.f32.vlgmr.msrb.gmra.mxu1 %v20990_v40  ;;  %v21056_v27 = vld.sshfl [vmem:[#allocation1 + $0x8] sm:$0xff pattern:$0x75316420]  ;;  %v21070_v62 = vld.sshfl [vmem:[#allocation1 + $0x20] sm:$0xff pattern:$0x75316420] }
 0x16e   : > { %v6031_v45 = vadd.f32 %v6030_v48, %v6011_v52  ;;  %7408 = vmatpush.xpose.msra.mxu2 %v776_v42  ;;  %7368 = vmatpush.xpose.msra.mxu0 %v774_v50  ;;  %2793 = vst [vmem:[#allocation1] ss:$2 sm:$0xff] %v326_v0  ;;  %v1555_v38 = vld [vmem:[%s20307_s9 + $0x1ce8] sm:$0x3]  ;;  %v789_v0 = vld [vmem:[%s20307_s9 + $0x4f8] sm:$0xff] }
 0x16f   : > { %v6050_v61 = vpop.f32.mrf.mxu2  ;;  %v6070_v47 = vpop.f32.mrf.mxu3  ;;  %7428 = vmatpush.xpose.msra.mxu3 %v777_v54  ;;  %7388 = vmatpush.xpose.msra.mxu1 %v775_v39  ;;  %2795 = vst [vmem:[#allocation1 + $0x20] ss:$2 sm:$0xff] %v328_v1  ;;  %v21103_v52 = vld.sshfl [vmem:[#allocation1 + $0x30] sm:$0xff pattern:$0x75316420]  ;;  %v786_v54 = vld [vmem:[%s20307_s9 + $0x4e0] sm:$0xff] }
 0x170   : > { %v6051_v40 = vadd.f32 %v6050_v61, %v6031_v45  ;;  %2806 = vst [vmem:[#allocation1 + $0x10] ss:$2 sm:$0xff] %v331_v11  ;;  %v21106_v39 = vld.sshfl [vmem:[#allocation1 + $0x38] sm:$0xff pattern:$0x75316420]  ;;  %v787_v45 = vld [vmem:[%s20307_s9 + $0x4e8] sm:$0xff] }
 0x171   : > { %v332_v61 = vld [vmem:[%s20300_s7 + $0x2b0] sm:$0xff]  ;;  %v335_v1 = vld [vmem:[%s20300_s7 + $0x2c8] sm:$0xff]  ;;  %v797_v11 = vld [vmem:[%s20307_s9 + $0x538] sm:$0xff] }
 0x172   : > { %7487 = vmatpush.xpose.msrb.mxu2 %v1548_v33  ;;  %7447 = vmatpush.xpose.msrb.mxu0 %v1546_v57  ;;  %v6071_v59 = vadd.f32 %v6070_v47, %v6051_v40  ;;  %v6090_v6 = vpop.f32.mrf.mxu0  ;;  %v6110_v56 = vpop.f32.mrf.mxu1  ;;  %v333_v33 = vld [vmem:[%s20300_s7 + $0x2b8] sm:$0xff] }
 0x173   : > { %7507 = vmatpush.xpose.msrb.mxu3 %v1549_v37  ;;  %7467 = vmatpush.xpose.msrb.mxu1 %v1547_v2  ;;  %2808 = vst [vmem:[#allocation1 + $0x30] ss:$2 sm:$0xff] %v333_v33  ;;  %v1560_v37 = vld [vmem:[%s20307_s9 + $0x1d10] sm:$0x3]  ;;  %v1558_v2 = vld [vmem:[%s20307_s9 + $0x1d00] sm:$0x3] }
 0x174   : > { %v6091_v7 = vadd.f32 %v6090_v6, %v6071_v59  ;;  %7409 = vmatmul.f32.vlgmr.msra.gmra.mxu2 %v20995_v3  ;;  %7429 = vmatmul.f32.vlgmr.msra.gmra.mxu3 %v20998_v58  ;;  %v1551_v3 = vld [vmem:[%s20307_s9 + $0x1cc8] sm:$0x3]  ;;  %v1561_v40 = vld [vmem:[%s20307_s9 + $0x1d18] sm:$0x3]  ;;  %v792_v6 = vld [vmem:[%s20307_s9 + $0x510] sm:$0xff] }
 0x175   : > { %7369 = vmatmul.f32.vlgmr.msra.gmra.mxu0 %v21004_v63  ;;  %7389 = vmatmul.f32.vlgmr.msra.gmra.mxu1 %v21009_v17  ;;  %v784_v17 = vld [vmem:[%s20307_s9 + $0x4d0] sm:$0xff]  ;;  %v21096_v46 = vld.sshfl [vmem:[#allocation1] sm:$0xff pattern:$0x75316420] }
 0x176   : > { %v6111_v12 = vadd.f32 %v6110_v56, %v6091_v7  ;;  %7488 = vmatpush.xpose.msrb.mxu2 %v780_v4  ;;  %7448 = vmatpush.xpose.msrb.mxu0 %v778_v9  ;;  %v21099_v43 = vld.sshfl [vmem:[#allocation1 + $0x8] sm:$0xff pattern:$0x75316420]  ;;  %v1559_v4 = vld [vmem:[%s20307_s9 + $0x1d08] sm:$0x3]  ;;  %v800_v33 = vld [vmem:[%s20307_s9 + $0x550] sm:$0xff] }
 0x177   : > { %v6130_v58 = vpop.f32.mrf.mxu2  ;;  %v6150_v18 = vpop.f32.mrf.mxu3  ;;  %7508 = vmatpush.xpose.msrb.mxu3 %v781_v51  ;;  %7468 = vmatpush.xpose.msrb.mxu1 %v779_v20  ;;  %v21127_v7 = vld.sshfl [vmem:[#allocation1 + $0x10] sm:$0xff pattern:$0x75316420]  ;;  %v1564_v20 = vld [vmem:[%s20307_s9 + $0x1d30] sm:$0x3] }
 0x178   : > { %v6131_v63 = vadd.f32 %v6130_v58, %v6111_v12  ;;  %v1562_v58 = vld [vmem:[%s20307_s9 + $0x1d20] sm:$0x3] }
 0x17a   : > { %7567 = vmatpush.xpose.msra.mxu2 %v1552_v14  ;;  %7527 = vmatpush.xpose.msra.mxu0 %v1550_v60  ;;  %v6151_v13 = vadd.f32 %v6150_v18, %v6131_v63  ;;  %v6170_v24 = vpop.f32.mrf.mxu0  ;;  %v6190_v19 = vpop.f32.mrf.mxu1  ;;  %v790_v14 = vld [vmem:[%s20307_s9 + $0x500] sm:$0xff]  ;;  %v21130_v60 = vld.sshfl [vmem:[#allocation1 + $0x18] sm:$0xff pattern:$0x75316420] }
 0x17b   : > { %7587 = vmatpush.xpose.msra.mxu3 %v1553_v10  ;;  %7547 = vmatpush.xpose.msra.mxu1 %v1551_v3  ;;  %v791_v10 = vld [vmem:[%s20307_s9 + $0x508] sm:$0xff]  ;;  %2818 = vst [vmem:[#allocation1 + $0x10] ss:$2 sm:$0xff] %v335_v1  ;;  %v334_v63 = vld [vmem:[%s20300_s7 + $0x2c0] sm:$0xff]  ;;  %v805_v1 = vld [vmem:[%s20307_s9 + $0x578] sm:$0xff] }
 0x17c   : > { %v6171_v32 = vadd.f32 %v6170_v24, %v6151_v13  ;;  %7489 = vmatmul.f32.vlgmr.msrb.gmra.mxu2 %v21017_v25  ;;  %7509 = vmatmul.f32.vlgmr.msrb.gmra.mxu3 %v21020_v22  ;;  %v330_v25 = vld [vmem:[%s20300_s7 + $0x2a0] sm:$0xff]  ;;  %v1565_v13 = vld [vmem:[%s20307_s9 + $0x1d38] sm:$0x3] }
 0x17d   : > { %7449 = vmatmul.f32.vlgmr.msrb.gmra.mxu0 %v21030_v41  ;;  %7469 = vmatmul.f32.vlgmr.msrb.gmra.mxu1 %v21033_v44  ;;  %2805 = vst [vmem:[#allocation1] ss:$2 sm:$0xff] %v330_v25  ;;  %v1566_v25 = vld [vmem:[%s20307_s9 + $0x1d40] sm:$0x3] }
 0x17e   : > { %v6191_v36 = vadd.f32 %v6190_v19, %v6171_v32  ;;  %7568 = vmatpush.xpose.msra.mxu2 %v784_v17  ;;  %7528 = vmatpush.xpose.msra.mxu0 %v782_v26  ;;  %v21149_v32 = vld.sshfl [vmem:[#allocation1 + $0x30] sm:$0xff pattern:$0x75316420] }
 0x17f   : > { %v6210_v22 = vpop.f32.mrf.mxu2  ;;  %v6230_v48 = vpop.f32.mrf.mxu3  ;;  %7588 = vmatpush.xpose.msra.mxu3 %v785_v8  ;;  %7548 = vmatpush.xpose.msra.mxu1 %v783_v30  ;;  %v794_v30 = vld [vmem:[%s20307_s9 + $0x520] sm:$0xff] }
 0x180   : > { %v6211_v41 = vadd.f32 %v6210_v22, %v6191_v36  ;;  %v1569_v22 = vld [vmem:[%s20307_s9 + $0x1d58] sm:$0x3] }
 0x182   : > { %7647 = vmatpush.xpose.msrb.mxu2 %v1556_v34  ;;  %7607 = vmatpush.xpose.msrb.mxu0 %v1554_v21  ;;  %v6231_v44 = vadd.f32 %v6230_v48, %v6211_v41  ;;  %v6250_v42 = vpop.f32.mrf.mxu0  ;;  %v6270_v50 = vpop.f32.mrf.mxu1  ;;  %v795_v34 = vld [vmem:[%s20307_s9 + $0x528] sm:$0xff]  ;;  %v21152_v21 = vld.sshfl [vmem:[#allocation1 + $0x38] sm:$0xff pattern:$0x75316420] }
 0x183   : > { %7667 = vmatpush.xpose.msrb.mxu3 %v1557_v16  ;;  %7627 = vmatpush.xpose.msrb.mxu1 %v1555_v38  ;;  %v337_v16 = vld [vmem:[%s20300_s7 + $0x2d8] sm:$0xff]  ;;  %v1568_v38 = vld [vmem:[%s20307_s9 + $0x1d50] sm:$0x3] }
 0x184   : > { %v6251_v57 = vadd.f32 %v6250_v42, %v6231_v44  ;;  %7569 = vmatmul.f32.vlgmr.msra.gmra.mxu2 %v21037_v49  ;;  %7589 = vmatmul.f32.vlgmr.msra.gmra.mxu3 %v21040_v35  ;;  %v21120_v35 = vld.sshfl [vmem:[#allocation1 + $0x20] sm:$0xff pattern:$0x75316420]  ;;  %v21141_v18 = vld.sshfl [vmem:[#allocation1 + $0x8] sm:$0xff pattern:$0x75316420] }
 0x185   : > { %7529 = vmatmul.f32.vlgmr.msra.gmra.mxu0 %v21054_v31  ;;  %7549 = vmatmul.f32.vlgmr.msra.gmra.mxu1 %v21056_v27  ;;  %v21122_v31 = vld.sshfl [vmem:[#allocation1 + $0x28] sm:$0xff pattern:$0x75316420]  ;;  %v21136_v3 = vld.sshfl [vmem:[#allocation1] sm:$0xff pattern:$0x75316420] }
 0x186   : > { %v6271_v47 = vadd.f32 %v6270_v50, %v6251_v57  ;;  %7648 = vmatpush.xpose.msrb.mxu2 %v788_v29  ;;  %7608 = vmatpush.xpose.msrb.mxu0 %v786_v54  ;;  %2807 = vst [vmem:[#allocation1 + $0x20] ss:$2 sm:$0xff] %v332_v61  ;;  %v1567_v44 = vld [vmem:[%s20307_s9 + $0x1d48] sm:$0x3]  ;;  %v801_v61 = vld [vmem:[%s20307_s9 + $0x558] sm:$0xff] }
 0x187   : > { %v6290_v59 = vpop.f32.mrf.mxu2  ;;  %v6310_v49 = vpop.f32.mrf.mxu3  ;;  %7668 = vmatpush.xpose.msrb.mxu3 %v789_v0  ;;  %7628 = vmatpush.xpose.msrb.mxu1 %v787_v45  ;;  %2817 = vst [vmem:[#allocation1] ss:$2 sm:$0xff] %v334_v63  ;;  %v21169_v57 = vld.sshfl [vmem:[#allocation1 + $0x10] sm:$0xff pattern:$0x75316420]  ;;  %v798_v0 = vld [vmem:[%s20307_s9 + $0x540] sm:$0xff] }
 0x188   : > { %v6291_v27 = vadd.f32 %v6290_v59, %v6271_v47  ;;  %2820 = vst [vmem:[#allocation1 + $0x30] ss:$2 sm:$0xff] %v337_v16  ;;  %v21172_v45 = vld.sshfl [vmem:[#allocation1 + $0x18] sm:$0xff pattern:$0x75316420]  ;;  %v799_v47 = vld [vmem:[%s20307_s9 + $0x548] sm:$0xff] }
 0x189   : > { %v338_v59 = vld [vmem:[%s20300_s7 + $0x2e0] sm:$0xff]  ;;  %v341_v63 = vld [vmem:[%s20300_s7 + $0x2f8] sm:$0xff] }
 0x18a   : > { %7727 = vmatpush.xpose.msra.mxu2 %v1560_v37  ;;  %7687 = vmatpush.xpose.msra.mxu0 %v1558_v2  ;;  %v6311_v56 = vadd.f32 %v6310_v49, %v6291_v27  ;;  %v6330_v9 = vpop.f32.mrf.mxu0  ;;  %v6350_v51 = vpop.f32.mrf.mxu1  ;;  %v339_v37 = vld [vmem:[%s20300_s7 + $0x2e8] sm:$0xff]  ;;  %v1573_v27 = vld [vmem:[%s20307_s9 + $0x1d78] sm:$0x3] }
 0x18b   : > { %7747 = vmatpush.xpose.msra.mxu3 %v1561_v40  ;;  %7707 = vmatpush.xpose.msra.mxu1 %v1559_v4  ;;  %2830 = vst [vmem:[#allocation1 + $0x10] ss:$2 sm:$0xff] %v339_v37  ;;  %v1572_v40 = vld [vmem:[%s20307_s9 + $0x1d70] sm:$0x3]  ;;  %v1570_v4 = vld [vmem:[%s20307_s9 + $0x1d60] sm:$0x3] }
 0x18c   : > { %v6331_v12 = vadd.f32 %v6330_v9, %v6311_v56  ;;  %7649 = vmatmul.f32.vlgmr.msrb.gmra.mxu2 %v21061_v5  ;;  %7669 = vmatmul.f32.vlgmr.msrb.gmra.mxu3 %v21064_v53  ;;  %v1563_v5 = vld [vmem:[%s20307_s9 + $0x1d28] sm:$0x3]  ;;  %v804_v9 = vld [vmem:[%s20307_s9 + $0x570] sm:$0xff]  ;;  %v809_v16 = vld [vmem:[%s20307_s9 + $0x598] sm:$0xff] }
 0x18d   : > { %7609 = vmatmul.f32.vlgmr.msrb.gmra.mxu0 %v21070_v62  ;;  %7629 = vmatmul.f32.vlgmr.msrb.gmra.mxu1 %v21075_v23  ;;  %v796_v23 = vld [vmem:[%s20307_s9 + $0x530] sm:$0xff]  ;;  %v21162_v48 = vld.sshfl [vmem:[#allocation1 + $0x20] sm:$0xff pattern:$0x75316420] }
 0x18e   : > { %v6351_v17 = vadd.f32 %v6350_v51, %v6331_v12  ;;  %7728 = vmatpush.xpose.msra.mxu2 %v792_v6  ;;  %7688 = vmatpush.xpose.msra.mxu0 %v790_v14  ;;  %v21165_v42 = vld.sshfl [vmem:[#allocation1 + $0x28] sm:$0xff pattern:$0x75316420]  ;;  %v1571_v6 = vld [vmem:[%s20307_s9 + $0x1d68] sm:$0x3]  ;;  %v812_v37 = vld [vmem:[%s20307_s9 + $0x5b0] sm:$0xff] }
 0x18f   : > { %v6370_v53 = vpop.f32.mrf.mxu2  ;;  %v6390_v24 = vpop.f32.mrf.mxu3  ;;  %7748 = vmatpush.xpose.msra.mxu3 %v793_v55  ;;  %7708 = vmatpush.xpose.msra.mxu1 %v791_v10  ;;  %v21193_v12 = vld.sshfl [vmem:[#allocation1 + $0x30] sm:$0xff pattern:$0x75316420]  ;;  %v1576_v10 = vld [vmem:[%s20307_s9 + $0x1d90] sm:$0x3] }
 0x190   : > { %v6371_v62 = vadd.f32 %v6370_v53, %v6351_v17  ;;  %v1574_v53 = vld [vmem:[%s20307_s9 + $0x1d80] sm:$0x3] }
 0x192   : > { %7807 = vmatpush.xpose.msrb.mxu2 %v1564_v20  ;;  %7767 = vmatpush.xpose.msrb.mxu0 %v1562_v58  ;;  %v6391_v19 = vadd.f32 %v6390_v24, %v6371_v62  ;;  %v6410_v26 = vpop.f32.mrf.mxu0  ;;  %v6430_v8 = vpop.f32.mrf.mxu1  ;;  %v802_v20 = vld [vmem:[%s20307_s9 + $0x560] sm:$0xff]  ;;  %v21196_v58 = vld.sshfl [vmem:[#allocation1 + $0x38] sm:$0xff pattern:$0x75316420] }
 0x193   : > { %7827 = vmatpush.xpose.msrb.mxu3 %v1565_v13  ;;  %7787 = vmatpush.xpose.msrb.mxu1 %v1563_v5  ;;  %v803_v13 = vld [vmem:[%s20307_s9 + $0x568] sm:$0xff]  ;;  %2832 = vst [vmem:[#allocation1 + $0x30] ss:$2 sm:$0xff] %v341_v63  ;;  %v340_v62 = vld [vmem:[%s20300_s7 + $0x2f0] sm:$0xff]  ;;  %v817_v63 = vld [vmem:[%s20307_s9 + $0x5d8] sm:$0xff] }
 0x194   : > { %v6411_v36 = vadd.f32 %v6410_v26, %v6391_v19  ;;  %7729 = vmatmul.f32.vlgmr.msra.gmra.mxu2 %v21083_v28  ;;  %7749 = vmatmul.f32.vlgmr.msra.gmra.mxu3 %v21086_v15  ;;  %v336_v28 = vld [vmem:[%s20300_s7 + $0x2d0] sm:$0xff]  ;;  %v1577_v19 = vld [vmem:[%s20307_s9 + $0x1d98] sm:$0x3] }
 0x195   : > { %7689 = vmatmul.f32.vlgmr.msra.gmra.mxu0 %v21096_v46  ;;  %7709 = vmatmul.f32.vlgmr.msra.gmra.mxu1 %v21099_v43  ;;  %2819 = vst [vmem:[#allocation1 + $0x20] ss:$2 sm:$0xff] %v336_v28  ;;  %v1578_v28 = vld [vmem:[%s20307_s9 + $0x1da0] sm:$0x3] }
 0x196   : > { %v6431_v41 = vadd.f32 %v6430_v8, %v6411_v36  ;;  %7808 = vmatpush.xpose.msrb.mxu2 %v796_v23  ;;  %7768 = vmatpush.xpose.msrb.mxu0 %v794_v30  ;;  %v21215_v36 = vld.sshfl [vmem:[#allocation1 + $0x10] sm:$0xff pattern:$0x75316420] }
 0x197   : > { %v6450_v15 = vpop.f32.mrf.mxu2  ;;  %v6470_v50 = vpop.f32.mrf.mxu3  ;;  %7828 = vmatpush.xpose.msrb.mxu3 %v797_v11  ;;  %7788 = vmatpush.xpose.msrb.mxu1 %v795_v34  ;;  %v806_v34 = vld [vmem:[%s20307_s9 + $0x580] sm:$0xff] }
 0x198   : > { %v6451_v46 = vadd.f32 %v6450_v15, %v6431_v41  ;;  %v1581_v15 = vld [vmem:[%s20307_s9 + $0x1db8] sm:$0x3] }
 0x19a   : > { %7887 = vmatpush.xpose.msra.mxu2 %v1568_v38  ;;  %7847 = vmatpush.xpose.msra.mxu0 %v1566_v25  ;;  %v6471_v43 = vadd.f32 %v6470_v50, %v6451_v46  ;;  %v6490_v29 = vpop.f32.mrf.mxu0  ;;  %v6510_v54 = vpop.f32.mrf.mxu1  ;;  %v807_v38 = vld [vmem:[%s20307_s9 + $0x588] sm:$0xff]  ;;  %v21218_v25 = vld.sshfl [vmem:[#allocation1 + $0x18] sm:$0xff pattern:$0x75316420] }
 0x19b   : > { %7907 = vmatpush.xpose.msra.mxu3 %v1569_v22  ;;  %7867 = vmatpush.xpose.msra.mxu1 %v1567_v44  ;;  %v343_v22 = vld [vmem:[%s20300_s7 + $0x308] sm:$0xff]  ;;  %v1580_v44 = vld [vmem:[%s20307_s9 + $0x1db0] sm:$0x3] }
 0x19c   : > { %v6491_v2 = vadd.f32 %v6490_v29, %v6471_v43  ;;  %7809 = vmatmul.f32.vlgmr.msrb.gmra.mxu2 %v21103_v52  ;;  %7829 = vmatmul.f32.vlgmr.msrb.gmra.mxu3 %v21106_v39  ;;  %v21186_v39 = vld.sshfl [vmem:[#allocation1] sm:$0xff pattern:$0x75316420]  ;;  %v21207_v24 = vld.sshfl [vmem:[#allocation1 + $0x28] sm:$0xff pattern:$0x75316420] }
 0x19d   : > { %7769 = vmatmul.f32.vlgmr.msrb.gmra.mxu0 %v21120_v35  ;;  %7789 = vmatmul.f32.vlgmr.msrb.gmra.mxu1 %v21122_v31  ;;  %v21188_v35 = vld.sshfl [vmem:[#allocation1 + $0x8] sm:$0xff pattern:$0x75316420]  ;;  %v21202_v5 = vld.sshfl [vmem:[#allocation1 + $0x20] sm:$0xff pattern:$0x75316420] }
 0x19e   : > { %v6511_v49 = vadd.f32 %v6510_v54, %v6491_v2  ;;  %7888 = vmatpush.xpose.msra.mxu2 %v800_v33  ;;  %7848 = vmatpush.xpose.msra.mxu0 %v798_v0  ;;  %2829 = vst [vmem:[#allocation1] ss:$2 sm:$0xff] %v338_v59  ;;  %v1579_v43 = vld [vmem:[%s20307_s9 + $0x1da8] sm:$0x3]  ;;  %v813_v59 = vld [vmem:[%s20307_s9 + $0x5b8] sm:$0xff] }
 0x19f   : > { %v6530_v56 = vpop.f32.mrf.mxu2  ;;  %v6550_v52 = vpop.f32.mrf.mxu3  ;;  %7908 = vmatpush.xpose.msra.mxu3 %v801_v61  ;;  %7868 = vmatpush.xpose.msra.mxu1 %v799_v47  ;;  %2831 = vst [vmem:[#allocation1 + $0x20] ss:$2 sm:$0xff] %v340_v62  ;;  %v21235_v2 = vld.sshfl [vmem:[#allocation1 + $0x30] sm:$0xff pattern:$0x75316420]  ;;  %v810_v61 = vld [vmem:[%s20307_s9 + $0x5a0] sm:$0xff] }
 0x1a0   : > { %v6531_v31 = vadd.f32 %v6530_v56, %v6511_v49  ;;  %2842 = vst [vmem:[#allocation1 + $0x10] ss:$2 sm:$0xff] %v343_v22  ;;  %v21238_v47 = vld.sshfl [vmem:[#allocation1 + $0x38] sm:$0xff pattern:$0x75316420]  ;;  %v811_v49 = vld [vmem:[%s20307_s9 + $0x5a8] sm:$0xff] }
 0x1a1   : > { %v344_v56 = vld [vmem:[%s20300_s7 + $0x310] sm:$0xff]  ;;  %v347_v62 = vld [vmem:[%s20300_s7 + $0x328] sm:$0xff]  ;;  %v821_v22 = vld [vmem:[%s20307_s9 + $0x5f8] sm:$0xff] }
 0x1a2   : > { %7967 = vmatpush.xpose.msrb.mxu2 %v1572_v40  ;;  %7927 = vmatpush.xpose.msrb.mxu0 %v1570_v4  ;;  %v6551_v51 = vadd.f32 %v6550_v52, %v6531_v31  ;;  %v6570_v14 = vpop.f32.mrf.mxu0  ;;  %v6590_v55 = vpop.f32.mrf.mxu1  ;;  %v345_v40 = vld [vmem:[%s20300_s7 + $0x318] sm:$0xff] }
 0x1a3   : > { %7987 = vmatpush.xpose.msrb.mxu3 %v1573_v27  ;;  %7947 = vmatpush.xpose.msrb.mxu1 %v1571_v6  ;;  %2844 = vst [vmem:[#allocation1 + $0x30] ss:$2 sm:$0xff] %v345_v40  ;;  %v1584_v27 = vld [vmem:[%s20307_s9 + $0x1dd0] sm:$0x3]  ;;  %v1582_v6 = vld [vmem:[%s20307_s9 + $0x1dc0] sm:$0x3] }
 0x1a4   : > { %v6571_v17 = vadd.f32 %v6570_v14, %v6551_v51  ;;  %7889 = vmatmul.f32.vlgmr.msra.gmra.mxu2 %v21127_v7  ;;  %7909 = vmatmul.f32.vlgmr.msra.gmra.mxu3 %v21130_v60  ;;  %v1575_v7 = vld [vmem:[%s20307_s9 + $0x1d88] sm:$0x3]  ;;  %v1585_v31 = vld [vmem:[%s20307_s9 + $0x1dd8] sm:$0x3]  ;;  %v816_v14 = vld [vmem:[%s20307_s9 + $0x5d0] sm:$0xff] }
 0x1a5   : > { %7849 = vmatmul.f32.vlgmr.msra.gmra.mxu0 %v21136_v3  ;;  %7869 = vmatmul.f32.vlgmr.msra.gmra.mxu1 %v21141_v18  ;;  %v808_v18 = vld [vmem:[%s20307_s9 + $0x590] sm:$0xff]  ;;  %v21228_v50 = vld.sshfl [vmem:[#allocation1] sm:$0xff pattern:$0x75316420] }
 0x1a6   : > { %v6591_v23 = vadd.f32 %v6590_v55, %v6571_v17  ;;  %7968 = vmatpush.xpose.msrb.mxu2 %v804_v9  ;;  %7928 = vmatpush.xpose.msrb.mxu0 %v802_v20  ;;  %v21231_v29 = vld.sshfl [vmem:[#allocation1 + $0x8] sm:$0xff pattern:$0x75316420]  ;;  %v1583_v9 = vld [vmem:[%s20307_s9 + $0x1dc8] sm:$0x3]  ;;  %v824_v40 = vld [vmem:[%s20307_s9 + $0x610] sm:$0xff] }
 0x1a7   : > { %v6610_v60 = vpop.f32.mrf.mxu2  ;;  %v6630_v26 = vpop.f32.mrf.mxu3  ;;  %7988 = vmatpush.xpose.msrb.mxu3 %v805_v1  ;;  %7948 = vmatpush.xpose.msrb.mxu1 %v803_v13  ;;  %v21259_v17 = vld.sshfl [vmem:[#allocation1 + $0x10] sm:$0xff pattern:$0x75316420]  ;;  %v1588_v13 = vld [vmem:[%s20307_s9 + $0x1df0] sm:$0x3] }
 0x1a8   : > { %v6611_v3 = vadd.f32 %v6610_v60, %v6591_v23  ;;  %v1586_v60 = vld [vmem:[%s20307_s9 + $0x1de0] sm:$0x3] }
 0x1aa   : > { %8047 = vmatpush.xpose.msra.mxu2 %v1576_v10  ;;  %8007 = vmatpush.xpose.msra.mxu0 %v1574_v53  ;;  %v6631_v8 = vadd.f32 %v6630_v26, %v6611_v3  ;;  %v6650_v30 = vpop.f32.mrf.mxu0  ;;  %v6670_v11 = vpop.f32.mrf.mxu1  ;;  %v814_v10 = vld [vmem:[%s20307_s9 + $0x5c0] sm:$0xff]  ;;  %v21262_v53 = vld.sshfl [vmem:[#allocation1 + $0x18] sm:$0xff pattern:$0x75316420] }
 0x1ab   : > { %8067 = vmatpush.xpose.msra.mxu3 %v1577_v19  ;;  %8027 = vmatpush.xpose.msra.mxu1 %v1575_v7  ;;  %v815_v19 = vld [vmem:[%s20307_s9 + $0x5c8] sm:$0xff]  ;;  %2854 = vst [vmem:[#allocation1 + $0x10] ss:$2 sm:$0xff] %v347_v62  ;;  %v346_v3 = vld [vmem:[%s20300_s7 + $0x320] sm:$0xff]  ;;  %v829_v62 = vld [vmem:[%s20307_s9 + $0x638] sm:$0xff] }
 0x1ac   : > { %v6651_v41 = vadd.f32 %v6650_v30, %v6631_v8  ;;  %7969 = vmatmul.f32.vlgmr.msrb.gmra.mxu2 %v21149_v32  ;;  %7989 = vmatmul.f32.vlgmr.msrb.gmra.mxu3 %v21152_v21  ;;  %v342_v32 = vld [vmem:[%s20300_s7 + $0x300] sm:$0xff]  ;;  %v1589_v8 = vld [vmem:[%s20307_s9 + $0x1df8] sm:$0x3] }
 0x1ad   : > { %7929 = vmatmul.f32.vlgmr.msrb.gmra.mxu0 %v21162_v48  ;;  %7949 = vmatmul.f32.vlgmr.msrb.gmra.mxu1 %v21165_v42  ;;  %2841 = vst [vmem:[#allocation1] ss:$2 sm:$0xff] %v342_v32  ;;  %v1590_v32 = vld [vmem:[%s20307_s9 + $0x1e00] sm:$0x3] }
 0x1ae   : > { %v6671_v46 = vadd.f32 %v6670_v11, %v6651_v41  ;;  %8048 = vmatpush.xpose.msra.mxu2 %v808_v18  ;;  %8008 = vmatpush.xpose.msra.mxu0 %v806_v34  ;;  %v21281_v41 = vld.sshfl [vmem:[#allocation1 + $0x30] sm:$0xff pattern:$0x75316420] }
 0x1af   : > { %v6690_v21 = vpop.f32.mrf.mxu2  ;;  %v6710_v54 = vpop.f32.mrf.mxu3  ;;  %8068 = vmatpush.xpose.msra.mxu3 %v809_v16  ;;  %8028 = vmatpush.xpose.msra.mxu1 %v807_v38  ;;  %v818_v38 = vld [vmem:[%s20307_s9 + $0x5e0] sm:$0xff] }
 0x1b0   : > { %v6691_v48 = vadd.f32 %v6690_v21, %v6671_v46  ;;  %v1593_v21 = vld [vmem:[%s20307_s9 + $0x1e18] sm:$0x3] }
 0x1b2   : > { %8127 = vmatpush.xpose.msrb.mxu2 %v1580_v44  ;;  %8087 = vmatpush.xpose.msrb.mxu0 %v1578_v28  ;;  %v6711_v42 = vadd.f32 %v6710_v54, %v6691_v48  ;;  %v6730_v33 = vpop.f32.mrf.mxu0  ;;  %v6750_v0 = vpop.f32.mrf.mxu1  ;;  %v819_v44 = vld [vmem:[%s20307_s9 + $0x5e8] sm:$0xff]  ;;  %v21284_v28 = vld.sshfl [vmem:[#allocation1 + $0x38] sm:$0xff pattern:$0x75316420] }
 0x1b3   : > { %8147 = vmatpush.xpose.msrb.mxu3 %v1581_v15  ;;  %8107 = vmatpush.xpose.msrb.mxu1 %v1579_v43  ;;  %v349_v15 = vld [vmem:[%s20300_s7 + $0x338] sm:$0xff]  ;;  %v1592_v43 = vld [vmem:[%s20307_s9 + $0x1e10] sm:$0x3] }
 0x1b4   : > { %v6731_v4 = vadd.f32 %v6730_v33, %v6711_v42  ;;  %8049 = vmatmul.f32.vlgmr.msra.gmra.mxu2 %v21169_v57  ;;  %8069 = vmatmul.f32.vlgmr.msra.gmra.mxu3 %v21172_v45  ;;  %v21252_v45 = vld.sshfl [vmem:[#allocation1 + $0x20] sm:$0xff pattern:$0x75316420]  ;;  %v21273_v26 = vld.sshfl [vmem:[#allocation1 + $0x8] sm:$0xff pattern:$0x75316420] }
 0x1b5   : > { %8009 = vmatmul.f32.vlgmr.msra.gmra.mxu0 %v21186_v39  ;;  %8029 = vmatmul.f32.vlgmr.msra.gmra.mxu1 %v21188_v35  ;;  %v21254_v39 = vld.sshfl [vmem:[#allocation1 + $0x28] sm:$0xff pattern:$0x75316420]  ;;  %v21268_v7 = vld.sshfl [vmem:[#allocation1] sm:$0xff pattern:$0x75316420] }
 0x1b6   : > { %v6751_v52 = vadd.f32 %v6750_v0, %v6731_v4  ;;  %8128 = vmatpush.xpose.msrb.mxu2 %v812_v37  ;;  %8088 = vmatpush.xpose.msrb.mxu0 %v810_v61  ;;  %2843 = vst [vmem:[#allocation1 + $0x20] ss:$2 sm:$0xff] %v344_v56  ;;  %v1591_v42 = vld [vmem:[%s20307_s9 + $0x1e08] sm:$0x3]  ;;  %v825_v56 = vld [vmem:[%s20307_s9 + $0x618] sm:$0xff] }
 0x1b7   : > { %v6770_v51 = vpop.f32.mrf.mxu2  ;;  %v6790_v57 = vpop.f32.mrf.mxu3  ;;  %8148 = vmatpush.xpose.msrb.mxu3 %v813_v59  ;;  %8108 = vmatpush.xpose.msrb.mxu1 %v811_v49  ;;  %2853 = vst [vmem:[#allocation1] ss:$2 sm:$0xff] %v346_v3  ;;  %v21301_v4 = vld.sshfl [vmem:[#allocation1 + $0x10] sm:$0xff pattern:$0x75316420]  ;;  %v822_v59 = vld [vmem:[%s20307_s9 + $0x600] sm:$0xff] }
 0x1b8   : > { %v6771_v35 = vadd.f32 %v6770_v51, %v6751_v52  ;;  %2856 = vst [vmem:[#allocation1 + $0x30] ss:$2 sm:$0xff] %v349_v15  ;;  %v21304_v49 = vld.sshfl [vmem:[#allocation1 + $0x18] sm:$0xff pattern:$0x75316420]  ;;  %v823_v52 = vld [vmem:[%s20307_s9 + $0x608] sm:$0xff] }
 0x1b9   : > { %v350_v51 = vld [vmem:[%s20300_s7 + $0x340] sm:$0xff]  ;;  %v353_v3 = vld [vmem:[%s20300_s7 + $0x358] sm:$0xff] }
 0x1ba   : > { %8207 = vmatpush.xpose.msra.mxu2 %v1584_v27  ;;  %8167 = vmatpush.xpose.msra.mxu0 %v1582_v6  ;;  %v6791_v55 = vadd.f32 %v6790_v57, %v6771_v35  ;;  %v6810_v20 = vpop.f32.mrf.mxu0  ;;  %v6830_v1 = vpop.f32.mrf.mxu1  ;;  %v351_v27 = vld [vmem:[%s20300_s7 + $0x348] sm:$0xff]  ;;  %v1597_v35 = vld [vmem:[%s20307_s9 + $0x1e38] sm:$0x3] }
 0x1bb   : > { %8227 = vmatpush.xpose.msra.mxu3 %v1585_v31  ;;  %8187 = vmatpush.xpose.msra.mxu1 %v1583_v9  ;;  %2866 = vst [vmem:[#allocation1 + $0x10] ss:$2 sm:$0xff] %v351_v27  ;;  %v1596_v31 = vld [vmem:[%s20307_s9 + $0x1e30] sm:$0x3]  ;;  %v1594_v9 = vld [vmem:[%s20307_s9 + $0x1e20] sm:$0x3] }
 0x1bc   : > { %v6811_v23 = vadd.f32 %v6810_v20, %v6791_v55  ;;  %8129 = vmatmul.f32.vlgmr.msrb.gmra.mxu2 %v21193_v12  ;;  %8149 = vmatmul.f32.vlgmr.msrb.gmra.mxu3 %v21196_v58  ;;  %v1587_v12 = vld [vmem:[%s20307_s9 + $0x1de8] sm:$0x3]  ;;  %v828_v20 = vld [vmem:[%s20307_s9 + $0x630] sm:$0xff]  ;;  %v833_v15 = vld [vmem:[%s20307_s9 + $0x658] sm:$0xff] }
 0x1bd   : > { %8089 = vmatmul.f32.vlgmr.msrb.gmra.mxu0 %v21202_v5  ;;  %8109 = vmatmul.f32.vlgmr.msrb.gmra.mxu1 %v21207_v24  ;;  %v820_v24 = vld [vmem:[%s20307_s9 + $0x5f0] sm:$0xff]  ;;  %v21294_v54 = vld.sshfl [vmem:[#allocation1 + $0x20] sm:$0xff pattern:$0x75316420] }
 0x1be   : > { %v6831_v18 = vadd.f32 %v6830_v1, %v6811_v23  ;;  %8208 = vmatpush.xpose.msra.mxu2 %v816_v14  ;;  %8168 = vmatpush.xpose.msra.mxu0 %v814_v10  ;;  %v21297_v33 = vld.sshfl [vmem:[#allocation1 + $0x28] sm:$0xff pattern:$0x75316420]  ;;  %v1595_v14 = vld [vmem:[%s20307_s9 + $0x1e28] sm:$0x3]  ;;  %v836_v27 = vld [vmem:[%s20307_s9 + $0x670] sm:$0xff] }
 0x1bf   : > { %v6850_v58 = vpop.f32.mrf.mxu2  ;;  %v6870_v30 = vpop.f32.mrf.mxu3  ;;  %8228 = vmatpush.xpose.msra.mxu3 %v817_v63  ;;  %8188 = vmatpush.xpose.msra.mxu1 %v815_v19  ;;  %v21325_v23 = vld.sshfl [vmem:[#allocation1 + $0x30] sm:$0xff pattern:$0x75316420]  ;;  %v1600_v19 = vld [vmem:[%s20307_s9 + $0x1e50] sm:$0x3] }
 0x1c0   : > { %v6851_v5 = vadd.f32 %v6850_v58, %v6831_v18  ;;  %v1598_v58 = vld [vmem:[%s20307_s9 + $0x1e40] sm:$0x3] }
 0x1c2   : > { %8287 = vmatpush.xpose.msrb.mxu2 %v1588_v13  ;;  %8247 = vmatpush.xpose.msrb.mxu0 %v1586_v60  ;;  %v6871_v11 = vadd.f32 %v6870_v30, %v6851_v5  ;;  %v6890_v34 = vpop.f32.mrf.mxu0  ;;  %v6910_v16 = vpop.f32.mrf.mxu1  ;;  %v826_v13 = vld [vmem:[%s20307_s9 + $0x620] sm:$0xff]  ;;  %v21328_v60 = vld.sshfl [vmem:[#allocation1 + $0x38] sm:$0xff pattern:$0x75316420] }
 0x1c3   : > { %8307 = vmatpush.xpose.msrb.mxu3 %v1589_v8  ;;  %8267 = vmatpush.xpose.msrb.mxu1 %v1587_v12  ;;  %v827_v8 = vld [vmem:[%s20307_s9 + $0x628] sm:$0xff]  ;;  %2868 = vst [vmem:[#allocation1 + $0x30] ss:$2 sm:$0xff] %v353_v3  ;;  %v352_v5 = vld [vmem:[%s20300_s7 + $0x350] sm:$0xff]  ;;  %v841_v3 = vld [vmem:[%s20307_s9 + $0x698] sm:$0xff] }
 0x1c4   : > { %v6891_v46 = vadd.f32 %v6890_v34, %v6871_v11  ;;  %8209 = vmatmul.f32.vlgmr.msra.gmra.mxu2 %v21215_v36  ;;  %8229 = vmatmul.f32.vlgmr.msra.gmra.mxu3 %v21218_v25  ;;  %v348_v36 = vld [vmem:[%s20300_s7 + $0x330] sm:$0xff]  ;;  %v1601_v11 = vld [vmem:[%s20307_s9 + $0x1e58] sm:$0x3] }
 0x1c5   : > { %8169 = vmatmul.f32.vlgmr.msra.gmra.mxu0 %v21228_v50  ;;  %8189 = vmatmul.f32.vlgmr.msra.gmra.mxu1 %v21231_v29  ;;  %2855 = vst [vmem:[#allocation1 + $0x20] ss:$2 sm:$0xff] %v348_v36  ;;  %v1602_v36 = vld [vmem:[%s20307_s9 + $0x1e60] sm:$0x3] }
 0x1c6   : > { %v6911_v48 = vadd.f32 %v6910_v16, %v6891_v46  ;;  %8288 = vmatpush.xpose.msrb.mxu2 %v820_v24  ;;  %8248 = vmatpush.xpose.msrb.mxu0 %v818_v38  ;;  %v21347_v46 = vld.sshfl [vmem:[#allocation1 + $0x10] sm:$0xff pattern:$0x75316420] }
 0x1c7   : > { %v6930_v25 = vpop.f32.mrf.mxu2  ;;  %v6950_v0 = vpop.f32.mrf.mxu3  ;;  %8308 = vmatpush.xpose.msrb.mxu3 %v821_v22  ;;  %8268 = vmatpush.xpose.msrb.mxu1 %v819_v44  ;;  %v830_v44 = vld [vmem:[%s20307_s9 + $0x640] sm:$0xff] }
 0x1c8   : > { %v6931_v50 = vadd.f32 %v6930_v25, %v6911_v48  ;;  %v1605_v25 = vld [vmem:[%s20307_s9 + $0x1e78] sm:$0x3] }
 0x1ca   : > { %8367 = vmatpush.xpose.msra.mxu2 %v1592_v43  ;;  %8327 = vmatpush.xpose.msra.mxu0 %v1590_v32  ;;  %v6951_v29 = vadd.f32 %v6950_v0, %v6931_v50  ;;  %v6970_v37 = vpop.f32.mrf.mxu0  ;;  %v6990_v61 = vpop.f32.mrf.mxu1  ;;  %v831_v43 = vld [vmem:[%s20307_s9 + $0x648] sm:$0xff]  ;;  %v21350_v32 = vld.sshfl [vmem:[#allocation1 + $0x18] sm:$0xff pattern:$0x75316420] }
 0x1cb   : > { %8387 = vmatpush.xpose.msra.mxu3 %v1593_v21  ;;  %8347 = vmatpush.xpose.msra.mxu1 %v1591_v42  ;;  %v355_v21 = vld [vmem:[%s20300_s7 + $0x368] sm:$0xff]  ;;  %v1604_v42 = vld [vmem:[%s20307_s9 + $0x1e70] sm:$0x3] }
 0x1cc   : > { %v6971_v6 = vadd.f32 %v6970_v37, %v6951_v29  ;;  %8289 = vmatmul.f32.vlgmr.msrb.gmra.mxu2 %v21235_v2  ;;  %8309 = vmatmul.f32.vlgmr.msrb.gmra.mxu3 %v21238_v47  ;;  %v21318_v47 = vld.sshfl [vmem:[#allocation1] sm:$0xff pattern:$0x75316420]  ;;  %v21339_v30 = vld.sshfl [vmem:[#allocation1 + $0x28] sm:$0xff pattern:$0x75316420] }
 0x1cd   : > { %8249 = vmatmul.f32.vlgmr.msrb.gmra.mxu0 %v21252_v45  ;;  %8269 = vmatmul.f32.vlgmr.msrb.gmra.mxu1 %v21254_v39  ;;  %v21320_v45 = vld.sshfl [vmem:[#allocation1 + $0x8] sm:$0xff pattern:$0x75316420]  ;;  %v21334_v12 = vld.sshfl [vmem:[#allocation1 + $0x20] sm:$0xff pattern:$0x75316420] }
 0x1ce   : > { %v6991_v57 = vadd.f32 %v6990_v61, %v6971_v6  ;;  %8368 = vmatpush.xpose.msra.mxu2 %v824_v40  ;;  %8328 = vmatpush.xpose.msra.mxu0 %v822_v59  ;;  %2865 = vst [vmem:[#allocation1] ss:$2 sm:$0xff] %v350_v51  ;;  %v1603_v29 = vld [vmem:[%s20307_s9 + $0x1e68] sm:$0x3]  ;;  %v837_v51 = vld [vmem:[%s20307_s9 + $0x678] sm:$0xff] }
 0x1cf   : > { %v7010_v55 = vpop.f32.mrf.mxu2  ;;  %v7030_v2 = vpop.f32.mrf.mxu3  ;;  %8388 = vmatpush.xpose.msra.mxu3 %v825_v56  ;;  %8348 = vmatpush.xpose.msra.mxu1 %v823_v52  ;;  %2867 = vst [vmem:[#allocation1 + $0x20] ss:$2 sm:$0xff] %v352_v5  ;;  %v21367_v6 = vld.sshfl [vmem:[#allocation1 + $0x30] sm:$0xff pattern:$0x75316420]  ;;  %v834_v56 = vld [vmem:[%s20307_s9 + $0x660] sm:$0xff] }
 0x1d0   : > { %v7011_v39 = vadd.f32 %v7010_v55, %v6991_v57  ;;  %2878 = vst [vmem:[#allocation1 + $0x10] ss:$2 sm:$0xff] %v355_v21  ;;  %v21370_v52 = vld.sshfl [vmem:[#allocation1 + $0x38] sm:$0xff pattern:$0x75316420]  ;;  %v835_v57 = vld [vmem:[%s20307_s9 + $0x668] sm:$0xff] }
 0x1d1   : > { %v356_v55 = vld [vmem:[%s20300_s7 + $0x370] sm:$0xff]  ;;  %v359_v5 = vld [vmem:[%s20300_s7 + $0x388] sm:$0xff]  ;;  %v845_v21 = vld [vmem:[%s20307_s9 + $0x6b8] sm:$0xff] }
 0x1d2   : > { %8447 = vmatpush.xpose.msrb.mxu2 %v1596_v31  ;;  %8407 = vmatpush.xpose.msrb.mxu0 %v1594_v9  ;;  %v7031_v1 = vadd.f32 %v7030_v2, %v7011_v39  ;;  %v7050_v10 = vpop.f32.mrf.mxu0  ;;  %v7070_v63 = vpop.f32.mrf.mxu1  ;;  %v357_v31 = vld [vmem:[%s20300_s7 + $0x378] sm:$0xff] }
 0x1d3   : > { %8467 = vmatpush.xpose.msrb.mxu3 %v1597_v35  ;;  %8427 = vmatpush.xpose.msrb.mxu1 %v1595_v14  ;;  %2880 = vst [vmem:[#allocation1 + $0x30] ss:$2 sm:$0xff] %v357_v31  ;;  %v1608_v35 = vld [vmem:[%s20307_s9 + $0x1e90] sm:$0x3]  ;;  %v1606_v14 = vld [vmem:[%s20307_s9 + $0x1e80] sm:$0x3] }
 0x1d4   : > { %v7051_v18 = vadd.f32 %v7050_v10, %v7031_v1  ;;  %8369 = vmatmul.f32.vlgmr.msra.gmra.mxu2 %v21259_v17  ;;  %8389 = vmatmul.f32.vlgmr.msra.gmra.mxu3 %v21262_v53  ;;  %v1599_v17 = vld [vmem:[%s20307_s9 + $0x1e48] sm:$0x3]  ;;  %v1609_v39 = vld [vmem:[%s20307_s9 + $0x1e98] sm:$0x3]  ;;  %v840_v10 = vld [vmem:[%s20307_s9 + $0x690] sm:$0xff] }
 0x1d5   : > { %8329 = vmatmul.f32.vlgmr.msra.gmra.mxu0 %v21268_v7  ;;  %8349 = vmatmul.f32.vlgmr.msra.gmra.mxu1 %v21273_v26  ;;  %v832_v26 = vld [vmem:[%s20307_s9 + $0x650] sm:$0xff]  ;;  %v21360_v0 = vld.sshfl [vmem:[#allocation1] sm:$0xff pattern:$0x75316420] }
 0x1d6   : > { %v7071_v24 = vadd.f32 %v7070_v63, %v7051_v18  ;;  %8448 = vmatpush.xpose.msrb.mxu2 %v828_v20  ;;  %8408 = vmatpush.xpose.msrb.mxu0 %v826_v13  ;;  %v21363_v37 = vld.sshfl [vmem:[#allocation1 + $0x8] sm:$0xff pattern:$0x75316420]  ;;  %v1607_v20 = vld [vmem:[%s20307_s9 + $0x1e88] sm:$0x3]  ;;  %v848_v31 = vld [vmem:[%s20307_s9 + $0x6d0] sm:$0xff] }
 0x1d7   : > { %v7090_v53 = vpop.f32.mrf.mxu2  ;;  %v7110_v34 = vpop.f32.mrf.mxu3  ;;  %8468 = vmatpush.xpose.msrb.mxu3 %v829_v62  ;;  %8428 = vmatpush.xpose.msrb.mxu1 %v827_v8  ;;  %v21391_v18 = vld.sshfl [vmem:[#allocation1 + $0x10] sm:$0xff pattern:$0x75316420]  ;;  %v1612_v8 = vld [vmem:[%s20307_s9 + $0x1eb0] sm:$0x3] }
 0x1d8   : > { %v7091_v7 = vadd.f32 %v7090_v53, %v7071_v24  ;;  %v1610_v53 = vld [vmem:[%s20307_s9 + $0x1ea0] sm:$0x3] }
 0x1da   : > { %8527 = vmatpush.xpose.msra.mxu2 %v1600_v19  ;;  %8487 = vmatpush.xpose.msra.mxu0 %v1598_v58  ;;  %v7111_v16 = vadd.f32 %v7110_v34, %v7091_v7  ;;  %v7130_v38 = vpop.f32.mrf.mxu0  ;;  %v7150_v22 = vpop.f32.mrf.mxu1  ;;  %v838_v19 = vld [vmem:[%s20307_s9 + $0x680] sm:$0xff]  ;;  %v21394_v58 = vld.sshfl [vmem:[#allocation1 + $0x18] sm:$0xff pattern:$0x75316420] }
 0x1db   : > { %8547 = vmatpush.xpose.msra.mxu3 %v1601_v11  ;;  %8507 = vmatpush.xpose.msra.mxu1 %v1599_v17  ;;  %v839_v11 = vld [vmem:[%s20307_s9 + $0x688] sm:$0xff]  ;;  %2890 = vst [vmem:[#allocation1 + $0x10] ss:$2 sm:$0xff] %v359_v5  ;;  %v358_v7 = vld [vmem:[%s20300_s7 + $0x380] sm:$0xff]  ;;  %v853_v5 = vld [vmem:[%s20307_s9 + $0x6f8] sm:$0xff] }
 0x1dc   : > { %v7131_v48 = vadd.f32 %v7130_v38, %v7111_v16  ;;  %8449 = vmatmul.f32.vlgmr.msrb.gmra.mxu2 %v21281_v41  ;;  %8469 = vmatmul.f32.vlgmr.msrb.gmra.mxu3 %v21284_v28  ;;  %v354_v41 = vld [vmem:[%s20300_s7 + $0x360] sm:$0xff]  ;;  %v1613_v16 = vld [vmem:[%s20307_s9 + $0x1eb8] sm:$0x3] }
 0x1dd   : > { %8409 = vmatmul.f32.vlgmr.msrb.gmra.mxu0 %v21294_v54  ;;  %8429 = vmatmul.f32.vlgmr.msrb.gmra.mxu1 %v21297_v33  ;;  %2877 = vst [vmem:[#allocation1] ss:$2 sm:$0xff] %v354_v41  ;;  %v1614_v41 = vld [vmem:[%s20307_s9 + $0x1ec0] sm:$0x3] }
 0x1de   : > { %v7151_v50 = vadd.f32 %v7150_v22, %v7131_v48  ;;  %8528 = vmatpush.xpose.msra.mxu2 %v832_v26  ;;  %8488 = vmatpush.xpose.msra.mxu0 %v830_v44  ;;  %v21413_v48 = vld.sshfl [vmem:[#allocation1 + $0x30] sm:$0xff pattern:$0x75316420] }
 0x1df   : > { %v7170_v28 = vpop.f32.mrf.mxu2  ;;  %v7190_v61 = vpop.f32.mrf.mxu3  ;;  %8548 = vmatpush.xpose.msra.mxu3 %v833_v15  ;;  %8508 = vmatpush.xpose.msra.mxu1 %v831_v43  ;;  %v842_v43 = vld [vmem:[%s20307_s9 + $0x6a0] sm:$0xff] }
 0x1e0   : > { %v7171_v54 = vadd.f32 %v7170_v28, %v7151_v50  ;;  %v1617_v28 = vld [vmem:[%s20307_s9 + $0x1ed8] sm:$0x3] }
 0x1e2   : > { %8607 = vmatpush.xpose.msrb.mxu2 %v1604_v42  ;;  %8567 = vmatpush.xpose.msrb.mxu0 %v1602_v36  ;;  %v7191_v33 = vadd.f32 %v7190_v61, %v7171_v54  ;;  %v7210_v40 = vpop.f32.mrf.mxu0  ;;  %v7230_v59 = vpop.f32.mrf.mxu1  ;;  %v843_v42 = vld [vmem:[%s20307_s9 + $0x6a8] sm:$0xff]  ;;  %v21416_v36 = vld.sshfl [vmem:[#allocation1 + $0x38] sm:$0xff pattern:$0x75316420] }
 0x1e3   : > { %8627 = vmatpush.xpose.msrb.mxu3 %v1605_v25  ;;  %8587 = vmatpush.xpose.msrb.mxu1 %v1603_v29  ;;  %v361_v25 = vld [vmem:[%s20300_s7 + $0x398] sm:$0xff]  ;;  %v1616_v29 = vld [vmem:[%s20307_s9 + $0x1ed0] sm:$0x3] }
 0x1e4   : > { %v7211_v9 = vadd.f32 %v7210_v40, %v7191_v33  ;;  %8529 = vmatmul.f32.vlgmr.msra.gmra.mxu2 %v21301_v4  ;;  %8549 = vmatmul.f32.vlgmr.msra.gmra.mxu3 %v21304_v49  ;;  %v21384_v49 = vld.sshfl [vmem:[#allocation1 + $0x20] sm:$0xff pattern:$0x75316420]  ;;  %v21405_v34 = vld.sshfl [vmem:[#allocation1 + $0x8] sm:$0xff pattern:$0x75316420] }
 0x1e5   : > { %8489 = vmatmul.f32.vlgmr.msra.gmra.mxu0 %v21318_v47  ;;  %8509 = vmatmul.f32.vlgmr.msra.gmra.mxu1 %v21320_v45  ;;  %v21386_v47 = vld.sshfl [vmem:[#allocation1 + $0x28] sm:$0xff pattern:$0x75316420]  ;;  %v21400_v17 = vld.sshfl [vmem:[#allocation1] sm:$0xff pattern:$0x75316420] }
 0x1e6   : > { %v7231_v2 = vadd.f32 %v7230_v59, %v7211_v9  ;;  %8608 = vmatpush.xpose.msrb.mxu2 %v836_v27  ;;  %8568 = vmatpush.xpose.msrb.mxu0 %v834_v56  ;;  %2879 = vst [vmem:[#allocation1 + $0x20] ss:$2 sm:$0xff] %v356_v55  ;;  %v1615_v33 = vld [vmem:[%s20307_s9 + $0x1ec8] sm:$0x3]  ;;  %v849_v55 = vld [vmem:[%s20307_s9 + $0x6d8] sm:$0xff] }
 0x1e7   : > { %v7250_v1 = vpop.f32.mrf.mxu2  ;;  %v7270_v4 = vpop.f32.mrf.mxu3  ;;  %8628 = vmatpush.xpose.msrb.mxu3 %v837_v51  ;;  %8588 = vmatpush.xpose.msrb.mxu1 %v835_v57  ;;  %2889 = vst [vmem:[#allocation1] ss:$2 sm:$0xff] %v358_v7  ;;  %v21433_v9 = vld.sshfl [vmem:[#allocation1 + $0x10] sm:$0xff pattern:$0x75316420]  ;;  %v846_v51 = vld [vmem:[%s20307_s9 + $0x6c0] sm:$0xff] }
 0x1e8   : > { %v7251_v45 = vadd.f32 %v7250_v1, %v7231_v2  ;;  %2892 = vst [vmem:[#allocation1 + $0x30] ss:$2 sm:$0xff] %v361_v25  ;;  %v21436_v57 = vld.sshfl [vmem:[#allocation1 + $0x18] sm:$0xff pattern:$0x75316420]  ;;  %v847_v2 = vld [vmem:[%s20307_s9 + $0x6c8] sm:$0xff] }
 0x1e9   : > { %v362_v1 = vld [vmem:[%s20300_s7 + $0x3a0] sm:$0xff]  ;;  %v365_v7 = vld [vmem:[%s20300_s7 + $0x3b8] sm:$0xff] }
 0x1ea   : > { %8687 = vmatpush.xpose.msra.mxu2 %v1608_v35  ;;  %8647 = vmatpush.xpose.msra.mxu0 %v1606_v14  ;;  %v7271_v63 = vadd.f32 %v7270_v4, %v7251_v45  ;;  %v7290_v13 = vpop.f32.mrf.mxu0  ;;  %v7310_v62 = vpop.f32.mrf.mxu1  ;;  %v363_v35 = vld [vmem:[%s20300_s7 + $0x3a8] sm:$0xff]  ;;  %v1621_v45 = vld [vmem:[%s20307_s9 + $0x1ef8] sm:$0x3] }
 0x1eb   : > { %8707 = vmatpush.xpose.msra.mxu3 %v1609_v39  ;;  %8667 = vmatpush.xpose.msra.mxu1 %v1607_v20  ;;  %2902 = vst [vmem:[#allocation1 + $0x10] ss:$2 sm:$0xff] %v363_v35  ;;  %v1620_v39 = vld [vmem:[%s20307_s9 + $0x1ef0] sm:$0x3]  ;;  %v1618_v20 = vld [vmem:[%s20307_s9 + $0x1ee0] sm:$0x3] }
 0x1ec   : > { %v7291_v24 = vadd.f32 %v7290_v13, %v7271_v63  ;;  %8609 = vmatmul.f32.vlgmr.msrb.gmra.mxu2 %v21325_v23  ;;  %8629 = vmatmul.f32.vlgmr.msrb.gmra.mxu3 %v21328_v60  ;;  %v1611_v23 = vld [vmem:[%s20307_s9 + $0x1ea8] sm:$0x3]  ;;  %v852_v13 = vld [vmem:[%s20307_s9 + $0x6f0] sm:$0xff]  ;;  %v857_v25 = vld [vmem:[%s20307_s9 + $0x718] sm:$0xff] }
 0x1ed   : > { %8569 = vmatmul.f32.vlgmr.msrb.gmra.mxu0 %v21334_v12  ;;  %8589 = vmatmul.f32.vlgmr.msrb.gmra.mxu1 %v21339_v30  ;;  %v844_v30 = vld [vmem:[%s20307_s9 + $0x6b0] sm:$0xff]  ;;  %v21426_v61 = vld.sshfl [vmem:[#allocation1 + $0x20] sm:$0xff pattern:$0x75316420] }
 0x1ee   : > { %v7311_v26 = vadd.f32 %v7310_v62, %v7291_v24  ;;  %8688 = vmatpush.xpose.msra.mxu2 %v840_v10  ;;  %8648 = vmatpush.xpose.msra.mxu0 %v838_v19  ;;  %v21429_v40 = vld.sshfl [vmem:[#allocation1 + $0x28] sm:$0xff pattern:$0x75316420]  ;;  %v1619_v10 = vld [vmem:[%s20307_s9 + $0x1ee8] sm:$0x3]  ;;  %v860_v35 = vld [vmem:[%s20307_s9 + $0x730] sm:$0xff] }
 0x1ef   : > { %v7330_v60 = vpop.f32.mrf.mxu2  ;;  %v7350_v38 = vpop.f32.mrf.mxu3  ;;  %8708 = vmatpush.xpose.msra.mxu3 %v841_v3  ;;  %8668 = vmatpush.xpose.msra.mxu1 %v839_v11  ;;  %v21457_v24 = vld.sshfl [vmem:[#allocation1 + $0x30] sm:$0xff pattern:$0x75316420]  ;;  %v1624_v11 = vld [vmem:[%s20307_s9 + $0x1f10] sm:$0x3] }
 0x1f0   : > { %v7331_v12 = vadd.f32 %v7330_v60, %v7311_v26  ;;  %v1622_v60 = vld [vmem:[%s20307_s9 + $0x1f00] sm:$0x3] }
 0x1f2   : > { %8767 = vmatpush.xpose.msrb.mxu2 %v1612_v8  ;;  %8727 = vmatpush.xpose.msrb.mxu0 %v1610_v53  ;;  %v7351_v22 = vadd.f32 %v7350_v38, %v7331_v12  ;;  %v7370_v44 = vpop.f32.mrf.mxu0  ;;  %v7390_v15 = vpop.f32.mrf.mxu1  ;;  %v850_v8 = vld [vmem:[%s20307_s9 + $0x6e0] sm:$0xff]  ;;  %v21460_v53 = vld.sshfl [vmem:[#allocation1 + $0x38] sm:$0xff pattern:$0x75316420] }
 0x1f3   : > { %8787 = vmatpush.xpose.msrb.mxu3 %v1613_v16  ;;  %8747 = vmatpush.xpose.msrb.mxu1 %v1611_v23  ;;  %v851_v16 = vld [vmem:[%s20307_s9 + $0x6e8] sm:$0xff]  ;;  %2904 = vst [vmem:[#allocation1 + $0x30] ss:$2 sm:$0xff] %v365_v7  ;;  %v364_v12 = vld [vmem:[%s20300_s7 + $0x3b0] sm:$0xff]  ;;  %v865_v7 = vld [vmem:[%s20307_s9 + $0x758] sm:$0xff] }
 0x1f4   : > { %v7371_v50 = vadd.f32 %v7370_v44, %v7351_v22  ;;  %8689 = vmatmul.f32.vlgmr.msra.gmra.mxu2 %v21347_v46  ;;  %8709 = vmatmul.f32.vlgmr.msra.gmra.mxu3 %v21350_v32  ;;  %v360_v46 = vld [vmem:[%s20300_s7 + $0x390] sm:$0xff]  ;;  %v1625_v22 = vld [vmem:[%s20307_s9 + $0x1f18] sm:$0x3] }
 0x1f5   : > { %8649 = vmatmul.f32.vlgmr.msra.gmra.mxu0 %v21360_v0  ;;  %8669 = vmatmul.f32.vlgmr.msra.gmra.mxu1 %v21363_v37  ;;  %2891 = vst [vmem:[#allocation1 + $0x20] ss:$2 sm:$0xff] %v360_v46  ;;  %v1626_v46 = vld [vmem:[%s20307_s9 + $0x1f20] sm:$0x3] }
 0x1f6   : > { %v7391_v54 = vadd.f32 %v7390_v15, %v7371_v50  ;;  %8768 = vmatpush.xpose.msrb.mxu2 %v844_v30  ;;  %8728 = vmatpush.xpose.msrb.mxu0 %v842_v43  ;;  %v21479_v50 = vld.sshfl [vmem:[#allocation1 + $0x10] sm:$0xff pattern:$0x75316420] }
 0x1f7   : > { %v7410_v32 = vpop.f32.mrf.mxu2  ;;  %v7430_v59 = vpop.f32.mrf.mxu3  ;;  %8788 = vmatpush.xpose.msrb.mxu3 %v845_v21  ;;  %8748 = vmatpush.xpose.msrb.mxu1 %v843_v42  ;;  %v854_v42 = vld [vmem:[%s20307_s9 + $0x700] sm:$0xff] }
 0x1f8   : > { %v7411_v0 = vadd.f32 %v7410_v32, %v7391_v54  ;;  %v1629_v32 = vld [vmem:[%s20307_s9 + $0x1f38] sm:$0x3] }
 0x1fa   : > { %8847 = vmatpush.xpose.msra.mxu2 %v1616_v29  ;;  %8807 = vmatpush.xpose.msra.mxu0 %v1614_v41  ;;  %v7431_v37 = vadd.f32 %v7430_v59, %v7411_v0  ;;  %v7450_v27 = vpop.f32.mrf.mxu0  ;;  %v7470_v56 = vpop.f32.mrf.mxu1  ;;  %v855_v29 = vld [vmem:[%s20307_s9 + $0x708] sm:$0xff]  ;;  %v21482_v41 = vld.sshfl [vmem:[#allocation1 + $0x18] sm:$0xff pattern:$0x75316420] }
 0x1fb   : > { %8867 = vmatpush.xpose.msra.mxu3 %v1617_v28  ;;  %8827 = vmatpush.xpose.msra.mxu1 %v1615_v33  ;;  %v367_v28 = vld [vmem:[%s20300_s7 + $0x3c8] sm:$0xff]  ;;  %v1628_v33 = vld [vmem:[%s20307_s9 + $0x1f30] sm:$0x3] }
 0x1fc   : > { %v7451_v14 = vadd.f32 %v7450_v27, %v7431_v37  ;;  %8769 = vmatmul.f32.vlgmr.msrb.gmra.mxu2 %v21367_v6  ;;  %8789 = vmatmul.f32.vlgmr.msrb.gmra.mxu3 %v21370_v52  ;;  %v21450_v52 = vld.sshfl [vmem:[#allocation1] sm:$0xff pattern:$0x75316420]  ;;  %v21471_v38 = vld.sshfl [vmem:[#allocation1 + $0x28] sm:$0xff pattern:$0x75316420] }
 0x1fd   : > { %8729 = vmatmul.f32.vlgmr.msrb.gmra.mxu0 %v21384_v49  ;;  %8749 = vmatmul.f32.vlgmr.msrb.gmra.mxu1 %v21386_v47  ;;  %v21452_v49 = vld.sshfl [vmem:[#allocation1 + $0x8] sm:$0xff pattern:$0x75316420]  ;;  %v21466_v23 = vld.sshfl [vmem:[#allocation1 + $0x20] sm:$0xff pattern:$0x75316420] }
 0x1fe   : > { %v7471_v4 = vadd.f32 %v7470_v56, %v7451_v14  ;;  %8848 = vmatpush.xpose.msra.mxu2 %v848_v31  ;;  %8808 = vmatpush.xpose.msra.mxu0 %v846_v51  ;;  %2901 = vst [vmem:[#allocation1] ss:$2 sm:$0xff] %v362_v1  ;;  %v1627_v37 = vld [vmem:[%s20307_s9 + $0x1f28] sm:$0x3]  ;;  %v861_v1 = vld [vmem:[%s20307_s9 + $0x738] sm:$0xff] }
 0x1ff   : > { %v7490_v63 = vpop.f32.mrf.mxu2  ;;  %v7510_v6 = vpop.f32.mrf.mxu3  ;;  %8868 = vmatpush.xpose.msra.mxu3 %v849_v55  ;;  %8828 = vmatpush.xpose.msra.mxu1 %v847_v2  ;;  %2903 = vst [vmem:[#allocation1 + $0x20] ss:$2 sm:$0xff] %v364_v12  ;;  %v21499_v14 = vld.sshfl [vmem:[#allocation1 + $0x30] sm:$0xff pattern:$0x75316420]  ;;  %v858_v55 = vld [vmem:[%s20307_s9 + $0x720] sm:$0xff] }
 0x200   : > { %v7491_v47 = vadd.f32 %v7490_v63, %v7471_v4  ;;  %2914 = vst [vmem:[#allocation1 + $0x10] ss:$2 sm:$0xff] %v367_v28  ;;  %v21502_v2 = vld.sshfl [vmem:[#allocation1 + $0x38] sm:$0xff pattern:$0x75316420]  ;;  %v859_v4 = vld [vmem:[%s20307_s9 + $0x728] sm:$0xff] }
 0x201   : > { %v368_v63 = vld [vmem:[%s20300_s7 + $0x3d0] sm:$0xff]  ;;  %v371_v12 = vld [vmem:[%s20300_s7 + $0x3e8] sm:$0xff]  ;;  %v869_v28 = vld [vmem:[%s20307_s9 + $0x778] sm:$0xff] }
 0x202   : > { %8927 = vmatpush.xpose.msrb.mxu2 %v1620_v39  ;;  %8887 = vmatpush.xpose.msrb.mxu0 %v1618_v20  ;;  %v7511_v62 = vadd.f32 %v7510_v6, %v7491_v47  ;;  %v7530_v19 = vpop.f32.mrf.mxu0  ;;  %v7550_v3 = vpop.f32.mrf.mxu1  ;;  %v369_v39 = vld [vmem:[%s20300_s7 + $0x3d8] sm:$0xff] }
 0x203   : > { %8947 = vmatpush.xpose.msrb.mxu3 %v1621_v45  ;;  %8907 = vmatpush.xpose.msrb.mxu1 %v1619_v10  ;;  %2916 = vst [vmem:[#allocation1 + $0x30] ss:$2 sm:$0xff] %v369_v39  ;;  %v1632_v45 = vld [vmem:[%s20307_s9 + $0x1f50] sm:$0x3]  ;;  %v1630_v10 = vld [vmem:[%s20307_s9 + $0x1f40] sm:$0x3] }
 0x204   : > { %v7531_v26 = vadd.f32 %v7530_v19, %v7511_v62  ;;  %8849 = vmatmul.f32.vlgmr.msra.gmra.mxu2 %v21391_v18  ;;  %8869 = vmatmul.f32.vlgmr.msra.gmra.mxu3 %v21394_v58  ;;  %v1623_v18 = vld [vmem:[%s20307_s9 + $0x1f08] sm:$0x3]  ;;  %v1633_v47 = vld [vmem:[%s20307_s9 + $0x1f58] sm:$0x3]  ;;  %v864_v19 = vld [vmem:[%s20307_s9 + $0x750] sm:$0xff] }
 0x205   : > { %8809 = vmatmul.f32.vlgmr.msra.gmra.mxu0 %v21400_v17  ;;  %8829 = vmatmul.f32.vlgmr.msra.gmra.mxu1 %v21405_v34  ;;  %v856_v34 = vld [vmem:[%s20307_s9 + $0x710] sm:$0xff]  ;;  %v21492_v59 = vld.sshfl [vmem:[#allocation1] sm:$0xff pattern:$0x75316420] }
 0x206   : > { %v7551_v30 = vadd.f32 %v7550_v3, %v7531_v26  ;;  %8928 = vmatpush.xpose.msrb.mxu2 %v852_v13  ;;  %8888 = vmatpush.xpose.msrb.mxu0 %v850_v8  ;;  %v21495_v27 = vld.sshfl [vmem:[#allocation1 + $0x8] sm:$0xff pattern:$0x75316420]  ;;  %v1631_v13 = vld [vmem:[%s20307_s9 + $0x1f48] sm:$0x3]  ;;  %v872_v39 = vld [vmem:[%s20307_s9 + $0x790] sm:$0xff] }
 0x207   : > { %v7570_v58 = vpop.f32.mrf.mxu2  ;;  %v7590_v44 = vpop.f32.mrf.mxu3  ;;  %8948 = vmatpush.xpose.msrb.mxu3 %v853_v5  ;;  %8908 = vmatpush.xpose.msrb.mxu1 %v851_v16  ;;  %v21523_v26 = vld.sshfl [vmem:[#allocation1 + $0x10] sm:$0xff pattern:$0x75316420]  ;;  %v1636_v16 = vld [vmem:[%s20307_s9 + $0x1f70] sm:$0x3] }
 0x208   : > { %v7571_v17 = vadd.f32 %v7570_v58, %v7551_v30  ;;  %v1634_v58 = vld [vmem:[%s20307_s9 + $0x1f60] sm:$0x3] }
 0x20a   : > { %9007 = vmatpush.xpose.msra.mxu2 %v1624_v11  ;;  %8967 = vmatpush.xpose.msra.mxu0 %v1622_v60  ;;  %v7591_v15 = vadd.f32 %v7590_v44, %v7571_v17  ;;  %v7610_v43 = vpop.f32.mrf.mxu0  ;;  %v7630_v21 = vpop.f32.mrf.mxu1  ;;  %v862_v11 = vld [vmem:[%s20307_s9 + $0x740] sm:$0xff]  ;;  %v21526_v60 = vld.sshfl [vmem:[#allocation1 + $0x18] sm:$0xff pattern:$0x75316420] }
 0x20b   : > { %9027 = vmatpush.xpose.msra.mxu3 %v1625_v22  ;;  %8987 = vmatpush.xpose.msra.mxu1 %v1623_v18  ;;  %v863_v22 = vld [vmem:[%s20307_s9 + $0x748] sm:$0xff]  ;;  %2926 = vst [vmem:[#allocation1 + $0x10] ss:$2 sm:$0xff] %v371_v12  ;;  %v370_v17 = vld [vmem:[%s20300_s7 + $0x3e0] sm:$0xff]  ;;  %v877_v12 = vld [vmem:[%s20307_s9 + $0x7b8] sm:$0xff] }
 0x20c   : > { %v7611_v54 = vadd.f32 %v7610_v43, %v7591_v15  ;;  %8929 = vmatmul.f32.vlgmr.msrb.gmra.mxu2 %v21413_v48  ;;  %8949 = vmatmul.f32.vlgmr.msrb.gmra.mxu3 %v21416_v36  ;;  %v366_v48 = vld [vmem:[%s20300_s7 + $0x3c0] sm:$0xff]  ;;  %v1637_v15 = vld [vmem:[%s20307_s9 + $0x1f78] sm:$0x3] }
 0x20d   : > { %8889 = vmatmul.f32.vlgmr.msrb.gmra.mxu0 %v21426_v61  ;;  %8909 = vmatmul.f32.vlgmr.msrb.gmra.mxu1 %v21429_v40  ;;  %2913 = vst [vmem:[#allocation1] ss:$2 sm:$0xff] %v366_v48  ;;  %v1638_v48 = vld [vmem:[%s20307_s9 + $0x1f80] sm:$0x3] }
 0x20e   : > { %v7631_v0 = vadd.f32 %v7630_v21, %v7611_v54  ;;  %9008 = vmatpush.xpose.msra.mxu2 %v856_v34  ;;  %8968 = vmatpush.xpose.msra.mxu0 %v854_v42  ;;  %v21545_v54 = vld.sshfl [vmem:[#allocation1 + $0x30] sm:$0xff pattern:$0x75316420] }
 0x20f   : > { %v7650_v36 = vpop.f32.mrf.mxu2  ;;  %v7670_v56 = vpop.f32.mrf.mxu3  ;;  %9028 = vmatpush.xpose.msra.mxu3 %v857_v25  ;;  %8988 = vmatpush.xpose.msra.mxu1 %v855_v29  ;;  %v866_v29 = vld [vmem:[%s20307_s9 + $0x760] sm:$0xff] }
 0x210   : > { %v7651_v61 = vadd.f32 %v7650_v36, %v7631_v0  ;;  %v1641_v36 = vld [vmem:[%s20307_s9 + $0x1f98] sm:$0x3] }
 0x212   : > { %9087 = vmatpush.xpose.msrb.mxu2 %v1628_v33  ;;  %9047 = vmatpush.xpose.msrb.mxu0 %v1626_v46  ;;  %v7671_v40 = vadd.f32 %v7670_v56, %v7651_v61  ;;  %v7690_v31 = vpop.f32.mrf.mxu0  ;;  %v7710_v51 = vpop.f32.mrf.mxu1  ;;  %v867_v33 = vld [vmem:[%s20307_s9 + $0x768] sm:$0xff]  ;;  %v21548_v46 = vld.sshfl [vmem:[#allocation1 + $0x38] sm:$0xff pattern:$0x75316420] }
 0x213   : > { %9107 = vmatpush.xpose.msrb.mxu3 %v1629_v32  ;;  %9067 = vmatpush.xpose.msrb.mxu1 %v1627_v37  ;;  %v373_v32 = vld [vmem:[%s20300_s7 + $0x3f8] sm:$0xff]  ;;  %v1640_v37 = vld [vmem:[%s20307_s9 + $0x1f90] sm:$0x3] }
 0x214   : > { %v7691_v20 = vadd.f32 %v7690_v31, %v7671_v40  ;;  %9009 = vmatmul.f32.vlgmr.msra.gmra.mxu2 %v21433_v9  ;;  %9029 = vmatmul.f32.vlgmr.msra.gmra.mxu3 %v21436_v57  ;;  %v21516_v57 = vld.sshfl [vmem:[#allocation1 + $0x20] sm:$0xff pattern:$0x75316420]  ;;  %v21537_v44 = vld.sshfl [vmem:[#allocation1 + $0x8] sm:$0xff pattern:$0x75316420] }
 0x215   : > { %8969 = vmatmul.f32.vlgmr.msra.gmra.mxu0 %v21450_v52  ;;  %8989 = vmatmul.f32.vlgmr.msra.gmra.mxu1 %v21452_v49  ;;  %v21518_v52 = vld.sshfl [vmem:[#allocation1 + $0x28] sm:$0xff pattern:$0x75316420]  ;;  %v21532_v18 = vld.sshfl [vmem:[#allocation1] sm:$0xff pattern:$0x75316420] }
 0x216   : > { %v7711_v6 = vadd.f32 %v7710_v51, %v7691_v20  ;;  %9088 = vmatpush.xpose.msrb.mxu2 %v860_v35  ;;  %9048 = vmatpush.xpose.msrb.mxu0 %v858_v55  ;;  %2915 = vst [vmem:[#allocation1 + $0x20] ss:$2 sm:$0xff] %v368_v63  ;;  %v1639_v40 = vld [vmem:[%s20307_s9 + $0x1f88] sm:$0x3]  ;;  %v873_v63 = vld [vmem:[%s20307_s9 + $0x798] sm:$0xff] }
 0x217   : > { %v7730_v62 = vpop.f32.mrf.mxu2  ;;  %v7750_v9 = vpop.f32.mrf.mxu3  ;;  %9108 = vmatpush.xpose.msrb.mxu3 %v861_v1  ;;  %9068 = vmatpush.xpose.msrb.mxu1 %v859_v4  ;;  %2925 = vst [vmem:[#allocation1] ss:$2 sm:$0xff] %v370_v17  ;;  %v21565_v20 = vld.sshfl [vmem:[#allocation1 + $0x10] sm:$0xff pattern:$0x75316420]  ;;  %v870_v1 = vld [vmem:[%s20307_s9 + $0x780] sm:$0xff] }
 0x218   : > { %v7731_v49 = vadd.f32 %v7730_v62, %v7711_v6  ;;  %2928 = vst [vmem:[#allocation1 + $0x30] ss:$2 sm:$0xff] %v373_v32  ;;  %v21568_v4 = vld.sshfl [vmem:[#allocation1 + $0x18] sm:$0xff pattern:$0x75316420]  ;;  %v871_v6 = vld [vmem:[%s20307_s9 + $0x788] sm:$0xff] }
 0x219   : > { %v374_v62 = vld [vmem:[%s20300_s7 + $0x400] sm:$0xff]  ;;  %v377_v17 = vld [vmem:[%s20300_s7 + $0x418] sm:$0xff] }
 0x21a   : > { %9167 = vmatpush.xpose.msra.mxu2 %v1632_v45  ;;  %9127 = vmatpush.xpose.msra.mxu0 %v1630_v10  ;;  %v7751_v3 = vadd.f32 %v7750_v9, %v7731_v49  ;;  %v7770_v8 = vpop.f32.mrf.mxu0  ;;  %v7790_v5 = vpop.f32.mrf.mxu1  ;;  %v375_v45 = vld [vmem:[%s20300_s7 + $0x408] sm:$0xff]  ;;  %v1645_v49 = vld [vmem:[%s20307_s9 + $0x1fb8] sm:$0x3] }
 0x21b   : > { %9187 = vmatpush.xpose.msra.mxu3 %v1633_v47  ;;  %9147 = vmatpush.xpose.msra.mxu1 %v1631_v13  ;;  %2938 = vst [vmem:[#allocation1 + $0x10] ss:$2 sm:$0xff] %v375_v45  ;;  %v1644_v47 = vld [vmem:[%s20307_s9 + $0x1fb0] sm:$0x3]  ;;  %v1642_v13 = vld [vmem:[%s20307_s9 + $0x1fa0] sm:$0x3] }
 0x21c   : > { %v7771_v30 = vadd.f32 %v7770_v8, %v7751_v3  ;;  %9089 = vmatmul.f32.vlgmr.msrb.gmra.mxu2 %v21457_v24  ;;  %9109 = vmatmul.f32.vlgmr.msrb.gmra.mxu3 %v21460_v53  ;;  %v1635_v24 = vld [vmem:[%s20307_s9 + $0x1f68] sm:$0x3]  ;;  %v876_v8 = vld [vmem:[%s20307_s9 + $0x7b0] sm:$0xff]  ;;  %v881_v32 = vld [vmem:[%s20307_s9 + $0x7d8] sm:$0xff] }
 0x21d   : > { %9049 = vmatmul.f32.vlgmr.msrb.gmra.mxu0 %v21466_v23  ;;  %9069 = vmatmul.f32.vlgmr.msrb.gmra.mxu1 %v21471_v38  ;;  %v868_v38 = vld [vmem:[%s20307_s9 + $0x770] sm:$0xff]  ;;  %v21558_v56 = vld.sshfl [vmem:[#allocation1 + $0x20] sm:$0xff pattern:$0x75316420] }
 0x21e   : > { %v7791_v34 = vadd.f32 %v7790_v5, %v7771_v30  ;;  %9168 = vmatpush.xpose.msra.mxu2 %v864_v19  ;;  %9128 = vmatpush.xpose.msra.mxu0 %v862_v11  ;;  %v21561_v31 = vld.sshfl [vmem:[#allocation1 + $0x28] sm:$0xff pattern:$0x75316420]  ;;  %v1643_v19 = vld [vmem:[%s20307_s9 + $0x1fa8] sm:$0x3]  ;;  %v884_v45 = vld [vmem:[%s20307_s9 + $0x7f0] sm:$0xff] }
 0x21f   : > { %v7810_v53 = vpop.f32.mrf.mxu2  ;;  %v7830_v43 = vpop.f32.mrf.mxu3  ;;  %9188 = vmatpush.xpose.msra.mxu3 %v865_v7  ;;  %9148 = vmatpush.xpose.msra.mxu1 %v863_v22  ;;  %v21589_v30 = vld.sshfl [vmem:[#allocation1 + $0x30] sm:$0xff pattern:$0x75316420]  ;;  %v1648_v22 = vld [vmem:[%s20307_s9 + $0x1fd0] sm:$0x3] }
 0x220   : > { %v7811_v23 = vadd.f32 %v7810_v53, %v7791_v34  ;;  %v1646_v53 = vld [vmem:[%s20307_s9 + $0x1fc0] sm:$0x3] }
 0x222   : > { %9247 = vmatpush.xpose.msrb.mxu2 %v1636_v16  ;;  %9207 = vmatpush.xpose.msrb.mxu0 %v1634_v58  ;;  %v7831_v21 = vadd.f32 %v7830_v43, %v7811_v23  ;;  %v7850_v42 = vpop.f32.mrf.mxu0  ;;  %v7870_v25 = vpop.f32.mrf.mxu1  ;;  %v874_v16 = vld [vmem:[%s20307_s9 + $0x7a0] sm:$0xff]  ;;  %v21592_v58 = vld.sshfl [vmem:[#allocation1 + $0x38] sm:$0xff pattern:$0x75316420] }
 0x223   : > { %9267 = vmatpush.xpose.msrb.mxu3 %v1637_v15  ;;  %9227 = vmatpush.xpose.msrb.mxu1 %v1635_v24  ;;  %v875_v15 = vld [vmem:[%s20307_s9 + $0x7a8] sm:$0xff]  ;;  %2940 = vst [vmem:[#allocation1 + $0x30] ss:$2 sm:$0xff] %v377_v17  ;;  %v376_v23 = vld [vmem:[%s20300_s7 + $0x410] sm:$0xff]  ;;  %v889_v17 = vld [vmem:[%s20307_s9 + $0x818] sm:$0xff] }
 0x224   : > { %v7851_v0 = vadd.f32 %v7850_v42, %v7831_v21  ;;  %9169 = vmatmul.f32.vlgmr.msra.gmra.mxu2 %v21479_v50  ;;  %9189 = vmatmul.f32.vlgmr.msra.gmra.mxu3 %v21482_v41  ;;  %v372_v50 = vld [vmem:[%s20300_s7 + $0x3f0] sm:$0xff]  ;;  %v1649_v21 = vld [vmem:[%s20307_s9 + $0x1fd8] sm:$0x3] }
 0x225   : > { %9129 = vmatmul.f32.vlgmr.msra.gmra.mxu0 %v21492_v59  ;;  %9149 = vmatmul.f32.vlgmr.msra.gmra.mxu1 %v21495_v27  ;;  %2927 = vst [vmem:[#allocation1 + $0x20] ss:$2 sm:$0xff] %v372_v50  ;;  %v1650_v50 = vld [vmem:[%s20307_s9 + $0x1fe0] sm:$0x3] }
 0x226   : > { %v7871_v61 = vadd.f32 %v7870_v25, %v7851_v0  ;;  %9248 = vmatpush.xpose.msrb.mxu2 %v868_v38  ;;  %9208 = vmatpush.xpose.msrb.mxu0 %v866_v29  ;;  %v21611_v0 = vld.sshfl [vmem:[#allocation1 + $0x10] sm:$0xff pattern:$0x75316420] }
 0x227   : > { %v7890_v41 = vpop.f32.mrf.mxu2  ;;  %v7910_v51 = vpop.f32.mrf.mxu3  ;;  %9268 = vmatpush.xpose.msrb.mxu3 %v869_v28  ;;  %9228 = vmatpush.xpose.msrb.mxu1 %v867_v33  ;;  %v878_v33 = vld [vmem:[%s20307_s9 + $0x7c0] sm:$0xff] }
 0x228   : > { %v7891_v59 = vadd.f32 %v7890_v41, %v7871_v61  ;;  %v1653_v41 = vld [vmem:[%s20307_s9 + $0x1ff8] sm:$0x3] }
 0x22a   : > { %9327 = vmatpush.xpose.msra.mxu2 %v1640_v37  ;;  %9287 = vmatpush.xpose.msra.mxu0 %v1638_v48  ;;  %v7911_v27 = vadd.f32 %v7910_v51, %v7891_v59  ;;  %v7930_v35 = vpop.f32.mrf.mxu0  ;;  %v7950_v55 = vpop.f32.mrf.mxu1  ;;  %v879_v37 = vld [vmem:[%s20307_s9 + $0x7c8] sm:$0xff]  ;;  %v21614_v48 = vld.sshfl [vmem:[#allocation1 + $0x18] sm:$0xff pattern:$0x75316420] }
 0x22b   : > { %9347 = vmatpush.xpose.msra.mxu3 %v1641_v36  ;;  %9307 = vmatpush.xpose.msra.mxu1 %v1639_v40  ;;  %v379_v36 = vld [vmem:[%s20300_s7 + $0x428] sm:$0xff]  ;;  %v1652_v40 = vld [vmem:[%s20307_s9 + $0x1ff0] sm:$0x3] }
 0x22c   : > { %v7931_v10 = vadd.f32 %v7930_v35, %v7911_v27  ;;  %9249 = vmatmul.f32.vlgmr.msrb.gmra.mxu2 %v21499_v14  ;;  %9269 = vmatmul.f32.vlgmr.msrb.gmra.mxu3 %v21502_v2  ;;  %v21582_v2 = vld.sshfl [vmem:[#allocation1] sm:$0xff pattern:$0x75316420]  ;;  %v21603_v43 = vld.sshfl [vmem:[#allocation1 + $0x28] sm:$0xff pattern:$0x75316420] }
 0x22d   : > { %9209 = vmatmul.f32.vlgmr.msrb.gmra.mxu0 %v21516_v57  ;;  %9229 = vmatmul.f32.vlgmr.msrb.gmra.mxu1 %v21518_v52  ;;  %v21584_v57 = vld.sshfl [vmem:[#allocation1 + $0x8] sm:$0xff pattern:$0x75316420]  ;;  %v21598_v24 = vld.sshfl [vmem:[#allocation1 + $0x20] sm:$0xff pattern:$0x75316420] }
 0x22e   : > { %v7951_v9 = vadd.f32 %v7950_v55, %v7931_v10  ;;  %9328 = vmatpush.xpose.msra.mxu2 %v872_v39  ;;  %9288 = vmatpush.xpose.msra.mxu0 %v870_v1  ;;  %2937 = vst [vmem:[#allocation1] ss:$2 sm:$0xff] %v374_v62  ;;  %v1651_v27 = vld [vmem:[%s20307_s9 + $0x1fe8] sm:$0x3]  ;;  %v885_v62 = vld [vmem:[%s20307_s9 + $0x7f8] sm:$0xff] }
 0x22f   : > { %v7970_v3 = vpop.f32.mrf.mxu2  ;;  %v7990_v14 = vpop.f32.mrf.mxu3  ;;  %9348 = vmatpush.xpose.msra.mxu3 %v873_v63  ;;  %9308 = vmatpush.xpose.msra.mxu1 %v871_v6  ;;  %2939 = vst [vmem:[#allocation1 + $0x20] ss:$2 sm:$0xff] %v376_v23  ;;  %v21631_v10 = vld.sshfl [vmem:[#allocation1 + $0x30] sm:$0xff pattern:$0x75316420]  ;;  %v882_v63 = vld [vmem:[%s20307_s9 + $0x7e0] sm:$0xff] }
 0x230   : > { %v7971_v52 = vadd.f32 %v7970_v3, %v7951_v9  ;;  %2950 = vst [vmem:[#allocation1 + $0x10] ss:$2 sm:$0xff] %v379_v36  ;;  %v21634_v6 = vld.sshfl [vmem:[#allocation1 + $0x38] sm:$0xff pattern:$0x75316420]  ;;  %v883_v9 = vld [vmem:[%s20307_s9 + $0x7e8] sm:$0xff] }
 0x231   : > { %v380_v3 = vld [vmem:[%s20300_s7 + $0x430] sm:$0xff]  ;;  %v383_v23 = vld [vmem:[%s20300_s7 + $0x448] sm:$0xff]  ;;  %v893_v36 = vld [vmem:[%s20307_s9 + $0x838] sm:$0xff] }
 0x232   : > { %9407 = vmatpush.xpose.msrb.mxu2 %v1644_v47  ;;  %9367 = vmatpush.xpose.msrb.mxu0 %v1642_v13  ;;  %v7991_v5 = vadd.f32 %v7990_v14, %v7971_v52  ;;  %v8010_v11 = vpop.f32.mrf.mxu0  ;;  %v8030_v7 = vpop.f32.mrf.mxu1  ;;  %v381_v47 = vld [vmem:[%s20300_s7 + $0x438] sm:$0xff] }
 0x233   : > { %9427 = vmatpush.xpose.msrb.mxu3 %v1645_v49  ;;  %9387 = vmatpush.xpose.msrb.mxu1 %v1643_v19  ;;  %2952 = vst [vmem:[#allocation1 + $0x30] ss:$2 sm:$0xff] %v381_v47  ;;  %v1656_v49 = vld [vmem:[%s20307_s9 + $0x2010] sm:$0x3]  ;;  %v1654_v19 = vld [vmem:[%s20307_s9 + $0x2000] sm:$0x3] }
 0x234   : > { %v8011_v34 = vadd.f32 %v8010_v11, %v7991_v5  ;;  %9329 = vmatmul.f32.vlgmr.msra.gmra.mxu2 %v21523_v26  ;;  %9349 = vmatmul.f32.vlgmr.msra.gmra.mxu3 %v21526_v60  ;;  %v1647_v26 = vld [vmem:[%s20307_s9 + $0x1fc8] sm:$0x3]  ;;  %v1657_v52 = vld [vmem:[%s20307_s9 + $0x2018] sm:$0x3]  ;;  %v888_v11 = vld [vmem:[%s20307_s9 + $0x810] sm:$0xff] }
 0x235   : > { %9289 = vmatmul.f32.vlgmr.msra.gmra.mxu0 %v21532_v18  ;;  %9309 = vmatmul.f32.vlgmr.msra.gmra.mxu1 %v21537_v44  ;;  %v880_v44 = vld [vmem:[%s20307_s9 + $0x7d0] sm:$0xff]  ;;  %v21624_v51 = vld.sshfl [vmem:[#allocation1] sm:$0xff pattern:$0x75316420] }
 0x236   : > { %v8031_v38 = vadd.f32 %v8030_v7, %v8011_v34  ;;  %9408 = vmatpush.xpose.msrb.mxu2 %v876_v8  ;;  %9368 = vmatpush.xpose.msrb.mxu0 %v874_v16  ;;  %v21627_v35 = vld.sshfl [vmem:[#allocation1 + $0x8] sm:$0xff pattern:$0x75316420]  ;;  %v1655_v8 = vld [vmem:[%s20307_s9 + $0x2008] sm:$0x3]  ;;  %v896_v47 = vld [vmem:[%s20307_s9 + $0x850] sm:$0xff] }
 0x237   : > { %v8050_v60 = vpop.f32.mrf.mxu2  ;;  %v8070_v42 = vpop.f32.mrf.mxu3  ;;  %9428 = vmatpush.xpose.msrb.mxu3 %v877_v12  ;;  %9388 = vmatpush.xpose.msrb.mxu1 %v875_v15  ;;  %v21655_v34 = vld.sshfl [vmem:[#allocation1 + $0x10] sm:$0xff pattern:$0x75316420]  ;;  %v1660_v15 = vld [vmem:[%s20307_s9 + $0x2030] sm:$0x3] }
 0x238   : > { %v8051_v18 = vadd.f32 %v8050_v60, %v8031_v38  ;;  %v1658_v60 = vld [vmem:[%s20307_s9 + $0x2020] sm:$0x3] }
 0x23a   : > { %9487 = vmatpush.xpose.msra.mxu2 %v1648_v22  ;;  %9447 = vmatpush.xpose.msra.mxu0 %v1646_v53  ;;  %v8071_v25 = vadd.f32 %v8070_v42, %v8051_v18  ;;  %v8090_v29 = vpop.f32.mrf.mxu0  ;;  %v8110_v28 = vpop.f32.mrf.mxu1  ;;  %v886_v22 = vld [vmem:[%s20307_s9 + $0x800] sm:$0xff]  ;;  %v21658_v53 = vld.sshfl [vmem:[#allocation1 + $0x18] sm:$0xff pattern:$0x75316420] }
 0x23b   : > { %9507 = vmatpush.xpose.msra.mxu3 %v1649_v21  ;;  %9467 = vmatpush.xpose.msra.mxu1 %v1647_v26  ;;  %v887_v21 = vld [vmem:[%s20307_s9 + $0x808] sm:$0xff]  ;;  %2962 = vst [vmem:[#allocation1 + $0x10] ss:$2 sm:$0xff] %v383_v23  ;;  %v382_v18 = vld [vmem:[%s20300_s7 + $0x440] sm:$0xff]  ;;  %v901_v23 = vld [vmem:[%s20307_s9 + $0x878] sm:$0xff] }
 0x23c   : > { %v8091_v61 = vadd.f32 %v8090_v29, %v8071_v25  ;;  %9409 = vmatmul.f32.vlgmr.msrb.gmra.mxu2 %v21545_v54  ;;  %9429 = vmatmul.f32.vlgmr.msrb.gmra.mxu3 %v21548_v46  ;;  %v378_v54 = vld [vmem:[%s20300_s7 + $0x420] sm:$0xff]  ;;  %v1661_v25 = vld [vmem:[%s20307_s9 + $0x2038] sm:$0x3] }
 0x23d   : > { %9369 = vmatmul.f32.vlgmr.msrb.gmra.mxu0 %v21558_v56  ;;  %9389 = vmatmul.f32.vlgmr.msrb.gmra.mxu1 %v21561_v31  ;;  %2949 = vst [vmem:[#allocation1] ss:$2 sm:$0xff] %v378_v54  ;;  %v1662_v54 = vld [vmem:[%s20307_s9 + $0x2040] sm:$0x3] }
 0x23e   : > { %v8111_v59 = vadd.f32 %v8110_v28, %v8091_v61  ;;  %9488 = vmatpush.xpose.msra.mxu2 %v880_v44  ;;  %9448 = vmatpush.xpose.msra.mxu0 %v878_v33  ;;  %v21677_v61 = vld.sshfl [vmem:[#allocation1 + $0x30] sm:$0xff pattern:$0x75316420] }
 0x23f   : > { %v8130_v46 = vpop.f32.mrf.mxu2  ;;  %v8150_v55 = vpop.f32.mrf.mxu3  ;;  %9508 = vmatpush.xpose.msra.mxu3 %v881_v32  ;;  %9468 = vmatpush.xpose.msra.mxu1 %v879_v37  ;;  %v890_v37 = vld [vmem:[%s20307_s9 + $0x820] sm:$0xff] }
 0x240   : > { %v8131_v56 = vadd.f32 %v8130_v46, %v8111_v59  ;;  %v1665_v46 = vld [vmem:[%s20307_s9 + $0x2058] sm:$0x3] }
 0x242   : > { %9567 = vmatpush.xpose.msrb.mxu2 %v1652_v40  ;;  %9527 = vmatpush.xpose.msrb.mxu0 %v1650_v50  ;;  %v8151_v31 = vadd.f32 %v8150_v55, %v8131_v56  ;;  %v8170_v39 = vpop.f32.mrf.mxu0  ;;  %v8190_v1 = vpop.f32.mrf.mxu1  ;;  %v891_v40 = vld [vmem:[%s20307_s9 + $0x828] sm:$0xff]  ;;  %v21680_v50 = vld.sshfl [vmem:[#allocation1 + $0x38] sm:$0xff pattern:$0x75316420] }
 0x243   : > { %9587 = vmatpush.xpose.msrb.mxu3 %v1653_v41  ;;  %9547 = vmatpush.xpose.msrb.mxu1 %v1651_v27  ;;  %v385_v41 = vld [vmem:[%s20300_s7 + $0x458] sm:$0xff]  ;;  %v1664_v27 = vld [vmem:[%s20307_s9 + $0x2050] sm:$0x3] }
 0x244   : > { %v8171_v13 = vadd.f32 %v8170_v39, %v8151_v31  ;;  %9489 = vmatmul.f32.vlgmr.msra.gmra.mxu2 %v21565_v20  ;;  %9509 = vmatmul.f32.vlgmr.msra.gmra.mxu3 %v21568_v4  ;;  %v21648_v4 = vld.sshfl [vmem:[#allocation1 + $0x20] sm:$0xff pattern:$0x75316420]  ;;  %v21669_v42 = vld.sshfl [vmem:[#allocation1 + $0x8] sm:$0xff pattern:$0x75316420] }
 0x245   : > { %9449 = vmatmul.f32.vlgmr.msra.gmra.mxu0 %v21582_v2  ;;  %9469 = vmatmul.f32.vlgmr.msra.gmra.mxu1 %v21584_v57  ;;  %v21650_v2 = vld.sshfl [vmem:[#allocation1 + $0x28] sm:$0xff pattern:$0x75316420]  ;;  %v21664_v26 = vld.sshfl [vmem:[#allocation1] sm:$0xff pattern:$0x75316420] }
 0x246   : > { %v8191_v14 = vadd.f32 %v8190_v1, %v8171_v13  ;;  %9568 = vmatpush.xpose.msrb.mxu2 %v884_v45  ;;  %9528 = vmatpush.xpose.msrb.mxu0 %v882_v63  ;;  %2951 = vst [vmem:[#allocation1 + $0x20] ss:$2 sm:$0xff] %v380_v3  ;;  %v1663_v31 = vld [vmem:[%s20307_s9 + $0x2048] sm:$0x3]  ;;  %v897_v3 = vld [vmem:[%s20307_s9 + $0x858] sm:$0xff] }
 0x247   : > { %v8210_v5 = vpop.f32.mrf.mxu2  ;;  %v8230_v20 = vpop.f32.mrf.mxu3  ;;  %9588 = vmatpush.xpose.msrb.mxu3 %v885_v62  ;;  %9548 = vmatpush.xpose.msrb.mxu1 %v883_v9  ;;  %2961 = vst [vmem:[#allocation1] ss:$2 sm:$0xff] %v382_v18  ;;  %v21697_v13 = vld.sshfl [vmem:[#allocation1 + $0x10] sm:$0xff pattern:$0x75316420]  ;;  %v894_v62 = vld [vmem:[%s20307_s9 + $0x840] sm:$0xff] }
 0x248   : > { %v8211_v57 = vadd.f32 %v8210_v5, %v8191_v14  ;;  %2964 = vst [vmem:[#allocation1 + $0x30] ss:$2 sm:$0xff] %v385_v41  ;;  %v21700_v9 = vld.sshfl [vmem:[#allocation1 + $0x18] sm:$0xff pattern:$0x75316420]  ;;  %v895_v14 = vld [vmem:[%s20307_s9 + $0x848] sm:$0xff] }
 0x249   : > { %v386_v5 = vld [vmem:[%s20300_s7 + $0x460] sm:$0xff]  ;;  %v389_v18 = vld [vmem:[%s20300_s7 + $0x478] sm:$0xff] }
 0x24a   : > { %9647 = vmatpush.xpose.msra.mxu2 %v1656_v49  ;;  %9607 = vmatpush.xpose.msra.mxu0 %v1654_v19  ;;  %v8231_v7 = vadd.f32 %v8230_v20, %v8211_v57  ;;  %v8250_v16 = vpop.f32.mrf.mxu0  ;;  %v8270_v12 = vpop.f32.mrf.mxu1  ;;  %v387_v49 = vld [vmem:[%s20300_s7 + $0x468] sm:$0xff]  ;;  %v1669_v57 = vld [vmem:[%s20307_s9 + $0x2078] sm:$0x3] }
 0x24b   : > { %9667 = vmatpush.xpose.msra.mxu3 %v1657_v52  ;;  %9627 = vmatpush.xpose.msra.mxu1 %v1655_v8  ;;  %2974 = vst [vmem:[#allocation1 + $0x10] ss:$2 sm:$0xff] %v387_v49  ;;  %v1668_v52 = vld [vmem:[%s20307_s9 + $0x2070] sm:$0x3]  ;;  %v1666_v8 = vld [vmem:[%s20307_s9 + $0x2060] sm:$0x3] }
 0x24c   : > { %v8251_v38 = vadd.f32 %v8250_v16, %v8231_v7  ;;  %9569 = vmatmul.f32.vlgmr.msrb.gmra.mxu2 %v21589_v30  ;;  %9589 = vmatmul.f32.vlgmr.msrb.gmra.mxu3 %v21592_v58  ;;  %v1659_v30 = vld [vmem:[%s20307_s9 + $0x2028] sm:$0x3]  ;;  %v900_v16 = vld [vmem:[%s20307_s9 + $0x870] sm:$0xff]  ;;  %v905_v41 = vld [vmem:[%s20307_s9 + $0x898] sm:$0xff] }
 0x24d   : > { %9529 = vmatmul.f32.vlgmr.msrb.gmra.mxu0 %v21598_v24  ;;  %9549 = vmatmul.f32.vlgmr.msrb.gmra.mxu1 %v21603_v43  ;;  %v892_v43 = vld [vmem:[%s20307_s9 + $0x830] sm:$0xff]  ;;  %v21690_v55 = vld.sshfl [vmem:[#allocation1 + $0x20] sm:$0xff pattern:$0x75316420] }
 0x24e   : > { %v8271_v44 = vadd.f32 %v8270_v12, %v8251_v38  ;;  %9648 = vmatpush.xpose.msra.mxu2 %v888_v11  ;;  %9608 = vmatpush.xpose.msra.mxu0 %v886_v22  ;;  %v21693_v39 = vld.sshfl [vmem:[#allocation1 + $0x28] sm:$0xff pattern:$0x75316420]  ;;  %v1667_v11 = vld [vmem:[%s20307_s9 + $0x2068] sm:$0x3]  ;;  %v908_v49 = vld [vmem:[%s20307_s9 + $0x8b0] sm:$0xff] }
 0x24f   : > { %v8290_v58 = vpop.f32.mrf.mxu2  ;;  %v8310_v29 = vpop.f32.mrf.mxu3  ;;  %9668 = vmatpush.xpose.msra.mxu3 %v889_v17  ;;  %9628 = vmatpush.xpose.msra.mxu1 %v887_v21  ;;  %v21721_v38 = vld.sshfl [vmem:[#allocation1 + $0x30] sm:$0xff pattern:$0x75316420]  ;;  %v1672_v21 = vld [vmem:[%s20307_s9 + $0x2090] sm:$0x3] }
 0x250   : > { %v8291_v24 = vadd.f32 %v8290_v58, %v8271_v44  ;;  %v1670_v58 = vld [vmem:[%s20307_s9 + $0x2080] sm:$0x3] }
 0x252   : > { %9727 = vmatpush.xpose.msrb.mxu2 %v1660_v15  ;;  %9687 = vmatpush.xpose.msrb.mxu0 %v1658_v60  ;;  %v8311_v28 = vadd.f32 %v8310_v29, %v8291_v24  ;;  %v8330_v33 = vpop.f32.mrf.mxu0  ;;  %v8350_v32 = vpop.f32.mrf.mxu1  ;;  %v898_v15 = vld [vmem:[%s20307_s9 + $0x860] sm:$0xff]  ;;  %v21724_v60 = vld.sshfl [vmem:[#allocation1 + $0x38] sm:$0xff pattern:$0x75316420] }
 0x253   : > { %9747 = vmatpush.xpose.msrb.mxu3 %v1661_v25  ;;  %9707 = vmatpush.xpose.msrb.mxu1 %v1659_v30  ;;  %v899_v25 = vld [vmem:[%s20307_s9 + $0x868] sm:$0xff]  ;;  %2976 = vst [vmem:[#allocation1 + $0x30] ss:$2 sm:$0xff] %v389_v18  ;;  %v388_v24 = vld [vmem:[%s20300_s7 + $0x470] sm:$0xff]  ;;  %v913_v18 = vld [vmem:[%s20307_s9 + $0x8d8] sm:$0xff] }
 0x254   : > { %v8331_v59 = vadd.f32 %v8330_v33, %v8311_v28  ;;  %9649 = vmatmul.f32.vlgmr.msra.gmra.mxu2 %v21611_v0  ;;  %9669 = vmatmul.f32.vlgmr.msra.gmra.mxu3 %v21614_v48  ;;  %v384_v0 = vld [vmem:[%s20300_s7 + $0x450] sm:$0xff]  ;;  %v1673_v28 = vld [vmem:[%s20307_s9 + $0x2098] sm:$0x3] }
 0x255   : > { %9609 = vmatmul.f32.vlgmr.msra.gmra.mxu0 %v21624_v51  ;;  %9629 = vmatmul.f32.vlgmr.msra.gmra.mxu1 %v21627_v35  ;;  %2963 = vst [vmem:[#allocation1 + $0x20] ss:$2 sm:$0xff] %v384_v0  ;;  %v1674_v0 = vld [vmem:[%s20307_s9 + $0x20a0] sm:$0x3] }
 0x256   : > { %v8351_v56 = vadd.f32 %v8350_v32, %v8331_v59  ;;  %9728 = vmatpush.xpose.msrb.mxu2 %v892_v43  ;;  %9688 = vmatpush.xpose.msrb.mxu0 %v890_v37  ;;  %v21743_v59 = vld.sshfl [vmem:[#allocation1 + $0x10] sm:$0xff pattern:$0x75316420] }
 0x257   : > { %v8370_v48 = vpop.f32.mrf.mxu2  ;;  %v8390_v1 = vpop.f32.mrf.mxu3  ;;  %9748 = vmatpush.xpose.msrb.mxu3 %v893_v36  ;;  %9708 = vmatpush.xpose.msrb.mxu1 %v891_v40  ;;  %v902_v40 = vld [vmem:[%s20307_s9 + $0x880] sm:$0xff] }
 0x258   : > { %v8371_v51 = vadd.f32 %v8370_v48, %v8351_v56  ;;  %v1677_v48 = vld [vmem:[%s20307_s9 + $0x20b8] sm:$0x3] }
 0x25a   : > { %9807 = vmatpush.xpose.msra.mxu2 %v1664_v27  ;;  %9767 = vmatpush.xpose.msra.mxu0 %v1662_v54  ;;  %v8391_v35 = vadd.f32 %v8390_v1, %v8371_v51  ;;  %v8410_v45 = vpop.f32.mrf.mxu0  ;;  %v8430_v63 = vpop.f32.mrf.mxu1  ;;  %v903_v27 = vld [vmem:[%s20307_s9 + $0x888] sm:$0xff]  ;;  %v21746_v54 = vld.sshfl [vmem:[#allocation1 + $0x18] sm:$0xff pattern:$0x75316420] }
 0x25b   : > { %9827 = vmatpush.xpose.msra.mxu3 %v1665_v46  ;;  %9787 = vmatpush.xpose.msra.mxu1 %v1663_v31  ;;  %v391_v46 = vld [vmem:[%s20300_s7 + $0x488] sm:$0xff]  ;;  %v1676_v31 = vld [vmem:[%s20307_s9 + $0x20b0] sm:$0x3] }
 0x25c   : > { %v8411_v19 = vadd.f32 %v8410_v45, %v8391_v35  ;;  %9729 = vmatmul.f32.vlgmr.msrb.gmra.mxu2 %v21631_v10  ;;  %9749 = vmatmul.f32.vlgmr.msrb.gmra.mxu3 %v21634_v6  ;;  %v21714_v6 = vld.sshfl [vmem:[#allocation1] sm:$0xff pattern:$0x75316420]  ;;  %v21735_v29 = vld.sshfl [vmem:[#allocation1 + $0x28] sm:$0xff pattern:$0x75316420] }
 0x25d   : > { %9689 = vmatmul.f32.vlgmr.msrb.gmra.mxu0 %v21648_v4  ;;  %9709 = vmatmul.f32.vlgmr.msrb.gmra.mxu1 %v21650_v2  ;;  %v21716_v4 = vld.sshfl [vmem:[#allocation1 + $0x8] sm:$0xff pattern:$0x75316420]  ;;  %v21730_v30 = vld.sshfl [vmem:[#allocation1 + $0x20] sm:$0xff pattern:$0x75316420] }
 0x25e   : > { %v8431_v20 = vadd.f32 %v8430_v63, %v8411_v19  ;;  %9808 = vmatpush.xpose.msra.mxu2 %v896_v47  ;;  %9768 = vmatpush.xpose.msra.mxu0 %v894_v62  ;;  %2973 = vst [vmem:[#allocation1] ss:$2 sm:$0xff] %v386_v5  ;;  %v1675_v35 = vld [vmem:[%s20307_s9 + $0x20a8] sm:$0x3]  ;;  %v909_v5 = vld [vmem:[%s20307_s9 + $0x8b8] sm:$0xff] }
 0x25f   : > { %v8450_v7 = vpop.f32.mrf.mxu2  ;;  %v8470_v10 = vpop.f32.mrf.mxu3  ;;  %9828 = vmatpush.xpose.msra.mxu3 %v897_v3  ;;  %9788 = vmatpush.xpose.msra.mxu1 %v895_v14  ;;  %2975 = vst [vmem:[#allocation1 + $0x20] ss:$2 sm:$0xff] %v388_v24  ;;  %v21763_v19 = vld.sshfl [vmem:[#allocation1 + $0x30] sm:$0xff pattern:$0x75316420]  ;;  %v906_v3 = vld [vmem:[%s20307_s9 + $0x8a0] sm:$0xff] }
 0x260   : > { %v8451_v2 = vadd.f32 %v8450_v7, %v8431_v20  ;;  %2986 = vst [vmem:[#allocation1 + $0x10] ss:$2 sm:$0xff] %v391_v46  ;;  %v21766_v14 = vld.sshfl [vmem:[#allocation1 + $0x38] sm:$0xff pattern:$0x75316420]  ;;  %v907_v20 = vld [vmem:[%s20307_s9 + $0x8a8] sm:$0xff] }
 0x261   : > { %v392_v7 = vld [vmem:[%s20300_s7 + $0x490] sm:$0xff]  ;;  %v395_v24 = vld [vmem:[%s20300_s7 + $0x4a8] sm:$0xff]  ;;  %v917_v46 = vld [vmem:[%s20307_s9 + $0x8f8] sm:$0xff] }
 0x262   : > { %9887 = vmatpush.xpose.msrb.mxu2 %v1668_v52  ;;  %9847 = vmatpush.xpose.msrb.mxu0 %v1666_v8  ;;  %v8471_v12 = vadd.f32 %v8470_v10, %v8451_v2  ;;  %v8490_v22 = vpop.f32.mrf.mxu0  ;;  %v8510_v17 = vpop.f32.mrf.mxu1  ;;  %v393_v52 = vld [vmem:[%s20300_s7 + $0x498] sm:$0xff] }
 0x263   : > { %9907 = vmatpush.xpose.msrb.mxu3 %v1669_v57  ;;  %9867 = vmatpush.xpose.msrb.mxu1 %v1667_v11  ;;  %2988 = vst [vmem:[#allocation1 + $0x30] ss:$2 sm:$0xff] %v393_v52  ;;  %v1680_v57 = vld [vmem:[%s20307_s9 + $0x20d0] sm:$0x3]  ;;  %v1678_v11 = vld [vmem:[%s20307_s9 + $0x20c0] sm:$0x3] }
 0x264   : > { %v8491_v44 = vadd.f32 %v8490_v22, %v8471_v12  ;;  %9809 = vmatmul.f32.vlgmr.msra.gmra.mxu2 %v21655_v34  ;;  %9829 = vmatmul.f32.vlgmr.msra.gmra.mxu3 %v21658_v53  ;;  %v1671_v34 = vld [vmem:[%s20307_s9 + $0x2088] sm:$0x3]  ;;  %v1681_v2 = vld [vmem:[%s20307_s9 + $0x20d8] sm:$0x3]  ;;  %v912_v22 = vld [vmem:[%s20307_s9 + $0x8d0] sm:$0xff] }
 0x265   : > { %9769 = vmatmul.f32.vlgmr.msra.gmra.mxu0 %v21664_v26  ;;  %9789 = vmatmul.f32.vlgmr.msra.gmra.mxu1 %v21669_v42  ;;  %v904_v42 = vld [vmem:[%s20307_s9 + $0x890] sm:$0xff]  ;;  %v21756_v1 = vld.sshfl [vmem:[#allocation1] sm:$0xff pattern:$0x75316420] }
 0x266   : > { %v8511_v43 = vadd.f32 %v8510_v17, %v8491_v44  ;;  %9888 = vmatpush.xpose.msrb.mxu2 %v900_v16  ;;  %9848 = vmatpush.xpose.msrb.mxu0 %v898_v15  ;;  %v21759_v45 = vld.sshfl [vmem:[#allocation1 + $0x8] sm:$0xff pattern:$0x75316420]  ;;  %v1679_v16 = vld [vmem:[%s20307_s9 + $0x20c8] sm:$0x3]  ;;  %v920_v52 = vld [vmem:[%s20307_s9 + $0x910] sm:$0xff] }
 0x267   : > { %v8530_v53 = vpop.f32.mrf.mxu2  ;;  %v8550_v33 = vpop.f32.mrf.mxu3  ;;  %9908 = vmatpush.xpose.msrb.mxu3 %v901_v23  ;;  %9868 = vmatpush.xpose.msrb.mxu1 %v899_v25  ;;  %v21787_v44 = vld.sshfl [vmem:[#allocation1 + $0x10] sm:$0xff pattern:$0x75316420]  ;;  %v1684_v25 = vld [vmem:[%s20307_s9 + $0x20f0] sm:$0x3] }
 0x268   : > { %v8531_v26 = vadd.f32 %v8530_v53, %v8511_v43  ;;  %v1682_v53 = vld [vmem:[%s20307_s9 + $0x20e0] sm:$0x3] }
 0x26a   : > { %9967 = vmatpush.xpose.msra.mxu2 %v1672_v21  ;;  %9927 = vmatpush.xpose.msra.mxu0 %v1670_v58  ;;  %v8551_v32 = vadd.f32 %v8550_v33, %v8531_v26  ;;  %v8570_v37 = vpop.f32.mrf.mxu0  ;;  %v8590_v36 = vpop.f32.mrf.mxu1  ;;  %v910_v21 = vld [vmem:[%s20307_s9 + $0x8c0] sm:$0xff]  ;;  %v21790_v58 = vld.sshfl [vmem:[#allocation1 + $0x18] sm:$0xff pattern:$0x75316420] }
 0x26b   : > { %9987 = vmatpush.xpose.msra.mxu3 %v1673_v28  ;;  %9947 = vmatpush.xpose.msra.mxu1 %v1671_v34  ;;  %v911_v28 = vld [vmem:[%s20307_s9 + $0x8c8] sm:$0xff]  ;;  %2998 = vst [vmem:[#allocation1 + $0x10] ss:$2 sm:$0xff] %v395_v24  ;;  %v394_v26 = vld [vmem:[%s20300_s7 + $0x4a0] sm:$0xff]  ;;  %v925_v24 = vld [vmem:[%s20307_s9 + $0x938] sm:$0xff] }
 0x26c   : > { %v8571_v56 = vadd.f32 %v8570_v37, %v8551_v32  ;;  %9889 = vmatmul.f32.vlgmr.msrb.gmra.mxu2 %v21677_v61  ;;  %9909 = vmatmul.f32.vlgmr.msrb.gmra.mxu3 %v21680_v50  ;;  %v390_v61 = vld [vmem:[%s20300_s7 + $0x480] sm:$0xff]  ;;  %v1685_v32 = vld [vmem:[%s20307_s9 + $0x20f8] sm:$0x3] }
 0x26d   : > { %9849 = vmatmul.f32.vlgmr.msrb.gmra.mxu0 %v21690_v55  ;;  %9869 = vmatmul.f32.vlgmr.msrb.gmra.mxu1 %v21693_v39  ;;  %2985 = vst [vmem:[#allocation1] ss:$2 sm:$0xff] %v390_v61  ;;  %v1686_v61 = vld [vmem:[%s20307_s9 + $0x2100] sm:$0x3] }
 0x26e   : > { %v8591_v51 = vadd.f32 %v8590_v36, %v8571_v56  ;;  %9968 = vmatpush.xpose.msra.mxu2 %v904_v42  ;;  %9928 = vmatpush.xpose.msra.mxu0 %v902_v40  ;;  %v21809_v56 = vld.sshfl [vmem:[#allocation1 + $0x30] sm:$0xff pattern:$0x75316420] }
 0x26f   : > { %v8610_v50 = vpop.f32.mrf.mxu2  ;;  %v8630_v63 = vpop.f32.mrf.mxu3  ;;  %9988 = vmatpush.xpose.msra.mxu3 %v905_v41  ;;  %9948 = vmatpush.xpose.msra.mxu1 %v903_v27  ;;  %v914_v27 = vld [vmem:[%s20307_s9 + $0x8e0] sm:$0xff] }
 0x270   : > { %v8611_v55 = vadd.f32 %v8610_v50, %v8591_v51  ;;  %v1689_v50 = vld [vmem:[%s20307_s9 + $0x2118] sm:$0x3] }
 0x272   : > { %10047 = vmatpush.xpose.msrb.mxu2 %v1676_v31  ;;  %10007 = vmatpush.xpose.msrb.mxu0 %v1674_v0  ;;  %v8631_v39 = vadd.f32 %v8630_v63, %v8611_v55  ;;  %v8650_v47 = vpop.f32.mrf.mxu0  ;;  %v8670_v62 = vpop.f32.mrf.mxu1  ;;  %v915_v31 = vld [vmem:[%s20307_s9 + $0x8e8] sm:$0xff]  ;;  %v21812_v0 = vld.sshfl [vmem:[#allocation1 + $0x38] sm:$0xff pattern:$0x75316420] }
 0x273   : > { %10067 = vmatpush.xpose.msrb.mxu3 %v1677_v48  ;;  %10027 = vmatpush.xpose.msrb.mxu1 %v1675_v35  ;;  %v397_v48 = vld [vmem:[%s20300_s7 + $0x4b8] sm:$0xff]  ;;  %v1688_v35 = vld [vmem:[%s20307_s9 + $0x2110] sm:$0x3] }
 0x274   : > { %v8651_v8 = vadd.f32 %v8650_v47, %v8631_v39  ;;  %9969 = vmatmul.f32.vlgmr.msra.gmra.mxu2 %v21697_v13  ;;  %9989 = vmatmul.f32.vlgmr.msra.gmra.mxu3 %v21700_v9  ;;  %v21780_v9 = vld.sshfl [vmem:[#allocation1 + $0x20] sm:$0xff pattern:$0x75316420]  ;;  %v21801_v33 = vld.sshfl [vmem:[#allocation1 + $0x8] sm:$0xff pattern:$0x75316420] }
 0x275   : > { %9929 = vmatmul.f32.vlgmr.msra.gmra.mxu0 %v21714_v6  ;;  %9949 = vmatmul.f32.vlgmr.msra.gmra.mxu1 %v21716_v4  ;;  %v21782_v6 = vld.sshfl [vmem:[#allocation1 + $0x28] sm:$0xff pattern:$0x75316420]  ;;  %v21796_v34 = vld.sshfl [vmem:[#allocation1] sm:$0xff pattern:$0x75316420] }
 0x276   : > { %v8671_v10 = vadd.f32 %v8670_v62, %v8651_v8  ;;  %10048 = vmatpush.xpose.msrb.mxu2 %v908_v49  ;;  %10008 = vmatpush.xpose.msrb.mxu0 %v906_v3  ;;  %2987 = vst [vmem:[#allocation1 + $0x20] ss:$2 sm:$0xff] %v392_v7  ;;  %v1687_v39 = vld [vmem:[%s20307_s9 + $0x2108] sm:$0x3]  ;;  %v921_v7 = vld [vmem:[%s20307_s9 + $0x918] sm:$0xff] }
 0x277   : > { %v8690_v12 = vpop.f32.mrf.mxu2  ;;  %v8710_v13 = vpop.f32.mrf.mxu3  ;;  %10068 = vmatpush.xpose.msrb.mxu3 %v909_v5  ;;  %10028 = vmatpush.xpose.msrb.mxu1 %v907_v20  ;;  %2997 = vst [vmem:[#allocation1] ss:$2 sm:$0xff] %v394_v26  ;;  %v21829_v8 = vld.sshfl [vmem:[#allocation1 + $0x10] sm:$0xff pattern:$0x75316420]  ;;  %v918_v5 = vld [vmem:[%s20307_s9 + $0x900] sm:$0xff] }
 0x278   : > { %v8691_v4 = vadd.f32 %v8690_v12, %v8671_v10  ;;  %3000 = vst [vmem:[#allocation1 + $0x30] ss:$2 sm:$0xff] %v397_v48  ;;  %v21832_v20 = vld.sshfl [vmem:[#allocation1 + $0x18] sm:$0xff pattern:$0x75316420]  ;;  %v919_v10 = vld [vmem:[%s20307_s9 + $0x908] sm:$0xff] }
 0x279   : > { %v398_v12 = vld [vmem:[%s20300_s7 + $0x4c0] sm:$0xff]  ;;  %v401_v26 = vld [vmem:[%s20300_s7 + $0x4d8] sm:$0xff] }
 0x27a   : > { %10127 = vmatpush.xpose.msra.mxu2 %v1680_v57  ;;  %10087 = vmatpush.xpose.msra.mxu0 %v1678_v11  ;;  %v8711_v17 = vadd.f32 %v8710_v13, %v8691_v4  ;;  %v8730_v15 = vpop.f32.mrf.mxu0  ;;  %v8750_v23 = vpop.f32.mrf.mxu1  ;;  %v399_v57 = vld [vmem:[%s20300_s7 + $0x4c8] sm:$0xff]  ;;  %v1693_v4 = vld [vmem:[%s20307_s9 + $0x2138] sm:$0x3] }
 0x27b   : > { %10147 = vmatpush.xpose.msra.mxu3 %v1681_v2  ;;  %10107 = vmatpush.xpose.msra.mxu1 %v1679_v16  ;;  %3010 = vst [vmem:[#allocation1 + $0x10] ss:$2 sm:$0xff] %v399_v57  ;;  %v1692_v2 = vld [vmem:[%s20307_s9 + $0x2130] sm:$0x3]  ;;  %v1690_v16 = vld [vmem:[%s20307_s9 + $0x2120] sm:$0x3] }
 0x27c   : > { %v8731_v43 = vadd.f32 %v8730_v15, %v8711_v17  ;;  %10049 = vmatmul.f32.vlgmr.msrb.gmra.mxu2 %v21721_v38  ;;  %10069 = vmatmul.f32.vlgmr.msrb.gmra.mxu3 %v21724_v60  ;;  %v1683_v38 = vld [vmem:[%s20307_s9 + $0x20e8] sm:$0x3]  ;;  %v924_v15 = vld [vmem:[%s20307_s9 + $0x930] sm:$0xff]  ;;  %v929_v48 = vld [vmem:[%s20307_s9 + $0x958] sm:$0xff] }
 0x27d   : > { %10009 = vmatmul.f32.vlgmr.msrb.gmra.mxu0 %v21730_v30  ;;  %10029 = vmatmul.f32.vlgmr.msrb.gmra.mxu1 %v21735_v29  ;;  %v916_v29 = vld [vmem:[%s20307_s9 + $0x8f0] sm:$0xff]  ;;  %v21822_v63 = vld.sshfl [vmem:[#allocation1 + $0x20] sm:$0xff pattern:$0x75316420] }
 0x27e   : > { %v8751_v42 = vadd.f32 %v8750_v23, %v8731_v43  ;;  %10128 = vmatpush.xpose.msra.mxu2 %v912_v22  ;;  %10088 = vmatpush.xpose.msra.mxu0 %v910_v21  ;;  %v21825_v47 = vld.sshfl [vmem:[#allocation1 + $0x28] sm:$0xff pattern:$0x75316420]  ;;  %v1691_v22 = vld [vmem:[%s20307_s9 + $0x2128] sm:$0x3]  ;;  %v932_v57 = vld [vmem:[%s20307_s9 + $0x970] sm:$0xff] }
 0x27f   : > { %v8770_v60 = vpop.f32.mrf.mxu2  ;;  %v8790_v37 = vpop.f32.mrf.mxu3  ;;  %10148 = vmatpush.xpose.msra.mxu3 %v913_v18  ;;  %10108 = vmatpush.xpose.msra.mxu1 %v911_v28  ;;  %v21853_v43 = vld.sshfl [vmem:[#allocation1 + $0x30] sm:$0xff pattern:$0x75316420]  ;;  %v1696_v28 = vld [vmem:[%s20307_s9 + $0x2150] sm:$0x3] }
 0x280   : > { %v8771_v30 = vadd.f32 %v8770_v60, %v8751_v42  ;;  %v1694_v60 = vld [vmem:[%s20307_s9 + $0x2140] sm:$0x3] }
 0x282   : > { %10207 = vmatpush.xpose.msrb.mxu2 %v1684_v25  ;;  %10167 = vmatpush.xpose.msrb.mxu0 %v1682_v53  ;;  %v8791_v36 = vadd.f32 %v8790_v37, %v8771_v30  ;;  %v8810_v40 = vpop.f32.mrf.mxu0  ;;  %v8830_v41 = vpop.f32.mrf.mxu1  ;;  %v922_v25 = vld [vmem:[%s20307_s9 + $0x920] sm:$0xff]  ;;  %v21856_v53 = vld.sshfl [vmem:[#allocation1 + $0x38] sm:$0xff pattern:$0x75316420] }
 0x283   : > { %10227 = vmatpush.xpose.msrb.mxu3 %v1685_v32  ;;  %10187 = vmatpush.xpose.msrb.mxu1 %v1683_v38  ;;  %v923_v32 = vld [vmem:[%s20307_s9 + $0x928] sm:$0xff]  ;;  %3012 = vst [vmem:[#allocation1 + $0x30] ss:$2 sm:$0xff] %v401_v26  ;;  %v400_v30 = vld [vmem:[%s20300_s7 + $0x4d0] sm:$0xff]  ;;  %v937_v26 = vld [vmem:[%s20307_s9 + $0x998] sm:$0xff] }
 0x284   : > { %v8811_v51 = vadd.f32 %v8810_v40, %v8791_v36  ;;  %10129 = vmatmul.f32.vlgmr.msra.gmra.mxu2 %v21743_v59  ;;  %10149 = vmatmul.f32.vlgmr.msra.gmra.mxu3 %v21746_v54  ;;  %v396_v59 = vld [vmem:[%s20300_s7 + $0x4b0] sm:$0xff]  ;;  %v1697_v36 = vld [vmem:[%s20307_s9 + $0x2158] sm:$0x3] }
 0x285   : > { %10089 = vmatmul.f32.vlgmr.msra.gmra.mxu0 %v21756_v1  ;;  %10109 = vmatmul.f32.vlgmr.msra.gmra.mxu1 %v21759_v45  ;;  %2999 = vst [vmem:[#allocation1 + $0x20] ss:$2 sm:$0xff] %v396_v59  ;;  %v1698_v59 = vld [vmem:[%s20307_s9 + $0x2160] sm:$0x3] }
 0x286   : > { %v8831_v55 = vadd.f32 %v8830_v41, %v8811_v51  ;;  %10208 = vmatpush.xpose.msrb.mxu2 %v916_v29  ;;  %10168 = vmatpush.xpose.msrb.mxu0 %v914_v27  ;;  %v21875_v51 = vld.sshfl [vmem:[#allocation1 + $0x10] sm:$0xff pattern:$0x75316420] }
 0x287   : > { %v8850_v54 = vpop.f32.mrf.mxu2  ;;  %v8870_v62 = vpop.f32.mrf.mxu3  ;;  %10228 = vmatpush.xpose.msrb.mxu3 %v917_v46  ;;  %10188 = vmatpush.xpose.msrb.mxu1 %v915_v31  ;;  %v926_v31 = vld [vmem:[%s20307_s9 + $0x940] sm:$0xff] }
 0x288   : > { %v8851_v1 = vadd.f32 %v8850_v54, %v8831_v55  ;;  %v1701_v54 = vld [vmem:[%s20307_s9 + $0x2178] sm:$0x3] }
 0x28a   : > { %10287 = vmatpush.xpose.msra.mxu2 %v1688_v35  ;;  %10247 = vmatpush.xpose.msra.mxu0 %v1686_v61  ;;  %v8871_v45 = vadd.f32 %v8870_v62, %v8851_v1  ;;  %v8890_v49 = vpop.f32.mrf.mxu0  ;;  %v8910_v3 = vpop.f32.mrf.mxu1  ;;  %v927_v35 = vld [vmem:[%s20307_s9 + $0x948] sm:$0xff]  ;;  %v21878_v61 = vld.sshfl [vmem:[#allocation1 + $0x18] sm:$0xff pattern:$0x75316420] }
 0x28b   : > { %10307 = vmatpush.xpose.msra.mxu3 %v1689_v50  ;;  %10267 = vmatpush.xpose.msra.mxu1 %v1687_v39  ;;  %v403_v50 = vld [vmem:[%s20300_s7 + $0x4e8] sm:$0xff]  ;;  %v1700_v39 = vld [vmem:[%s20307_s9 + $0x2170] sm:$0x3] }
 0x28c   : > { %v8891_v11 = vadd.f32 %v8890_v49, %v8871_v45  ;;  %10209 = vmatmul.f32.vlgmr.msrb.gmra.mxu2 %v21763_v19  ;;  %10229 = vmatmul.f32.vlgmr.msrb.gmra.mxu3 %v21766_v14  ;;  %v21846_v14 = vld.sshfl [vmem:[#allocation1] sm:$0xff pattern:$0x75316420]  ;;  %v21867_v37 = vld.sshfl [vmem:[#allocation1 + $0x28] sm:$0xff pattern:$0x75316420] }
 0x28d   : > { %10169 = vmatmul.f32.vlgmr.msrb.gmra.mxu0 %v21780_v9  ;;  %10189 = vmatmul.f32.vlgmr.msrb.gmra.mxu1 %v21782_v6  ;;  %v21848_v9 = vld.sshfl [vmem:[#allocation1 + $0x8] sm:$0xff pattern:$0x75316420]  ;;  %v21862_v38 = vld.sshfl [vmem:[#allocation1 + $0x20] sm:$0xff pattern:$0x75316420] }
 0x28e   : > { %v8911_v13 = vadd.f32 %v8910_v3, %v8891_v11  ;;  %10288 = vmatpush.xpose.msra.mxu2 %v920_v52  ;;  %10248 = vmatpush.xpose.msra.mxu0 %v918_v5  ;;  %3009 = vst [vmem:[#allocation1] ss:$2 sm:$0xff] %v398_v12  ;;  %v1699_v45 = vld [vmem:[%s20307_s9 + $0x2168] sm:$0x3]  ;;  %v933_v12 = vld [vmem:[%s20307_s9 + $0x978] sm:$0xff] }
 0x28f   : > { %v8930_v17 = vpop.f32.mrf.mxu2  ;;  %v8950_v19 = vpop.f32.mrf.mxu3  ;;  %10308 = vmatpush.xpose.msra.mxu3 %v921_v7  ;;  %10268 = vmatpush.xpose.msra.mxu1 %v919_v10  ;;  %3011 = vst [vmem:[#allocation1 + $0x20] ss:$2 sm:$0xff] %v400_v30  ;;  %v21895_v11 = vld.sshfl [vmem:[#allocation1 + $0x30] sm:$0xff pattern:$0x75316420]  ;;  %v930_v7 = vld [vmem:[%s20307_s9 + $0x960] sm:$0xff] }
 0x290   : > { %v8931_v6 = vadd.f32 %v8930_v17, %v8911_v13  ;;  %3022 = vst [vmem:[#allocation1 + $0x10] ss:$2 sm:$0xff] %v403_v50  ;;  %v21898_v10 = vld.sshfl [vmem:[#allocation1 + $0x38] sm:$0xff pattern:$0x75316420]  ;;  %v931_v13 = vld [vmem:[%s20307_s9 + $0x968] sm:$0xff] }
 0x291   : > { %v404_v17 = vld [vmem:[%s20300_s7 + $0x4f0] sm:$0xff]  ;;  %v407_v30 = vld [vmem:[%s20300_s7 + $0x508] sm:$0xff]  ;;  %v941_v50 = vld [vmem:[%s20307_s9 + $0x9b8] sm:$0xff] }
 0x292   : > { %10367 = vmatpush.xpose.msrb.mxu2 %v1692_v2  ;;  %10327 = vmatpush.xpose.msrb.mxu0 %v1690_v16  ;;  %v8951_v23 = vadd.f32 %v8950_v19, %v8931_v6  ;;  %v8970_v21 = vpop.f32.mrf.mxu0  ;;  %v8990_v18 = vpop.f32.mrf.mxu1  ;;  %v405_v2 = vld [vmem:[%s20300_s7 + $0x4f8] sm:$0xff] }
 0x293   : > { %10387 = vmatpush.xpose.msrb.mxu3 %v1693_v4  ;;  %10347 = vmatpush.xpose.msrb.mxu1 %v1691_v22  ;;  %3024 = vst [vmem:[#allocation1 + $0x30] ss:$2 sm:$0xff] %v405_v2  ;;  %v1704_v4 = vld [vmem:[%s20307_s9 + $0x2190] sm:$0x3]  ;;  %v1702_v22 = vld [vmem:[%s20307_s9 + $0x2180] sm:$0x3] }
 0x294   : > { %v8971_v42 = vadd.f32 %v8970_v21, %v8951_v23  ;;  %10289 = vmatmul.f32.vlgmr.msra.gmra.mxu2 %v21787_v44  ;;  %10309 = vmatmul.f32.vlgmr.msra.gmra.mxu3 %v21790_v58  ;;  %v1695_v44 = vld [vmem:[%s20307_s9 + $0x2148] sm:$0x3]  ;;  %v1705_v6 = vld [vmem:[%s20307_s9 + $0x2198] sm:$0x3]  ;;  %v936_v21 = vld [vmem:[%s20307_s9 + $0x990] sm:$0xff] }
 0x295   : > { %10249 = vmatmul.f32.vlgmr.msra.gmra.mxu0 %v21796_v34  ;;  %10269 = vmatmul.f32.vlgmr.msra.gmra.mxu1 %v21801_v33  ;;  %v928_v33 = vld [vmem:[%s20307_s9 + $0x950] sm:$0xff]  ;;  %v21888_v62 = vld.sshfl [vmem:[#allocation1] sm:$0xff pattern:$0x75316420] }
 0x296   : > { %v8991_v29 = vadd.f32 %v8990_v18, %v8971_v42  ;;  %10368 = vmatpush.xpose.msrb.mxu2 %v924_v15  ;;  %10328 = vmatpush.xpose.msrb.mxu0 %v922_v25  ;;  %v21891_v49 = vld.sshfl [vmem:[#allocation1 + $0x8] sm:$0xff pattern:$0x75316420]  ;;  %v1703_v15 = vld [vmem:[%s20307_s9 + $0x2188] sm:$0x3]  ;;  %v944_v2 = vld [vmem:[%s20307_s9 + $0x9d0] sm:$0xff] }
 0x297   : > { %v9010_v58 = vpop.f32.mrf.mxu2  ;;  %v9030_v40 = vpop.f32.mrf.mxu3  ;;  %10388 = vmatpush.xpose.msrb.mxu3 %v925_v24  ;;  %10348 = vmatpush.xpose.msrb.mxu1 %v923_v32  ;;  %v21919_v42 = vld.sshfl [vmem:[#allocation1 + $0x10] sm:$0xff pattern:$0x75316420]  ;;  %v1708_v32 = vld [vmem:[%s20307_s9 + $0x21b0] sm:$0x3] }
 0x298   : > { %v9011_v34 = vadd.f32 %v9010_v58, %v8991_v29  ;;  %v1706_v58 = vld [vmem:[%s20307_s9 + $0x21a0] sm:$0x3] }
 0x29a   : > { %10447 = vmatpush.xpose.msra.mxu2 %v1696_v28  ;;  %10407 = vmatpush.xpose.msra.mxu0 %v1694_v60  ;;  %v9031_v41 = vadd.f32 %v9030_v40, %v9011_v34  ;;  %v9050_v27 = vpop.f32.mrf.mxu0  ;;  %v9070_v46 = vpop.f32.mrf.mxu1  ;;  %v934_v28 = vld [vmem:[%s20307_s9 + $0x980] sm:$0xff]  ;;  %v21922_v60 = vld.sshfl [vmem:[#allocation1 + $0x18] sm:$0xff pattern:$0x75316420] }
 0x29b   : > { %10467 = vmatpush.xpose.msra.mxu3 %v1697_v36  ;;  %10427 = vmatpush.xpose.msra.mxu1 %v1695_v44  ;;  %v935_v36 = vld [vmem:[%s20307_s9 + $0x988] sm:$0xff]  ;;  %3034 = vst [vmem:[#allocation1 + $0x10] ss:$2 sm:$0xff] %v407_v30  ;;  %v406_v34 = vld [vmem:[%s20300_s7 + $0x500] sm:$0xff]  ;;  %v949_v30 = vld [vmem:[%s20307_s9 + $0x9f8] sm:$0xff] }
 0x29c   : > { %v9051_v55 = vadd.f32 %v9050_v27, %v9031_v41  ;;  %10369 = vmatmul.f32.vlgmr.msrb.gmra.mxu2 %v21809_v56  ;;  %10389 = vmatmul.f32.vlgmr.msrb.gmra.mxu3 %v21812_v0  ;;  %v402_v56 = vld [vmem:[%s20300_s7 + $0x4e0] sm:$0xff]  ;;  %v1709_v41 = vld [vmem:[%s20307_s9 + $0x21b8] sm:$0x3] }
 0x29d   : > { %10329 = vmatmul.f32.vlgmr.msrb.gmra.mxu0 %v21822_v63  ;;  %10349 = vmatmul.f32.vlgmr.msrb.gmra.mxu1 %v21825_v47  ;;  %3021 = vst [vmem:[#allocation1] ss:$2 sm:$0xff] %v402_v56  ;;  %v1710_v56 = vld [vmem:[%s20307_s9 + $0x21c0] sm:$0x3] }
 0x29e   : > { %v9071_v1 = vadd.f32 %v9070_v46, %v9051_v55  ;;  %10448 = vmatpush.xpose.msra.mxu2 %v928_v33  ;;  %10408 = vmatpush.xpose.msra.mxu0 %v926_v31  ;;  %v21941_v55 = vld.sshfl [vmem:[#allocation1 + $0x30] sm:$0xff pattern:$0x75316420] }
 0x29f   : > { %v9090_v0 = vpop.f32.mrf.mxu2  ;;  %v9110_v3 = vpop.f32.mrf.mxu3  ;;  %10468 = vmatpush.xpose.msra.mxu3 %v929_v48  ;;  %10428 = vmatpush.xpose.msra.mxu1 %v927_v35  ;;  %v938_v35 = vld [vmem:[%s20307_s9 + $0x9a0] sm:$0xff] }
 0x2a0   : > { %v9091_v63 = vadd.f32 %v9090_v0, %v9071_v1  ;;  %v1713_v0 = vld [vmem:[%s20307_s9 + $0x21d8] sm:$0x3] }
 0x2a2   : > { %10527 = vmatpush.xpose.msrb.mxu2 %v1700_v39  ;;  %10487 = vmatpush.xpose.msrb.mxu0 %v1698_v59  ;;  %v9111_v47 = vadd.f32 %v9110_v3, %v9091_v63  ;;  %v9130_v52 = vpop.f32.mrf.mxu0  ;;  %v9150_v5 = vpop.f32.mrf.mxu1  ;;  %v939_v39 = vld [vmem:[%s20307_s9 + $0x9a8] sm:$0xff]  ;;  %v21944_v59 = vld.sshfl [vmem:[#allocation1 + $0x38] sm:$0xff pattern:$0x75316420] }
 0x2a3   : > { %10547 = vmatpush.xpose.msrb.mxu3 %v1701_v54  ;;  %10507 = vmatpush.xpose.msrb.mxu1 %v1699_v45  ;;  %v409_v54 = vld [vmem:[%s20300_s7 + $0x518] sm:$0xff]  ;;  %v1712_v45 = vld [vmem:[%s20307_s9 + $0x21d0] sm:$0x3] }
 0x2a4   : > { %v9131_v16 = vadd.f32 %v9130_v52, %v9111_v47  ;;  %10449 = vmatmul.f32.vlgmr.msra.gmra.mxu2 %v21829_v8  ;;  %10469 = vmatmul.f32.vlgmr.msra.gmra.mxu3 %v21832_v20  ;;  %v21912_v20 = vld.sshfl [vmem:[#allocation1 + $0x20] sm:$0xff pattern:$0x75316420]  ;;  %v21933_v40 = vld.sshfl [vmem:[#allocation1 + $0x8] sm:$0xff pattern:$0x75316420] }
 0x2a5   : > { %10409 = vmatmul.f32.vlgmr.msra.gmra.mxu0 %v21846_v14  ;;  %10429 = vmatmul.f32.vlgmr.msra.gmra.mxu1 %v21848_v9  ;;  %v21914_v14 = vld.sshfl [vmem:[#allocation1 + $0x28] sm:$0xff pattern:$0x75316420]  ;;  %v21928_v44 = vld.sshfl [vmem:[#allocation1] sm:$0xff pattern:$0x75316420] }
 0x2a6   : > { %v9151_v19 = vadd.f32 %v9150_v5, %v9131_v16  ;;  %10528 = vmatpush.xpose.msrb.mxu2 %v932_v57  ;;  %10488 = vmatpush.xpose.msrb.mxu0 %v930_v7  ;;  %3023 = vst [vmem:[#allocation1 + $0x20] ss:$2 sm:$0xff] %v404_v17  ;;  %v1711_v47 = vld [vmem:[%s20307_s9 + $0x21c8] sm:$0x3]  ;;  %v945_v17 = vld [vmem:[%s20307_s9 + $0x9d8] sm:$0xff] }
 0x2a7   : > { %v9170_v23 = vpop.f32.mrf.mxu2  ;;  %v9190_v8 = vpop.f32.mrf.mxu3  ;;  %10548 = vmatpush.xpose.msrb.mxu3 %v933_v12  ;;  %10508 = vmatpush.xpose.msrb.mxu1 %v931_v13  ;;  %3033 = vst [vmem:[#allocation1] ss:$2 sm:$0xff] %v406_v34  ;;  %v21961_v16 = vld.sshfl [vmem:[#allocation1 + $0x10] sm:$0xff pattern:$0x75316420]  ;;  %v942_v12 = vld [vmem:[%s20307_s9 + $0x9c0] sm:$0xff] }
 0x2a8   : > { %v9171_v9 = vadd.f32 %v9170_v23, %v9151_v19  ;;  %3036 = vst [vmem:[#allocation1 + $0x30] ss:$2 sm:$0xff] %v409_v54  ;;  %v21964_v13 = vld.sshfl [vmem:[#allocation1 + $0x18] sm:$0xff pattern:$0x75316420]  ;;  %v943_v19 = vld [vmem:[%s20307_s9 + $0x9c8] sm:$0xff] }
 0x2a9   : > { %v410_v23 = vld [vmem:[%s20300_s7 + $0x520] sm:$0xff]  ;;  %v413_v34 = vld [vmem:[%s20300_s7 + $0x538] sm:$0xff] }
 0x2aa   : > { %10607 = vmatpush.xpose.msra.mxu2 %v1704_v4  ;;  %10567 = vmatpush.xpose.msra.mxu0 %v1702_v22  ;;  %v9191_v18 = vadd.f32 %v9190_v8, %v9171_v9  ;;  %v9210_v25 = vpop.f32.mrf.mxu0  ;;  %v9230_v24 = vpop.f32.mrf.mxu1  ;;  %v411_v4 = vld [vmem:[%s20300_s7 + $0x528] sm:$0xff]  ;;  %v1717_v9 = vld [vmem:[%s20307_s9 + $0x21f8] sm:$0x3] }
 0x2ab   : > { %10627 = vmatpush.xpose.msra.mxu3 %v1705_v6  ;;  %10587 = vmatpush.xpose.msra.mxu1 %v1703_v15  ;;  %3046 = vst [vmem:[#allocation1 + $0x10] ss:$2 sm:$0xff] %v411_v4  ;;  %v1716_v6 = vld [vmem:[%s20307_s9 + $0x21f0] sm:$0x3]  ;;  %v1714_v15 = vld [vmem:[%s20307_s9 + $0x21e0] sm:$0x3] }
 0x2ac   : > { %v9211_v29 = vadd.f32 %v9210_v25, %v9191_v18  ;;  %10529 = vmatmul.f32.vlgmr.msrb.gmra.mxu2 %v21853_v43  ;;  %10549 = vmatmul.f32.vlgmr.msrb.gmra.mxu3 %v21856_v53  ;;  %v1707_v43 = vld [vmem:[%s20307_s9 + $0x21a8] sm:$0x3]  ;;  %v948_v25 = vld [vmem:[%s20307_s9 + $0x9f0] sm:$0xff]  ;;  %v953_v54 = vld [vmem:[%s20307_s9 + $0xa18] sm:$0xff] }
 0x2ad   : > { %10489 = vmatmul.f32.vlgmr.msrb.gmra.mxu0 %v21862_v38  ;;  %10509 = vmatmul.f32.vlgmr.msrb.gmra.mxu1 %v21867_v37  ;;  %v940_v37 = vld [vmem:[%s20307_s9 + $0x9b0] sm:$0xff]  ;;  %v21954_v3 = vld.sshfl [vmem:[#allocation1 + $0x20] sm:$0xff pattern:$0x75316420] }
 0x2ae   : > { %v9231_v33 = vadd.f32 %v9230_v24, %v9211_v29  ;;  %10608 = vmatpush.xpose.msra.mxu2 %v936_v21  ;;  %10568 = vmatpush.xpose.msra.mxu0 %v934_v28  ;;  %v21957_v52 = vld.sshfl [vmem:[#allocation1 + $0x28] sm:$0xff pattern:$0x75316420]  ;;  %v1715_v21 = vld [vmem:[%s20307_s9 + $0x21e8] sm:$0x3]  ;;  %v956_v4 = vld [vmem:[%s20307_s9 + $0xa30] sm:$0xff] }
 0x2af   : > { %v9250_v53 = vpop.f32.mrf.mxu2  ;;  %v9270_v27 = vpop.f32.mrf.mxu3  ;;  %10628 = vmatpush.xpose.msra.mxu3 %v937_v26  ;;  %10588 = vmatpush.xpose.msra.mxu1 %v935_v36  ;;  %v21985_v29 = vld.sshfl [vmem:[#allocation1 + $0x30] sm:$0xff pattern:$0x75316420]  ;;  %v1720_v36 = vld [vmem:[%s20307_s9 + $0x2210] sm:$0x3] }
 0x2b0   : > { %v9251_v38 = vadd.f32 %v9250_v53, %v9231_v33  ;;  %v1718_v53 = vld [vmem:[%s20307_s9 + $0x2200] sm:$0x3] }
 0x2b2   : > { %10687 = vmatpush.xpose.msrb.mxu2 %v1708_v32  ;;  %10647 = vmatpush.xpose.msrb.mxu0 %v1706_v58  ;;  %v9271_v46 = vadd.f32 %v9270_v27, %v9251_v38  ;;  %v9290_v31 = vpop.f32.mrf.mxu0  ;;  %v9310_v48 = vpop.f32.mrf.mxu1  ;;  %v946_v32 = vld [vmem:[%s20307_s9 + $0x9e0] sm:$0xff]  ;;  %v21988_v58 = vld.sshfl [vmem:[#allocation1 + $0x38] sm:$0xff pattern:$0x75316420] }
 0x2b3   : > { %10707 = vmatpush.xpose.msrb.mxu3 %v1709_v41  ;;  %10667 = vmatpush.xpose.msrb.mxu1 %v1707_v43  ;;  %v947_v41 = vld [vmem:[%s20307_s9 + $0x9e8] sm:$0xff]  ;;  %3048 = vst [vmem:[#allocation1 + $0x30] ss:$2 sm:$0xff] %v413_v34  ;;  %v412_v38 = vld [vmem:[%s20300_s7 + $0x530] sm:$0xff]  ;;  %v961_v34 = vld [vmem:[%s20307_s9 + $0xa58] sm:$0xff] }
 0x2b4   : > { %v9291_v1 = vadd.f32 %v9290_v31, %v9271_v46  ;;  %10609 = vmatmul.f32.vlgmr.msra.gmra.mxu2 %v21875_v51  ;;  %10629 = vmatmul.f32.vlgmr.msra.gmra.mxu3 %v21878_v61  ;;  %v408_v51 = vld [vmem:[%s20300_s7 + $0x510] sm:$0xff]  ;;  %v1721_v46 = vld [vmem:[%s20307_s9 + $0x2218] sm:$0x3] }
 0x2b5   : > { %10569 = vmatmul.f32.vlgmr.msra.gmra.mxu0 %v21888_v62  ;;  %10589 = vmatmul.f32.vlgmr.msra.gmra.mxu1 %v21891_v49  ;;  %3035 = vst [vmem:[#allocation1 + $0x20] ss:$2 sm:$0xff] %v408_v51  ;;  %v1722_v51 = vld [vmem:[%s20307_s9 + $0x2220] sm:$0x3] }
 0x2b6   : > { %v9311_v63 = vadd.f32 %v9310_v48, %v9291_v1  ;;  %10688 = vmatpush.xpose.msrb.mxu2 %v940_v37  ;;  %10648 = vmatpush.xpose.msrb.mxu0 %v938_v35  ;;  %v22007_v1 = vld.sshfl [vmem:[#allocation1 + $0x10] sm:$0xff pattern:$0x75316420] }
 0x2b7   : > { %v9330_v61 = vpop.f32.mrf.mxu2  ;;  %v9350_v5 = vpop.f32.mrf.mxu3  ;;  %10708 = vmatpush.xpose.msrb.mxu3 %v941_v50  ;;  %10668 = vmatpush.xpose.msrb.mxu1 %v939_v39  ;;  %v950_v39 = vld [vmem:[%s20307_s9 + $0xa00] sm:$0xff] }
 0x2b8   : > { %v9331_v62 = vadd.f32 %v9330_v61, %v9311_v63  ;;  %v1725_v61 = vld [vmem:[%s20307_s9 + $0x2238] sm:$0x3] }
 0x2ba   : > { %10767 = vmatpush.xpose.msra.mxu2 %v1712_v45  ;;  %10727 = vmatpush.xpose.msra.mxu0 %v1710_v56  ;;  %v9351_v49 = vadd.f32 %v9350_v5, %v9331_v62  ;;  %v9370_v57 = vpop.f32.mrf.mxu0  ;;  %v9390_v7 = vpop.f32.mrf.mxu1  ;;  %v951_v45 = vld [vmem:[%s20307_s9 + $0xa08] sm:$0xff]  ;;  %v22010_v56 = vld.sshfl [vmem:[#allocation1 + $0x18] sm:$0xff pattern:$0x75316420] }
 0x2bb   : > { %10787 = vmatpush.xpose.msra.mxu3 %v1713_v0  ;;  %10747 = vmatpush.xpose.msra.mxu1 %v1711_v47  ;;  %v415_v0 = vld [vmem:[%s20300_s7 + $0x548] sm:$0xff]  ;;  %v1724_v47 = vld [vmem:[%s20307_s9 + $0x2230] sm:$0x3] }
 0x2bc   : > { %v9371_v22 = vadd.f32 %v9370_v57, %v9351_v49  ;;  %10689 = vmatmul.f32.vlgmr.msrb.gmra.mxu2 %v21895_v11  ;;  %10709 = vmatmul.f32.vlgmr.msrb.gmra.mxu3 %v21898_v10  ;;  %v21978_v10 = vld.sshfl [vmem:[#allocation1] sm:$0xff pattern:$0x75316420]  ;;  %v21999_v27 = vld.sshfl [vmem:[#allocation1 + $0x28] sm:$0xff pattern:$0x75316420] }
 0x2bd   : > { %10649 = vmatmul.f32.vlgmr.msrb.gmra.mxu0 %v21912_v20  ;;  %10669 = vmatmul.f32.vlgmr.msrb.gmra.mxu1 %v21914_v14  ;;  %v21980_v20 = vld.sshfl [vmem:[#allocation1 + $0x8] sm:$0xff pattern:$0x75316420]  ;;  %v21994_v43 = vld.sshfl [vmem:[#allocation1 + $0x20] sm:$0xff pattern:$0x75316420] }
 0x2be   : > { %v9391_v8 = vadd.f32 %v9390_v7, %v9371_v22  ;;  %10768 = vmatpush.xpose.msra.mxu2 %v944_v2  ;;  %10728 = vmatpush.xpose.msra.mxu0 %v942_v12  ;;  %3045 = vst [vmem:[#allocation1] ss:$2 sm:$0xff] %v410_v23  ;;  %v1723_v49 = vld [vmem:[%s20307_s9 + $0x2228] sm:$0x3]  ;;  %v957_v23 = vld [vmem:[%s20307_s9 + $0xa38] sm:$0xff] }
 0x2bf   : > { %v9410_v18 = vpop.f32.mrf.mxu2  ;;  %v9430_v11 = vpop.f32.mrf.mxu3  ;;  %10788 = vmatpush.xpose.msra.mxu3 %v945_v17  ;;  %10748 = vmatpush.xpose.msra.mxu1 %v943_v19  ;;  %3047 = vst [vmem:[#allocation1 + $0x20] ss:$2 sm:$0xff] %v412_v38  ;;  %v22027_v22 = vld.sshfl [vmem:[#allocation1 + $0x30] sm:$0xff pattern:$0x75316420]  ;;  %v954_v17 = vld [vmem:[%s20307_s9 + $0xa20] sm:$0xff] }
 0x2c0   : > { %v9411_v14 = vadd.f32 %v9410_v18, %v9391_v8  ;;  %3058 = vst [vmem:[#allocation1 + $0x10] ss:$2 sm:$0xff] %v415_v0  ;;  %v22030_v19 = vld.sshfl [vmem:[#allocation1 + $0x38] sm:$0xff pattern:$0x75316420]  ;;  %v955_v8 = vld [vmem:[%s20307_s9 + $0xa28] sm:$0xff] }
 0x2c1   : > { %v416_v18 = vld [vmem:[%s20300_s7 + $0x550] sm:$0xff]  ;;  %v419_v38 = vld [vmem:[%s20300_s7 + $0x568] sm:$0xff]  ;;  %v965_v0 = vld [vmem:[%s20307_s9 + $0xa78] sm:$0xff] }
 0x2c2   : > { %10847 = vmatpush.xpose.msrb.mxu2 %v1716_v6  ;;  %10807 = vmatpush.xpose.msrb.mxu0 %v1714_v15  ;;  %v9431_v24 = vadd.f32 %v9430_v11, %v9411_v14  ;;  %v9450_v28 = vpop.f32.mrf.mxu0  ;;  %v9470_v26 = vpop.f32.mrf.mxu1  ;;  %v417_v6 = vld [vmem:[%s20300_s7 + $0x558] sm:$0xff] }
 0x2c3   : > { %10867 = vmatpush.xpose.msrb.mxu3 %v1717_v9  ;;  %10827 = vmatpush.xpose.msrb.mxu1 %v1715_v21  ;;  %3060 = vst [vmem:[#allocation1 + $0x30] ss:$2 sm:$0xff] %v417_v6  ;;  %v1728_v9 = vld [vmem:[%s20307_s9 + $0x2250] sm:$0x3]  ;;  %v1726_v21 = vld [vmem:[%s20307_s9 + $0x2240] sm:$0x3] }
 0x2c4   : > { %v9451_v33 = vadd.f32 %v9450_v28, %v9431_v24  ;;  %10769 = vmatmul.f32.vlgmr.msra.gmra.mxu2 %v21919_v42  ;;  %10789 = vmatmul.f32.vlgmr.msra.gmra.mxu3 %v21922_v60  ;;  %v1719_v42 = vld [vmem:[%s20307_s9 + $0x2208] sm:$0x3]  ;;  %v1729_v14 = vld [vmem:[%s20307_s9 + $0x2258] sm:$0x3]  ;;  %v960_v28 = vld [vmem:[%s20307_s9 + $0xa50] sm:$0xff] }
 0x2c5   : > { %10729 = vmatmul.f32.vlgmr.msra.gmra.mxu0 %v21928_v44  ;;  %10749 = vmatmul.f32.vlgmr.msra.gmra.mxu1 %v21933_v40  ;;  %v952_v40 = vld [vmem:[%s20307_s9 + $0xa10] sm:$0xff]  ;;  %v22020_v5 = vld.sshfl [vmem:[#allocation1] sm:$0xff pattern:$0x75316420] }
 0x2c6   : > { %v9471_v37 = vadd.f32 %v9470_v26, %v9451_v33  ;;  %10848 = vmatpush.xpose.msrb.mxu2 %v948_v25  ;;  %10808 = vmatpush.xpose.msrb.mxu0 %v946_v32  ;;  %v22023_v57 = vld.sshfl [vmem:[#allocation1 + $0x8] sm:$0xff pattern:$0x75316420]  ;;  %v1727_v25 = vld [vmem:[%s20307_s9 + $0x2248] sm:$0x3]  ;;  %v968_v6 = vld [vmem:[%s20307_s9 + $0xa90] sm:$0xff] }
 0x2c7   : > { %v9490_v60 = vpop.f32.mrf.mxu2  ;;  %v9510_v31 = vpop.f32.mrf.mxu3  ;;  %10868 = vmatpush.xpose.msrb.mxu3 %v949_v30  ;;  %10828 = vmatpush.xpose.msrb.mxu1 %v947_v41  ;;  %v22051_v33 = vld.sshfl [vmem:[#allocation1 + $0x10] sm:$0xff pattern:$0x75316420]  ;;  %v1732_v41 = vld [vmem:[%s20307_s9 + $0x2270] sm:$0x3] }
 0x2c8   : > { %v9491_v44 = vadd.f32 %v9490_v60, %v9471_v37  ;;  %v1730_v60 = vld [vmem:[%s20307_s9 + $0x2260] sm:$0x3] }
 0x2ca   : > { %10927 = vmatpush.xpose.msra.mxu2 %v1720_v36  ;;  %10887 = vmatpush.xpose.msra.mxu0 %v1718_v53  ;;  %v9511_v48 = vadd.f32 %v9510_v31, %v9491_v44  ;;  %v9530_v35 = vpop.f32.mrf.mxu0  ;;  %v9550_v50 = vpop.f32.mrf.mxu1  ;;  %v958_v36 = vld [vmem:[%s20307_s9 + $0xa40] sm:$0xff]  ;;  %v22054_v53 = vld.sshfl [vmem:[#allocation1 + $0x18] sm:$0xff pattern:$0x75316420] }
 0x2cb   : > { %10947 = vmatpush.xpose.msra.mxu3 %v1721_v46  ;;  %10907 = vmatpush.xpose.msra.mxu1 %v1719_v42  ;;  %v959_v46 = vld [vmem:[%s20307_s9 + $0xa48] sm:$0xff]  ;;  %3070 = vst [vmem:[#allocation1 + $0x10] ss:$2 sm:$0xff] %v419_v38  ;;  %v418_v44 = vld [vmem:[%s20300_s7 + $0x560] sm:$0xff]  ;;  %v973_v38 = vld [vmem:[%s20307_s9 + $0xab8] sm:$0xff] }
 0x2cc   : > { %v9531_v63 = vadd.f32 %v9530_v35, %v9511_v48  ;;  %10849 = vmatmul.f32.vlgmr.msrb.gmra.mxu2 %v21941_v55  ;;  %10869 = vmatmul.f32.vlgmr.msrb.gmra.mxu3 %v21944_v59  ;;  %v414_v55 = vld [vmem:[%s20300_s7 + $0x540] sm:$0xff]  ;;  %v1733_v48 = vld [vmem:[%s20307_s9 + $0x2278] sm:$0x3] }
 0x2cd   : > { %10809 = vmatmul.f32.vlgmr.msrb.gmra.mxu0 %v21954_v3  ;;  %10829 = vmatmul.f32.vlgmr.msrb.gmra.mxu1 %v21957_v52  ;;  %3057 = vst [vmem:[#allocation1] ss:$2 sm:$0xff] %v414_v55  ;;  %v1734_v55 = vld [vmem:[%s20307_s9 + $0x2280] sm:$0x3] }
 0x2ce   : > { %v9551_v62 = vadd.f32 %v9550_v50, %v9531_v63  ;;  %10928 = vmatpush.xpose.msra.mxu2 %v952_v40  ;;  %10888 = vmatpush.xpose.msra.mxu0 %v950_v39  ;;  %v22073_v63 = vld.sshfl [vmem:[#allocation1 + $0x30] sm:$0xff pattern:$0x75316420] }
 0x2cf   : > { %v9570_v59 = vpop.f32.mrf.mxu2  ;;  %v9590_v7 = vpop.f32.mrf.mxu3  ;;  %10948 = vmatpush.xpose.msra.mxu3 %v953_v54  ;;  %10908 = vmatpush.xpose.msra.mxu1 %v951_v45  ;;  %v962_v45 = vld [vmem:[%s20307_s9 + $0xa60] sm:$0xff] }
 0x2d0   : > { %v9571_v3 = vadd.f32 %v9570_v59, %v9551_v62  ;;  %v1737_v59 = vld [vmem:[%s20307_s9 + $0x2298] sm:$0x3] }
 0x2d2   : > { %11007 = vmatpush.xpose.msrb.mxu2 %v1724_v47  ;;  %10967 = vmatpush.xpose.msrb.mxu0 %v1722_v51  ;;  %v9591_v52 = vadd.f32 %v9590_v7, %v9571_v3  ;;  %v9610_v2 = vpop.f32.mrf.mxu0  ;;  %v9630_v12 = vpop.f32.mrf.mxu1  ;;  %v963_v47 = vld [vmem:[%s20307_s9 + $0xa68] sm:$0xff]  ;;  %v22076_v51 = vld.sshfl [vmem:[#allocation1 + $0x38] sm:$0xff pattern:$0x75316420] }
 0x2d3   : > { %11027 = vmatpush.xpose.msrb.mxu3 %v1725_v61  ;;  %10987 = vmatpush.xpose.msrb.mxu1 %v1723_v49  ;;  %v421_v61 = vld [vmem:[%s20300_s7 + $0x578] sm:$0xff]  ;;  %v1736_v49 = vld [vmem:[%s20307_s9 + $0x2290] sm:$0x3] }
 0x2d4   : > { %v9611_v15 = vadd.f32 %v9610_v2, %v9591_v52  ;;  %10929 = vmatmul.f32.vlgmr.msra.gmra.mxu2 %v21961_v16  ;;  %10949 = vmatmul.f32.vlgmr.msra.gmra.mxu3 %v21964_v13  ;;  %v22044_v13 = vld.sshfl [vmem:[#allocation1 + $0x20] sm:$0xff pattern:$0x75316420]  ;;  %v22065_v31 = vld.sshfl [vmem:[#allocation1 + $0x8] sm:$0xff pattern:$0x75316420] }
 0x2d5   : > { %10889 = vmatmul.f32.vlgmr.msra.gmra.mxu0 %v21978_v10  ;;  %10909 = vmatmul.f32.vlgmr.msra.gmra.mxu1 %v21980_v20  ;;  %v22046_v10 = vld.sshfl [vmem:[#allocation1 + $0x28] sm:$0xff pattern:$0x75316420]  ;;  %v22060_v42 = vld.sshfl [vmem:[#allocation1] sm:$0xff pattern:$0x75316420] }
 0x2d6   : > { %v9631_v11 = vadd.f32 %v9630_v12, %v9611_v15  ;;  %11008 = vmatpush.xpose.msrb.mxu2 %v956_v4  ;;  %10968 = vmatpush.xpose.msrb.mxu0 %v954_v17  ;;  %3059 = vst [vmem:[#allocation1 + $0x20] ss:$2 sm:$0xff] %v416_v18  ;;  %v1735_v52 = vld [vmem:[%s20307_s9 + $0x2288] sm:$0x3]  ;;  %v969_v18 = vld [vmem:[%s20307_s9 + $0xa98] sm:$0xff] }
 0x2d7   : > { %v9650_v24 = vpop.f32.mrf.mxu2  ;;  %v9670_v16 = vpop.f32.mrf.mxu3  ;;  %11028 = vmatpush.xpose.msrb.mxu3 %v957_v23  ;;  %10988 = vmatpush.xpose.msrb.mxu1 %v955_v8  ;;  %3069 = vst [vmem:[#allocation1] ss:$2 sm:$0xff] %v418_v44  ;;  %v22093_v15 = vld.sshfl [vmem:[#allocation1 + $0x10] sm:$0xff pattern:$0x75316420]  ;;  %v966_v23 = vld [vmem:[%s20307_s9 + $0xa80] sm:$0xff] }
 0x2d8   : > { %v9651_v20 = vadd.f32 %v9650_v24, %v9631_v11  ;;  %3072 = vst [vmem:[#allocation1 + $0x30] ss:$2 sm:$0xff] %v421_v61  ;;  %v22096_v8 = vld.sshfl [vmem:[#allocation1 + $0x18] sm:$0xff pattern:$0x75316420]  ;;  %v967_v11 = vld [vmem:[%s20307_s9 + $0xa88] sm:$0xff] }
 0x2d9   : > { %v422_v24 = vld [vmem:[%s20300_s7 + $0x580] sm:$0xff]  ;;  %v425_v44 = vld [vmem:[%s20300_s7 + $0x598] sm:$0xff] }
 0x2da   : > { %11087 = vmatpush.xpose.msra.mxu2 %v1728_v9  ;;  %11047 = vmatpush.xpose.msra.mxu0 %v1726_v21  ;;  %v9671_v26 = vadd.f32 %v9670_v16, %v9651_v20  ;;  %v9690_v32 = vpop.f32.mrf.mxu0  ;;  %v9710_v30 = vpop.f32.mrf.mxu1  ;;  %v423_v9 = vld [vmem:[%s20300_s7 + $0x588] sm:$0xff]  ;;  %v1741_v20 = vld [vmem:[%s20307_s9 + $0x22b8] sm:$0x3] }
 0x2db   : > { %11107 = vmatpush.xpose.msra.mxu3 %v1729_v14  ;;  %11067 = vmatpush.xpose.msra.mxu1 %v1727_v25  ;;  %3082 = vst [vmem:[#allocation1 + $0x10] ss:$2 sm:$0xff] %v423_v9  ;;  %v1740_v14 = vld [vmem:[%s20307_s9 + $0x22b0] sm:$0x3]  ;;  %v1738_v25 = vld [vmem:[%s20307_s9 + $0x22a0] sm:$0x3] }
 0x2dc   : > { %v9691_v37 = vadd.f32 %v9690_v32, %v9671_v26  ;;  %11009 = vmatmul.f32.vlgmr.msrb.gmra.mxu2 %v21985_v29  ;;  %11029 = vmatmul.f32.vlgmr.msrb.gmra.mxu3 %v21988_v58  ;;  %v1731_v29 = vld [vmem:[%s20307_s9 + $0x2268] sm:$0x3]  ;;  %v972_v32 = vld [vmem:[%s20307_s9 + $0xab0] sm:$0xff]  ;;  %v977_v61 = vld [vmem:[%s20307_s9 + $0xad8] sm:$0xff] }
 0x2dd   : > { %10969 = vmatmul.f32.vlgmr.msrb.gmra.mxu0 %v21994_v43  ;;  %10989 = vmatmul.f32.vlgmr.msrb.gmra.mxu1 %v21999_v27  ;;  %v964_v27 = vld [vmem:[%s20307_s9 + $0xa70] sm:$0xff]  ;;  %v22086_v7 = vld.sshfl [vmem:[#allocation1 + $0x20] sm:$0xff pattern:$0x75316420] }
 0x2de   : > { %v9711_v40 = vadd.f32 %v9710_v30, %v9691_v37  ;;  %11088 = vmatpush.xpose.msra.mxu2 %v960_v28  ;;  %11048 = vmatpush.xpose.msra.mxu0 %v958_v36  ;;  %v22089_v2 = vld.sshfl [vmem:[#allocation1 + $0x28] sm:$0xff pattern:$0x75316420]  ;;  %v1739_v28 = vld [vmem:[%s20307_s9 + $0x22a8] sm:$0x3]  ;;  %v980_v9 = vld [vmem:[%s20307_s9 + $0xaf0] sm:$0xff] }
 0x2df   : > { %v9730_v58 = vpop.f32.mrf.mxu2  ;;  %v9750_v35 = vpop.f32.mrf.mxu3  ;;  %11108 = vmatpush.xpose.msra.mxu3 %v961_v34  ;;  %11068 = vmatpush.xpose.msra.mxu1 %v959_v46  ;;  %v22117_v37 = vld.sshfl [vmem:[#allocation1 + $0x30] sm:$0xff pattern:$0x75316420]  ;;  %v1744_v46 = vld [vmem:[%s20307_s9 + $0x22d0] sm:$0x3] }
 0x2e0   : > { %v9731_v43 = vadd.f32 %v9730_v58, %v9711_v40  ;;  %v1742_v58 = vld [vmem:[%s20307_s9 + $0x22c0] sm:$0x3] }
 0x2e2   : > { %11167 = vmatpush.xpose.msrb.mxu2 %v1732_v41  ;;  %11127 = vmatpush.xpose.msrb.mxu0 %v1730_v60  ;;  %v9751_v50 = vadd.f32 %v9750_v35, %v9731_v43  ;;  %v9770_v39 = vpop.f32.mrf.mxu0  ;;  %v9790_v54 = vpop.f32.mrf.mxu1  ;;  %v970_v41 = vld [vmem:[%s20307_s9 + $0xaa0] sm:$0xff]  ;;  %v22120_v60 = vld.sshfl [vmem:[#allocation1 + $0x38] sm:$0xff pattern:$0x75316420] }
 0x2e3   : > { %11187 = vmatpush.xpose.msrb.mxu3 %v1733_v48  ;;  %11147 = vmatpush.xpose.msrb.mxu1 %v1731_v29  ;;  %v971_v48 = vld [vmem:[%s20307_s9 + $0xaa8] sm:$0xff]  ;;  %3084 = vst [vmem:[#allocation1 + $0x30] ss:$2 sm:$0xff] %v425_v44  ;;  %v424_v43 = vld [vmem:[%s20300_s7 + $0x590] sm:$0xff]  ;;  %v985_v44 = vld [vmem:[%s20307_s9 + $0xb18] sm:$0xff] }
 0x2e4   : > { %v9771_v62 = vadd.f32 %v9770_v39, %v9751_v50  ;;  %11089 = vmatmul.f32.vlgmr.msra.gmra.mxu2 %v22007_v1  ;;  %11109 = vmatmul.f32.vlgmr.msra.gmra.mxu3 %v22010_v56  ;;  %v420_v1 = vld [vmem:[%s20300_s7 + $0x570] sm:$0xff]  ;;  %v1745_v50 = vld [vmem:[%s20307_s9 + $0x22d8] sm:$0x3] }
 0x2e5   : > { %11049 = vmatmul.f32.vlgmr.msra.gmra.mxu0 %v22020_v5  ;;  %11069 = vmatmul.f32.vlgmr.msra.gmra.mxu1 %v22023_v57  ;;  %3071 = vst [vmem:[#allocation1 + $0x20] ss:$2 sm:$0xff] %v420_v1  ;;  %v1746_v1 = vld [vmem:[%s20307_s9 + $0x22e0] sm:$0x3] }
 0x2e6   : > { %v9791_v3 = vadd.f32 %v9790_v54, %v9771_v62  ;;  %11168 = vmatpush.xpose.msrb.mxu2 %v964_v27  ;;  %11128 = vmatpush.xpose.msrb.mxu0 %v962_v45  ;;  %v22139_v62 = vld.sshfl [vmem:[#allocation1 + $0x10] sm:$0xff pattern:$0x75316420] }
 0x2e7   : > { %v9810_v56 = vpop.f32.mrf.mxu2  ;;  %v9830_v12 = vpop.f32.mrf.mxu3  ;;  %11188 = vmatpush.xpose.msrb.mxu3 %v965_v0  ;;  %11148 = vmatpush.xpose.msrb.mxu1 %v963_v47  ;;  %v974_v47 = vld [vmem:[%s20307_s9 + $0xac0] sm:$0xff] }
 0x2e8   : > { %v9811_v5 = vadd.f32 %v9810_v56, %v9791_v3  ;;  %v1749_v56 = vld [vmem:[%s20307_s9 + $0x22f8] sm:$0x3] }
 0x2ea   : > { %11247 = vmatpush.xpose.msra.mxu2 %v1736_v49  ;;  %11207 = vmatpush.xpose.msra.mxu0 %v1734_v55  ;;  %v9831_v57 = vadd.f32 %v9830_v12, %v9811_v5  ;;  %v9850_v4 = vpop.f32.mrf.mxu0  ;;  %v9870_v17 = vpop.f32.mrf.mxu1  ;;  %v975_v49 = vld [vmem:[%s20307_s9 + $0xac8] sm:$0xff]  ;;  %v22142_v55 = vld.sshfl [vmem:[#allocation1 + $0x18] sm:$0xff pattern:$0x75316420] }
 0x2eb   : > { %11267 = vmatpush.xpose.msra.mxu3 %v1737_v59  ;;  %11227 = vmatpush.xpose.msra.mxu1 %v1735_v52  ;;  %v427_v59 = vld [vmem:[%s20300_s7 + $0x5a8] sm:$0xff]  ;;  %v1748_v52 = vld [vmem:[%s20307_s9 + $0x22f0] sm:$0x3] }
 0x2ec   : > { %v9851_v21 = vadd.f32 %v9850_v4, %v9831_v57  ;;  %11169 = vmatmul.f32.vlgmr.msrb.gmra.mxu2 %v22027_v22  ;;  %11189 = vmatmul.f32.vlgmr.msrb.gmra.mxu3 %v22030_v19  ;;  %v22110_v19 = vld.sshfl [vmem:[#allocation1] sm:$0xff pattern:$0x75316420]  ;;  %v22131_v35 = vld.sshfl [vmem:[#allocation1 + $0x28] sm:$0xff pattern:$0x75316420] }
 0x2ed   : > { %11129 = vmatmul.f32.vlgmr.msrb.gmra.mxu0 %v22044_v13  ;;  %11149 = vmatmul.f32.vlgmr.msrb.gmra.mxu1 %v22046_v10  ;;  %v22112_v13 = vld.sshfl [vmem:[#allocation1 + $0x8] sm:$0xff pattern:$0x75316420]  ;;  %v22126_v29 = vld.sshfl [vmem:[#allocation1 + $0x20] sm:$0xff pattern:$0x75316420] }
 0x2ee   : > { %v9871_v16 = vadd.f32 %v9870_v17, %v9851_v21  ;;  %11248 = vmatpush.xpose.msra.mxu2 %v968_v6  ;;  %11208 = vmatpush.xpose.msra.mxu0 %v966_v23  ;;  %3081 = vst [vmem:[#allocation1] ss:$2 sm:$0xff] %v422_v24  ;;  %v1747_v57 = vld [vmem:[%s20307_s9 + $0x22e8] sm:$0x3]  ;;  %v981_v24 = vld [vmem:[%s20307_s9 + $0xaf8] sm:$0xff] }
 0x2ef   : > { %v9890_v26 = vpop.f32.mrf.mxu2  ;;  %v9910_v22 = vpop.f32.mrf.mxu3  ;;  %11268 = vmatpush.xpose.msra.mxu3 %v969_v18  ;;  %11228 = vmatpush.xpose.msra.mxu1 %v967_v11  ;;  %3083 = vst [vmem:[#allocation1 + $0x20] ss:$2 sm:$0xff] %v424_v43  ;;  %v22159_v21 = vld.sshfl [vmem:[#allocation1 + $0x30] sm:$0xff pattern:$0x75316420]  ;;  %v978_v18 = vld [vmem:[%s20307_s9 + $0xae0] sm:$0xff] }
 0x2f0   : > { %v9891_v10 = vadd.f32 %v9890_v26, %v9871_v16  ;;  %3094 = vst [vmem:[#allocation1 + $0x10] ss:$2 sm:$0xff] %v427_v59  ;;  %v22162_v11 = vld.sshfl [vmem:[#allocation1 + $0x38] sm:$0xff pattern:$0x75316420]  ;;  %v979_v16 = vld [vmem:[%s20307_s9 + $0xae8] sm:$0xff] }
 0x2f1   : > { %v428_v26 = vld [vmem:[%s20300_s7 + $0x5b0] sm:$0xff]  ;;  %v431_v43 = vld [vmem:[%s20300_s7 + $0x5c8] sm:$0xff]  ;;  %v989_v59 = vld [vmem:[%s20307_s9 + $0xb38] sm:$0xff] }
 0x2f2   : > { %11327 = vmatpush.xpose.msrb.mxu2 %v1740_v14  ;;  %11287 = vmatpush.xpose.msrb.mxu0 %v1738_v25  ;;  %v9911_v30 = vadd.f32 %v9910_v22, %v9891_v10  ;;  %v9930_v36 = vpop.f32.mrf.mxu0  ;;  %v9950_v34 = vpop.f32.mrf.mxu1  ;;  %v429_v14 = vld [vmem:[%s20300_s7 + $0x5b8] sm:$0xff] }
 0x2f3   : > { %11347 = vmatpush.xpose.msrb.mxu3 %v1741_v20  ;;  %11307 = vmatpush.xpose.msrb.mxu1 %v1739_v28  ;;  %3096 = vst [vmem:[#allocation1 + $0x30] ss:$2 sm:$0xff] %v429_v14  ;;  %v1752_v20 = vld [vmem:[%s20307_s9 + $0x2310] sm:$0x3]  ;;  %v1750_v28 = vld [vmem:[%s20307_s9 + $0x2300] sm:$0x3] }
 0x2f4   : > { %v9931_v40 = vadd.f32 %v9930_v36, %v9911_v30  ;;  %11249 = vmatmul.f32.vlgmr.msra.gmra.mxu2 %v22051_v33  ;;  %11269 = vmatmul.f32.vlgmr.msra.gmra.mxu3 %v22054_v53  ;;  %v1743_v33 = vld [vmem:[%s20307_s9 + $0x22c8] sm:$0x3]  ;;  %v1753_v10 = vld [vmem:[%s20307_s9 + $0x2318] sm:$0x3]  ;;  %v984_v36 = vld [vmem:[%s20307_s9 + $0xb10] sm:$0xff] }
 0x2f5   : > { %11209 = vmatmul.f32.vlgmr.msra.gmra.mxu0 %v22060_v42  ;;  %11229 = vmatmul.f32.vlgmr.msra.gmra.mxu1 %v22065_v31  ;;  %v976_v31 = vld [vmem:[%s20307_s9 + $0xad0] sm:$0xff]  ;;  %v22152_v12 = vld.sshfl [vmem:[#allocation1] sm:$0xff pattern:$0x75316420] }
 0x2f6   : > { %v9951_v27 = vadd.f32 %v9950_v34, %v9931_v40  ;;  %11328 = vmatpush.xpose.msrb.mxu2 %v972_v32  ;;  %11288 = vmatpush.xpose.msrb.mxu0 %v970_v41  ;;  %v22155_v4 = vld.sshfl [vmem:[#allocation1 + $0x8] sm:$0xff pattern:$0x75316420]  ;;  %v1751_v32 = vld [vmem:[%s20307_s9 + $0x2308] sm:$0x3]  ;;  %v992_v14 = vld [vmem:[%s20307_s9 + $0xb50] sm:$0xff] }
 0x2f7   : > { %v9970_v53 = vpop.f32.mrf.mxu2  ;;  %v9990_v39 = vpop.f32.mrf.mxu3  ;;  %11348 = vmatpush.xpose.msrb.mxu3 %v973_v38  ;;  %11308 = vmatpush.xpose.msrb.mxu1 %v971_v48  ;;  %v22183_v40 = vld.sshfl [vmem:[#allocation1 + $0x10] sm:$0xff pattern:$0x75316420]  ;;  %v1756_v48 = vld [vmem:[%s20307_s9 + $0x2330] sm:$0x3] }
 0x2f8   : > { %v9971_v42 = vadd.f32 %v9970_v53, %v9951_v27  ;;  %v1754_v53 = vld [vmem:[%s20307_s9 + $0x2320] sm:$0x3] }
 0x2fa   : > { %11407 = vmatpush.xpose.msra.mxu2 %v1744_v46  ;;  %11367 = vmatpush.xpose.msra.mxu0 %v1742_v58  ;;  %v9991_v54 = vadd.f32 %v9990_v39, %v9971_v42  ;;  %v10010_v45 = vpop.f32.mrf.mxu0  ;;  %v10030_v0 = vpop.f32.mrf.mxu1  ;;  %v982_v46 = vld [vmem:[%s20307_s9 + $0xb00] sm:$0xff]  ;;  %v22186_v58 = vld.sshfl [vmem:[#allocation1 + $0x18] sm:$0xff pattern:$0x75316420] }
 0x2fb   : > { %11427 = vmatpush.xpose.msra.mxu3 %v1745_v50  ;;  %11387 = vmatpush.xpose.msra.mxu1 %v1743_v33  ;;  %v983_v50 = vld [vmem:[%s20307_s9 + $0xb08] sm:$0xff]  ;;  %3106 = vst [vmem:[#allocation1 + $0x10] ss:$2 sm:$0xff] %v431_v43  ;;  %v430_v42 = vld [vmem:[%s20300_s7 + $0x5c0] sm:$0xff]  ;;  %v997_v43 = vld [vmem:[%s20307_s9 + $0xb78] sm:$0xff] }
 0x2fc   : > { %v10011_v3 = vadd.f32 %v10010_v45, %v9991_v54  ;;  %11329 = vmatmul.f32.vlgmr.msrb.gmra.mxu2 %v22073_v63  ;;  %11349 = vmatmul.f32.vlgmr.msrb.gmra.mxu3 %v22076_v51  ;;  %v426_v63 = vld [vmem:[%s20300_s7 + $0x5a0] sm:$0xff]  ;;  %v1757_v54 = vld [vmem:[%s20307_s9 + $0x2338] sm:$0x3] }
 0x2fd   : > { %11289 = vmatmul.f32.vlgmr.msrb.gmra.mxu0 %v22086_v7  ;;  %11309 = vmatmul.f32.vlgmr.msrb.gmra.mxu1 %v22089_v2  ;;  %3093 = vst [vmem:[#allocation1] ss:$2 sm:$0xff] %v426_v63  ;;  %v1758_v63 = vld [vmem:[%s20307_s9 + $0x2340] sm:$0x3] }
 0x2fe   : > { %v10031_v5 = vadd.f32 %v10030_v0, %v10011_v3  ;;  %11408 = vmatpush.xpose.msra.mxu2 %v976_v31  ;;  %11368 = vmatpush.xpose.msra.mxu0 %v974_v47  ;;  %v22205_v3 = vld.sshfl [vmem:[#allocation1 + $0x30] sm:$0xff pattern:$0x75316420] }
 0x2ff   : > { %v10050_v51 = vpop.f32.mrf.mxu2  ;;  %v10070_v17 = vpop.f32.mrf.mxu3  ;;  %11428 = vmatpush.xpose.msra.mxu3 %v977_v61  ;;  %11388 = vmatpush.xpose.msra.mxu1 %v975_v49  ;;  %v986_v49 = vld [vmem:[%s20307_s9 + $0xb20] sm:$0xff] }
 0x300   : > { %v10051_v7 = vadd.f32 %v10050_v51, %v10031_v5  ;;  %v1761_v51 = vld [vmem:[%s20307_s9 + $0x2358] sm:$0x3] }
 0x302   : > { %11487 = vmatpush.xpose.msrb.mxu2 %v1748_v52  ;;  %11447 = vmatpush.xpose.msrb.mxu0 %v1746_v1  ;;  %v10071_v2 = vadd.f32 %v10070_v17, %v10051_v7  ;;  %v10090_v6 = vpop.f32.mrf.mxu0  ;;  %v10110_v23 = vpop.f32.mrf.mxu1  ;;  %v987_v52 = vld [vmem:[%s20307_s9 + $0xb28] sm:$0xff]  ;;  %v22208_v1 = vld.sshfl [vmem:[#allocation1 + $0x38] sm:$0xff pattern:$0x75316420] }
 0x303   : > { %11507 = vmatpush.xpose.msrb.mxu3 %v1749_v56  ;;  %11467 = vmatpush.xpose.msrb.mxu1 %v1747_v57  ;;  %v433_v56 = vld [vmem:[%s20300_s7 + $0x5d8] sm:$0xff]  ;;  %v1760_v57 = vld [vmem:[%s20307_s9 + $0x2350] sm:$0x3] }
 0x304   : > { %v10091_v25 = vadd.f32 %v10090_v6, %v10071_v2  ;;  %11409 = vmatmul.f32.vlgmr.msra.gmra.mxu2 %v22093_v15  ;;  %11429 = vmatmul.f32.vlgmr.msra.gmra.mxu3 %v22096_v8  ;;  %v22176_v8 = vld.sshfl [vmem:[#allocation1 + $0x20] sm:$0xff pattern:$0x75316420]  ;;  %v22197_v39 = vld.sshfl [vmem:[#allocation1 + $0x8] sm:$0xff pattern:$0x75316420] }
 0x305   : > { %11369 = vmatmul.f32.vlgmr.msra.gmra.mxu0 %v22110_v19  ;;  %11389 = vmatmul.f32.vlgmr.msra.gmra.mxu1 %v22112_v13  ;;  %v22178_v19 = vld.sshfl [vmem:[#allocation1 + $0x28] sm:$0xff pattern:$0x75316420]  ;;  %v22192_v33 = vld.sshfl [vmem:[#allocation1] sm:$0xff pattern:$0x75316420] }
 0x306   : > { %v10111_v22 = vadd.f32 %v10110_v23, %v10091_v25  ;;  %11488 = vmatpush.xpose.msrb.mxu2 %v980_v9  ;;  %11448 = vmatpush.xpose.msrb.mxu0 %v978_v18  ;;  %3095 = vst [vmem:[#allocation1 + $0x20] ss:$2 sm:$0xff] %v428_v26  ;;  %v1759_v2 = vld [vmem:[%s20307_s9 + $0x2348] sm:$0x3]  ;;  %v993_v26 = vld [vmem:[%s20307_s9 + $0xb58] sm:$0xff] }
 0x307   : > { %v10130_v30 = vpop.f32.mrf.mxu2  ;;  %v10150_v15 = vpop.f32.mrf.mxu3  ;;  %11508 = vmatpush.xpose.msrb.mxu3 %v981_v24  ;;  %11468 = vmatpush.xpose.msrb.mxu1 %v979_v16  ;;  %3105 = vst [vmem:[#allocation1] ss:$2 sm:$0xff] %v430_v42  ;;  %v22225_v25 = vld.sshfl [vmem:[#allocation1 + $0x10] sm:$0xff pattern:$0x75316420]  ;;  %v990_v24 = vld [vmem:[%s20307_s9 + $0xb40] sm:$0xff] }
 0x308   : > { %v10131_v13 = vadd.f32 %v10130_v30, %v10111_v22  ;;  %3108 = vst [vmem:[#allocation1 + $0x30] ss:$2 sm:$0xff] %v433_v56  ;;  %v22228_v16 = vld.sshfl [vmem:[#allocation1 + $0x18] sm:$0xff pattern:$0x75316420]  ;;  %v991_v22 = vld [vmem:[%s20307_s9 + $0xb48] sm:$0xff] }
 0x309   : > { %v434_v30 = vld [vmem:[%s20300_s7 + $0x5e0] sm:$0xff]  ;;  %v437_v42 = vld [vmem:[%s20300_s7 + $0x5f8] sm:$0xff] }
 0x30a   : > { %11567 = vmatpush.xpose.msra.mxu2 %v1752_v20  ;;  %11527 = vmatpush.xpose.msra.mxu0 %v1750_v28  ;;  %v10151_v34 = vadd.f32 %v10150_v15, %v10131_v13  ;;  %v10170_v41 = vpop.f32.mrf.mxu0  ;;  %v10190_v38 = vpop.f32.mrf.mxu1  ;;  %v435_v20 = vld [vmem:[%s20300_s7 + $0x5e8] sm:$0xff]  ;;  %v1765_v13 = vld [vmem:[%s20307_s9 + $0x2378] sm:$0x3] }
 0x30b   : > { %11587 = vmatpush.xpose.msra.mxu3 %v1753_v10  ;;  %11547 = vmatpush.xpose.msra.mxu1 %v1751_v32  ;;  %3118 = vst [vmem:[#allocation1 + $0x10] ss:$2 sm:$0xff] %v435_v20  ;;  %v1764_v10 = vld [vmem:[%s20307_s9 + $0x2370] sm:$0x3]  ;;  %v1762_v32 = vld [vmem:[%s20307_s9 + $0x2360] sm:$0x3] }
 0x30c   : > { %v10171_v27 = vadd.f32 %v10170_v41, %v10151_v34  ;;  %11489 = vmatmul.f32.vlgmr.msrb.gmra.mxu2 %v22117_v37  ;;  %11509 = vmatmul.f32.vlgmr.msrb.gmra.mxu3 %v22120_v60  ;;  %v1755_v37 = vld [vmem:[%s20307_s9 + $0x2328] sm:$0x3]  ;;  %v996_v41 = vld [vmem:[%s20307_s9 + $0xb70] sm:$0xff]  ;;  %v1001_v56 = vld [vmem:[%s20307_s9 + $0xb98] sm:$0xff] }
 0x30d   : > { %11449 = vmatmul.f32.vlgmr.msrb.gmra.mxu0 %v22126_v29  ;;  %11469 = vmatmul.f32.vlgmr.msrb.gmra.mxu1 %v22131_v35  ;;  %v988_v35 = vld [vmem:[%s20307_s9 + $0xb30] sm:$0xff]  ;;  %v22218_v17 = vld.sshfl [vmem:[#allocation1 + $0x20] sm:$0xff pattern:$0x75316420] }
 0x30e   : > { %v10191_v31 = vadd.f32 %v10190_v38, %v10171_v27  ;;  %11568 = vmatpush.xpose.msra.mxu2 %v984_v36  ;;  %11528 = vmatpush.xpose.msra.mxu0 %v982_v46  ;;  %v22221_v6 = vld.sshfl [vmem:[#allocation1 + $0x28] sm:$0xff pattern:$0x75316420]  ;;  %v1763_v36 = vld [vmem:[%s20307_s9 + $0x2368] sm:$0x3]  ;;  %v1004_v20 = vld [vmem:[%s20307_s9 + $0xbb0] sm:$0xff] }
 0x30f   : > { %v10210_v60 = vpop.f32.mrf.mxu2  ;;  %v10230_v45 = vpop.f32.mrf.mxu3  ;;  %11588 = vmatpush.xpose.msra.mxu3 %v985_v44  ;;  %11548 = vmatpush.xpose.msra.mxu1 %v983_v50  ;;  %v22249_v27 = vld.sshfl [vmem:[#allocation1 + $0x30] sm:$0xff pattern:$0x75316420]  ;;  %v1768_v50 = vld [vmem:[%s20307_s9 + $0x2390] sm:$0x3] }
 0x310   : > { %v10211_v29 = vadd.f32 %v10210_v60, %v10191_v31  ;;  %v1766_v60 = vld [vmem:[%s20307_s9 + $0x2380] sm:$0x3] }
 0x312   : > { %11647 = vmatpush.xpose.msrb.mxu2 %v1756_v48  ;;  %11607 = vmatpush.xpose.msrb.mxu0 %v1754_v53  ;;  %v10231_v0 = vadd.f32 %v10230_v45, %v10211_v29  ;;  %v10250_v47 = vpop.f32.mrf.mxu0  ;;  %v10270_v61 = vpop.f32.mrf.mxu1  ;;  %v994_v48 = vld [vmem:[%s20307_s9 + $0xb60] sm:$0xff]  ;;  %v22252_v53 = vld.sshfl [vmem:[#allocation1 + $0x38] sm:$0xff pattern:$0x75316420] }
 0x313   : > { %11667 = vmatpush.xpose.msrb.mxu3 %v1757_v54  ;;  %11627 = vmatpush.xpose.msrb.mxu1 %v1755_v37  ;;  %v995_v54 = vld [vmem:[%s20307_s9 + $0xb68] sm:$0xff]  ;;  %3120 = vst [vmem:[#allocation1 + $0x30] ss:$2 sm:$0xff] %v437_v42  ;;  %v436_v29 = vld [vmem:[%s20300_s7 + $0x5f0] sm:$0xff]  ;;  %v1009_v42 = vld [vmem:[%s20307_s9 + $0xbd8] sm:$0xff] }
 0x314   : > { %v10251_v5 = vadd.f32 %v10250_v47, %v10231_v0  ;;  %11569 = vmatmul.f32.vlgmr.msra.gmra.mxu2 %v22139_v62  ;;  %11589 = vmatmul.f32.vlgmr.msra.gmra.mxu3 %v22142_v55  ;;  %v432_v62 = vld [vmem:[%s20300_s7 + $0x5d0] sm:$0xff]  ;;  %v1769_v0 = vld [vmem:[%s20307_s9 + $0x2398] sm:$0x3] }
 0x315   : > { %11529 = vmatmul.f32.vlgmr.msra.gmra.mxu0 %v22152_v12  ;;  %11549 = vmatmul.f32.vlgmr.msra.gmra.mxu1 %v22155_v4  ;;  %3107 = vst [vmem:[#allocation1 + $0x20] ss:$2 sm:$0xff] %v432_v62  ;;  %v1770_v62 = vld [vmem:[%s20307_s9 + $0x23a0] sm:$0x3] }
 0x316   : > { %v10271_v7 = vadd.f32 %v10270_v61, %v10251_v5  ;;  %11648 = vmatpush.xpose.msrb.mxu2 %v988_v35  ;;  %11608 = vmatpush.xpose.msrb.mxu0 %v986_v49  ;;  %v22271_v5 = vld.sshfl [vmem:[#allocation1 + $0x10] sm:$0xff pattern:$0x75316420] }
 0x317   : > { %v10290_v55 = vpop.f32.mrf.mxu2  ;;  %v10310_v23 = vpop.f32.mrf.mxu3  ;;  %11668 = vmatpush.xpose.msrb.mxu3 %v989_v59  ;;  %11628 = vmatpush.xpose.msrb.mxu1 %v987_v52  ;;  %v998_v52 = vld [vmem:[%s20307_s9 + $0xb80] sm:$0xff] }
 0x318   : > { %v10291_v12 = vadd.f32 %v10290_v55, %v10271_v7  ;;  %v1773_v55 = vld [vmem:[%s20307_s9 + $0x23b8] sm:$0x3] }
 0x31a   : > { %11727 = vmatpush.xpose.msra.mxu2 %v1760_v57  ;;  %11687 = vmatpush.xpose.msra.mxu0 %v1758_v63  ;;  %v10311_v4 = vadd.f32 %v10310_v23, %v10291_v12  ;;  %v10330_v9 = vpop.f32.mrf.mxu0  ;;  %v10350_v18 = vpop.f32.mrf.mxu1  ;;  %v999_v57 = vld [vmem:[%s20307_s9 + $0xb88] sm:$0xff]  ;;  %v22274_v63 = vld.sshfl [vmem:[#allocation1 + $0x18] sm:$0xff pattern:$0x75316420] }
 0x31b   : > { %11747 = vmatpush.xpose.msra.mxu3 %v1761_v51  ;;  %11707 = vmatpush.xpose.msra.mxu1 %v1759_v2  ;;  %v439_v51 = vld [vmem:[%s20300_s7 + $0x608] sm:$0xff]  ;;  %v1772_v2 = vld [vmem:[%s20307_s9 + $0x23b0] sm:$0x3] }
 0x31c   : > { %v10331_v28 = vadd.f32 %v10330_v9, %v10311_v4  ;;  %11649 = vmatmul.f32.vlgmr.msrb.gmra.mxu2 %v22159_v21  ;;  %11669 = vmatmul.f32.vlgmr.msrb.gmra.mxu3 %v22162_v11  ;;  %v22242_v11 = vld.sshfl [vmem:[#allocation1] sm:$0xff pattern:$0x75316420]  ;;  %v22263_v45 = vld.sshfl [vmem:[#allocation1 + $0x28] sm:$0xff pattern:$0x75316420] }
 0x31d   : > { %11609 = vmatmul.f32.vlgmr.msrb.gmra.mxu0 %v22176_v8  ;;  %11629 = vmatmul.f32.vlgmr.msrb.gmra.mxu1 %v22178_v19  ;;  %v22244_v8 = vld.sshfl [vmem:[#allocation1 + $0x8] sm:$0xff pattern:$0x75316420]  ;;  %v22258_v37 = vld.sshfl [vmem:[#allocation1 + $0x20] sm:$0xff pattern:$0x75316420] }
 0x31e   : > { %v10351_v15 = vadd.f32 %v10350_v18, %v10331_v28  ;;  %11728 = vmatpush.xpose.msra.mxu2 %v992_v14  ;;  %11688 = vmatpush.xpose.msra.mxu0 %v990_v24  ;;  %3117 = vst [vmem:[#allocation1] ss:$2 sm:$0xff] %v434_v30  ;;  %v1771_v4 = vld [vmem:[%s20307_s9 + $0x23a8] sm:$0x3]  ;;  %v1005_v30 = vld [vmem:[%s20307_s9 + $0xbb8] sm:$0xff] }
 0x31f   : > { %v10370_v34 = vpop.f32.mrf.mxu2  ;;  %v10390_v21 = vpop.f32.mrf.mxu3  ;;  %11748 = vmatpush.xpose.msra.mxu3 %v993_v26  ;;  %11708 = vmatpush.xpose.msra.mxu1 %v991_v22  ;;  %3119 = vst [vmem:[#allocation1 + $0x20] ss:$2 sm:$0xff] %v436_v29  ;;  %v22291_v28 = vld.sshfl [vmem:[#allocation1 + $0x30] sm:$0xff pattern:$0x75316420]  ;;  %v1002_v26 = vld [vmem:[%s20307_s9 + $0xba0] sm:$0xff] }
 0x320   : > { %v10371_v19 = vadd.f32 %v10370_v34, %v10351_v15  ;;  %3130 = vst [vmem:[#allocation1 + $0x10] ss:$2 sm:$0xff] %v439_v51  ;;  %v22294_v22 = vld.sshfl [vmem:[#allocation1 + $0x38] sm:$0xff pattern:$0x75316420]  ;;  %v1003_v15 = vld [vmem:[%s20307_s9 + $0xba8] sm:$0xff] }
 0x321   : > { %v440_v34 = vld [vmem:[%s20300_s7 + $0x610] sm:$0xff]  ;;  %v443_v29 = vld [vmem:[%s20300_s7 + $0x628] sm:$0xff]  ;;  %v1013_v51 = vld [vmem:[%s20307_s9 + $0xbf8] sm:$0xff] }
 0x322   : > { %11807 = vmatpush.xpose.msrb.mxu2 %v1764_v10  ;;  %11767 = vmatpush.xpose.msrb.mxu0 %v1762_v32  ;;  %v10391_v38 = vadd.f32 %v10390_v21, %v10371_v19  ;;  %v10410_v46 = vpop.f32.mrf.mxu0  ;;  %v10430_v44 = vpop.f32.mrf.mxu1  ;;  %v441_v10 = vld [vmem:[%s20300_s7 + $0x618] sm:$0xff] }
 0x323   : > { %11827 = vmatpush.xpose.msrb.mxu3 %v1765_v13  ;;  %11787 = vmatpush.xpose.msrb.mxu1 %v1763_v36  ;;  %3132 = vst [vmem:[#allocation1 + $0x30] ss:$2 sm:$0xff] %v441_v10  ;;  %v1776_v13 = vld [vmem:[%s20307_s9 + $0x23d0] sm:$0x3]  ;;  %v1774_v36 = vld [vmem:[%s20307_s9 + $0x23c0] sm:$0x3] }
 0x324   : > { %v10411_v31 = vadd.f32 %v10410_v46, %v10391_v38  ;;  %11729 = vmatmul.f32.vlgmr.msra.gmra.mxu2 %v22183_v40  ;;  %11749 = vmatmul.f32.vlgmr.msra.gmra.mxu3 %v22186_v58  ;;  %v1767_v40 = vld [vmem:[%s20307_s9 + $0x2388] sm:$0x3]  ;;  %v1777_v19 = vld [vmem:[%s20307_s9 + $0x23d8] sm:$0x3]  ;;  %v1008_v46 = vld [vmem:[%s20307_s9 + $0xbd0] sm:$0xff] }
 0x325   : > { %11689 = vmatmul.f32.vlgmr.msra.gmra.mxu0 %v22192_v33  ;;  %11709 = vmatmul.f32.vlgmr.msra.gmra.mxu1 %v22197_v39  ;;  %v1000_v39 = vld [vmem:[%s20307_s9 + $0xb90] sm:$0xff]  ;;  %v22284_v23 = vld.sshfl [vmem:[#allocation1] sm:$0xff pattern:$0x75316420] }
 0x326   : > { %v10431_v35 = vadd.f32 %v10430_v44, %v10411_v31  ;;  %11808 = vmatpush.xpose.msrb.mxu2 %v996_v41  ;;  %11768 = vmatpush.xpose.msrb.mxu0 %v994_v48  ;;  %v22287_v9 = vld.sshfl [vmem:[#allocation1 + $0x8] sm:$0xff pattern:$0x75316420]  ;;  %v1775_v41 = vld [vmem:[%s20307_s9 + $0x23c8] sm:$0x3]  ;;  %v1016_v10 = vld [vmem:[%s20307_s9 + $0xc10] sm:$0xff] }
 0x327   : > { %v10450_v58 = vpop.f32.mrf.mxu2  ;;  %v10470_v47 = vpop.f32.mrf.mxu3  ;;  %11828 = vmatpush.xpose.msrb.mxu3 %v997_v43  ;;  %11788 = vmatpush.xpose.msrb.mxu1 %v995_v54  ;;  %v22315_v31 = vld.sshfl [vmem:[#allocation1 + $0x10] sm:$0xff pattern:$0x75316420]  ;;  %v1780_v54 = vld [vmem:[%s20307_s9 + $0x23f0] sm:$0x3] }
 0x328   : > { %v10451_v33 = vadd.f32 %v10450_v58, %v10431_v35  ;;  %v1778_v58 = vld [vmem:[%s20307_s9 + $0x23e0] sm:$0x3] }
 0x32a   : > { %11887 = vmatpush.xpose.msra.mxu2 %v1768_v50  ;;  %11847 = vmatpush.xpose.msra.mxu0 %v1766_v60  ;;  %v10471_v61 = vadd.f32 %v10470_v47, %v10451_v33  ;;  %v10490_v49 = vpop.f32.mrf.mxu0  ;;  %v10510_v59 = vpop.f32.mrf.mxu1  ;;  %v1006_v50 = vld [vmem:[%s20307_s9 + $0xbc0] sm:$0xff]  ;;  %v22318_v60 = vld.sshfl [vmem:[#allocation1 + $0x18] sm:$0xff pattern:$0x75316420] }
 0x32b   : > { %11907 = vmatpush.xpose.msra.mxu3 %v1769_v0  ;;  %11867 = vmatpush.xpose.msra.mxu1 %v1767_v40  ;;  %v1007_v0 = vld [vmem:[%s20307_s9 + $0xbc8] sm:$0xff]  ;;  %3142 = vst [vmem:[#allocation1 + $0x10] ss:$2 sm:$0xff] %v443_v29  ;;  %v442_v33 = vld [vmem:[%s20300_s7 + $0x620] sm:$0xff]  ;;  %v1021_v29 = vld [vmem:[%s20307_s9 + $0xc38] sm:$0xff] }
 0x32c   : > { %v10491_v7 = vadd.f32 %v10490_v49, %v10471_v61  ;;  %11809 = vmatmul.f32.vlgmr.msrb.gmra.mxu2 %v22205_v3  ;;  %11829 = vmatmul.f32.vlgmr.msrb.gmra.mxu3 %v22208_v1  ;;  %v438_v3 = vld [vmem:[%s20300_s7 + $0x600] sm:$0xff]  ;;  %v1781_v61 = vld [vmem:[%s20307_s9 + $0x23f8] sm:$0x3] }
 0x32d   : > { %11769 = vmatmul.f32.vlgmr.msrb.gmra.mxu0 %v22218_v17  ;;  %11789 = vmatmul.f32.vlgmr.msrb.gmra.mxu1 %v22221_v6  ;;  %3129 = vst [vmem:[#allocation1] ss:$2 sm:$0xff] %v438_v3  ;;  %v1782_v3 = vld [vmem:[%s20307_s9 + $0x2400] sm:$0x3] }
 0x32e   : > { %v10511_v12 = vadd.f32 %v10510_v59, %v10491_v7  ;;  %11888 = vmatpush.xpose.msra.mxu2 %v1000_v39  ;;  %11848 = vmatpush.xpose.msra.mxu0 %v998_v52  ;;  %v22337_v7 = vld.sshfl [vmem:[#allocation1 + $0x30] sm:$0xff pattern:$0x75316420] }
 0x32f   : > { %v10530_v1 = vpop.f32.mrf.mxu2  ;;  %v10550_v18 = vpop.f32.mrf.mxu3  ;;  %11908 = vmatpush.xpose.msra.mxu3 %v1001_v56  ;;  %11868 = vmatpush.xpose.msra.mxu1 %v999_v57  ;;  %v1010_v57 = vld [vmem:[%s20307_s9 + $0xbe0] sm:$0xff] }
 0x330   : > { %v10531_v17 = vadd.f32 %v10530_v1, %v10511_v12  ;;  %v1785_v1 = vld [vmem:[%s20307_s9 + $0x2418] sm:$0x3] }
 0x332   : > { %11967 = vmatpush.xpose.msrb.mxu2 %v1772_v2  ;;  %11927 = vmatpush.xpose.msrb.mxu0 %v1770_v62  ;;  %v10551_v6 = vadd.f32 %v10550_v18, %v10531_v17  ;;  %v10570_v14 = vpop.f32.mrf.mxu0  ;;  %v10590_v24 = vpop.f32.mrf.mxu1  ;;  %v1011_v2 = vld [vmem:[%s20307_s9 + $0xbe8] sm:$0xff]  ;;  %v22340_v62 = vld.sshfl [vmem:[#allocation1 + $0x38] sm:$0xff pattern:$0x75316420] }
 0x333   : > { %11987 = vmatpush.xpose.msrb.mxu3 %v1773_v55  ;;  %11947 = vmatpush.xpose.msrb.mxu1 %v1771_v4  ;;  %v445_v55 = vld [vmem:[%s20300_s7 + $0x638] sm:$0xff]  ;;  %v1784_v4 = vld [vmem:[%s20307_s9 + $0x2410] sm:$0x3] }
 0x334   : > { %v10571_v32 = vadd.f32 %v10570_v14, %v10551_v6  ;;  %11889 = vmatmul.f32.vlgmr.msra.gmra.mxu2 %v22225_v25  ;;  %11909 = vmatmul.f32.vlgmr.msra.gmra.mxu3 %v22228_v16  ;;  %v22308_v16 = vld.sshfl [vmem:[#allocation1 + $0x20] sm:$0xff pattern:$0x75316420]  ;;  %v22329_v47 = vld.sshfl [vmem:[#allocation1 + $0x8] sm:$0xff pattern:$0x75316420] }
 0x335   : > { %11849 = vmatmul.f32.vlgmr.msra.gmra.mxu0 %v22242_v11  ;;  %11869 = vmatmul.f32.vlgmr.msra.gmra.mxu1 %v22244_v8  ;;  %v22310_v11 = vld.sshfl [vmem:[#allocation1 + $0x28] sm:$0xff pattern:$0x75316420]  ;;  %v22324_v40 = vld.sshfl [vmem:[#allocation1] sm:$0xff pattern:$0x75316420] }
 0x336   : > { %v10591_v21 = vadd.f32 %v10590_v24, %v10571_v32  ;;  %11968 = vmatpush.xpose.msrb.mxu2 %v1004_v20  ;;  %11928 = vmatpush.xpose.msrb.mxu0 %v1002_v26  ;;  %3131 = vst [vmem:[#allocation1 + $0x20] ss:$2 sm:$0xff] %v440_v34  ;;  %v1783_v6 = vld [vmem:[%s20307_s9 + $0x2408] sm:$0x3]  ;;  %v1017_v34 = vld [vmem:[%s20307_s9 + $0xc18] sm:$0xff] }
 0x337   : > { %v10610_v38 = vpop.f32.mrf.mxu2  ;;  %v10630_v25 = vpop.f32.mrf.mxu3  ;;  %11988 = vmatpush.xpose.msrb.mxu3 %v1005_v30  ;;  %11948 = vmatpush.xpose.msrb.mxu1 %v1003_v15  ;;  %3141 = vst [vmem:[#allocation1] ss:$2 sm:$0xff] %v442_v33  ;;  %v22357_v32 = vld.sshfl [vmem:[#allocation1 + $0x10] sm:$0xff pattern:$0x75316420]  ;;  %v1014_v30 = vld [vmem:[%s20307_s9 + $0xc00] sm:$0xff] }
 0x338   : > { %v10611_v8 = vadd.f32 %v10610_v38, %v10591_v21  ;;  %3144 = vst [vmem:[#allocation1 + $0x30] ss:$2 sm:$0xff] %v445_v55  ;;  %v22360_v15 = vld.sshfl [vmem:[#allocation1 + $0x18] sm:$0xff pattern:$0x75316420]  ;;  %v1015_v21 = vld [vmem:[%s20307_s9 + $0xc08] sm:$0xff] }
 0x339   : > { %v446_v38 = vld [vmem:[%s20300_s7 + $0x640] sm:$0xff]  ;;  %v449_v33 = vld [vmem:[%s20300_s7 + $0x658] sm:$0xff] }
 0x33a   : > { %12047 = vmatpush.xpose.msra.mxu2 %v1776_v13  ;;  %12007 = vmatpush.xpose.msra.mxu0 %v1774_v36  ;;  %v10631_v44 = vadd.f32 %v10630_v25, %v10611_v8  ;;  %v10650_v48 = vpop.f32.mrf.mxu0  ;;  %v10670_v43 = vpop.f32.mrf.mxu1  ;;  %v447_v13 = vld [vmem:[%s20300_s7 + $0x648] sm:$0xff]  ;;  %v1789_v8 = vld [vmem:[%s20307_s9 + $0x2438] sm:$0x3] }
 0x33b   : > { %12067 = vmatpush.xpose.msra.mxu3 %v1777_v19  ;;  %12027 = vmatpush.xpose.msra.mxu1 %v1775_v41  ;;  %3154 = vst [vmem:[#allocation1 + $0x10] ss:$2 sm:$0xff] %v447_v13  ;;  %v1788_v19 = vld [vmem:[%s20307_s9 + $0x2430] sm:$0x3]  ;;  %v1786_v41 = vld [vmem:[%s20307_s9 + $0x2420] sm:$0x3] }
 0x33c   : > { %v10651_v35 = vadd.f32 %v10650_v48, %v10631_v44  ;;  %11969 = vmatmul.f32.vlgmr.msrb.gmra.mxu2 %v22249_v27  ;;  %11989 = vmatmul.f32.vlgmr.msrb.gmra.mxu3 %v22252_v53  ;;  %v1779_v27 = vld [vmem:[%s20307_s9 + $0x23e8] sm:$0x3]  ;;  %v1020_v48 = vld [vmem:[%s20307_s9 + $0xc30] sm:$0xff]  ;;  %v1025_v55 = vld [vmem:[%s20307_s9 + $0xc58] sm:$0xff] }
 0x33d   : > { %11929 = vmatmul.f32.vlgmr.msrb.gmra.mxu0 %v22258_v37  ;;  %11949 = vmatmul.f32.vlgmr.msrb.gmra.mxu1 %v22263_v45  ;;  %v1012_v45 = vld [vmem:[%s20307_s9 + $0xbf0] sm:$0xff]  ;;  %v22350_v18 = vld.sshfl [vmem:[#allocation1 + $0x20] sm:$0xff pattern:$0x75316420] }
 0x33e   : > { %v10671_v39 = vadd.f32 %v10670_v43, %v10651_v35  ;;  %12048 = vmatpush.xpose.msra.mxu2 %v1008_v46  ;;  %12008 = vmatpush.xpose.msra.mxu0 %v1006_v50  ;;  %v22353_v14 = vld.sshfl [vmem:[#allocation1 + $0x28] sm:$0xff pattern:$0x75316420]  ;;  %v1787_v46 = vld [vmem:[%s20307_s9 + $0x2428] sm:$0x3]  ;;  %v1028_v13 = vld [vmem:[%s20307_s9 + $0xc70] sm:$0xff] }
 0x33f   : > { %v10690_v53 = vpop.f32.mrf.mxu2  ;;  %v10710_v49 = vpop.f32.mrf.mxu3  ;;  %12068 = vmatpush.xpose.msra.mxu3 %v1009_v42  ;;  %12028 = vmatpush.xpose.msra.mxu1 %v1007_v0  ;;  %v22381_v35 = vld.sshfl [vmem:[#allocation1 + $0x30] sm:$0xff pattern:$0x75316420]  ;;  %v1792_v0 = vld [vmem:[%s20307_s9 + $0x2450] sm:$0x3] }
 0x340   : > { %v10691_v37 = vadd.f32 %v10690_v53, %v10671_v39  ;;  %v1790_v53 = vld [vmem:[%s20307_s9 + $0x2440] sm:$0x3] }
 0x342   : > { %12127 = vmatpush.xpose.msrb.mxu2 %v1780_v54  ;;  %12087 = vmatpush.xpose.msrb.mxu0 %v1778_v58  ;;  %v10711_v59 = vadd.f32 %v10710_v49, %v10691_v37  ;;  %v10730_v52 = vpop.f32.mrf.mxu0  ;;  %v10750_v56 = vpop.f32.mrf.mxu1  ;;  %v1018_v54 = vld [vmem:[%s20307_s9 + $0xc20] sm:$0xff]  ;;  %v22384_v58 = vld.sshfl [vmem:[#allocation1 + $0x38] sm:$0xff pattern:$0x75316420] }
 0x343   : > { %12147 = vmatpush.xpose.msrb.mxu3 %v1781_v61  ;;  %12107 = vmatpush.xpose.msrb.mxu1 %v1779_v27  ;;  %v1019_v61 = vld [vmem:[%s20307_s9 + $0xc28] sm:$0xff]  ;;  %3156 = vst [vmem:[#allocation1 + $0x30] ss:$2 sm:$0xff] %v449_v33  ;;  %v448_v37 = vld [vmem:[%s20300_s7 + $0x650] sm:$0xff]  ;;  %v1033_v33 = vld [vmem:[%s20307_s9 + $0xc98] sm:$0xff] }
 0x344   : > { %v10731_v12 = vadd.f32 %v10730_v52, %v10711_v59  ;;  %12049 = vmatmul.f32.vlgmr.msra.gmra.mxu2 %v22271_v5  ;;  %12069 = vmatmul.f32.vlgmr.msra.gmra.mxu3 %v22274_v63  ;;  %v444_v5 = vld [vmem:[%s20300_s7 + $0x630] sm:$0xff]  ;;  %v1793_v59 = vld [vmem:[%s20307_s9 + $0x2458] sm:$0x3] }
 0x345   : > { %12009 = vmatmul.f32.vlgmr.msra.gmra.mxu0 %v22284_v23  ;;  %12029 = vmatmul.f32.vlgmr.msra.gmra.mxu1 %v22287_v9  ;;  %3143 = vst [vmem:[#allocation1 + $0x20] ss:$2 sm:$0xff] %v444_v5  ;;  %v1794_v5 = vld [vmem:[%s20307_s9 + $0x2460] sm:$0x3] }
 0x346   : > { %v10751_v17 = vadd.f32 %v10750_v56, %v10731_v12  ;;  %12128 = vmatpush.xpose.msrb.mxu2 %v1012_v45  ;;  %12088 = vmatpush.xpose.msrb.mxu0 %v1010_v57  ;;  %v22403_v12 = vld.sshfl [vmem:[#allocation1 + $0x10] sm:$0xff pattern:$0x75316420] }
 0x347   : > { %v10770_v63 = vpop.f32.mrf.mxu2  ;;  %v10790_v24 = vpop.f32.mrf.mxu3  ;;  %12148 = vmatpush.xpose.msrb.mxu3 %v1013_v51  ;;  %12108 = vmatpush.xpose.msrb.mxu1 %v1011_v2  ;;  %v1022_v2 = vld [vmem:[%s20307_s9 + $0xc40] sm:$0xff] }
 0x348   : > { %v10771_v23 = vadd.f32 %v10770_v63, %v10751_v17  ;;  %v1797_v63 = vld [vmem:[%s20307_s9 + $0x2478] sm:$0x3] }
 0x34a   : > { %12207 = vmatpush.xpose.msra.mxu2 %v1784_v4  ;;  %12167 = vmatpush.xpose.msra.mxu0 %v1782_v3  ;;  %v10791_v9 = vadd.f32 %v10790_v24, %v10771_v23  ;;  %v10810_v20 = vpop.f32.mrf.mxu0  ;;  %v10830_v26 = vpop.f32.mrf.mxu1  ;;  %v1023_v4 = vld [vmem:[%s20307_s9 + $0xc48] sm:$0xff]  ;;  %v22406_v3 = vld.sshfl [vmem:[#allocation1 + $0x18] sm:$0xff pattern:$0x75316420] }
 0x34b   : > { %12227 = vmatpush.xpose.msra.mxu3 %v1785_v1  ;;  %12187 = vmatpush.xpose.msra.mxu1 %v1783_v6  ;;  %v451_v1 = vld [vmem:[%s20300_s7 + $0x668] sm:$0xff]  ;;  %v1796_v6 = vld [vmem:[%s20307_s9 + $0x2470] sm:$0x3] }
 0x34c   : > { %v10811_v36 = vadd.f32 %v10810_v20, %v10791_v9  ;;  %12129 = vmatmul.f32.vlgmr.msrb.gmra.mxu2 %v22291_v28  ;;  %12149 = vmatmul.f32.vlgmr.msrb.gmra.mxu3 %v22294_v22  ;;  %v22374_v22 = vld.sshfl [vmem:[#allocation1] sm:$0xff pattern:$0x75316420]  ;;  %v22395_v49 = vld.sshfl [vmem:[#allocation1 + $0x28] sm:$0xff pattern:$0x75316420] }
 0x34d   : > { %12089 = vmatmul.f32.vlgmr.msrb.gmra.mxu0 %v22308_v16  ;;  %12109 = vmatmul.f32.vlgmr.msrb.gmra.mxu1 %v22310_v11  ;;  %v22376_v16 = vld.sshfl [vmem:[#allocation1 + $0x8] sm:$0xff pattern:$0x75316420]  ;;  %v22390_v27 = vld.sshfl [vmem:[#allocation1 + $0x20] sm:$0xff pattern:$0x75316420] }
 0x34e   : > { %v10831_v25 = vadd.f32 %v10830_v26, %v10811_v36  ;;  %12208 = vmatpush.xpose.msra.mxu2 %v1016_v10  ;;  %12168 = vmatpush.xpose.msra.mxu0 %v1014_v30  ;;  %3153 = vst [vmem:[#allocation1] ss:$2 sm:$0xff] %v446_v38  ;;  %v1795_v9 = vld [vmem:[%s20307_s9 + $0x2468] sm:$0x3]  ;;  %v1029_v38 = vld [vmem:[%s20307_s9 + $0xc78] sm:$0xff] }
 0x34f   : > { %v10850_v44 = vpop.f32.mrf.mxu2  ;;  %v10870_v28 = vpop.f32.mrf.mxu3  ;;  %12228 = vmatpush.xpose.msra.mxu3 %v1017_v34  ;;  %12188 = vmatpush.xpose.msra.mxu1 %v1015_v21  ;;  %3155 = vst [vmem:[#allocation1 + $0x20] ss:$2 sm:$0xff] %v448_v37  ;;  %v22423_v36 = vld.sshfl [vmem:[#allocation1 + $0x30] sm:$0xff pattern:$0x75316420]  ;;  %v1026_v34 = vld [vmem:[%s20307_s9 + $0xc60] sm:$0xff] }
 0x350   : > { %v10851_v11 = vadd.f32 %v10850_v44, %v10831_v25  ;;  %3166 = vst [vmem:[#allocation1 + $0x10] ss:$2 sm:$0xff] %v451_v1  ;;  %v22426_v21 = vld.sshfl [vmem:[#allocation1 + $0x38] sm:$0xff pattern:$0x75316420]  ;;  %v1027_v25 = vld [vmem:[%s20307_s9 + $0xc68] sm:$0xff] }
 0x351   : > { %v452_v44 = vld [vmem:[%s20300_s7 + $0x670] sm:$0xff]  ;;  %v455_v37 = vld [vmem:[%s20300_s7 + $0x688] sm:$0xff]  ;;  %v1037_v1 = vld [vmem:[%s20307_s9 + $0xcb8] sm:$0xff] }
 0x352   : > { %12287 = vmatpush.xpose.msrb.mxu2 %v1788_v19  ;;  %12247 = vmatpush.xpose.msrb.mxu0 %v1786_v41  ;;  %v10871_v43 = vadd.f32 %v10870_v28, %v10851_v11  ;;  %v10890_v50 = vpop.f32.mrf.mxu0  ;;  %v10910_v42 = vpop.f32.mrf.mxu1  ;;  %v453_v19 = vld [vmem:[%s20300_s7 + $0x678] sm:$0xff] }
 0x353   : > { %12307 = vmatpush.xpose.msrb.mxu3 %v1789_v8  ;;  %12267 = vmatpush.xpose.msrb.mxu1 %v1787_v46  ;;  %3168 = vst [vmem:[#allocation1 + $0x30] ss:$2 sm:$0xff] %v453_v19  ;;  %v1800_v8 = vld [vmem:[%s20307_s9 + $0x2490] sm:$0x3]  ;;  %v1798_v46 = vld [vmem:[%s20307_s9 + $0x2480] sm:$0x3] }
 0x354   : > { %v10891_v39 = vadd.f32 %v10890_v50, %v10871_v43  ;;  %12209 = vmatmul.f32.vlgmr.msra.gmra.mxu2 %v22315_v31  ;;  %12229 = vmatmul.f32.vlgmr.msra.gmra.mxu3 %v22318_v60  ;;  %v1791_v31 = vld [vmem:[%s20307_s9 + $0x2448] sm:$0x3]  ;;  %v1801_v11 = vld [vmem:[%s20307_s9 + $0x2498] sm:$0x3]  ;;  %v1032_v50 = vld [vmem:[%s20307_s9 + $0xc90] sm:$0xff] }
 0x355   : > { %12169 = vmatmul.f32.vlgmr.msra.gmra.mxu0 %v22324_v40  ;;  %12189 = vmatmul.f32.vlgmr.msra.gmra.mxu1 %v22329_v47  ;;  %v1024_v47 = vld [vmem:[%s20307_s9 + $0xc50] sm:$0xff]  ;;  %v22416_v24 = vld.sshfl [vmem:[#allocation1] sm:$0xff pattern:$0x75316420] }
 0x356   : > { %v10911_v45 = vadd.f32 %v10910_v42, %v10891_v39  ;;  %12288 = vmatpush.xpose.msrb.mxu2 %v1020_v48  ;;  %12248 = vmatpush.xpose.msrb.mxu0 %v1018_v54  ;;  %v22419_v20 = vld.sshfl [vmem:[#allocation1 + $0x8] sm:$0xff pattern:$0x75316420]  ;;  %v1799_v48 = vld [vmem:[%s20307_s9 + $0x2488] sm:$0x3]  ;;  %v1040_v19 = vld [vmem:[%s20307_s9 + $0xcd0] sm:$0xff] }
 0x357   : > { %v10930_v60 = vpop.f32.mrf.mxu2  ;;  %v10950_v52 = vpop.f32.mrf.mxu3  ;;  %12308 = vmatpush.xpose.msrb.mxu3 %v1021_v29  ;;  %12268 = vmatpush.xpose.msrb.mxu1 %v1019_v61  ;;  %v22447_v39 = vld.sshfl [vmem:[#allocation1 + $0x10] sm:$0xff pattern:$0x75316420]  ;;  %v1804_v61 = vld [vmem:[%s20307_s9 + $0x24b0] sm:$0x3] }
 0x358   : > { %v10931_v40 = vadd.f32 %v10930_v60, %v10911_v45  ;;  %v1802_v60 = vld [vmem:[%s20307_s9 + $0x24a0] sm:$0x3] }
 0x35a   : > { %12367 = vmatpush.xpose.msra.mxu2 %v1792_v0  ;;  %12327 = vmatpush.xpose.msra.mxu0 %v1790_v53  ;;  %v10951_v56 = vadd.f32 %v10950_v52, %v10931_v40  ;;  %v10970_v57 = vpop.f32.mrf.mxu0  ;;  %v10990_v51 = vpop.f32.mrf.mxu1  ;;  %v1030_v0 = vld [vmem:[%s20307_s9 + $0xc80] sm:$0xff]  ;;  %v22450_v53 = vld.sshfl [vmem:[#allocation1 + $0x18] sm:$0xff pattern:$0x75316420] }
 0x35b   : > { %12387 = vmatpush.xpose.msra.mxu3 %v1793_v59  ;;  %12347 = vmatpush.xpose.msra.mxu1 %v1791_v31  ;;  %v1031_v59 = vld [vmem:[%s20307_s9 + $0xc88] sm:$0xff]  ;;  %3178 = vst [vmem:[#allocation1 + $0x10] ss:$2 sm:$0xff] %v455_v37  ;;  %v454_v40 = vld [vmem:[%s20300_s7 + $0x680] sm:$0xff]  ;;  %v1045_v37 = vld [vmem:[%s20307_s9 + $0xcf8] sm:$0xff] }
 0x35c   : > { %v10971_v17 = vadd.f32 %v10970_v57, %v10951_v56  ;;  %12289 = vmatmul.f32.vlgmr.msrb.gmra.mxu2 %v22337_v7  ;;  %12309 = vmatmul.f32.vlgmr.msrb.gmra.mxu3 %v22340_v62  ;;  %v450_v7 = vld [vmem:[%s20300_s7 + $0x660] sm:$0xff]  ;;  %v1805_v56 = vld [vmem:[%s20307_s9 + $0x24b8] sm:$0x3] }
 0x35d   : > { %12249 = vmatmul.f32.vlgmr.msrb.gmra.mxu0 %v22350_v18  ;;  %12269 = vmatmul.f32.vlgmr.msrb.gmra.mxu1 %v22353_v14  ;;  %3165 = vst [vmem:[#allocation1] ss:$2 sm:$0xff] %v450_v7  ;;  %v1806_v7 = vld [vmem:[%s20307_s9 + $0x24c0] sm:$0x3] }
 0x35e   : > { %v10991_v23 = vadd.f32 %v10990_v51, %v10971_v17  ;;  %12368 = vmatpush.xpose.msra.mxu2 %v1024_v47  ;;  %12328 = vmatpush.xpose.msra.mxu0 %v1022_v2  ;;  %v22469_v17 = vld.sshfl [vmem:[#allocation1 + $0x30] sm:$0xff pattern:$0x75316420] }
 0x35f   : > { %v11010_v62 = vpop.f32.mrf.mxu2  ;;  %v11030_v26 = vpop.f32.mrf.mxu3  ;;  %12388 = vmatpush.xpose.msra.mxu3 %v1025_v55  ;;  %12348 = vmatpush.xpose.msra.mxu1 %v1023_v4  ;;  %v1034_v4 = vld [vmem:[%s20307_s9 + $0xca0] sm:$0xff] }
 0x360   : > { %v11011_v18 = vadd.f32 %v11010_v62, %v10991_v23  ;;  %v1809_v62 = vld [vmem:[%s20307_s9 + $0x24d8] sm:$0x3] }
 0x362   : > { %12447 = vmatpush.xpose.msrb.mxu2 %v1796_v6  ;;  %12407 = vmatpush.xpose.msrb.mxu0 %v1794_v5  ;;  %v11031_v14 = vadd.f32 %v11030_v26, %v11011_v18  ;;  %v11050_v10 = vpop.f32.mrf.mxu0  ;;  %v11070_v30 = vpop.f32.mrf.mxu1  ;;  %v1035_v6 = vld [vmem:[%s20307_s9 + $0xca8] sm:$0xff]  ;;  %v22472_v5 = vld.sshfl [vmem:[#allocation1 + $0x38] sm:$0xff pattern:$0x75316420] }
 0x363   : > { %12467 = vmatpush.xpose.msrb.mxu3 %v1797_v63  ;;  %12427 = vmatpush.xpose.msrb.mxu1 %v1795_v9  ;;  %v457_v63 = vld [vmem:[%s20300_s7 + $0x698] sm:$0xff]  ;;  %v1808_v9 = vld [vmem:[%s20307_s9 + $0x24d0] sm:$0x3] }
 0x364   : > { %v11051_v41 = vadd.f32 %v11050_v10, %v11031_v14  ;;  %12369 = vmatmul.f32.vlgmr.msra.gmra.mxu2 %v22357_v32  ;;  %12389 = vmatmul.f32.vlgmr.msra.gmra.mxu3 %v22360_v15  ;;  %v22440_v15 = vld.sshfl [vmem:[#allocation1 + $0x20] sm:$0xff pattern:$0x75316420]  ;;  %v22461_v52 = vld.sshfl [vmem:[#allocation1 + $0x8] sm:$0xff pattern:$0x75316420] }
 0x365   : > { %12329 = vmatmul.f32.vlgmr.msra.gmra.mxu0 %v22374_v22  ;;  %12349 = vmatmul.f32.vlgmr.msra.gmra.mxu1 %v22376_v16  ;;  %v22442_v22 = vld.sshfl [vmem:[#allocation1 + $0x28] sm:$0xff pattern:$0x75316420]  ;;  %v22456_v31 = vld.sshfl [vmem:[#allocation1] sm:$0xff pattern:$0x75316420] }
 0x366   : > { %v11071_v28 = vadd.f32 %v11070_v30, %v11051_v41  ;;  %12448 = vmatpush.xpose.msrb.mxu2 %v1028_v13  ;;  %12408 = vmatpush.xpose.msrb.mxu0 %v1026_v34  ;;  %3167 = vst [vmem:[#allocation1 + $0x20] ss:$2 sm:$0xff] %v452_v44  ;;  %v1807_v14 = vld [vmem:[%s20307_s9 + $0x24c8] sm:$0x3]  ;;  %v1041_v44 = vld [vmem:[%s20307_s9 + $0xcd8] sm:$0xff] }
 0x367   : > { %v11090_v43 = vpop.f32.mrf.mxu2  ;;  %v11110_v32 = vpop.f32.mrf.mxu3  ;;  %12468 = vmatpush.xpose.msrb.mxu3 %v1029_v38  ;;  %12428 = vmatpush.xpose.msrb.mxu1 %v1027_v25  ;;  %3177 = vst [vmem:[#allocation1] ss:$2 sm:$0xff] %v454_v40  ;;  %v22489_v41 = vld.sshfl [vmem:[#allocation1 + $0x10] sm:$0xff pattern:$0x75316420]  ;;  %v1038_v38 = vld [vmem:[%s20307_s9 + $0xcc0] sm:$0xff] }
 0x368   : > { %v11091_v16 = vadd.f32 %v11090_v43, %v11071_v28  ;;  %3180 = vst [vmem:[#allocation1 + $0x30] ss:$2 sm:$0xff] %v457_v63  ;;  %v22492_v25 = vld.sshfl [vmem:[#allocation1 + $0x18] sm:$0xff pattern:$0x75316420]  ;;  %v1039_v28 = vld [vmem:[%s20307_s9 + $0xcc8] sm:$0xff] }
 0x369   : > { %v458_v43 = vld [vmem:[%s20300_s7 + $0x6a0] sm:$0xff]  ;;  %v461_v40 = vld [vmem:[%s20300_s7 + $0x6b8] sm:$0xff] }
 0x36a   : > { %12527 = vmatpush.xpose.msra.mxu2 %v1800_v8  ;;  %12487 = vmatpush.xpose.msra.mxu0 %v1798_v46  ;;  %v11111_v42 = vadd.f32 %v11110_v32, %v11091_v16  ;;  %v11130_v54 = vpop.f32.mrf.mxu0  ;;  %v11150_v29 = vpop.f32.mrf.mxu1  ;;  %v459_v8 = vld [vmem:[%s20300_s7 + $0x6a8] sm:$0xff]  ;;  %v1813_v16 = vld [vmem:[%s20307_s9 + $0x24f8] sm:$0x3] }
 0x36b   : > { %12547 = vmatpush.xpose.msra.mxu3 %v1801_v11  ;;  %12507 = vmatpush.xpose.msra.mxu1 %v1799_v48  ;;  %3190 = vst [vmem:[#allocation1 + $0x10] ss:$2 sm:$0xff] %v459_v8  ;;  %v1812_v11 = vld [vmem:[%s20307_s9 + $0x24f0] sm:$0x3]  ;;  %v1810_v48 = vld [vmem:[%s20307_s9 + $0x24e0] sm:$0x3] }
 0x36c   : > { %v11131_v45 = vadd.f32 %v11130_v54, %v11111_v42  ;;  %12449 = vmatmul.f32.vlgmr.msrb.gmra.mxu2 %v22381_v35  ;;  %12469 = vmatmul.f32.vlgmr.msrb.gmra.mxu3 %v22384_v58  ;;  %v1803_v35 = vld [vmem:[%s20307_s9 + $0x24a8] sm:$0x3]  ;;  %v1044_v54 = vld [vmem:[%s20307_s9 + $0xcf0] sm:$0xff]  ;;  %v1049_v63 = vld [vmem:[%s20307_s9 + $0xd18] sm:$0xff] }
 0x36d   : > { %12409 = vmatmul.f32.vlgmr.msrb.gmra.mxu0 %v22390_v27  ;;  %12429 = vmatmul.f32.vlgmr.msrb.gmra.mxu1 %v22395_v49  ;;  %v1036_v49 = vld [vmem:[%s20307_s9 + $0xcb0] sm:$0xff]  ;;  %v22482_v26 = vld.sshfl [vmem:[#allocation1 + $0x20] sm:$0xff pattern:$0x75316420] }
 0x36e   : > { %v11151_v47 = vadd.f32 %v11150_v29, %v11131_v45  ;;  %12528 = vmatpush.xpose.msra.mxu2 %v1032_v50  ;;  %12488 = vmatpush.xpose.msra.mxu0 %v1030_v0  ;;  %v22485_v10 = vld.sshfl [vmem:[#allocation1 + $0x28] sm:$0xff pattern:$0x75316420]  ;;  %v1811_v50 = vld [vmem:[%s20307_s9 + $0x24e8] sm:$0x3]  ;;  %v1052_v8 = vld [vmem:[%s20307_s9 + $0xd30] sm:$0xff] }
 0x36f   : > { %v11170_v58 = vpop.f32.mrf.mxu2  ;;  %v11190_v57 = vpop.f32.mrf.mxu3  ;;  %12548 = vmatpush.xpose.msra.mxu3 %v1033_v33  ;;  %12508 = vmatpush.xpose.msra.mxu1 %v1031_v59  ;;  %v22513_v45 = vld.sshfl [vmem:[#allocation1 + $0x30] sm:$0xff pattern:$0x75316420]  ;;  %v1816_v59 = vld [vmem:[%s20307_s9 + $0x2510] sm:$0x3] }
 0x370   : > { %v11171_v27 = vadd.f32 %v11170_v58, %v11151_v47  ;;  %v1814_v58 = vld [vmem:[%s20307_s9 + $0x2500] sm:$0x3] }
 0x372   : > { %12607 = vmatpush.xpose.msrb.mxu2 %v1804_v61  ;;  %12567 = vmatpush.xpose.msrb.mxu0 %v1802_v60  ;;  %v11191_v51 = vadd.f32 %v11190_v57, %v11171_v27  ;;  %v11210_v2 = vpop.f32.mrf.mxu0  ;;  %v11230_v55 = vpop.f32.mrf.mxu1  ;;  %v1042_v61 = vld [vmem:[%s20307_s9 + $0xce0] sm:$0xff]  ;;  %v22516_v60 = vld.sshfl [vmem:[#allocation1 + $0x38] sm:$0xff pattern:$0x75316420] }
 0x373   : > { %12627 = vmatpush.xpose.msrb.mxu3 %v1805_v56  ;;  %12587 = vmatpush.xpose.msrb.mxu1 %v1803_v35  ;;  %v1043_v56 = vld [vmem:[%s20307_s9 + $0xce8] sm:$0xff]  ;;  %3192 = vst [vmem:[#allocation1 + $0x30] ss:$2 sm:$0xff] %v461_v40  ;;  %v460_v27 = vld [vmem:[%s20300_s7 + $0x6b0] sm:$0xff]  ;;  %v1057_v40 = vld [vmem:[%s20307_s9 + $0xd58] sm:$0xff] }
 0x374   : > { %v11211_v23 = vadd.f32 %v11210_v2, %v11191_v51  ;;  %12529 = vmatmul.f32.vlgmr.msra.gmra.mxu2 %v22403_v12  ;;  %12549 = vmatmul.f32.vlgmr.msra.gmra.mxu3 %v22406_v3  ;;  %v456_v12 = vld [vmem:[%s20300_s7 + $0x690] sm:$0xff]  ;;  %v1817_v51 = vld [vmem:[%s20307_s9 + $0x2518] sm:$0x3] }
 0x375   : > { %12489 = vmatmul.f32.vlgmr.msra.gmra.mxu0 %v22416_v24  ;;  %12509 = vmatmul.f32.vlgmr.msra.gmra.mxu1 %v22419_v20  ;;  %3179 = vst [vmem:[#allocation1 + $0x20] ss:$2 sm:$0xff] %v456_v12  ;;  %v1818_v12 = vld [vmem:[%s20307_s9 + $0x2520] sm:$0x3] }
 0x376   : > { %v11231_v18 = vadd.f32 %v11230_v55, %v11211_v23  ;;  %12608 = vmatpush.xpose.msrb.mxu2 %v1036_v49  ;;  %12568 = vmatpush.xpose.msrb.mxu0 %v1034_v4  ;;  %v22535_v23 = vld.sshfl [vmem:[#allocation1 + $0x10] sm:$0xff pattern:$0x75316420] }
 0x377   : > { %v11250_v3 = vpop.f32.mrf.mxu2  ;;  %v11270_v30 = vpop.f32.mrf.mxu3  ;;  %12628 = vmatpush.xpose.msrb.mxu3 %v1037_v1  ;;  %12588 = vmatpush.xpose.msrb.mxu1 %v1035_v6  ;;  %v1046_v6 = vld [vmem:[%s20307_s9 + $0xd00] sm:$0xff] }
 0x378   : > { %v11251_v24 = vadd.f32 %v11250_v3, %v11231_v18  ;;  %v1821_v3 = vld [vmem:[%s20307_s9 + $0x2538] sm:$0x3] }
 0x37a   : > { %12687 = vmatpush.xpose.msra.mxu2 %v1808_v9  ;;  %12647 = vmatpush.xpose.msra.mxu0 %v1806_v7  ;;  %v11271_v20 = vadd.f32 %v11270_v30, %v11251_v24  ;;  %v11290_v13 = vpop.f32.mrf.mxu0  ;;  %v11310_v34 = vpop.f32.mrf.mxu1  ;;  %v1047_v9 = vld [vmem:[%s20307_s9 + $0xd08] sm:$0xff]  ;;  %v22538_v7 = vld.sshfl [vmem:[#allocation1 + $0x18] sm:$0xff pattern:$0x75316420] }
 0x37b   : > { %12707 = vmatpush.xpose.msra.mxu3 %v1809_v62  ;;  %12667 = vmatpush.xpose.msra.mxu1 %v1807_v14  ;;  %v463_v62 = vld [vmem:[%s20300_s7 + $0x6c8] sm:$0xff]  ;;  %v1820_v14 = vld [vmem:[%s20307_s9 + $0x2530] sm:$0x3] }
 0x37c   : > { %v11291_v46 = vadd.f32 %v11290_v13, %v11271_v20  ;;  %12609 = vmatmul.f32.vlgmr.msrb.gmra.mxu2 %v22423_v36  ;;  %12629 = vmatmul.f32.vlgmr.msrb.gmra.mxu3 %v22426_v21  ;;  %v22506_v21 = vld.sshfl [vmem:[#allocation1] sm:$0xff pattern:$0x75316420]  ;;  %v22527_v57 = vld.sshfl [vmem:[#allocation1 + $0x28] sm:$0xff pattern:$0x75316420] }
 0x37d   : > { %12569 = vmatmul.f32.vlgmr.msrb.gmra.mxu0 %v22440_v15  ;;  %12589 = vmatmul.f32.vlgmr.msrb.gmra.mxu1 %v22442_v22  ;;  %v22508_v15 = vld.sshfl [vmem:[#allocation1 + $0x8] sm:$0xff pattern:$0x75316420]  ;;  %v22522_v35 = vld.sshfl [vmem:[#allocation1 + $0x20] sm:$0xff pattern:$0x75316420] }
 0x37e   : > { %v11311_v32 = vadd.f32 %v11310_v34, %v11291_v46  ;;  %12688 = vmatpush.xpose.msra.mxu2 %v1040_v19  ;;  %12648 = vmatpush.xpose.msra.mxu0 %v1038_v38  ;;  %3189 = vst [vmem:[#allocation1] ss:$2 sm:$0xff] %v458_v43  ;;  %v1819_v20 = vld [vmem:[%s20307_s9 + $0x2528] sm:$0x3]  ;;  %v1053_v43 = vld [vmem:[%s20307_s9 + $0xd38] sm:$0xff] }
 0x37f   : > { %v11330_v42 = vpop.f32.mrf.mxu2  ;;  %v11350_v36 = vpop.f32.mrf.mxu3  ;;  %12708 = vmatpush.xpose.msra.mxu3 %v1041_v44  ;;  %12668 = vmatpush.xpose.msra.mxu1 %v1039_v28  ;;  %3191 = vst [vmem:[#allocation1 + $0x20] ss:$2 sm:$0xff] %v460_v27  ;;  %v22555_v46 = vld.sshfl [vmem:[#allocation1 + $0x30] sm:$0xff pattern:$0x75316420]  ;;  %v1050_v44 = vld [vmem:[%s20307_s9 + $0xd20] sm:$0xff] }
 0x380   : > { %v11331_v22 = vadd.f32 %v11330_v42, %v11311_v32  ;;  %3202 = vst [vmem:[#allocation1 + $0x10] ss:$2 sm:$0xff] %v463_v62  ;;  %v22558_v28 = vld.sshfl [vmem:[#allocation1 + $0x38] sm:$0xff pattern:$0x75316420]  ;;  %v1051_v32 = vld [vmem:[%s20307_s9 + $0xd28] sm:$0xff] }
 0x381   : > { %v464_v42 = vld [vmem:[%s20300_s7 + $0x6d0] sm:$0xff]  ;;  %v467_v27 = vld [vmem:[%s20300_s7 + $0x6e8] sm:$0xff]  ;;  %v1061_v62 = vld [vmem:[%s20307_s9 + $0xd78] sm:$0xff] }
 0x382   : > { %12767 = vmatpush.xpose.msrb.mxu2 %v1812_v11  ;;  %12727 = vmatpush.xpose.msrb.mxu0 %v1810_v48  ;;  %v11351_v29 = vadd.f32 %v11350_v36, %v11331_v22  ;;  %v11370_v0 = vpop.f32.mrf.mxu0  ;;  %v11390_v33 = vpop.f32.mrf.mxu1  ;;  %v465_v11 = vld [vmem:[%s20300_s7 + $0x6d8] sm:$0xff] }
 0x383   : > { %12787 = vmatpush.xpose.msrb.mxu3 %v1813_v16  ;;  %12747 = vmatpush.xpose.msrb.mxu1 %v1811_v50  ;;  %3204 = vst [vmem:[#allocation1 + $0x30] ss:$2 sm:$0xff] %v465_v11  ;;  %v1824_v16 = vld [vmem:[%s20307_s9 + $0x2550] sm:$0x3]  ;;  %v1822_v50 = vld [vmem:[%s20307_s9 + $0x2540] sm:$0x3] }
 0x384   : > { %v11371_v47 = vadd.f32 %v11370_v0, %v11351_v29  ;;  %12689 = vmatmul.f32.vlgmr.msra.gmra.mxu2 %v22447_v39  ;;  %12709 = vmatmul.f32.vlgmr.msra.gmra.mxu3 %v22450_v53  ;;  %v1815_v39 = vld [vmem:[%s20307_s9 + $0x2508] sm:$0x3]  ;;  %v1825_v22 = vld [vmem:[%s20307_s9 + $0x2558] sm:$0x3]  ;;  %v1056_v0 = vld [vmem:[%s20307_s9 + $0xd50] sm:$0xff] }
 0x385   : > { %12649 = vmatmul.f32.vlgmr.msra.gmra.mxu0 %v22456_v31  ;;  %12669 = vmatmul.f32.vlgmr.msra.gmra.mxu1 %v22461_v52  ;;  %v1048_v52 = vld [vmem:[%s20307_s9 + $0xd10] sm:$0xff]  ;;  %v22548_v30 = vld.sshfl [vmem:[#allocation1] sm:$0xff pattern:$0x75316420] }
 0x386   : > { %v11391_v49 = vadd.f32 %v11390_v33, %v11371_v47  ;;  %12768 = vmatpush.xpose.msrb.mxu2 %v1044_v54  ;;  %12728 = vmatpush.xpose.msrb.mxu0 %v1042_v61  ;;  %v22551_v13 = vld.sshfl [vmem:[#allocation1 + $0x8] sm:$0xff pattern:$0x75316420]  ;;  %v1823_v54 = vld [vmem:[%s20307_s9 + $0x2548] sm:$0x3]  ;;  %v1064_v11 = vld [vmem:[%s20307_s9 + $0xd90] sm:$0xff] }
 0x387   : > { %v11410_v53 = vpop.f32.mrf.mxu2  ;;  %v11430_v2 = vpop.f32.mrf.mxu3  ;;  %12788 = vmatpush.xpose.msrb.mxu3 %v1045_v37  ;;  %12748 = vmatpush.xpose.msrb.mxu1 %v1043_v56  ;;  %v22579_v47 = vld.sshfl [vmem:[#allocation1 + $0x10] sm:$0xff pattern:$0x75316420]  ;;  %v1828_v56 = vld [vmem:[%s20307_s9 + $0x2570] sm:$0x3] }
 0x388   : > { %v11411_v31 = vadd.f32 %v11410_v53, %v11391_v49  ;;  %v1826_v53 = vld [vmem:[%s20307_s9 + $0x2560] sm:$0x3] }
 0x38a   : > { %12847 = vmatpush.xpose.msra.mxu2 %v1816_v59  ;;  %12807 = vmatpush.xpose.msra.mxu0 %v1814_v58  ;;  %v11431_v55 = vadd.f32 %v11430_v2, %v11411_v31  ;;  %v11450_v4 = vpop.f32.mrf.mxu0  ;;  %v11470_v1 = vpop.f32.mrf.mxu1  ;;  %v1054_v59 = vld [vmem:[%s20307_s9 + $0xd40] sm:$0xff]  ;;  %v22582_v58 = vld.sshfl [vmem:[#allocation1 + $0x18] sm:$0xff pattern:$0x75316420] }
 0x38b   : > { %12867 = vmatpush.xpose.msra.mxu3 %v1817_v51  ;;  %12827 = vmatpush.xpose.msra.mxu1 %v1815_v39  ;;  %v1055_v51 = vld [vmem:[%s20307_s9 + $0xd48] sm:$0xff]  ;;  %3214 = vst [vmem:[#allocation1 + $0x10] ss:$2 sm:$0xff] %v467_v27  ;;  %v466_v31 = vld [vmem:[%s20300_s7 + $0x6e0] sm:$0xff]  ;;  %v1069_v27 = vld [vmem:[%s20307_s9 + $0xdb8] sm:$0xff] }
 0x38c   : > { %v11451_v18 = vadd.f32 %v11450_v4, %v11431_v55  ;;  %12769 = vmatmul.f32.vlgmr.msrb.gmra.mxu2 %v22469_v17  ;;  %12789 = vmatmul.f32.vlgmr.msrb.gmra.mxu3 %v22472_v5  ;;  %v462_v17 = vld [vmem:[%s20300_s7 + $0x6c0] sm:$0xff]  ;;  %v1829_v55 = vld [vmem:[%s20307_s9 + $0x2578] sm:$0x3] }
 0x38d   : > { %12729 = vmatmul.f32.vlgmr.msrb.gmra.mxu0 %v22482_v26  ;;  %12749 = vmatmul.f32.vlgmr.msrb.gmra.mxu1 %v22485_v10  ;;  %3201 = vst [vmem:[#allocation1] ss:$2 sm:$0xff] %v462_v17  ;;  %v1830_v17 = vld [vmem:[%s20307_s9 + $0x2580] sm:$0x3] }
 0x38e   : > { %v11471_v24 = vadd.f32 %v11470_v1, %v11451_v18  ;;  %12848 = vmatpush.xpose.msra.mxu2 %v1048_v52  ;;  %12808 = vmatpush.xpose.msra.mxu0 %v1046_v6  ;;  %v22601_v18 = vld.sshfl [vmem:[#allocation1 + $0x30] sm:$0xff pattern:$0x75316420] }
 0x38f   : > { %v11490_v5 = vpop.f32.mrf.mxu2  ;;  %v11510_v34 = vpop.f32.mrf.mxu3  ;;  %12868 = vmatpush.xpose.msra.mxu3 %v1049_v63  ;;  %12828 = vmatpush.xpose.msra.mxu1 %v1047_v9  ;;  %v1058_v9 = vld [vmem:[%s20307_s9 + $0xd60] sm:$0xff] }
 0x390   : > { %v11491_v26 = vadd.f32 %v11490_v5, %v11471_v24  ;;  %v1833_v5 = vld [vmem:[%s20307_s9 + $0x2598] sm:$0x3] }
 0x392   : > { %12927 = vmatpush.xpose.msrb.mxu2 %v1820_v14  ;;  %12887 = vmatpush.xpose.msrb.mxu0 %v1818_v12  ;;  %v11511_v10 = vadd.f32 %v11510_v34, %v11491_v26  ;;  %v11530_v19 = vpop.f32.mrf.mxu0  ;;  %v11550_v38 = vpop.f32.mrf.mxu1  ;;  %v1059_v14 = vld [vmem:[%s20307_s9 + $0xd68] sm:$0xff]  ;;  %v22604_v12 = vld.sshfl [vmem:[#allocation1 + $0x38] sm:$0xff pattern:$0x75316420] }
 0x393   : > { %12947 = vmatpush.xpose.msrb.mxu3 %v1821_v3  ;;  %12907 = vmatpush.xpose.msrb.mxu1 %v1819_v20  ;;  %v469_v3 = vld [vmem:[%s20300_s7 + $0x6f8] sm:$0xff]  ;;  %v1832_v20 = vld [vmem:[%s20307_s9 + $0x2590] sm:$0x3] }
 0x394   : > { %v11531_v48 = vadd.f32 %v11530_v19, %v11511_v10  ;;  %12849 = vmatmul.f32.vlgmr.msra.gmra.mxu2 %v22489_v41  ;;  %12869 = vmatmul.f32.vlgmr.msra.gmra.mxu3 %v22492_v25  ;;  %v22572_v25 = vld.sshfl [vmem:[#allocation1 + $0x20] sm:$0xff pattern:$0x75316420]  ;;  %v22593_v2 = vld.sshfl [vmem:[#allocation1 + $0x8] sm:$0xff pattern:$0x75316420] }
 0x395   : > { %12809 = vmatmul.f32.vlgmr.msra.gmra.mxu0 %v22506_v21  ;;  %12829 = vmatmul.f32.vlgmr.msra.gmra.mxu1 %v22508_v15  ;;  %v22574_v21 = vld.sshfl [vmem:[#allocation1 + $0x28] sm:$0xff pattern:$0x75316420]  ;;  %v22588_v39 = vld.sshfl [vmem:[#allocation1] sm:$0xff pattern:$0x75316420] }
 0x396   : > { %v11551_v36 = vadd.f32 %v11550_v38, %v11531_v48  ;;  %12928 = vmatpush.xpose.msrb.mxu2 %v1052_v8  ;;  %12888 = vmatpush.xpose.msrb.mxu0 %v1050_v44  ;;  %3203 = vst [vmem:[#allocation1 + $0x20] ss:$2 sm:$0xff] %v464_v42  ;;  %v1831_v10 = vld [vmem:[%s20307_s9 + $0x2588] sm:$0x3]  ;;  %v1065_v42 = vld [vmem:[%s20307_s9 + $0xd98] sm:$0xff] }
 0x397   : > { %v11570_v29 = vpop.f32.mrf.mxu2  ;;  %v11590_v41 = vpop.f32.mrf.mxu3  ;;  %12948 = vmatpush.xpose.msrb.mxu3 %v1053_v43  ;;  %12908 = vmatpush.xpose.msrb.mxu1 %v1051_v32  ;;  %3213 = vst [vmem:[#allocation1] ss:$2 sm:$0xff] %v466_v31  ;;  %v22621_v48 = vld.sshfl [vmem:[#allocation1 + $0x10] sm:$0xff pattern:$0x75316420]  ;;  %v1062_v43 = vld [vmem:[%s20307_s9 + $0xd80] sm:$0xff] }
 0x398   : > { %v11571_v15 = vadd.f32 %v11570_v29, %v11551_v36  ;;  %3216 = vst [vmem:[#allocation1 + $0x30] ss:$2 sm:$0xff] %v469_v3  ;;  %v22624_v32 = vld.sshfl [vmem:[#allocation1 + $0x18] sm:$0xff pattern:$0x75316420]  ;;  %v1063_v36 = vld [vmem:[%s20307_s9 + $0xd88] sm:$0xff] }
 0x399   : > { %v470_v29 = vld [vmem:[%s20300_s7 + $0x700] sm:$0xff]  ;;  %v473_v31 = vld [vmem:[%s20300_s7 + $0x718] sm:$0xff] }
 0x39a   : > { %13007 = vmatpush.xpose.msra.mxu2 %v1824_v16  ;;  %12967 = vmatpush.xpose.msra.mxu0 %v1822_v50  ;;  %v11591_v33 = vadd.f32 %v11590_v41, %v11571_v15  ;;  %v11610_v61 = vpop.f32.mrf.mxu0  ;;  %v11630_v37 = vpop.f32.mrf.mxu1  ;;  %v471_v16 = vld [vmem:[%s20300_s7 + $0x708] sm:$0xff]  ;;  %v1837_v15 = vld [vmem:[%s20307_s9 + $0x25b8] sm:$0x3] }
 0x39b   : > { %13027 = vmatpush.xpose.msra.mxu3 %v1825_v22  ;;  %12987 = vmatpush.xpose.msra.mxu1 %v1823_v54  ;;  %3226 = vst [vmem:[#allocation1 + $0x10] ss:$2 sm:$0xff] %v471_v16  ;;  %v1836_v22 = vld [vmem:[%s20307_s9 + $0x25b0] sm:$0x3]  ;;  %v1834_v54 = vld [vmem:[%s20307_s9 + $0x25a0] sm:$0x3] }
 0x39c   : > { %v11611_v49 = vadd.f32 %v11610_v61, %v11591_v33  ;;  %12929 = vmatmul.f32.vlgmr.msrb.gmra.mxu2 %v22513_v45  ;;  %12949 = vmatmul.f32.vlgmr.msrb.gmra.mxu3 %v22516_v60  ;;  %v1827_v45 = vld [vmem:[%s20307_s9 + $0x2568] sm:$0x3]  ;;  %v1068_v61 = vld [vmem:[%s20307_s9 + $0xdb0] sm:$0xff]  ;;  %v1073_v3 = vld [vmem:[%s20307_s9 + $0xdd8] sm:$0xff] }
 0x39d   : > { %12889 = vmatmul.f32.vlgmr.msrb.gmra.mxu0 %v22522_v35  ;;  %12909 = vmatmul.f32.vlgmr.msrb.gmra.mxu1 %v22527_v57  ;;  %v1060_v57 = vld [vmem:[%s20307_s9 + $0xd70] sm:$0xff]  ;;  %v22614_v34 = vld.sshfl [vmem:[#allocation1 + $0x20] sm:$0xff pattern:$0x75316420] }
 0x39e   : > { %v11631_v52 = vadd.f32 %v11630_v37, %v11611_v49  ;;  %13008 = vmatpush.xpose.msra.mxu2 %v1056_v0  ;;  %12968 = vmatpush.xpose.msra.mxu0 %v1054_v59  ;;  %v22617_v19 = vld.sshfl [vmem:[#allocation1 + $0x28] sm:$0xff pattern:$0x75316420]  ;;  %v1835_v0 = vld [vmem:[%s20307_s9 + $0x25a8] sm:$0x3]  ;;  %v1076_v16 = vld [vmem:[%s20307_s9 + $0xdf0] sm:$0xff] }
 0x39f   : > { %v11650_v60 = vpop.f32.mrf.mxu2  ;;  %v11670_v4 = vpop.f32.mrf.mxu3  ;;  %13028 = vmatpush.xpose.msra.mxu3 %v1057_v40  ;;  %12988 = vmatpush.xpose.msra.mxu1 %v1055_v51  ;;  %v22645_v49 = vld.sshfl [vmem:[#allocation1 + $0x30] sm:$0xff pattern:$0x75316420]  ;;  %v1840_v51 = vld [vmem:[%s20307_s9 + $0x25d0] sm:$0x3] }
 0x3a0   : > { %v11651_v35 = vadd.f32 %v11650_v60, %v11631_v52  ;;  %v1838_v60 = vld [vmem:[%s20307_s9 + $0x25c0] sm:$0x3] }
 0x3a2   : > { %13087 = vmatpush.xpose.msrb.mxu2 %v1828_v56  ;;  %13047 = vmatpush.xpose.msrb.mxu0 %v1826_v53  ;;  %v11671_v1 = vadd.f32 %v11670_v4, %v11651_v35  ;;  %v11690_v6 = vpop.f32.mrf.mxu0  ;;  %v11710_v63 = vpop.f32.mrf.mxu1  ;;  %v1066_v56 = vld [vmem:[%s20307_s9 + $0xda0] sm:$0xff]  ;;  %v22648_v53 = vld.sshfl [vmem:[#allocation1 + $0x38] sm:$0xff pattern:$0x75316420] }
 0x3a3   : > { %13107 = vmatpush.xpose.msrb.mxu3 %v1829_v55  ;;  %13067 = vmatpush.xpose.msrb.mxu1 %v1827_v45  ;;  %v1067_v55 = vld [vmem:[%s20307_s9 + $0xda8] sm:$0xff]  ;;  %3228 = vst [vmem:[#allocation1 + $0x30] ss:$2 sm:$0xff] %v473_v31  ;;  %v472_v35 = vld [vmem:[%s20300_s7 + $0x710] sm:$0xff]  ;;  %v1081_v31 = vld [vmem:[%s20307_s9 + $0xe18] sm:$0xff] }
 0x3a4   : > { %v11691_v24 = vadd.f32 %v11690_v6, %v11671_v1  ;;  %13009 = vmatmul.f32.vlgmr.msra.gmra.mxu2 %v22535_v23  ;;  %13029 = vmatmul.f32.vlgmr.msra.gmra.mxu3 %v22538_v7  ;;  %v468_v23 = vld [vmem:[%s20300_s7 + $0x6f0] sm:$0xff]  ;;  %v1841_v1 = vld [vmem:[%s20307_s9 + $0x25d8] sm:$0x3] }
 0x3a5   : > { %12969 = vmatmul.f32.vlgmr.msra.gmra.mxu0 %v22548_v30  ;;  %12989 = vmatmul.f32.vlgmr.msra.gmra.mxu1 %v22551_v13  ;;  %3215 = vst [vmem:[#allocation1 + $0x20] ss:$2 sm:$0xff] %v468_v23  ;;  %v1842_v23 = vld [vmem:[%s20307_s9 + $0x25e0] sm:$0x3] }
 0x3a6   : > { %v11711_v26 = vadd.f32 %v11710_v63, %v11691_v24  ;;  %13088 = vmatpush.xpose.msrb.mxu2 %v1060_v57  ;;  %13048 = vmatpush.xpose.msrb.mxu0 %v1058_v9  ;;  %v22667_v24 = vld.sshfl [vmem:[#allocation1 + $0x10] sm:$0xff pattern:$0x75316420] }
 0x3a7   : > { %v11730_v7 = vpop.f32.mrf.mxu2  ;;  %v11750_v38 = vpop.f32.mrf.mxu3  ;;  %13108 = vmatpush.xpose.msrb.mxu3 %v1061_v62  ;;  %13068 = vmatpush.xpose.msrb.mxu1 %v1059_v14  ;;  %v1070_v14 = vld [vmem:[%s20307_s9 + $0xdc0] sm:$0xff] }
 0x3a8   : > { %v11731_v30 = vadd.f32 %v11730_v7, %v11711_v26  ;;  %v1845_v7 = vld [vmem:[%s20307_s9 + $0x25f8] sm:$0x3] }
 0x3aa   : > { %13167 = vmatpush.xpose.msra.mxu2 %v1832_v20  ;;  %13127 = vmatpush.xpose.msra.mxu0 %v1830_v17  ;;  %v11751_v13 = vadd.f32 %v11750_v38, %v11731_v30  ;;  %v11770_v8 = vpop.f32.mrf.mxu0  ;;  %v11790_v44 = vpop.f32.mrf.mxu1  ;;  %v1071_v20 = vld [vmem:[%s20307_s9 + $0xdc8] sm:$0xff]  ;;  %v22670_v17 = vld.sshfl [vmem:[#allocation1 + $0x18] sm:$0xff pattern:$0x75316420] }
 0x3ab   : > { %13187 = vmatpush.xpose.msra.mxu3 %v1833_v5  ;;  %13147 = vmatpush.xpose.msra.mxu1 %v1831_v10  ;;  %v475_v5 = vld [vmem:[%s20300_s7 + $0x728] sm:$0xff]  ;;  %v1844_v10 = vld [vmem:[%s20307_s9 + $0x25f0] sm:$0x3] }
 0x3ac   : > { %v11771_v50 = vadd.f32 %v11770_v8, %v11751_v13  ;;  %13089 = vmatmul.f32.vlgmr.msrb.gmra.mxu2 %v22555_v46  ;;  %13109 = vmatmul.f32.vlgmr.msrb.gmra.mxu3 %v22558_v28  ;;  %v22638_v28 = vld.sshfl [vmem:[#allocation1] sm:$0xff pattern:$0x75316420]  ;;  %v22659_v4 = vld.sshfl [vmem:[#allocation1 + $0x28] sm:$0xff pattern:$0x75316420] }
 0x3ad   : > { %13049 = vmatmul.f32.vlgmr.msrb.gmra.mxu0 %v22572_v25  ;;  %13069 = vmatmul.f32.vlgmr.msrb.gmra.mxu1 %v22574_v21  ;;  %v22640_v25 = vld.sshfl [vmem:[#allocation1 + $0x8] sm:$0xff pattern:$0x75316420]  ;;  %v22654_v45 = vld.sshfl [vmem:[#allocation1 + $0x20] sm:$0xff pattern:$0x75316420] }
 0x3ae   : > { %v11791_v41 = vadd.f32 %v11790_v44, %v11771_v50  ;;  %13168 = vmatpush.xpose.msra.mxu2 %v1064_v11  ;;  %13128 = vmatpush.xpose.msra.mxu0 %v1062_v43  ;;  %3225 = vst [vmem:[#allocation1] ss:$2 sm:$0xff] %v470_v29  ;;  %v1843_v13 = vld [vmem:[%s20307_s9 + $0x25e8] sm:$0x3]  ;;  %v1077_v29 = vld [vmem:[%s20307_s9 + $0xdf8] sm:$0xff] }
 0x3af   : > { %v11810_v33 = vpop.f32.mrf.mxu2  ;;  %v11830_v46 = vpop.f32.mrf.mxu3  ;;  %13188 = vmatpush.xpose.msra.mxu3 %v1065_v42  ;;  %13148 = vmatpush.xpose.msra.mxu1 %v1063_v36  ;;  %3227 = vst [vmem:[#allocation1 + $0x20] ss:$2 sm:$0xff] %v472_v35  ;;  %v22687_v50 = vld.sshfl [vmem:[#allocation1 + $0x30] sm:$0xff pattern:$0x75316420]  ;;  %v1074_v42 = vld [vmem:[%s20307_s9 + $0xde0] sm:$0xff] }
 0x3b0   : > { %v11811_v21 = vadd.f32 %v11810_v33, %v11791_v41  ;;  %3238 = vst [vmem:[#allocation1 + $0x10] ss:$2 sm:$0xff] %v475_v5  ;;  %v22690_v36 = vld.sshfl [vmem:[#allocation1 + $0x38] sm:$0xff pattern:$0x75316420]  ;;  %v1075_v41 = vld [vmem:[%s20307_s9 + $0xde8] sm:$0xff] }
 0x3b1   : > { %v476_v33 = vld [vmem:[%s20300_s7 + $0x730] sm:$0xff]  ;;  %v479_v35 = vld [vmem:[%s20300_s7 + $0x748] sm:$0xff]  ;;  %v1085_v5 = vld [vmem:[%s20307_s9 + $0xe38] sm:$0xff] }
 0x3b2   : > { %13247 = vmatpush.xpose.msrb.mxu2 %v1836_v22  ;;  %13207 = vmatpush.xpose.msrb.mxu0 %v1834_v54  ;;  %v11831_v37 = vadd.f32 %v11830_v46, %v11811_v21  ;;  %v11850_v59 = vpop.f32.mrf.mxu0  ;;  %v11870_v40 = vpop.f32.mrf.mxu1  ;;  %v477_v22 = vld [vmem:[%s20300_s7 + $0x738] sm:$0xff] }
 0x3b3   : > { %13267 = vmatpush.xpose.msrb.mxu3 %v1837_v15  ;;  %13227 = vmatpush.xpose.msrb.mxu1 %v1835_v0  ;;  %3240 = vst [vmem:[#allocation1 + $0x30] ss:$2 sm:$0xff] %v477_v22  ;;  %v1848_v15 = vld [vmem:[%s20307_s9 + $0x2610] sm:$0x3]  ;;  %v1846_v0 = vld [vmem:[%s20307_s9 + $0x2600] sm:$0x3] }
 0x3b4   : > { %v11851_v52 = vadd.f32 %v11850_v59, %v11831_v37  ;;  %13169 = vmatmul.f32.vlgmr.msra.gmra.mxu2 %v22579_v47  ;;  %13189 = vmatmul.f32.vlgmr.msra.gmra.mxu3 %v22582_v58  ;;  %v1839_v47 = vld [vmem:[%s20307_s9 + $0x25c8] sm:$0x3]  ;;  %v1849_v21 = vld [vmem:[%s20307_s9 + $0x2618] sm:$0x3]  ;;  %v1080_v59 = vld [vmem:[%s20307_s9 + $0xe10] sm:$0xff] }
 0x3b5   : > { %13129 = vmatmul.f32.vlgmr.msra.gmra.mxu0 %v22588_v39  ;;  %13149 = vmatmul.f32.vlgmr.msra.gmra.mxu1 %v22593_v2  ;;  %v1072_v2 = vld [vmem:[%s20307_s9 + $0xdd0] sm:$0xff]  ;;  %v22680_v38 = vld.sshfl [vmem:[#allocation1] sm:$0xff pattern:$0x75316420] }
 0x3b6   : > { %v11871_v57 = vadd.f32 %v11870_v40, %v11851_v52  ;;  %13248 = vmatpush.xpose.msrb.mxu2 %v1068_v61  ;;  %13208 = vmatpush.xpose.msrb.mxu0 %v1066_v56  ;;  %v22683_v8 = vld.sshfl [vmem:[#allocation1 + $0x8] sm:$0xff pattern:$0x75316420]  ;;  %v1847_v61 = vld [vmem:[%s20307_s9 + $0x2608] sm:$0x3]  ;;  %v1088_v22 = vld [vmem:[%s20307_s9 + $0xe50] sm:$0xff] }
 0x3b7   : > { %v11890_v58 = vpop.f32.mrf.mxu2  ;;  %v11910_v6 = vpop.f32.mrf.mxu3  ;;  %13268 = vmatpush.xpose.msrb.mxu3 %v1069_v27  ;;  %13228 = vmatpush.xpose.msrb.mxu1 %v1067_v55  ;;  %v22711_v52 = vld.sshfl [vmem:[#allocation1 + $0x10] sm:$0xff pattern:$0x75316420]  ;;  %v1852_v55 = vld [vmem:[%s20307_s9 + $0x2630] sm:$0x3] }
 0x3b8   : > { %v11891_v39 = vadd.f32 %v11890_v58, %v11871_v57  ;;  %v1850_v58 = vld [vmem:[%s20307_s9 + $0x2620] sm:$0x3] }
 0x3ba   : > { %13327 = vmatpush.xpose.msra.mxu2 %v1840_v51  ;;  %13287 = vmatpush.xpose.msra.mxu0 %v1838_v60  ;;  %v11911_v63 = vadd.f32 %v11910_v6, %v11891_v39  ;;  %v11930_v9 = vpop.f32.mrf.mxu0  ;;  %v11950_v62 = vpop.f32.mrf.mxu1  ;;  %v1078_v51 = vld [vmem:[%s20307_s9 + $0xe00] sm:$0xff]  ;;  %v22714_v60 = vld.sshfl [vmem:[#allocation1 + $0x18] sm:$0xff pattern:$0x75316420] }
 0x3bb   : > { %13347 = vmatpush.xpose.msra.mxu3 %v1841_v1  ;;  %13307 = vmatpush.xpose.msra.mxu1 %v1839_v47  ;;  %v1079_v1 = vld [vmem:[%s20307_s9 + $0xe08] sm:$0xff]  ;;  %3250 = vst [vmem:[#allocation1 + $0x10] ss:$2 sm:$0xff] %v479_v35  ;;  %v478_v39 = vld [vmem:[%s20300_s7 + $0x740] sm:$0xff]  ;;  %v1093_v35 = vld [vmem:[%s20307_s9 + $0xe78] sm:$0xff] }
 0x3bc   : > { %v11931_v26 = vadd.f32 %v11930_v9, %v11911_v63  ;;  %13249 = vmatmul.f32.vlgmr.msrb.gmra.mxu2 %v22601_v18  ;;  %13269 = vmatmul.f32.vlgmr.msrb.gmra.mxu3 %v22604_v12  ;;  %v474_v18 = vld [vmem:[%s20300_s7 + $0x720] sm:$0xff]  ;;  %v1853_v63 = vld [vmem:[%s20307_s9 + $0x2638] sm:$0x3] }
 0x3bd   : > { %13209 = vmatmul.f32.vlgmr.msrb.gmra.mxu0 %v22614_v34  ;;  %13229 = vmatmul.f32.vlgmr.msrb.gmra.mxu1 %v22617_v19  ;;  %3237 = vst [vmem:[#allocation1] ss:$2 sm:$0xff] %v474_v18  ;;  %v1854_v18 = vld [vmem:[%s20307_s9 + $0x2640] sm:$0x3] }
 0x3be   : > { %v11951_v30 = vadd.f32 %v11950_v62, %v11931_v26  ;;  %13328 = vmatpush.xpose.msra.mxu2 %v1072_v2  ;;  %13288 = vmatpush.xpose.msra.mxu0 %v1070_v14  ;;  %v22733_v26 = vld.sshfl [vmem:[#allocation1 + $0x30] sm:$0xff pattern:$0x75316420] }
 0x3bf   : > { %v11970_v12 = vpop.f32.mrf.mxu2  ;;  %v11990_v44 = vpop.f32.mrf.mxu3  ;;  %13348 = vmatpush.xpose.msra.mxu3 %v1073_v3  ;;  %13308 = vmatpush.xpose.msra.mxu1 %v1071_v20  ;;  %v1082_v20 = vld [vmem:[%s20307_s9 + $0xe20] sm:$0xff] }
 0x3c0   : > { %v11971_v34 = vadd.f32 %v11970_v12, %v11951_v30  ;;  %v1857_v12 = vld [vmem:[%s20307_s9 + $0x2658] sm:$0x3] }
 0x3c2   : > { %13407 = vmatpush.xpose.msrb.mxu2 %v1844_v10  ;;  %13367 = vmatpush.xpose.msrb.mxu0 %v1842_v23  ;;  %v11991_v19 = vadd.f32 %v11990_v44, %v11971_v34  ;;  %v12010_v11 = vpop.f32.mrf.mxu0  ;;  %v12030_v43 = vpop.f32.mrf.mxu1  ;;  %v1083_v10 = vld [vmem:[%s20307_s9 + $0xe28] sm:$0xff]  ;;  %v22736_v23 = vld.sshfl [vmem:[#allocation1 + $0x38] sm:$0xff pattern:$0x75316420] }
 0x3c3   : > { %13427 = vmatpush.xpose.msrb.mxu3 %v1845_v7  ;;  %13387 = vmatpush.xpose.msrb.mxu1 %v1843_v13  ;;  %v481_v7 = vld [vmem:[%s20300_s7 + $0x758] sm:$0xff]  ;;  %v1856_v13 = vld [vmem:[%s20307_s9 + $0x2650] sm:$0x3] }
 0x3c4   : > { %v12011_v54 = vadd.f32 %v12010_v11, %v11991_v19  ;;  %13329 = vmatmul.f32.vlgmr.msra.gmra.mxu2 %v22621_v48  ;;  %13349 = vmatmul.f32.vlgmr.msra.gmra.mxu3 %v22624_v32  ;;  %v22704_v32 = vld.sshfl [vmem:[#allocation1 + $0x20] sm:$0xff pattern:$0x75316420]  ;;  %v22725_v6 = vld.sshfl [vmem:[#allocation1 + $0x8] sm:$0xff pattern:$0x75316420] }
 0x3c5   : > { %13289 = vmatmul.f32.vlgmr.msra.gmra.mxu0 %v22638_v28  ;;  %13309 = vmatmul.f32.vlgmr.msra.gmra.mxu1 %v22640_v25  ;;  %v22706_v28 = vld.sshfl [vmem:[#allocation1 + $0x28] sm:$0xff pattern:$0x75316420]  ;;  %v22720_v47 = vld.sshfl [vmem:[#allocation1] sm:$0xff pattern:$0x75316420] }
 0x3c6   : > { %v12031_v46 = vadd.f32 %v12030_v43, %v12011_v54  ;;  %13408 = vmatpush.xpose.msrb.mxu2 %v1076_v16  ;;  %13368 = vmatpush.xpose.msrb.mxu0 %v1074_v42  ;;  %3239 = vst [vmem:[#allocation1 + $0x20] ss:$2 sm:$0xff] %v476_v33  ;;  %v1855_v19 = vld [vmem:[%s20307_s9 + $0x2648] sm:$0x3]  ;;  %v1089_v33 = vld [vmem:[%s20307_s9 + $0xe58] sm:$0xff] }
 0x3c7   : > { %v12050_v37 = vpop.f32.mrf.mxu2  ;;  %v12070_v48 = vpop.f32.mrf.mxu3  ;;  %13428 = vmatpush.xpose.msrb.mxu3 %v1077_v29  ;;  %13388 = vmatpush.xpose.msrb.mxu1 %v1075_v41  ;;  %3249 = vst [vmem:[#allocation1] ss:$2 sm:$0xff] %v478_v39  ;;  %v22753_v54 = vld.sshfl [vmem:[#allocation1 + $0x10] sm:$0xff pattern:$0x75316420]  ;;  %v1086_v29 = vld [vmem:[%s20307_s9 + $0xe40] sm:$0xff] }
 0x3c8   : > { %v12051_v25 = vadd.f32 %v12050_v37, %v12031_v46  ;;  %3252 = vst [vmem:[#allocation1 + $0x30] ss:$2 sm:$0xff] %v481_v7  ;;  %v22756_v41 = vld.sshfl [vmem:[#allocation1 + $0x18] sm:$0xff pattern:$0x75316420]  ;;  %v1087_v46 = vld [vmem:[%s20307_s9 + $0xe48] sm:$0xff] }
 0x3c9   : > { %v482_v37 = vld [vmem:[%s20300_s7 + $0x760] sm:$0xff]  ;;  %v485_v39 = vld [vmem:[%s20300_s7 + $0x778] sm:$0xff] }
 0x3ca   : > { %13487 = vmatpush.xpose.msra.mxu2 %v1848_v15  ;;  %13447 = vmatpush.xpose.msra.mxu0 %v1846_v0  ;;  %v12071_v40 = vadd.f32 %v12070_v48, %v12051_v25  ;;  %v12090_v56 = vpop.f32.mrf.mxu0  ;;  %v12110_v27 = vpop.f32.mrf.mxu1  ;;  %v483_v15 = vld [vmem:[%s20300_s7 + $0x768] sm:$0xff]  ;;  %v1861_v25 = vld [vmem:[%s20307_s9 + $0x2678] sm:$0x3] }
 0x3cb   : > { %13507 = vmatpush.xpose.msra.mxu3 %v1849_v21  ;;  %13467 = vmatpush.xpose.msra.mxu1 %v1847_v61  ;;  %3262 = vst [vmem:[#allocation1 + $0x10] ss:$2 sm:$0xff] %v483_v15  ;;  %v1860_v21 = vld [vmem:[%s20307_s9 + $0x2670] sm:$0x3]  ;;  %v1858_v61 = vld [vmem:[%s20307_s9 + $0x2660] sm:$0x3] }
 0x3cc   : > { %v12091_v57 = vadd.f32 %v12090_v56, %v12071_v40  ;;  %13409 = vmatmul.f32.vlgmr.msrb.gmra.mxu2 %v22645_v49  ;;  %13429 = vmatmul.f32.vlgmr.msrb.gmra.mxu3 %v22648_v53  ;;  %v1851_v49 = vld [vmem:[%s20307_s9 + $0x2628] sm:$0x3]  ;;  %v1092_v56 = vld [vmem:[%s20307_s9 + $0xe70] sm:$0xff]  ;;  %v1097_v7 = vld [vmem:[%s20307_s9 + $0xe98] sm:$0xff] }
 0x3cd   : > { %13369 = vmatmul.f32.vlgmr.msrb.gmra.mxu0 %v22654_v45  ;;  %13389 = vmatmul.f32.vlgmr.msrb.gmra.mxu1 %v22659_v4  ;;  %v1084_v4 = vld [vmem:[%s20307_s9 + $0xe30] sm:$0xff]  ;;  %v22746_v44 = vld.sshfl [vmem:[#allocation1 + $0x20] sm:$0xff pattern:$0x75316420] }
 0x3ce   : > { %v12111_v2 = vadd.f32 %v12110_v27, %v12091_v57  ;;  %13488 = vmatpush.xpose.msra.mxu2 %v1080_v59  ;;  %13448 = vmatpush.xpose.msra.mxu0 %v1078_v51  ;;  %v22749_v11 = vld.sshfl [vmem:[#allocation1 + $0x28] sm:$0xff pattern:$0x75316420]  ;;  %v1859_v59 = vld [vmem:[%s20307_s9 + $0x2668] sm:$0x3]  ;;  %v1100_v15 = vld [vmem:[%s20307_s9 + $0xeb0] sm:$0xff] }
 0x3cf   : > { %v12130_v53 = vpop.f32.mrf.mxu2  ;;  %v12150_v9 = vpop.f32.mrf.mxu3  ;;  %13508 = vmatpush.xpose.msra.mxu3 %v1081_v31  ;;  %13468 = vmatpush.xpose.msra.mxu1 %v1079_v1  ;;  %v22777_v57 = vld.sshfl [vmem:[#allocation1 + $0x30] sm:$0xff pattern:$0x75316420]  ;;  %v1864_v1 = vld [vmem:[%s20307_s9 + $0x2690] sm:$0x3] }
 0x3d0   : > { %v12131_v45 = vadd.f32 %v12130_v53, %v12111_v2  ;;  %v1862_v53 = vld [vmem:[%s20307_s9 + $0x2680] sm:$0x3] }
 0x3d2   : > { %13567 = vmatpush.xpose.msrb.mxu2 %v1852_v55  ;;  %13527 = vmatpush.xpose.msrb.mxu0 %v1850_v58  ;;  %v12151_v62 = vadd.f32 %v12150_v9, %v12131_v45  ;;  %v12170_v14 = vpop.f32.mrf.mxu0  ;;  %v12190_v3 = vpop.f32.mrf.mxu1  ;;  %v1090_v55 = vld [vmem:[%s20307_s9 + $0xe60] sm:$0xff]  ;;  %v22780_v58 = vld.sshfl [vmem:[#allocation1 + $0x38] sm:$0xff pattern:$0x75316420] }
 0x3d3   : > { %13587 = vmatpush.xpose.msrb.mxu3 %v1853_v63  ;;  %13547 = vmatpush.xpose.msrb.mxu1 %v1851_v49  ;;  %v1091_v63 = vld [vmem:[%s20307_s9 + $0xe68] sm:$0xff]  ;;  %3264 = vst [vmem:[#allocation1 + $0x30] ss:$2 sm:$0xff] %v485_v39  ;;  %v484_v45 = vld [vmem:[%s20300_s7 + $0x770] sm:$0xff]  ;;  %v1105_v39 = vld [vmem:[%s20307_s9 + $0xed8] sm:$0xff] }
 0x3d4   : > { %v12171_v30 = vadd.f32 %v12170_v14, %v12151_v62  ;;  %13489 = vmatmul.f32.vlgmr.msra.gmra.mxu2 %v22667_v24  ;;  %13509 = vmatmul.f32.vlgmr.msra.gmra.mxu3 %v22670_v17  ;;  %v480_v24 = vld [vmem:[%s20300_s7 + $0x750] sm:$0xff]  ;;  %v1865_v62 = vld [vmem:[%s20307_s9 + $0x2698] sm:$0x3] }
 0x3d5   : > { %13449 = vmatmul.f32.vlgmr.msra.gmra.mxu0 %v22680_v38  ;;  %13469 = vmatmul.f32.vlgmr.msra.gmra.mxu1 %v22683_v8  ;;  %3251 = vst [vmem:[#allocation1 + $0x20] ss:$2 sm:$0xff] %v480_v24  ;;  %v1866_v24 = vld [vmem:[%s20307_s9 + $0x26a0] sm:$0x3] }
 0x3d6   : > { %v12191_v34 = vadd.f32 %v12190_v3, %v12171_v30  ;;  %13568 = vmatpush.xpose.msrb.mxu2 %v1084_v4  ;;  %13528 = vmatpush.xpose.msrb.mxu0 %v1082_v20  ;;  %v22799_v30 = vld.sshfl [vmem:[#allocation1 + $0x10] sm:$0xff pattern:$0x75316420] }
 0x3d7   : > { %v12210_v17 = vpop.f32.mrf.mxu2  ;;  %v12230_v43 = vpop.f32.mrf.mxu3  ;;  %13588 = vmatpush.xpose.msrb.mxu3 %v1085_v5  ;;  %13548 = vmatpush.xpose.msrb.mxu1 %v1083_v10  ;;  %v1094_v10 = vld [vmem:[%s20307_s9 + $0xe80] sm:$0xff] }
 0x3d8   : > { %v12211_v38 = vadd.f32 %v12210_v17, %v12191_v34  ;;  %v1869_v17 = vld [vmem:[%s20307_s9 + $0x26b8] sm:$0x3] }
 0x3da   : > { %13647 = vmatpush.xpose.msra.mxu2 %v1856_v13  ;;  %13607 = vmatpush.xpose.msra.mxu0 %v1854_v18  ;;  %v12231_v8 = vadd.f32 %v12230_v43, %v12211_v38  ;;  %v12250_v16 = vpop.f32.mrf.mxu0  ;;  %v12270_v42 = vpop.f32.mrf.mxu1  ;;  %v1095_v13 = vld [vmem:[%s20307_s9 + $0xe88] sm:$0xff]  ;;  %v22802_v18 = vld.sshfl [vmem:[#allocation1 + $0x18] sm:$0xff pattern:$0x75316420] }
 0x3db   : > { %13667 = vmatpush.xpose.msra.mxu3 %v1857_v12  ;;  %13627 = vmatpush.xpose.msra.mxu1 %v1855_v19  ;;  %v487_v12 = vld [vmem:[%s20300_s7 + $0x788] sm:$0xff]  ;;  %v1868_v19 = vld [vmem:[%s20307_s9 + $0x26b0] sm:$0x3] }
 0x3dc   : > { %v12251_v0 = vadd.f32 %v12250_v16, %v12231_v8  ;;  %13569 = vmatmul.f32.vlgmr.msrb.gmra.mxu2 %v22687_v50  ;;  %13589 = vmatmul.f32.vlgmr.msrb.gmra.mxu3 %v22690_v36  ;;  %v22770_v36 = vld.sshfl [vmem:[#allocation1] sm:$0xff pattern:$0x75316420]  ;;  %v22791_v9 = vld.sshfl [vmem:[#allocation1 + $0x28] sm:$0xff pattern:$0x75316420] }
 0x3dd   : > { %13529 = vmatmul.f32.vlgmr.msrb.gmra.mxu0 %v22704_v32  ;;  %13549 = vmatmul.f32.vlgmr.msrb.gmra.mxu1 %v22706_v28  ;;  %v22772_v32 = vld.sshfl [vmem:[#allocation1 + $0x8] sm:$0xff pattern:$0x75316420]  ;;  %v22786_v49 = vld.sshfl [vmem:[#allocation1 + $0x20] sm:$0xff pattern:$0x75316420] }
 0x3de   : > { %v12271_v48 = vadd.f32 %v12270_v42, %v12251_v0  ;;  %13648 = vmatpush.xpose.msra.mxu2 %v1088_v22  ;;  %13608 = vmatpush.xpose.msra.mxu0 %v1086_v29  ;;  %3261 = vst [vmem:[#allocation1] ss:$2 sm:$0xff] %v482_v37  ;;  %v1867_v8 = vld [vmem:[%s20307_s9 + $0x26a8] sm:$0x3]  ;;  %v1101_v37 = vld [vmem:[%s20307_s9 + $0xeb8] sm:$0xff] }
 0x3df   : > { %v12290_v40 = vpop.f32.mrf.mxu2  ;;  %v12310_v50 = vpop.f32.mrf.mxu3  ;;  %13668 = vmatpush.xpose.msra.mxu3 %v1089_v33  ;;  %13628 = vmatpush.xpose.msra.mxu1 %v1087_v46  ;;  %3263 = vst [vmem:[#allocation1 + $0x20] ss:$2 sm:$0xff] %v484_v45  ;;  %v22819_v0 = vld.sshfl [vmem:[#allocation1 + $0x30] sm:$0xff pattern:$0x75316420]  ;;  %v1098_v33 = vld [vmem:[%s20307_s9 + $0xea0] sm:$0xff] }
 0x3e0   : > { %v12291_v28 = vadd.f32 %v12290_v40, %v12271_v48  ;;  %3274 = vst [vmem:[#allocation1 + $0x10] ss:$2 sm:$0xff] %v487_v12  ;;  %v22822_v46 = vld.sshfl [vmem:[#allocation1 + $0x38] sm:$0xff pattern:$0x75316420]  ;;  %v1099_v48 = vld [vmem:[%s20307_s9 + $0xea8] sm:$0xff] }
 0x3e1   : > { %v488_v40 = vld [vmem:[%s20300_s7 + $0x790] sm:$0xff]  ;;  %v491_v45 = vld [vmem:[%s20300_s7 + $0x7a8] sm:$0xff]  ;;  %v1109_v12 = vld [vmem:[%s20307_s9 + $0xef8] sm:$0xff] }
 0x3e2   : > { %13727 = vmatpush.xpose.msrb.mxu2 %v1860_v21  ;;  %13687 = vmatpush.xpose.msrb.mxu0 %v1858_v61  ;;  %v12311_v27 = vadd.f32 %v12310_v50, %v12291_v28  ;;  %v12330_v51 = vpop.f32.mrf.mxu0  ;;  %v12350_v31 = vpop.f32.mrf.mxu1  ;;  %v489_v21 = vld [vmem:[%s20300_s7 + $0x798] sm:$0xff] }
 0x3e3   : > { %13747 = vmatpush.xpose.msrb.mxu3 %v1861_v25  ;;  %13707 = vmatpush.xpose.msrb.mxu1 %v1859_v59  ;;  %3276 = vst [vmem:[#allocation1 + $0x30] ss:$2 sm:$0xff] %v489_v21  ;;  %v1872_v25 = vld [vmem:[%s20307_s9 + $0x26d0] sm:$0x3]  ;;  %v1870_v59 = vld [vmem:[%s20307_s9 + $0x26c0] sm:$0x3] }
 0x3e4   : > { %v12331_v2 = vadd.f32 %v12330_v51, %v12311_v27  ;;  %13649 = vmatmul.f32.vlgmr.msra.gmra.mxu2 %v22711_v52  ;;  %13669 = vmatmul.f32.vlgmr.msra.gmra.mxu3 %v22714_v60  ;;  %v1863_v52 = vld [vmem:[%s20307_s9 + $0x2688] sm:$0x3]  ;;  %v1873_v28 = vld [vmem:[%s20307_s9 + $0x26d8] sm:$0x3]  ;;  %v1104_v51 = vld [vmem:[%s20307_s9 + $0xed0] sm:$0xff] }
 0x3e5   : > { %13609 = vmatmul.f32.vlgmr.msra.gmra.mxu0 %v22720_v47  ;;  %13629 = vmatmul.f32.vlgmr.msra.gmra.mxu1 %v22725_v6  ;;  %v1096_v6 = vld [vmem:[%s20307_s9 + $0xe90] sm:$0xff]  ;;  %v22812_v43 = vld.sshfl [vmem:[#allocation1] sm:$0xff pattern:$0x75316420] }
 0x3e6   : > { %v12351_v4 = vadd.f32 %v12350_v31, %v12331_v2  ;;  %13728 = vmatpush.xpose.msrb.mxu2 %v1092_v56  ;;  %13688 = vmatpush.xpose.msrb.mxu0 %v1090_v55  ;;  %v22815_v16 = vld.sshfl [vmem:[#allocation1 + $0x8] sm:$0xff pattern:$0x75316420]  ;;  %v1871_v56 = vld [vmem:[%s20307_s9 + $0x26c8] sm:$0x3]  ;;  %v1112_v21 = vld [vmem:[%s20307_s9 + $0xf10] sm:$0xff] }
 0x3e7   : > { %v12370_v60 = vpop.f32.mrf.mxu2  ;;  %v12390_v14 = vpop.f32.mrf.mxu3  ;;  %13748 = vmatpush.xpose.msrb.mxu3 %v1093_v35  ;;  %13708 = vmatpush.xpose.msrb.mxu1 %v1091_v63  ;;  %v22843_v2 = vld.sshfl [vmem:[#allocation1 + $0x10] sm:$0xff pattern:$0x75316420]  ;;  %v1876_v63 = vld [vmem:[%s20307_s9 + $0x26f0] sm:$0x3] }
 0x3e8   : > { %v12371_v47 = vadd.f32 %v12370_v60, %v12351_v4  ;;  %v1874_v60 = vld [vmem:[%s20307_s9 + $0x26e0] sm:$0x3] }
 0x3ea   : > { %13807 = vmatpush.xpose.msra.mxu2 %v1864_v1  ;;  %13767 = vmatpush.xpose.msra.mxu0 %v1862_v53  ;;  %v12391_v3 = vadd.f32 %v12390_v14, %v12371_v47  ;;  %v12410_v20 = vpop.f32.mrf.mxu0  ;;  %v12430_v5 = vpop.f32.mrf.mxu1  ;;  %v1102_v1 = vld [vmem:[%s20307_s9 + $0xec0] sm:$0xff]  ;;  %v22846_v53 = vld.sshfl [vmem:[#allocation1 + $0x18] sm:$0xff pattern:$0x75316420] }
 0x3eb   : > { %13827 = vmatpush.xpose.msra.mxu3 %v1865_v62  ;;  %13787 = vmatpush.xpose.msra.mxu1 %v1863_v52  ;;  %v1103_v62 = vld [vmem:[%s20307_s9 + $0xec8] sm:$0xff]  ;;  %3286 = vst [vmem:[#allocation1 + $0x10] ss:$2 sm:$0xff] %v491_v45  ;;  %v490_v47 = vld [vmem:[%s20300_s7 + $0x7a0] sm:$0xff]  ;;  %v1117_v45 = vld [vmem:[%s20307_s9 + $0xf38] sm:$0xff] }
 0x3ec   : > { %v12411_v34 = vadd.f32 %v12410_v20, %v12391_v3  ;;  %13729 = vmatmul.f32.vlgmr.msrb.gmra.mxu2 %v22733_v26  ;;  %13749 = vmatmul.f32.vlgmr.msrb.gmra.mxu3 %v22736_v23  ;;  %v486_v26 = vld [vmem:[%s20300_s7 + $0x780] sm:$0xff]  ;;  %v1877_v3 = vld [vmem:[%s20307_s9 + $0x26f8] sm:$0x3] }
 0x3ed   : > { %13689 = vmatmul.f32.vlgmr.msrb.gmra.mxu0 %v22746_v44  ;;  %13709 = vmatmul.f32.vlgmr.msrb.gmra.mxu1 %v22749_v11  ;;  %3273 = vst [vmem:[#allocation1] ss:$2 sm:$0xff] %v486_v26  ;;  %v1878_v26 = vld [vmem:[%s20307_s9 + $0x2700] sm:$0x3] }
 0x3ee   : > { %v12431_v38 = vadd.f32 %v12430_v5, %v12411_v34  ;;  %13808 = vmatpush.xpose.msra.mxu2 %v1096_v6  ;;  %13768 = vmatpush.xpose.msra.mxu0 %v1094_v10  ;;  %v22865_v34 = vld.sshfl [vmem:[#allocation1 + $0x30] sm:$0xff pattern:$0x75316420] }
 0x3ef   : > { %v12450_v23 = vpop.f32.mrf.mxu2  ;;  %v12470_v42 = vpop.f32.mrf.mxu3  ;;  %13828 = vmatpush.xpose.msra.mxu3 %v1097_v7  ;;  %13788 = vmatpush.xpose.msra.mxu1 %v1095_v13  ;;  %v1106_v13 = vld [vmem:[%s20307_s9 + $0xee0] sm:$0xff] }
 0x3f0   : > { %v12451_v44 = vadd.f32 %v12450_v23, %v12431_v38  ;;  %v1881_v23 = vld [vmem:[%s20307_s9 + $0x2718] sm:$0x3] }
 0x3f2   : > { %13887 = vmatpush.xpose.msrb.mxu2 %v1868_v19  ;;  %13847 = vmatpush.xpose.msrb.mxu0 %v1866_v24  ;;  %v12471_v11 = vadd.f32 %v12470_v42, %v12451_v44  ;;  %v12490_v22 = vpop.f32.mrf.mxu0  ;;  %v12510_v29 = vpop.f32.mrf.mxu1  ;;  %v1107_v19 = vld [vmem:[%s20307_s9 + $0xee8] sm:$0xff]  ;;  %v22868_v24 = vld.sshfl [vmem:[#allocation1 + $0x38] sm:$0xff pattern:$0x75316420] }
 0x3f3   : > { %13907 = vmatpush.xpose.msrb.mxu3 %v1869_v17  ;;  %13867 = vmatpush.xpose.msrb.mxu1 %v1867_v8  ;;  %v493_v17 = vld [vmem:[%s20300_s7 + $0x7b8] sm:$0xff]  ;;  %v1880_v8 = vld [vmem:[%s20307_s9 + $0x2710] sm:$0x3] }
 0x3f4   : > { %v12491_v61 = vadd.f32 %v12490_v22, %v12471_v11  ;;  %13809 = vmatmul.f32.vlgmr.msra.gmra.mxu2 %v22753_v54  ;;  %13829 = vmatmul.f32.vlgmr.msra.gmra.mxu3 %v22756_v41  ;;  %v22836_v41 = vld.sshfl [vmem:[#allocation1 + $0x20] sm:$0xff pattern:$0x75316420]  ;;  %v22857_v14 = vld.sshfl [vmem:[#allocation1 + $0x8] sm:$0xff pattern:$0x75316420] }
 0x3f5   : > { %13769 = vmatmul.f32.vlgmr.msra.gmra.mxu0 %v22770_v36  ;;  %13789 = vmatmul.f32.vlgmr.msra.gmra.mxu1 %v22772_v32  ;;  %v22838_v36 = vld.sshfl [vmem:[#allocation1 + $0x28] sm:$0xff pattern:$0x75316420]  ;;  %v22852_v52 = vld.sshfl [vmem:[#allocation1] sm:$0xff pattern:$0x75316420] }
 0x3f6   : > { %v12511_v50 = vadd.f32 %v12510_v29, %v12491_v61  ;;  %13888 = vmatpush.xpose.msrb.mxu2 %v1100_v15  ;;  %13848 = vmatpush.xpose.msrb.mxu0 %v1098_v33  ;;  %3275 = vst [vmem:[#allocation1 + $0x20] ss:$2 sm:$0xff] %v488_v40  ;;  %v1879_v11 = vld [vmem:[%s20307_s9 + $0x2708] sm:$0x3]  ;;  %v1113_v40 = vld [vmem:[%s20307_s9 + $0xf18] sm:$0xff] }
 0x3f7   : > { %v12530_v27 = vpop.f32.mrf.mxu2  ;;  %v12550_v54 = vpop.f32.mrf.mxu3  ;;  %13908 = vmatpush.xpose.msrb.mxu3 %v1101_v37  ;;  %13868 = vmatpush.xpose.msrb.mxu1 %v1099_v48  ;;  %3285 = vst [vmem:[#allocation1] ss:$2 sm:$0xff] %v490_v47  ;;  %v22885_v61 = vld.sshfl [vmem:[#allocation1 + $0x10] sm:$0xff pattern:$0x75316420]  ;;  %v1110_v37 = vld [vmem:[%s20307_s9 + $0xf00] sm:$0xff] }
 0x3f8   : > { %v12531_v32 = vadd.f32 %v12530_v27, %v12511_v50  ;;  %3288 = vst [vmem:[#allocation1 + $0x30] ss:$2 sm:$0xff] %v493_v17  ;;  %v22888_v48 = vld.sshfl [vmem:[#allocation1 + $0x18] sm:$0xff pattern:$0x75316420]  ;;  %v1111_v50 = vld [vmem:[%s20307_s9 + $0xf08] sm:$0xff] }
 0x3f9   : > { %v494_v27 = vld [vmem:[%s20300_s7 + $0x7c0] sm:$0xff]  ;;  %v497_v47 = vld [vmem:[%s20300_s7 + $0x7d8] sm:$0xff] }
 0x3fa   : > { %13967 = vmatpush.xpose.msra.mxu2 %v1872_v25  ;;  %13927 = vmatpush.xpose.msra.mxu0 %v1870_v59  ;;  %v12551_v31 = vadd.f32 %v12550_v54, %v12531_v32  ;;  %v12570_v55 = vpop.f32.mrf.mxu0  ;;  %v12590_v35 = vpop.f32.mrf.mxu1  ;;  %v495_v25 = vld [vmem:[%s20300_s7 + $0x7c8] sm:$0xff]  ;;  %v1885_v32 = vld [vmem:[%s20307_s9 + $0x2738] sm:$0x3] }
 0x3fb   : > { %13987 = vmatpush.xpose.msra.mxu3 %v1873_v28  ;;  %13947 = vmatpush.xpose.msra.mxu1 %v1871_v56  ;;  %3298 = vst [vmem:[#allocation1 + $0x10] ss:$2 sm:$0xff] %v495_v25  ;;  %v1884_v28 = vld [vmem:[%s20307_s9 + $0x2730] sm:$0x3]  ;;  %v1882_v56 = vld [vmem:[%s20307_s9 + $0x2720] sm:$0x3] }
 0x3fc   : > { %v12571_v4 = vadd.f32 %v12570_v55, %v12551_v31  ;;  %13889 = vmatmul.f32.vlgmr.msrb.gmra.mxu2 %v22777_v57  ;;  %13909 = vmatmul.f32.vlgmr.msrb.gmra.mxu3 %v22780_v58  ;;  %v1875_v57 = vld [vmem:[%s20307_s9 + $0x26e8] sm:$0x3]  ;;  %v1116_v55 = vld [vmem:[%s20307_s9 + $0xf30] sm:$0xff]  ;;  %v1121_v17 = vld [vmem:[%s20307_s9 + $0xf58] sm:$0xff] }
 0x3fd   : > { %13849 = vmatmul.f32.vlgmr.msrb.gmra.mxu0 %v22786_v49  ;;  %13869 = vmatmul.f32.vlgmr.msrb.gmra.mxu1 %v22791_v9  ;;  %v1108_v9 = vld [vmem:[%s20307_s9 + $0xef0] sm:$0xff]  ;;  %v22878_v42 = vld.sshfl [vmem:[#allocation1 + $0x20] sm:$0xff pattern:$0x75316420] }
 0x3fe   : > { %v12591_v6 = vadd.f32 %v12590_v35, %v12571_v4  ;;  %13968 = vmatpush.xpose.msra.mxu2 %v1104_v51  ;;  %13928 = vmatpush.xpose.msra.mxu0 %v1102_v1  ;;  %v22881_v22 = vld.sshfl [vmem:[#allocation1 + $0x28] sm:$0xff pattern:$0x75316420]  ;;  %v1883_v51 = vld [vmem:[%s20307_s9 + $0x2728] sm:$0x3]  ;;  %v1124_v25 = vld [vmem:[%s20307_s9 + $0xf70] sm:$0xff] }
 0x3ff   : > { %v12610_v58 = vpop.f32.mrf.mxu2  ;;  %v12630_v20 = vpop.f32.mrf.mxu3  ;;  %13988 = vmatpush.xpose.msra.mxu3 %v1105_v39  ;;  %13948 = vmatpush.xpose.msra.mxu1 %v1103_v62  ;;  %v22909_v4 = vld.sshfl [vmem:[#allocation1 + $0x30] sm:$0xff pattern:$0x75316420]  ;;  %v1888_v62 = vld [vmem:[%s20307_s9 + $0x2750] sm:$0x3] }
 0x400   : > { %v12611_v49 = vadd.f32 %v12610_v58, %v12591_v6  ;;  %v1886_v58 = vld [vmem:[%s20307_s9 + $0x2740] sm:$0x3] }
 0x402   : > { %14047 = vmatpush.xpose.msrb.mxu2 %v1876_v63  ;;  %14007 = vmatpush.xpose.msrb.mxu0 %v1874_v60  ;;  %v12631_v5 = vadd.f32 %v12630_v20, %v12611_v49  ;;  %v12650_v10 = vpop.f32.mrf.mxu0  ;;  %v12670_v7 = vpop.f32.mrf.mxu1  ;;  %v1114_v63 = vld [vmem:[%s20307_s9 + $0xf20] sm:$0xff]  ;;  %v22912_v60 = vld.sshfl [vmem:[#allocation1 + $0x38] sm:$0xff pattern:$0x75316420] }
 0x403   : > { %14067 = vmatpush.xpose.msrb.mxu3 %v1877_v3  ;;  %14027 = vmatpush.xpose.msrb.mxu1 %v1875_v57  ;;  %v1115_v3 = vld [vmem:[%s20307_s9 + $0xf28] sm:$0xff]  ;;  %3300 = vst [vmem:[#allocation1 + $0x30] ss:$2 sm:$0xff] %v497_v47  ;;  %v496_v49 = vld [vmem:[%s20300_s7 + $0x7d0] sm:$0xff]  ;;  %v1129_v47 = vld [vmem:[%s20307_s9 + $0xf98] sm:$0xff] }
 0x404   : > { %v12651_v38 = vadd.f32 %v12650_v10, %v12631_v5  ;;  %13969 = vmatmul.f32.vlgmr.msra.gmra.mxu2 %v22799_v30  ;;  %13989 = vmatmul.f32.vlgmr.msra.gmra.mxu3 %v22802_v18  ;;  %v492_v30 = vld [vmem:[%s20300_s7 + $0x7b0] sm:$0xff]  ;;  %v1889_v5 = vld [vmem:[%s20307_s9 + $0x2758] sm:$0x3] }
 0x405   : > { %13929 = vmatmul.f32.vlgmr.msra.gmra.mxu0 %v22812_v43  ;;  %13949 = vmatmul.f32.vlgmr.msra.gmra.mxu1 %v22815_v16  ;;  %3287 = vst [vmem:[#allocation1 + $0x20] ss:$2 sm:$0xff] %v492_v30  ;;  %v1890_v30 = vld [vmem:[%s20307_s9 + $0x2760] sm:$0x3] }
 0x406   : > { %v12671_v44 = vadd.f32 %v12670_v7, %v12651_v38  ;;  %14048 = vmatpush.xpose.msrb.mxu2 %v1108_v9  ;;  %14008 = vmatpush.xpose.msrb.mxu0 %v1106_v13  ;;  %v22931_v38 = vld.sshfl [vmem:[#allocation1 + $0x10] sm:$0xff pattern:$0x75316420] }
 0x407   : > { %v12690_v18 = vpop.f32.mrf.mxu2  ;;  %v12710_v29 = vpop.f32.mrf.mxu3  ;;  %14068 = vmatpush.xpose.msrb.mxu3 %v1109_v12  ;;  %14028 = vmatpush.xpose.msrb.mxu1 %v1107_v19  ;;  %v1118_v19 = vld [vmem:[%s20307_s9 + $0xf40] sm:$0xff] }
 0x408   : > { %v12691_v43 = vadd.f32 %v12690_v18, %v12671_v44  ;;  %v1893_v18 = vld [vmem:[%s20307_s9 + $0x2778] sm:$0x3] }
 0x40a   : > { %14127 = vmatpush.xpose.msra.mxu2 %v1880_v8  ;;  %14087 = vmatpush.xpose.msra.mxu0 %v1878_v26  ;;  %v12711_v16 = vadd.f32 %v12710_v29, %v12691_v43  ;;  %v12730_v15 = vpop.f32.mrf.mxu0  ;;  %v12750_v33 = vpop.f32.mrf.mxu1  ;;  %v1119_v8 = vld [vmem:[%s20307_s9 + $0xf48] sm:$0xff]  ;;  %v22934_v26 = vld.sshfl [vmem:[#allocation1 + $0x18] sm:$0xff pattern:$0x75316420] }
 0x40b   : > { %14147 = vmatpush.xpose.msra.mxu3 %v1881_v23  ;;  %14107 = vmatpush.xpose.msra.mxu1 %v1879_v11  ;;  %v499_v23 = vld [vmem:[%s20300_s7 + $0x7e8] sm:$0xff]  ;;  %v1892_v11 = vld [vmem:[%s20307_s9 + $0x2770] sm:$0x3] }
 0x40c   : > { %v12731_v59 = vadd.f32 %v12730_v15, %v12711_v16  ;;  %14049 = vmatmul.f32.vlgmr.msrb.gmra.mxu2 %v22819_v0  ;;  %14069 = vmatmul.f32.vlgmr.msrb.gmra.mxu3 %v22822_v46  ;;  %v22902_v46 = vld.sshfl [vmem:[#allocation1] sm:$0xff pattern:$0x75316420]  ;;  %v22923_v20 = vld.sshfl [vmem:[#allocation1 + $0x28] sm:$0xff pattern:$0x75316420] }
 0x40d   : > { %14009 = vmatmul.f32.vlgmr.msrb.gmra.mxu0 %v22836_v41  ;;  %14029 = vmatmul.f32.vlgmr.msrb.gmra.mxu1 %v22838_v36  ;;  %v22904_v41 = vld.sshfl [vmem:[#allocation1 + $0x8] sm:$0xff pattern:$0x75316420]  ;;  %v22918_v57 = vld.sshfl [vmem:[#allocation1 + $0x20] sm:$0xff pattern:$0x75316420] }
 0x40e   : > { %v12751_v54 = vadd.f32 %v12750_v33, %v12731_v59  ;;  %14128 = vmatpush.xpose.msra.mxu2 %v1112_v21  ;;  %14088 = vmatpush.xpose.msra.mxu0 %v1110_v37  ;;  %3297 = vst [vmem:[#allocation1] ss:$2 sm:$0xff] %v494_v27  ;;  %v1891_v16 = vld [vmem:[%s20307_s9 + $0x2768] sm:$0x3]  ;;  %v1125_v27 = vld [vmem:[%s20307_s9 + $0xf78] sm:$0xff] }
 0x40f   : > { %v12770_v31 = vpop.f32.mrf.mxu2  ;;  %v12790_v0 = vpop.f32.mrf.mxu3  ;;  %14148 = vmatpush.xpose.msra.mxu3 %v1113_v40  ;;  %14108 = vmatpush.xpose.msra.mxu1 %v1111_v50  ;;  %3299 = vst [vmem:[#allocation1 + $0x20] ss:$2 sm:$0xff] %v496_v49  ;;  %v22951_v59 = vld.sshfl [vmem:[#allocation1 + $0x30] sm:$0xff pattern:$0x75316420]  ;;  %v1122_v40 = vld [vmem:[%s20307_s9 + $0xf60] sm:$0xff] }
 0x410   : > { %v12771_v36 = vadd.f32 %v12770_v31, %v12751_v54  ;;  %3310 = vst [vmem:[#allocation1 + $0x10] ss:$2 sm:$0xff] %v499_v23  ;;  %v22954_v50 = vld.sshfl [vmem:[#allocation1 + $0x38] sm:$0xff pattern:$0x75316420]  ;;  %v1123_v54 = vld [vmem:[%s20307_s9 + $0xf68] sm:$0xff] }
 0x411   : > { %v500_v31 = vld [vmem:[%s20300_s7 + $0x7f0] sm:$0xff]  ;;  %v503_v49 = vld [vmem:[%s20300_s7 + $0x808] sm:$0xff]  ;;  %v1133_v23 = vld [vmem:[%s20307_s9 + $0xfb8] sm:$0xff] }
 0x412   : > { %14207 = vmatpush.xpose.msrb.mxu2 %v1884_v28  ;;  %14167 = vmatpush.xpose.msrb.mxu0 %v1882_v56  ;;  %v12791_v35 = vadd.f32 %v12790_v0, %v12771_v36  ;;  %v12810_v1 = vpop.f32.mrf.mxu0  ;;  %v12830_v39 = vpop.f32.mrf.mxu1  ;;  %v501_v28 = vld [vmem:[%s20300_s7 + $0x7f8] sm:$0xff] }
 0x413   : > { %14227 = vmatpush.xpose.msrb.mxu3 %v1885_v32  ;;  %14187 = vmatpush.xpose.msrb.mxu1 %v1883_v51  ;;  %3312 = vst [vmem:[#allocation1 + $0x30] ss:$2 sm:$0xff] %v501_v28  ;;  %v1896_v32 = vld [vmem:[%s20307_s9 + $0x2790] sm:$0x3]  ;;  %v1894_v51 = vld [vmem:[%s20307_s9 + $0x2780] sm:$0x3] }
 0x414   : > { %v12811_v6 = vadd.f32 %v12810_v1, %v12791_v35  ;;  %14129 = vmatmul.f32.vlgmr.msra.gmra.mxu2 %v22843_v2  ;;  %14149 = vmatmul.f32.vlgmr.msra.gmra.mxu3 %v22846_v53  ;;  %v1887_v2 = vld [vmem:[%s20307_s9 + $0x2748] sm:$0x3]  ;;  %v1897_v36 = vld [vmem:[%s20307_s9 + $0x2798] sm:$0x3]  ;;  %v1128_v1 = vld [vmem:[%s20307_s9 + $0xf90] sm:$0xff] }
 0x415   : > { %14089 = vmatmul.f32.vlgmr.msra.gmra.mxu0 %v22852_v52  ;;  %14109 = vmatmul.f32.vlgmr.msra.gmra.mxu1 %v22857_v14  ;;  %v1120_v14 = vld [vmem:[%s20307_s9 + $0xf50] sm:$0xff]  ;;  %v22944_v29 = vld.sshfl [vmem:[#allocation1] sm:$0xff pattern:$0x75316420] }
 0x416   : > { %v12831_v9 = vadd.f32 %v12830_v39, %v12811_v6  ;;  %14208 = vmatpush.xpose.msrb.mxu2 %v1116_v55  ;;  %14168 = vmatpush.xpose.msrb.mxu0 %v1114_v63  ;;  %v22947_v15 = vld.sshfl [vmem:[#allocation1 + $0x8] sm:$0xff pattern:$0x75316420]  ;;  %v1895_v55 = vld [vmem:[%s20307_s9 + $0x2788] sm:$0x3]  ;;  %v1136_v28 = vld [vmem:[%s20307_s9 + $0xfd0] sm:$0xff] }
 0x417   : > { %v12850_v53 = vpop.f32.mrf.mxu2  ;;  %v12870_v10 = vpop.f32.mrf.mxu3  ;;  %14228 = vmatpush.xpose.msrb.mxu3 %v1117_v45  ;;  %14188 = vmatpush.xpose.msrb.mxu1 %v1115_v3  ;;  %v22975_v6 = vld.sshfl [vmem:[#allocation1 + $0x10] sm:$0xff pattern:$0x75316420]  ;;  %v1900_v3 = vld [vmem:[%s20307_s9 + $0x27b0] sm:$0x3] }
 0x418   : > { %v12851_v52 = vadd.f32 %v12850_v53, %v12831_v9  ;;  %v1898_v53 = vld [vmem:[%s20307_s9 + $0x27a0] sm:$0x3] }
 0x41a   : > { %14287 = vmatpush.xpose.msra.mxu2 %v1888_v62  ;;  %14247 = vmatpush.xpose.msra.mxu0 %v1886_v58  ;;  %v12871_v7 = vadd.f32 %v12870_v10, %v12851_v52  ;;  %v12890_v13 = vpop.f32.mrf.mxu0  ;;  %v12910_v12 = vpop.f32.mrf.mxu1  ;;  %v1126_v62 = vld [vmem:[%s20307_s9 + $0xf80] sm:$0xff]  ;;  %v22978_v58 = vld.sshfl [vmem:[#allocation1 + $0x18] sm:$0xff pattern:$0x75316420] }
 0x41b   : > { %14307 = vmatpush.xpose.msra.mxu3 %v1889_v5  ;;  %14267 = vmatpush.xpose.msra.mxu1 %v1887_v2  ;;  %v1127_v5 = vld [vmem:[%s20307_s9 + $0xf88] sm:$0xff]  ;;  %3322 = vst [vmem:[#allocation1 + $0x10] ss:$2 sm:$0xff] %v503_v49  ;;  %v502_v52 = vld [vmem:[%s20300_s7 + $0x800] sm:$0xff]  ;;  %v1141_v49 = vld [vmem:[%s20307_s9 + $0xff8] sm:$0xff] }
 0x41c   : > { %v12891_v44 = vadd.f32 %v12890_v13, %v12871_v7  ;;  %14209 = vmatmul.f32.vlgmr.msrb.gmra.mxu2 %v22865_v34  ;;  %14229 = vmatmul.f32.vlgmr.msrb.gmra.mxu3 %v22868_v24  ;;  %v498_v34 = vld [vmem:[%s20300_s7 + $0x7e0] sm:$0xff]  ;;  %v1901_v7 = vld [vmem:[%s20307_s9 + $0x27b8] sm:$0x3] }
 0x41d   : > { %14169 = vmatmul.f32.vlgmr.msrb.gmra.mxu0 %v22878_v42  ;;  %14189 = vmatmul.f32.vlgmr.msrb.gmra.mxu1 %v22881_v22  ;;  %3309 = vst [vmem:[#allocation1] ss:$2 sm:$0xff] %v498_v34  ;;  %v1902_v34 = vld [vmem:[%s20307_s9 + $0x27c0] sm:$0x3] }
 0x41e   : > { %v12911_v43 = vadd.f32 %v12910_v12, %v12891_v44  ;;  %14288 = vmatpush.xpose.msra.mxu2 %v1120_v14  ;;  %14248 = vmatpush.xpose.msra.mxu0 %v1118_v19  ;;  %v22997_v44 = vld.sshfl [vmem:[#allocation1 + $0x30] sm:$0xff pattern:$0x75316420] }
 0x41f   : > { %v12930_v24 = vpop.f32.mrf.mxu2  ;;  %v12950_v33 = vpop.f32.mrf.mxu3  ;;  %14308 = vmatpush.xpose.msra.mxu3 %v1121_v17  ;;  %14268 = vmatpush.xpose.msra.mxu1 %v1119_v8  ;;  %v1130_v8 = vld [vmem:[%s20307_s9 + $0xfa0] sm:$0xff] }
 0x420   : > { %v12931_v42 = vadd.f32 %v12930_v24, %v12911_v43  ;;  %v1905_v24 = vld [vmem:[%s20307_s9 + $0x27d8] sm:$0x3] }
 0x422   : > { %14367 = vmatpush.xpose.msrb.mxu2 %v1892_v11  ;;  %14327 = vmatpush.xpose.msrb.mxu0 %v1890_v30  ;;  %v12951_v22 = vadd.f32 %v12950_v33, %v12931_v42  ;;  %v12970_v21 = vpop.f32.mrf.mxu0  ;;  %v12990_v37 = vpop.f32.mrf.mxu1  ;;  %v1131_v11 = vld [vmem:[%s20307_s9 + $0xfa8] sm:$0xff]  ;;  %v23000_v30 = vld.sshfl [vmem:[#allocation1 + $0x38] sm:$0xff pattern:$0x75316420] }
 0x423   : > { %14387 = vmatpush.xpose.msrb.mxu3 %v1893_v18  ;;  %14347 = vmatpush.xpose.msrb.mxu1 %v1891_v16  ;;  %v505_v18 = vld [vmem:[%s20300_s7 + $0x818] sm:$0xff]  ;;  %v1904_v16 = vld [vmem:[%s20307_s9 + $0x27d0] sm:$0x3] }
 0x424   : > { %v12971_v56 = vadd.f32 %v12970_v21, %v12951_v22  ;;  %14289 = vmatmul.f32.vlgmr.msra.gmra.mxu2 %v22885_v61  ;;  %14309 = vmatmul.f32.vlgmr.msra.gmra.mxu3 %v22888_v48  ;;  %v22968_v48 = vld.sshfl [vmem:[#allocation1 + $0x20] sm:$0xff pattern:$0x75316420]  ;;  %v22989_v10 = vld.sshfl [vmem:[#allocation1 + $0x8] sm:$0xff pattern:$0x75316420] }
 0x425   : > { %14249 = vmatmul.f32.vlgmr.msra.gmra.mxu0 %v22902_v46  ;;  %14269 = vmatmul.f32.vlgmr.msra.gmra.mxu1 %v22904_v41  ;;  %v22970_v46 = vld.sshfl [vmem:[#allocation1 + $0x28] sm:$0xff pattern:$0x75316420]  ;;  %v22984_v2 = vld.sshfl [vmem:[#allocation1] sm:$0xff pattern:$0x75316420] }
 0x426   : > { %v12991_v0 = vadd.f32 %v12990_v37, %v12971_v56  ;;  %14368 = vmatpush.xpose.msrb.mxu2 %v1124_v25  ;;  %14328 = vmatpush.xpose.msrb.mxu0 %v1122_v40  ;;  %3311 = vst [vmem:[#allocation1 + $0x20] ss:$2 sm:$0xff] %v500_v31  ;;  %v1903_v22 = vld [vmem:[%s20307_s9 + $0x27c8] sm:$0x3]  ;;  %v1137_v31 = vld [vmem:[%s20307_s9 + $0xfd8] sm:$0xff] }
 0x427   : > { %v13010_v35 = vpop.f32.mrf.mxu2  ;;  %v13030_v61 = vpop.f32.mrf.mxu3  ;;  %14388 = vmatpush.xpose.msrb.mxu3 %v1125_v27  ;;  %14348 = vmatpush.xpose.msrb.mxu1 %v1123_v54  ;;  %3321 = vst [vmem:[#allocation1] ss:$2 sm:$0xff] %v502_v52  ;;  %v23017_v56 = vld.sshfl [vmem:[#allocation1 + $0x10] sm:$0xff pattern:$0x75316420]  ;;  %v1134_v27 = vld [vmem:[%s20307_s9 + $0xfc0] sm:$0xff] }
 0x428   : > { %v13011_v41 = vadd.f32 %v13010_v35, %v12991_v0  ;;  %3324 = vst [vmem:[#allocation1 + $0x30] ss:$2 sm:$0xff] %v505_v18  ;;  %v23020_v54 = vld.sshfl [vmem:[#allocation1 + $0x18] sm:$0xff pattern:$0x75316420]  ;;  %v1135_v0 = vld [vmem:[%s20307_s9 + $0xfc8] sm:$0xff] }
 0x429   : > { %v506_v35 = vld [vmem:[%s20300_s7 + $0x820] sm:$0xff]  ;;  %v509_v52 = vld [vmem:[%s20300_s7 + $0x838] sm:$0xff] }
 0x42a   : > { %14447 = vmatpush.xpose.msra.mxu2 %v1896_v32  ;;  %14407 = vmatpush.xpose.msra.mxu0 %v1894_v51  ;;  %v13031_v39 = vadd.f32 %v13030_v61, %v13011_v41  ;;  %v13050_v63 = vpop.f32.mrf.mxu0  ;;  %v13070_v45 = vpop.f32.mrf.mxu1  ;;  %v507_v32 = vld [vmem:[%s20300_s7 + $0x828] sm:$0xff]  ;;  %v1909_v41 = vld [vmem:[%s20307_s9 + $0x27f8] sm:$0x3] }
 0x42b   : > { %14467 = vmatpush.xpose.msra.mxu3 %v1897_v36  ;;  %14427 = vmatpush.xpose.msra.mxu1 %v1895_v55  ;;  %3334 = vst [vmem:[#allocation1 + $0x10] ss:$2 sm:$0xff] %v507_v32  ;;  %v1908_v36 = vld [vmem:[%s20307_s9 + $0x27f0] sm:$0x3]  ;;  %v1906_v55 = vld [vmem:[%s20307_s9 + $0x27e0] sm:$0x3] }
 0x42c   : > { %v13051_v9 = vadd.f32 %v13050_v63, %v13031_v39  ;;  %14369 = vmatmul.f32.vlgmr.msrb.gmra.mxu2 %v22909_v4  ;;  %14389 = vmatmul.f32.vlgmr.msrb.gmra.mxu3 %v22912_v60  ;;  %v1899_v4 = vld [vmem:[%s20307_s9 + $0x27a8] sm:$0x3]  ;;  %v1140_v63 = vld [vmem:[%s20307_s9 + $0xff0] sm:$0xff]  ;;  %v1145_v18 = vld [vmem:[%s20307_s9 + $0x1018] sm:$0xff] }
 0x42d   : > { %14329 = vmatmul.f32.vlgmr.msrb.gmra.mxu0 %v22918_v57  ;;  %14349 = vmatmul.f32.vlgmr.msrb.gmra.mxu1 %v22923_v20  ;;  %v1132_v20 = vld [vmem:[%s20307_s9 + $0xfb0] sm:$0xff]  ;;  %v23010_v33 = vld.sshfl [vmem:[#allocation1 + $0x20] sm:$0xff pattern:$0x75316420] }
 0x42e   : > { %v13071_v14 = vadd.f32 %v13070_v45, %v13051_v9  ;;  %14448 = vmatpush.xpose.msra.mxu2 %v1128_v1  ;;  %14408 = vmatpush.xpose.msra.mxu0 %v1126_v62  ;;  %v23013_v21 = vld.sshfl [vmem:[#allocation1 + $0x28] sm:$0xff pattern:$0x75316420]  ;;  %v1907_v1 = vld [vmem:[%s20307_s9 + $0x27e8] sm:$0x3]  ;;  %v1148_v32 = vld [vmem:[%s20307_s9 + $0x1030] sm:$0xff] }
 0x42f   : > { %v13090_v60 = vpop.f32.mrf.mxu2  ;;  %v13110_v13 = vpop.f32.mrf.mxu3  ;;  %14468 = vmatpush.xpose.msra.mxu3 %v1129_v47  ;;  %14428 = vmatpush.xpose.msra.mxu1 %v1127_v5  ;;  %v23041_v9 = vld.sshfl [vmem:[#allocation1 + $0x30] sm:$0xff pattern:$0x75316420]  ;;  %v1912_v5 = vld [vmem:[%s20307_s9 + $0x2810] sm:$0x3] }
 0x430   : > { %v13091_v57 = vadd.f32 %v13090_v60, %v13071_v14  ;;  %v1910_v60 = vld [vmem:[%s20307_s9 + $0x2800] sm:$0x3] }
 0x432   : > { %14527 = vmatpush.xpose.msrb.mxu2 %v1900_v3  ;;  %14487 = vmatpush.xpose.msrb.mxu0 %v1898_v53  ;;  %v13111_v12 = vadd.f32 %v13110_v13, %v13091_v57  ;;  %v13130_v19 = vpop.f32.mrf.mxu0  ;;  %v13150_v17 = vpop.f32.mrf.mxu1  ;;  %v1138_v3 = vld [vmem:[%s20307_s9 + $0xfe0] sm:$0xff]  ;;  %v23044_v53 = vld.sshfl [vmem:[#allocation1 + $0x38] sm:$0xff pattern:$0x75316420] }
 0x433   : > { %14547 = vmatpush.xpose.msrb.mxu3 %v1901_v7  ;;  %14507 = vmatpush.xpose.msrb.mxu1 %v1899_v4  ;;  %v1139_v7 = vld [vmem:[%s20307_s9 + $0xfe8] sm:$0xff]  ;;  %3336 = vst [vmem:[#allocation1 + $0x30] ss:$2 sm:$0xff] %v509_v52  ;;  %v508_v57 = vld [vmem:[%s20300_s7 + $0x830] sm:$0xff]  ;;  %v1153_v52 = vld [vmem:[%s20307_s9 + $0x1058] sm:$0xff] }
 0x434   : > { %v13131_v43 = vadd.f32 %v13130_v19, %v13111_v12  ;;  %14449 = vmatmul.f32.vlgmr.msra.gmra.mxu2 %v22931_v38  ;;  %14469 = vmatmul.f32.vlgmr.msra.gmra.mxu3 %v22934_v26  ;;  %v504_v38 = vld [vmem:[%s20300_s7 + $0x810] sm:$0xff]  ;;  %v1913_v12 = vld [vmem:[%s20307_s9 + $0x2818] sm:$0x3] }
 0x435   : > { %14409 = vmatmul.f32.vlgmr.msra.gmra.mxu0 %v22944_v29  ;;  %14429 = vmatmul.f32.vlgmr.msra.gmra.mxu1 %v22947_v15  ;;  %3323 = vst [vmem:[#allocation1 + $0x20] ss:$2 sm:$0xff] %v504_v38  ;;  %v1914_v38 = vld [vmem:[%s20307_s9 + $0x2820] sm:$0x3] }
 0x436   : > { %v13151_v42 = vadd.f32 %v13150_v17, %v13131_v43  ;;  %14528 = vmatpush.xpose.msrb.mxu2 %v1132_v20  ;;  %14488 = vmatpush.xpose.msrb.mxu0 %v1130_v8  ;;  %v23063_v43 = vld.sshfl [vmem:[#allocation1 + $0x10] sm:$0xff pattern:$0x75316420] }
 0x437   : > { %v13170_v26 = vpop.f32.mrf.mxu2  ;;  %v13190_v37 = vpop.f32.mrf.mxu3  ;;  %14548 = vmatpush.xpose.msrb.mxu3 %v1133_v23  ;;  %14508 = vmatpush.xpose.msrb.mxu1 %v1131_v11  ;;  %v1142_v11 = vld [vmem:[%s20307_s9 + $0x1000] sm:$0xff] }
 0x438   : > { %v13171_v29 = vadd.f32 %v13170_v26, %v13151_v42  ;;  %v1917_v26 = vld [vmem:[%s20307_s9 + $0x2838] sm:$0x3] }
 0x43a   : > { %14607 = vmatpush.xpose.msra.mxu2 %v1904_v16  ;;  %14567 = vmatpush.xpose.msra.mxu0 %v1902_v34  ;;  %v13191_v15 = vadd.f32 %v13190_v37, %v13171_v29  ;;  %v13210_v25 = vpop.f32.mrf.mxu0  ;;  %v13230_v40 = vpop.f32.mrf.mxu1  ;;  %v1143_v16 = vld [vmem:[%s20307_s9 + $0x1008] sm:$0xff]  ;;  %v23066_v34 = vld.sshfl [vmem:[#allocation1 + $0x18] sm:$0xff pattern:$0x75316420] }
 0x43b   : > { %14627 = vmatpush.xpose.msra.mxu3 %v1905_v24  ;;  %14587 = vmatpush.xpose.msra.mxu1 %v1903_v22  ;;  %v511_v24 = vld [vmem:[%s20300_s7 + $0x848] sm:$0xff]  ;;  %v1916_v22 = vld [vmem:[%s20307_s9 + $0x2830] sm:$0x3] }
 0x43c   : > { %v13211_v51 = vadd.f32 %v13210_v25, %v13191_v15  ;;  %14529 = vmatmul.f32.vlgmr.msrb.gmra.mxu2 %v22951_v59  ;;  %14549 = vmatmul.f32.vlgmr.msrb.gmra.mxu3 %v22954_v50  ;;  %v23034_v50 = vld.sshfl [vmem:[#allocation1] sm:$0xff pattern:$0x75316420]  ;;  %v23055_v13 = vld.sshfl [vmem:[#allocation1 + $0x28] sm:$0xff pattern:$0x75316420] }
 0x43d   : > { %14489 = vmatmul.f32.vlgmr.msrb.gmra.mxu0 %v22968_v48  ;;  %14509 = vmatmul.f32.vlgmr.msrb.gmra.mxu1 %v22970_v46  ;;  %v23036_v48 = vld.sshfl [vmem:[#allocation1 + $0x8] sm:$0xff pattern:$0x75316420]  ;;  %v23050_v4 = vld.sshfl [vmem:[#allocation1 + $0x20] sm:$0xff pattern:$0x75316420] }
 0x43e   : > { %v13231_v61 = vadd.f32 %v13230_v40, %v13211_v51  ;;  %14608 = vmatpush.xpose.msra.mxu2 %v1136_v28  ;;  %14568 = vmatpush.xpose.msra.mxu0 %v1134_v27  ;;  %3333 = vst [vmem:[#allocation1] ss:$2 sm:$0xff] %v506_v35  ;;  %v1915_v15 = vld [vmem:[%s20307_s9 + $0x2828] sm:$0x3]  ;;  %v1149_v35 = vld [vmem:[%s20307_s9 + $0x1038] sm:$0xff] }
 0x43f   : > { %v13250_v39 = vpop.f32.mrf.mxu2  ;;  %v13270_v59 = vpop.f32.mrf.mxu3  ;;  %14628 = vmatpush.xpose.msra.mxu3 %v1137_v31  ;;  %14588 = vmatpush.xpose.msra.mxu1 %v1135_v0  ;;  %3335 = vst [vmem:[#allocation1 + $0x20] ss:$2 sm:$0xff] %v508_v57  ;;  %v23083_v51 = vld.sshfl [vmem:[#allocation1 + $0x30] sm:$0xff pattern:$0x75316420]  ;;  %v1146_v31 = vld [vmem:[%s20307_s9 + $0x1020] sm:$0xff] }
 0x440   : > { %v13251_v46 = vadd.f32 %v13250_v39, %v13231_v61  ;;  %3346 = vst [vmem:[#allocation1 + $0x10] ss:$2 sm:$0xff] %v511_v24  ;;  %v23086_v0 = vld.sshfl [vmem:[#allocation1 + $0x38] sm:$0xff pattern:$0x75316420]  ;;  %v1147_v61 = vld [vmem:[%s20307_s9 + $0x1028] sm:$0xff] }
 0x441   : > { %v512_v39 = vld [vmem:[%s20300_s7 + $0x850] sm:$0xff]  ;;  %v515_v57 = vld [vmem:[%s20300_s7 + $0x868] sm:$0xff]  ;;  %v1157_v24 = vld [vmem:[%s20307_s9 + $0x1078] sm:$0xff] }
 0x442   : > { %14687 = vmatpush.xpose.msrb.mxu2 %v1908_v36  ;;  %14647 = vmatpush.xpose.msrb.mxu0 %v1906_v55  ;;  %v13271_v45 = vadd.f32 %v13270_v59, %v13251_v46  ;;  %v13290_v62 = vpop.f32.mrf.mxu0  ;;  %v13310_v47 = vpop.f32.mrf.mxu1  ;;  %v513_v36 = vld [vmem:[%s20300_s7 + $0x858] sm:$0xff] }
 0x443   : > { %14707 = vmatpush.xpose.msrb.mxu3 %v1909_v41  ;;  %14667 = vmatpush.xpose.msrb.mxu1 %v1907_v1  ;;  %3348 = vst [vmem:[#allocation1 + $0x30] ss:$2 sm:$0xff] %v513_v36  ;;  %v1920_v41 = vld [vmem:[%s20307_s9 + $0x2850] sm:$0x3]  ;;  %v1918_v1 = vld [vmem:[%s20307_s9 + $0x2840] sm:$0x3] }
 0x444   : > { %v13291_v14 = vadd.f32 %v13290_v62, %v13271_v45  ;;  %14609 = vmatmul.f32.vlgmr.msra.gmra.mxu2 %v22975_v6  ;;  %14629 = vmatmul.f32.vlgmr.msra.gmra.mxu3 %v22978_v58  ;;  %v1911_v6 = vld [vmem:[%s20307_s9 + $0x2808] sm:$0x3]  ;;  %v1921_v46 = vld [vmem:[%s20307_s9 + $0x2858] sm:$0x3]  ;;  %v1152_v62 = vld [vmem:[%s20307_s9 + $0x1050] sm:$0xff] }
 0x445   : > { %14569 = vmatmul.f32.vlgmr.msra.gmra.mxu0 %v22984_v2  ;;  %14589 = vmatmul.f32.vlgmr.msra.gmra.mxu1 %v22989_v10  ;;  %v1144_v10 = vld [vmem:[%s20307_s9 + $0x1010] sm:$0xff]  ;;  %v23076_v37 = vld.sshfl [vmem:[#allocation1] sm:$0xff pattern:$0x75316420] }
 0x446   : > { %v13311_v20 = vadd.f32 %v13310_v47, %v13291_v14  ;;  %14688 = vmatpush.xpose.msrb.mxu2 %v1140_v63  ;;  %14648 = vmatpush.xpose.msrb.mxu0 %v1138_v3  ;;  %v23079_v25 = vld.sshfl [vmem:[#allocation1 + $0x8] sm:$0xff pattern:$0x75316420]  ;;  %v1919_v63 = vld [vmem:[%s20307_s9 + $0x2848] sm:$0x3]  ;;  %v1160_v36 = vld [vmem:[%s20307_s9 + $0x1090] sm:$0xff] }
 0x447   : > { %v13330_v58 = vpop.f32.mrf.mxu2  ;;  %v13350_v19 = vpop.f32.mrf.mxu3  ;;  %14708 = vmatpush.xpose.msrb.mxu3 %v1141_v49  ;;  %14668 = vmatpush.xpose.msrb.mxu1 %v1139_v7  ;;  %v23107_v14 = vld.sshfl [vmem:[#allocation1 + $0x10] sm:$0xff pattern:$0x75316420]  ;;  %v1924_v7 = vld [vmem:[%s20307_s9 + $0x2870] sm:$0x3] }
 0x448   : > { %v13331_v2 = vadd.f32 %v13330_v58, %v13311_v20  ;;  %v1922_v58 = vld [vmem:[%s20307_s9 + $0x2860] sm:$0x3] }
 0x44a   : > { %14767 = vmatpush.xpose.msra.mxu2 %v1912_v5  ;;  %14727 = vmatpush.xpose.msra.mxu0 %v1910_v60  ;;  %v13351_v17 = vadd.f32 %v13350_v19, %v13331_v2  ;;  %v13370_v8 = vpop.f32.mrf.mxu0  ;;  %v13390_v23 = vpop.f32.mrf.mxu1  ;;  %v1150_v5 = vld [vmem:[%s20307_s9 + $0x1040] sm:$0xff]  ;;  %v23110_v60 = vld.sshfl [vmem:[#allocation1 + $0x18] sm:$0xff pattern:$0x75316420] }
 0x44b   : > { %14787 = vmatpush.xpose.msra.mxu3 %v1913_v12  ;;  %14747 = vmatpush.xpose.msra.mxu1 %v1911_v6  ;;  %v1151_v12 = vld [vmem:[%s20307_s9 + $0x1048] sm:$0xff]  ;;  %3358 = vst [vmem:[#allocation1 + $0x10] ss:$2 sm:$0xff] %v515_v57  ;;  %v514_v2 = vld [vmem:[%s20300_s7 + $0x860] sm:$0xff]  ;;  %v1165_v57 = vld [vmem:[%s20307_s9 + $0x10b8] sm:$0xff] }
 0x44c   : > { %v13371_v42 = vadd.f32 %v13370_v8, %v13351_v17  ;;  %14689 = vmatmul.f32.vlgmr.msrb.gmra.mxu2 %v22997_v44  ;;  %14709 = vmatmul.f32.vlgmr.msrb.gmra.mxu3 %v23000_v30  ;;  %v510_v44 = vld [vmem:[%s20300_s7 + $0x840] sm:$0xff]  ;;  %v1925_v17 = vld [vmem:[%s20307_s9 + $0x2878] sm:$0x3] }
 0x44d   : > { %14649 = vmatmul.f32.vlgmr.msrb.gmra.mxu0 %v23010_v33  ;;  %14669 = vmatmul.f32.vlgmr.msrb.gmra.mxu1 %v23013_v21  ;;  %3345 = vst [vmem:[#allocation1] ss:$2 sm:$0xff] %v510_v44  ;;  %v1926_v44 = vld [vmem:[%s20307_s9 + $0x2880] sm:$0x3] }
 0x44e   : > { %v13391_v29 = vadd.f32 %v13390_v23, %v13371_v42  ;;  %14768 = vmatpush.xpose.msra.mxu2 %v1144_v10  ;;  %14728 = vmatpush.xpose.msra.mxu0 %v1142_v11  ;;  %v23129_v42 = vld.sshfl [vmem:[#allocation1 + $0x30] sm:$0xff pattern:$0x75316420] }
 0x44f   : > { %v13410_v30 = vpop.f32.mrf.mxu2  ;;  %v13430_v40 = vpop.f32.mrf.mxu3  ;;  %14788 = vmatpush.xpose.msra.mxu3 %v1145_v18  ;;  %14748 = vmatpush.xpose.msra.mxu1 %v1143_v16  ;;  %v1154_v16 = vld [vmem:[%s20307_s9 + $0x1060] sm:$0xff] }
 0x450   : > { %v13411_v33 = vadd.f32 %v13410_v30, %v13391_v29  ;;  %v1929_v30 = vld [vmem:[%s20307_s9 + $0x2898] sm:$0x3] }
 0x452   : > { %14847 = vmatpush.xpose.msrb.mxu2 %v1916_v22  ;;  %14807 = vmatpush.xpose.msrb.mxu0 %v1914_v38  ;;  %v13431_v21 = vadd.f32 %v13430_v40, %v13411_v33  ;;  %v13450_v28 = vpop.f32.mrf.mxu0  ;;  %v13470_v27 = vpop.f32.mrf.mxu1  ;;  %v1155_v22 = vld [vmem:[%s20307_s9 + $0x1068] sm:$0xff]  ;;  %v23132_v38 = vld.sshfl [vmem:[#allocation1 + $0x38] sm:$0xff pattern:$0x75316420] }
 0x453   : > { %14867 = vmatpush.xpose.msrb.mxu3 %v1917_v26  ;;  %14827 = vmatpush.xpose.msrb.mxu1 %v1915_v15  ;;  %v517_v26 = vld [vmem:[%s20300_s7 + $0x878] sm:$0xff]  ;;  %v1928_v15 = vld [vmem:[%s20307_s9 + $0x2890] sm:$0x3] }
 0x454   : > { %v13451_v55 = vadd.f32 %v13450_v28, %v13431_v21  ;;  %14769 = vmatmul.f32.vlgmr.msra.gmra.mxu2 %v23017_v56  ;;  %14789 = vmatmul.f32.vlgmr.msra.gmra.mxu3 %v23020_v54  ;;  %v23100_v54 = vld.sshfl [vmem:[#allocation1 + $0x20] sm:$0xff pattern:$0x75316420]  ;;  %v23121_v19 = vld.sshfl [vmem:[#allocation1 + $0x8] sm:$0xff pattern:$0x75316420] }
 0x455   : > { %14729 = vmatmul.f32.vlgmr.msra.gmra.mxu0 %v23034_v50  ;;  %14749 = vmatmul.f32.vlgmr.msra.gmra.mxu1 %v23036_v48  ;;  %v23102_v50 = vld.sshfl [vmem:[#allocation1 + $0x28] sm:$0xff pattern:$0x75316420]  ;;  %v23116_v6 = vld.sshfl [vmem:[#allocation1] sm:$0xff pattern:$0x75316420] }
 0x456   : > { %v13471_v59 = vadd.f32 %v13470_v27, %v13451_v55  ;;  %14848 = vmatpush.xpose.msrb.mxu2 %v1148_v32  ;;  %14808 = vmatpush.xpose.msrb.mxu0 %v1146_v31  ;;  %3347 = vst [vmem:[#allocation1 + $0x20] ss:$2 sm:$0xff] %v512_v39  ;;  %v1927_v21 = vld [vmem:[%s20307_s9 + $0x2888] sm:$0x3]  ;;  %v1161_v39 = vld [vmem:[%s20307_s9 + $0x1098] sm:$0xff] }
 0x457   : > { %v13490_v45 = vpop.f32.mrf.mxu2  ;;  %v13510_v56 = vpop.f32.mrf.mxu3  ;;  %14868 = vmatpush.xpose.msrb.mxu3 %v1149_v35  ;;  %14828 = vmatpush.xpose.msrb.mxu1 %v1147_v61  ;;  %3357 = vst [vmem:[#allocation1] ss:$2 sm:$0xff] %v514_v2  ;;  %v23149_v55 = vld.sshfl [vmem:[#allocation1 + $0x10] sm:$0xff pattern:$0x75316420]  ;;  %v1158_v35 = vld [vmem:[%s20307_s9 + $0x1080] sm:$0xff] }
 0x458   : > { %v13491_v48 = vadd.f32 %v13490_v45, %v13471_v59  ;;  %3360 = vst [vmem:[#allocation1 + $0x30] ss:$2 sm:$0xff] %v517_v26  ;;  %v23152_v61 = vld.sshfl [vmem:[#allocation1 + $0x18] sm:$0xff pattern:$0x75316420]  ;;  %v1159_v59 = vld [vmem:[%s20307_s9 + $0x1088] sm:$0xff] }
 0x459   : > { %v518_v45 = vld [vmem:[%s20300_s7 + $0x880] sm:$0xff]  ;;  %v521_v2 = vld [vmem:[%s20300_s7 + $0x898] sm:$0xff] }
 0x45a   : > { %14927 = vmatpush.xpose.msra.mxu2 %v1920_v41  ;;  %14887 = vmatpush.xpose.msra.mxu0 %v1918_v1  ;;  %v13511_v47 = vadd.f32 %v13510_v56, %v13491_v48  ;;  %v13530_v3 = vpop.f32.mrf.mxu0  ;;  %v13550_v49 = vpop.f32.mrf.mxu1  ;;  %v519_v41 = vld [vmem:[%s20300_s7 + $0x888] sm:$0xff]  ;;  %v1933_v48 = vld [vmem:[%s20307_s9 + $0x28b8] sm:$0x3] }
 0x45b   : > { %14947 = vmatpush.xpose.msra.mxu3 %v1921_v46  ;;  %14907 = vmatpush.xpose.msra.mxu1 %v1919_v63  ;;  %3370 = vst [vmem:[#allocation1 + $0x10] ss:$2 sm:$0xff] %v519_v41  ;;  %v1932_v46 = vld [vmem:[%s20307_s9 + $0x28b0] sm:$0x3]  ;;  %v1930_v63 = vld [vmem:[%s20307_s9 + $0x28a0] sm:$0x3] }
 0x45c   : > { %v13531_v20 = vadd.f32 %v13530_v3, %v13511_v47  ;;  %14849 = vmatmul.f32.vlgmr.msrb.gmra.mxu2 %v23041_v9  ;;  %14869 = vmatmul.f32.vlgmr.msrb.gmra.mxu3 %v23044_v53  ;;  %v1923_v9 = vld [vmem:[%s20307_s9 + $0x2868] sm:$0x3]  ;;  %v1164_v3 = vld [vmem:[%s20307_s9 + $0x10b0] sm:$0xff]  ;;  %v1169_v26 = vld [vmem:[%s20307_s9 + $0x10d8] sm:$0xff] }
 0x45d   : > { %14809 = vmatmul.f32.vlgmr.msrb.gmra.mxu0 %v23050_v4  ;;  %14829 = vmatmul.f32.vlgmr.msrb.gmra.mxu1 %v23055_v13  ;;  %v1156_v13 = vld [vmem:[%s20307_s9 + $0x1070] sm:$0xff]  ;;  %v23142_v40 = vld.sshfl [vmem:[#allocation1 + $0x20] sm:$0xff pattern:$0x75316420] }
 0x45e   : > { %v13551_v10 = vadd.f32 %v13550_v49, %v13531_v20  ;;  %14928 = vmatpush.xpose.msra.mxu2 %v1152_v62  ;;  %14888 = vmatpush.xpose.msra.mxu0 %v1150_v5  ;;  %v23145_v28 = vld.sshfl [vmem:[#allocation1 + $0x28] sm:$0xff pattern:$0x75316420]  ;;  %v1931_v62 = vld [vmem:[%s20307_s9 + $0x28a8] sm:$0x3]  ;;  %v1172_v41 = vld [vmem:[%s20307_s9 + $0x10f0] sm:$0xff] }
 0x45f   : > { %v13570_v53 = vpop.f32.mrf.mxu2  ;;  %v13590_v8 = vpop.f32.mrf.mxu3  ;;  %14948 = vmatpush.xpose.msra.mxu3 %v1153_v52  ;;  %14908 = vmatpush.xpose.msra.mxu1 %v1151_v12  ;;  %v23173_v20 = vld.sshfl [vmem:[#allocation1 + $0x30] sm:$0xff pattern:$0x75316420]  ;;  %v1936_v12 = vld [vmem:[%s20307_s9 + $0x28d0] sm:$0x3] }
 0x460   : > { %v13571_v4 = vadd.f32 %v13570_v53, %v13551_v10  ;;  %v1934_v53 = vld [vmem:[%s20307_s9 + $0x28c0] sm:$0x3] }
 0x462   : > { %15007 = vmatpush.xpose.msrb.mxu2 %v1924_v7  ;;  %14967 = vmatpush.xpose.msrb.mxu0 %v1922_v58  ;;  %v13591_v23 = vadd.f32 %v13590_v8, %v13571_v4  ;;  %v13610_v11 = vpop.f32.mrf.mxu0  ;;  %v13630_v18 = vpop.f32.mrf.mxu1  ;;  %v1162_v7 = vld [vmem:[%s20307_s9 + $0x10a0] sm:$0xff]  ;;  %v23176_v58 = vld.sshfl [vmem:[#allocation1 + $0x38] sm:$0xff pattern:$0x75316420] }
 0x463   : > { %15027 = vmatpush.xpose.msrb.mxu3 %v1925_v17  ;;  %14987 = vmatpush.xpose.msrb.mxu1 %v1923_v9  ;;  %v1163_v17 = vld [vmem:[%s20307_s9 + $0x10a8] sm:$0xff]  ;;  %3372 = vst [vmem:[#allocation1 + $0x30] ss:$2 sm:$0xff] %v521_v2  ;;  %v520_v4 = vld [vmem:[%s20300_s7 + $0x890] sm:$0xff]  ;;  %v1177_v2 = vld [vmem:[%s20307_s9 + $0x1118] sm:$0xff] }
 0x464   : > { %v13611_v29 = vadd.f32 %v13610_v11, %v13591_v23  ;;  %14929 = vmatmul.f32.vlgmr.msra.gmra.mxu2 %v23063_v43  ;;  %14949 = vmatmul.f32.vlgmr.msra.gmra.mxu3 %v23066_v34  ;;  %v516_v43 = vld [vmem:[%s20300_s7 + $0x870] sm:$0xff]  ;;  %v1937_v23 = vld [vmem:[%s20307_s9 + $0x28d8] sm:$0x3] }
 0x465   : > { %14889 = vmatmul.f32.vlgmr.msra.gmra.mxu0 %v23076_v37  ;;  %14909 = vmatmul.f32.vlgmr.msra.gmra.mxu1 %v23079_v25  ;;  %3359 = vst [vmem:[#allocation1 + $0x20] ss:$2 sm:$0xff] %v516_v43  ;;  %v1938_v43 = vld [vmem:[%s20307_s9 + $0x28e0] sm:$0x3] }
 0x466   : > { %v13631_v33 = vadd.f32 %v13630_v18, %v13611_v29  ;;  %15008 = vmatpush.xpose.msrb.mxu2 %v1156_v13  ;;  %14968 = vmatpush.xpose.msrb.mxu0 %v1154_v16  ;;  %v23195_v29 = vld.sshfl [vmem:[#allocation1 + $0x10] sm:$0xff pattern:$0x75316420] }
 0x467   : > { %v13650_v34 = vpop.f32.mrf.mxu2  ;;  %v13670_v27 = vpop.f32.mrf.mxu3  ;;  %15028 = vmatpush.xpose.msrb.mxu3 %v1157_v24  ;;  %14988 = vmatpush.xpose.msrb.mxu1 %v1155_v22  ;;  %v1166_v22 = vld [vmem:[%s20307_s9 + $0x10c0] sm:$0xff] }
 0x468   : > { %v13651_v37 = vadd.f32 %v13650_v34, %v13631_v33  ;;  %v1941_v34 = vld [vmem:[%s20307_s9 + $0x28f8] sm:$0x3] }
 0x46a   : > { %15087 = vmatpush.xpose.msra.mxu2 %v1928_v15  ;;  %15047 = vmatpush.xpose.msra.mxu0 %v1926_v44  ;;  %v13671_v25 = vadd.f32 %v13670_v27, %v13651_v37  ;;  %v13690_v32 = vpop.f32.mrf.mxu0  ;;  %v13710_v31 = vpop.f32.mrf.mxu1  ;;  %v1167_v15 = vld [vmem:[%s20307_s9 + $0x10c8] sm:$0xff]  ;;  %v23198_v44 = vld.sshfl [vmem:[#allocation1 + $0x18] sm:$0xff pattern:$0x75316420] }
 0x46b   : > { %15107 = vmatpush.xpose.msra.mxu3 %v1929_v30  ;;  %15067 = vmatpush.xpose.msra.mxu1 %v1927_v21  ;;  %v523_v30 = vld [vmem:[%s20300_s7 + $0x8a8] sm:$0xff]  ;;  %v1940_v21 = vld [vmem:[%s20307_s9 + $0x28f0] sm:$0x3] }
 0x46c   : > { %v13691_v1 = vadd.f32 %v13690_v32, %v13671_v25  ;;  %15009 = vmatmul.f32.vlgmr.msrb.gmra.mxu2 %v23083_v51  ;;  %15029 = vmatmul.f32.vlgmr.msrb.gmra.mxu3 %v23086_v0  ;;  %v23166_v0 = vld.sshfl [vmem:[#allocation1] sm:$0xff pattern:$0x75316420]  ;;  %v23187_v8 = vld.sshfl [vmem:[#allocation1 + $0x28] sm:$0xff pattern:$0x75316420] }
 0x46d   : > { %14969 = vmatmul.f32.vlgmr.msrb.gmra.mxu0 %v23100_v54  ;;  %14989 = vmatmul.f32.vlgmr.msrb.gmra.mxu1 %v23102_v50  ;;  %v23168_v54 = vld.sshfl [vmem:[#allocation1 + $0x8] sm:$0xff pattern:$0x75316420]  ;;  %v23182_v9 = vld.sshfl [vmem:[#allocation1 + $0x20] sm:$0xff pattern:$0x75316420] }
 0x46e   : > { %v13711_v56 = vadd.f32 %v13710_v31, %v13691_v1  ;;  %15088 = vmatpush.xpose.msra.mxu2 %v1160_v36  ;;  %15048 = vmatpush.xpose.msra.mxu0 %v1158_v35  ;;  %3369 = vst [vmem:[#allocation1] ss:$2 sm:$0xff] %v518_v45  ;;  %v1939_v25 = vld [vmem:[%s20307_s9 + $0x28e8] sm:$0x3]  ;;  %v1173_v45 = vld [vmem:[%s20307_s9 + $0x10f8] sm:$0xff] }
 0x46f   : > { %v13730_v47 = vpop.f32.mrf.mxu2  ;;  %v13750_v51 = vpop.f32.mrf.mxu3  ;;  %15108 = vmatpush.xpose.msra.mxu3 %v1161_v39  ;;  %15068 = vmatpush.xpose.msra.mxu1 %v1159_v59  ;;  %3371 = vst [vmem:[#allocation1 + $0x20] ss:$2 sm:$0xff] %v520_v4  ;;  %v23215_v1 = vld.sshfl [vmem:[#allocation1 + $0x30] sm:$0xff pattern:$0x75316420]  ;;  %v1170_v39 = vld [vmem:[%s20307_s9 + $0x10e0] sm:$0xff] }
 0x470   : > { %v13731_v50 = vadd.f32 %v13730_v47, %v13711_v56  ;;  %3382 = vst [vmem:[#allocation1 + $0x10] ss:$2 sm:$0xff] %v523_v30  ;;  %v23218_v59 = vld.sshfl [vmem:[#allocation1 + $0x38] sm:$0xff pattern:$0x75316420]  ;;  %v1171_v56 = vld [vmem:[%s20307_s9 + $0x10e8] sm:$0xff] }
 0x471   : > { %v524_v47 = vld [vmem:[%s20300_s7 + $0x8b0] sm:$0xff]  ;;  %v527_v4 = vld [vmem:[%s20300_s7 + $0x8c8] sm:$0xff]  ;;  %v1181_v30 = vld [vmem:[%s20307_s9 + $0x1138] sm:$0xff] }
 0x472   : > { %15167 = vmatpush.xpose.msrb.mxu2 %v1932_v46  ;;  %15127 = vmatpush.xpose.msrb.mxu0 %v1930_v63  ;;  %v13751_v49 = vadd.f32 %v13750_v51, %v13731_v50  ;;  %v13770_v5 = vpop.f32.mrf.mxu0  ;;  %v13790_v52 = vpop.f32.mrf.mxu1  ;;  %v525_v46 = vld [vmem:[%s20300_s7 + $0x8b8] sm:$0xff] }
 0x473   : > { %15187 = vmatpush.xpose.msrb.mxu3 %v1933_v48  ;;  %15147 = vmatpush.xpose.msrb.mxu1 %v1931_v62  ;;  %3384 = vst [vmem:[#allocation1 + $0x30] ss:$2 sm:$0xff] %v525_v46  ;;  %v1944_v48 = vld [vmem:[%s20307_s9 + $0x2910] sm:$0x3]  ;;  %v1942_v62 = vld [vmem:[%s20307_s9 + $0x2900] sm:$0x3] }
 0x474   : > { %v13771_v10 = vadd.f32 %v13770_v5, %v13751_v49  ;;  %15089 = vmatmul.f32.vlgmr.msra.gmra.mxu2 %v23107_v14  ;;  %15109 = vmatmul.f32.vlgmr.msra.gmra.mxu3 %v23110_v60  ;;  %v1935_v14 = vld [vmem:[%s20307_s9 + $0x28c8] sm:$0x3]  ;;  %v1945_v50 = vld [vmem:[%s20307_s9 + $0x2918] sm:$0x3]  ;;  %v1176_v5 = vld [vmem:[%s20307_s9 + $0x1110] sm:$0xff] }
 0x475   : > { %15049 = vmatmul.f32.vlgmr.msra.gmra.mxu0 %v23116_v6  ;;  %15069 = vmatmul.f32.vlgmr.msra.gmra.mxu1 %v23121_v19  ;;  %v1168_v19 = vld [vmem:[%s20307_s9 + $0x10d0] sm:$0xff]  ;;  %v23208_v27 = vld.sshfl [vmem:[#allocation1] sm:$0xff pattern:$0x75316420] }
 0x476   : > { %v13791_v13 = vadd.f32 %v13790_v52, %v13771_v10  ;;  %15168 = vmatpush.xpose.msrb.mxu2 %v1164_v3  ;;  %15128 = vmatpush.xpose.msrb.mxu0 %v1162_v7  ;;  %v23211_v32 = vld.sshfl [vmem:[#allocation1 + $0x8] sm:$0xff pattern:$0x75316420]  ;;  %v1943_v3 = vld [vmem:[%s20307_s9 + $0x2908] sm:$0x3]  ;;  %v1184_v46 = vld [vmem:[%s20307_s9 + $0x1150] sm:$0xff] }
 0x477   : > { %v13810_v60 = vpop.f32.mrf.mxu2  ;;  %v13830_v11 = vpop.f32.mrf.mxu3  ;;  %15188 = vmatpush.xpose.msrb.mxu3 %v1165_v57  ;;  %15148 = vmatpush.xpose.msrb.mxu1 %v1163_v17  ;;  %v23239_v10 = vld.sshfl [vmem:[#allocation1 + $0x10] sm:$0xff pattern:$0x75316420]  ;;  %v1948_v17 = vld [vmem:[%s20307_s9 + $0x2930] sm:$0x3] }
 0x478   : > { %v13811_v6 = vadd.f32 %v13810_v60, %v13791_v13  ;;  %v1946_v60 = vld [vmem:[%s20307_s9 + $0x2920] sm:$0x3] }
 0x47a   : > { %15247 = vmatpush.xpose.msra.mxu2 %v1936_v12  ;;  %15207 = vmatpush.xpose.msra.mxu0 %v1934_v53  ;;  %v13831_v18 = vadd.f32 %v13830_v11, %v13811_v6  ;;  %v13850_v16 = vpop.f32.mrf.mxu0  ;;  %v13870_v24 = vpop.f32.mrf.mxu1  ;;  %v1174_v12 = vld [vmem:[%s20307_s9 + $0x1100] sm:$0xff]  ;;  %v23242_v53 = vld.sshfl [vmem:[#allocation1 + $0x18] sm:$0xff pattern:$0x75316420] }
 0x47b   : > { %15267 = vmatpush.xpose.msra.mxu3 %v1937_v23  ;;  %15227 = vmatpush.xpose.msra.mxu1 %v1935_v14  ;;  %v1175_v23 = vld [vmem:[%s20307_s9 + $0x1108] sm:$0xff]  ;;  %3394 = vst [vmem:[#allocation1 + $0x10] ss:$2 sm:$0xff] %v527_v4  ;;  %v526_v6 = vld [vmem:[%s20300_s7 + $0x8c0] sm:$0xff]  ;;  %v1189_v4 = vld [vmem:[%s20307_s9 + $0x1178] sm:$0xff] }
 0x47c   : > { %v13851_v33 = vadd.f32 %v13850_v16, %v13831_v18  ;;  %15169 = vmatmul.f32.vlgmr.msrb.gmra.mxu2 %v23129_v42  ;;  %15189 = vmatmul.f32.vlgmr.msrb.gmra.mxu3 %v23132_v38  ;;  %v522_v42 = vld [vmem:[%s20300_s7 + $0x8a0] sm:$0xff]  ;;  %v1949_v18 = vld [vmem:[%s20307_s9 + $0x2938] sm:$0x3] }
 0x47d   : > { %15129 = vmatmul.f32.vlgmr.msrb.gmra.mxu0 %v23142_v40  ;;  %15149 = vmatmul.f32.vlgmr.msrb.gmra.mxu1 %v23145_v28  ;;  %3381 = vst [vmem:[#allocation1] ss:$2 sm:$0xff] %v522_v42  ;;  %v1950_v42 = vld [vmem:[%s20307_s9 + $0x2940] sm:$0x3] }
 0x47e   : > { %v13871_v37 = vadd.f32 %v13870_v24, %v13851_v33  ;;  %15248 = vmatpush.xpose.msra.mxu2 %v1168_v19  ;;  %15208 = vmatpush.xpose.msra.mxu0 %v1166_v22  ;;  %v23261_v33 = vld.sshfl [vmem:[#allocation1 + $0x30] sm:$0xff pattern:$0x75316420] }
 0x47f   : > { %v13890_v38 = vpop.f32.mrf.mxu2  ;;  %v13910_v31 = vpop.f32.mrf.mxu3  ;;  %15268 = vmatpush.xpose.msra.mxu3 %v1169_v26  ;;  %15228 = vmatpush.xpose.msra.mxu1 %v1167_v15  ;;  %v1178_v15 = vld [vmem:[%s20307_s9 + $0x1120] sm:$0xff] }
 0x480   : > { %v13891_v40 = vadd.f32 %v13890_v38, %v13871_v37  ;;  %v1953_v38 = vld [vmem:[%s20307_s9 + $0x2958] sm:$0x3] }
 0x482   : > { %15327 = vmatpush.xpose.msrb.mxu2 %v1940_v21  ;;  %15287 = vmatpush.xpose.msrb.mxu0 %v1938_v43  ;;  %v13911_v28 = vadd.f32 %v13910_v31, %v13891_v40  ;;  %v13930_v36 = vpop.f32.mrf.mxu0  ;;  %v13950_v35 = vpop.f32.mrf.mxu1  ;;  %v1179_v21 = vld [vmem:[%s20307_s9 + $0x1128] sm:$0xff]  ;;  %v23264_v43 = vld.sshfl [vmem:[#allocation1 + $0x38] sm:$0xff pattern:$0x75316420] }
 0x483   : > { %15347 = vmatpush.xpose.msrb.mxu3 %v1941_v34  ;;  %15307 = vmatpush.xpose.msrb.mxu1 %v1939_v25  ;;  %v529_v34 = vld [vmem:[%s20300_s7 + $0x8d8] sm:$0xff]  ;;  %v1952_v25 = vld [vmem:[%s20307_s9 + $0x2950] sm:$0x3] }
 0x484   : > { %v13931_v63 = vadd.f32 %v13930_v36, %v13911_v28  ;;  %15249 = vmatmul.f32.vlgmr.msra.gmra.mxu2 %v23149_v55  ;;  %15269 = vmatmul.f32.vlgmr.msra.gmra.mxu3 %v23152_v61  ;;  %v23232_v61 = vld.sshfl [vmem:[#allocation1 + $0x20] sm:$0xff pattern:$0x75316420]  ;;  %v23253_v11 = vld.sshfl [vmem:[#allocation1 + $0x8] sm:$0xff pattern:$0x75316420] }
 0x485   : > { %15209 = vmatmul.f32.vlgmr.msra.gmra.mxu0 %v23166_v0  ;;  %15229 = vmatmul.f32.vlgmr.msra.gmra.mxu1 %v23168_v54  ;;  %v23234_v0 = vld.sshfl [vmem:[#allocation1 + $0x28] sm:$0xff pattern:$0x75316420]  ;;  %v23248_v14 = vld.sshfl [vmem:[#allocation1] sm:$0xff pattern:$0x75316420] }
 0x486   : > { %v13951_v51 = vadd.f32 %v13950_v35, %v13931_v63  ;;  %15328 = vmatpush.xpose.msrb.mxu2 %v1172_v41  ;;  %15288 = vmatpush.xpose.msrb.mxu0 %v1170_v39  ;;  %3383 = vst [vmem:[#allocation1 + $0x20] ss:$2 sm:$0xff] %v524_v47  ;;  %v1951_v28 = vld [vmem:[%s20307_s9 + $0x2948] sm:$0x3]  ;;  %v1185_v47 = vld [vmem:[%s20307_s9 + $0x1158] sm:$0xff] }
 0x487   : > { %v13970_v49 = vpop.f32.mrf.mxu2  ;;  %v13990_v55 = vpop.f32.mrf.mxu3  ;;  %15348 = vmatpush.xpose.msrb.mxu3 %v1173_v45  ;;  %15308 = vmatpush.xpose.msrb.mxu1 %v1171_v56  ;;  %3393 = vst [vmem:[#allocation1] ss:$2 sm:$0xff] %v526_v6  ;;  %v23281_v63 = vld.sshfl [vmem:[#allocation1 + $0x10] sm:$0xff pattern:$0x75316420]  ;;  %v1182_v45 = vld [vmem:[%s20307_s9 + $0x1140] sm:$0xff] }
 0x488   : > { %v13971_v54 = vadd.f32 %v13970_v49, %v13951_v51  ;;  %3396 = vst [vmem:[#allocation1 + $0x30] ss:$2 sm:$0xff] %v529_v34  ;;  %v23284_v56 = vld.sshfl [vmem:[#allocation1 + $0x18] sm:$0xff pattern:$0x75316420]  ;;  %v1183_v51 = vld [vmem:[%s20307_s9 + $0x1148] sm:$0xff] }
 0x489   : > { %v530_v49 = vld [vmem:[%s20300_s7 + $0x8e0] sm:$0xff]  ;;  %v533_v6 = vld [vmem:[%s20300_s7 + $0x8f8] sm:$0xff] }
 0x48a   : > { %15407 = vmatpush.xpose.msra.mxu2 %v1944_v48  ;;  %15367 = vmatpush.xpose.msra.mxu0 %v1942_v62  ;;  %v13991_v52 = vadd.f32 %v13990_v55, %v13971_v54  ;;  %v14010_v7 = vpop.f32.mrf.mxu0  ;;  %v14030_v57 = vpop.f32.mrf.mxu1  ;;  %v531_v48 = vld [vmem:[%s20300_s7 + $0x8e8] sm:$0xff]  ;;  %v1957_v54 = vld [vmem:[%s20307_s9 + $0x2978] sm:$0x3] }
 0x48b   : > { %15427 = vmatpush.xpose.msra.mxu3 %v1945_v50  ;;  %15387 = vmatpush.xpose.msra.mxu1 %v1943_v3  ;;  %3406 = vst [vmem:[#allocation1 + $0x10] ss:$2 sm:$0xff] %v531_v48  ;;  %v1956_v50 = vld [vmem:[%s20307_s9 + $0x2970] sm:$0x3]  ;;  %v1954_v3 = vld [vmem:[%s20307_s9 + $0x2960] sm:$0x3] }
 0x48c   : > { %v14011_v13 = vadd.f32 %v14010_v7, %v13991_v52  ;;  %15329 = vmatmul.f32.vlgmr.msrb.gmra.mxu2 %v23173_v20  ;;  %15349 = vmatmul.f32.vlgmr.msrb.gmra.mxu3 %v23176_v58  ;;  %v1947_v20 = vld [vmem:[%s20307_s9 + $0x2928] sm:$0x3]  ;;  %v1188_v7 = vld [vmem:[%s20307_s9 + $0x1170] sm:$0xff]  ;;  %v1193_v34 = vld [vmem:[%s20307_s9 + $0x1198] sm:$0xff] }
 0x48d   : > { %15289 = vmatmul.f32.vlgmr.msrb.gmra.mxu0 %v23182_v9  ;;  %15309 = vmatmul.f32.vlgmr.msrb.gmra.mxu1 %v23187_v8  ;;  %v1180_v8 = vld [vmem:[%s20307_s9 + $0x1130] sm:$0xff]  ;;  %v23274_v31 = vld.sshfl [vmem:[#allocation1 + $0x20] sm:$0xff pattern:$0x75316420] }
 0x48e   : > { %v14031_v19 = vadd.f32 %v14030_v57, %v14011_v13  ;;  %15408 = vmatpush.xpose.msra.mxu2 %v1176_v5  ;;  %15368 = vmatpush.xpose.msra.mxu0 %v1174_v12  ;;  %v23277_v36 = vld.sshfl [vmem:[#allocation1 + $0x28] sm:$0xff pattern:$0x75316420]  ;;  %v1955_v5 = vld [vmem:[%s20307_s9 + $0x2968] sm:$0x3]  ;;  %v1196_v48 = vld [vmem:[%s20307_s9 + $0x11b0] sm:$0xff] }
 0x48f   : > { %v14050_v58 = vpop.f32.mrf.mxu2  ;;  %v14070_v16 = vpop.f32.mrf.mxu3  ;;  %15428 = vmatpush.xpose.msra.mxu3 %v1177_v2  ;;  %15388 = vmatpush.xpose.msra.mxu1 %v1175_v23  ;;  %v23305_v13 = vld.sshfl [vmem:[#allocation1 + $0x30] sm:$0xff pattern:$0x75316420]  ;;  %v1960_v23 = vld [vmem:[%s20307_s9 + $0x2990] sm:$0x3] }
 0x490   : > { %v14051_v9 = vadd.f32 %v14050_v58, %v14031_v19  ;;  %v1958_v58 = vld [vmem:[%s20307_s9 + $0x2980] sm:$0x3] }
 0x492   : > { %15487 = vmatpush.xpose.msrb.mxu2 %v1948_v17  ;;  %15447 = vmatpush.xpose.msrb.mxu0 %v1946_v60  ;;  %v14071_v24 = vadd.f32 %v14070_v16, %v14051_v9  ;;  %v14090_v22 = vpop.f32.mrf.mxu0  ;;  %v14110_v26 = vpop.f32.mrf.mxu1  ;;  %v1186_v17 = vld [vmem:[%s20307_s9 + $0x1160] sm:$0xff]  ;;  %v23308_v60 = vld.sshfl [vmem:[#allocation1 + $0x38] sm:$0xff pattern:$0x75316420] }
 0x493   : > { %15507 = vmatpush.xpose.msrb.mxu3 %v1949_v18  ;;  %15467 = vmatpush.xpose.msrb.mxu1 %v1947_v20  ;;  %v1187_v18 = vld [vmem:[%s20307_s9 + $0x1168] sm:$0xff]  ;;  %3408 = vst [vmem:[#allocation1 + $0x30] ss:$2 sm:$0xff] %v533_v6  ;;  %v532_v9 = vld [vmem:[%s20300_s7 + $0x8f0] sm:$0xff]  ;;  %v1201_v6 = vld [vmem:[%s20307_s9 + $0x11d8] sm:$0xff] }
 0x494   : > { %v14091_v37 = vadd.f32 %v14090_v22, %v14071_v24  ;;  %15409 = vmatmul.f32.vlgmr.msra.gmra.mxu2 %v23195_v29  ;;  %15429 = vmatmul.f32.vlgmr.msra.gmra.mxu3 %v23198_v44  ;;  %v528_v29 = vld [vmem:[%s20300_s7 + $0x8d0] sm:$0xff]  ;;  %v1961_v24 = vld [vmem:[%s20307_s9 + $0x2998] sm:$0x3] }
 0x495   : > { %15369 = vmatmul.f32.vlgmr.msra.gmra.mxu0 %v23208_v27  ;;  %15389 = vmatmul.f32.vlgmr.msra.gmra.mxu1 %v23211_v32  ;;  %3395 = vst [vmem:[#allocation1 + $0x20] ss:$2 sm:$0xff] %v528_v29  ;;  %v1962_v29 = vld [vmem:[%s20307_s9 + $0x29a0] sm:$0x3] }
 0x496   : > { %v14111_v40 = vadd.f32 %v14110_v26, %v14091_v37  ;;  %15488 = vmatpush.xpose.msrb.mxu2 %v1180_v8  ;;  %15448 = vmatpush.xpose.msrb.mxu0 %v1178_v15  ;;  %v23327_v37 = vld.sshfl [vmem:[#allocation1 + $0x10] sm:$0xff pattern:$0x75316420] }
 0x497   : > { %v14130_v44 = vpop.f32.mrf.mxu2  ;;  %v14150_v35 = vpop.f32.mrf.mxu3  ;;  %15508 = vmatpush.xpose.msrb.mxu3 %v1181_v30  ;;  %15468 = vmatpush.xpose.msrb.mxu1 %v1179_v21  ;;  %v1190_v21 = vld [vmem:[%s20307_s9 + $0x1180] sm:$0xff] }
 0x498   : > { %v14131_v27 = vadd.f32 %v14130_v44, %v14111_v40  ;;  %v1965_v44 = vld [vmem:[%s20307_s9 + $0x29b8] sm:$0x3] }
 0x49a   : > { %15567 = vmatpush.xpose.msra.mxu2 %v1952_v25  ;;  %15527 = vmatpush.xpose.msra.mxu0 %v1950_v42  ;;  %v14151_v32 = vadd.f32 %v14150_v35, %v14131_v27  ;;  %v14170_v41 = vpop.f32.mrf.mxu0  ;;  %v14190_v39 = vpop.f32.mrf.mxu1  ;;  %v1191_v25 = vld [vmem:[%s20307_s9 + $0x1188] sm:$0xff]  ;;  %v23330_v42 = vld.sshfl [vmem:[#allocation1 + $0x18] sm:$0xff pattern:$0x75316420] }
 0x49b   : > { %15587 = vmatpush.xpose.msra.mxu3 %v1953_v38  ;;  %15547 = vmatpush.xpose.msra.mxu1 %v1951_v28  ;;  %v535_v38 = vld [vmem:[%s20300_s7 + $0x908] sm:$0xff]  ;;  %v1964_v28 = vld [vmem:[%s20307_s9 + $0x29b0] sm:$0x3] }
 0x49c   : > { %v14171_v62 = vadd.f32 %v14170_v41, %v14151_v32  ;;  %15489 = vmatmul.f32.vlgmr.msrb.gmra.mxu2 %v23215_v1  ;;  %15509 = vmatmul.f32.vlgmr.msrb.gmra.mxu3 %v23218_v59  ;;  %v23298_v59 = vld.sshfl [vmem:[#allocation1] sm:$0xff pattern:$0x75316420]  ;;  %v23319_v16 = vld.sshfl [vmem:[#allocation1 + $0x28] sm:$0xff pattern:$0x75316420] }
 0x49d   : > { %15449 = vmatmul.f32.vlgmr.msrb.gmra.mxu0 %v23232_v61  ;;  %15469 = vmatmul.f32.vlgmr.msrb.gmra.mxu1 %v23234_v0  ;;  %v23300_v61 = vld.sshfl [vmem:[#allocation1 + $0x8] sm:$0xff pattern:$0x75316420]  ;;  %v23314_v20 = vld.sshfl [vmem:[#allocation1 + $0x20] sm:$0xff pattern:$0x75316420] }
 0x49e   : > { %v14191_v55 = vadd.f32 %v14190_v39, %v14171_v62  ;;  %15568 = vmatpush.xpose.msra.mxu2 %v1184_v46  ;;  %15528 = vmatpush.xpose.msra.mxu0 %v1182_v45  ;;  %3405 = vst [vmem:[#allocation1] ss:$2 sm:$0xff] %v530_v49  ;;  %v1963_v32 = vld [vmem:[%s20307_s9 + $0x29a8] sm:$0x3]  ;;  %v1197_v49 = vld [vmem:[%s20307_s9 + $0x11b8] sm:$0xff] }
 0x49f   : > { %v14210_v52 = vpop.f32.mrf.mxu2  ;;  %v14230_v1 = vpop.f32.mrf.mxu3  ;;  %15588 = vmatpush.xpose.msra.mxu3 %v1185_v47  ;;  %15548 = vmatpush.xpose.msra.mxu1 %v1183_v51  ;;  %3407 = vst [vmem:[#allocation1 + $0x20] ss:$2 sm:$0xff] %v532_v9  ;;  %v23347_v62 = vld.sshfl [vmem:[#allocation1 + $0x30] sm:$0xff pattern:$0x75316420]  ;;  %v1194_v47 = vld [vmem:[%s20307_s9 + $0x11a0] sm:$0xff] }
 0x4a0   : > { %v14211_v0 = vadd.f32 %v14210_v52, %v14191_v55  ;;  %3418 = vst [vmem:[#allocation1 + $0x10] ss:$2 sm:$0xff] %v535_v38  ;;  %v23350_v51 = vld.sshfl [vmem:[#allocation1 + $0x38] sm:$0xff pattern:$0x75316420]  ;;  %v1195_v55 = vld [vmem:[%s20307_s9 + $0x11a8] sm:$0xff] }
 0x4a1   : > { %v536_v52 = vld [vmem:[%s20300_s7 + $0x910] sm:$0xff]  ;;  %v539_v9 = vld [vmem:[%s20300_s7 + $0x928] sm:$0xff]  ;;  %v1205_v38 = vld [vmem:[%s20307_s9 + $0x11f8] sm:$0xff] }
 0x4a2   : > { %15647 = vmatpush.xpose.msrb.mxu2 %v1956_v50  ;;  %15607 = vmatpush.xpose.msrb.mxu0 %v1954_v3  ;;  %v14231_v57 = vadd.f32 %v14230_v1, %v14211_v0  ;;  %v14250_v12 = vpop.f32.mrf.mxu0  ;;  %v14270_v2 = vpop.f32.mrf.mxu1  ;;  %v537_v50 = vld [vmem:[%s20300_s7 + $0x918] sm:$0xff] }
 0x4a3   : > { %15667 = vmatpush.xpose.msrb.mxu3 %v1957_v54  ;;  %15627 = vmatpush.xpose.msrb.mxu1 %v1955_v5  ;;  %3420 = vst [vmem:[#allocation1 + $0x30] ss:$2 sm:$0xff] %v537_v50  ;;  %v1968_v54 = vld [vmem:[%s20307_s9 + $0x29d0] sm:$0x3]  ;;  %v1966_v5 = vld [vmem:[%s20307_s9 + $0x29c0] sm:$0x3] }
 0x4a4   : > { %v14251_v19 = vadd.f32 %v14250_v12, %v14231_v57  ;;  %15569 = vmatmul.f32.vlgmr.msra.gmra.mxu2 %v23239_v10  ;;  %15589 = vmatmul.f32.vlgmr.msra.gmra.mxu3 %v23242_v53  ;;  %v1959_v10 = vld [vmem:[%s20307_s9 + $0x2988] sm:$0x3]  ;;  %v1969_v0 = vld [vmem:[%s20307_s9 + $0x29d8] sm:$0x3]  ;;  %v1200_v12 = vld [vmem:[%s20307_s9 + $0x11d0] sm:$0xff] }
 0x4a5   : > { %15529 = vmatmul.f32.vlgmr.msra.gmra.mxu0 %v23248_v14  ;;  %15549 = vmatmul.f32.vlgmr.msra.gmra.mxu1 %v23253_v11  ;;  %v1192_v11 = vld [vmem:[%s20307_s9 + $0x1190] sm:$0xff]  ;;  %v23340_v35 = vld.sshfl [vmem:[#allocation1] sm:$0xff pattern:$0x75316420] }
 0x4a6   : > { %v14271_v8 = vadd.f32 %v14270_v2, %v14251_v19  ;;  %15648 = vmatpush.xpose.msrb.mxu2 %v1188_v7  ;;  %15608 = vmatpush.xpose.msrb.mxu0 %v1186_v17  ;;  %v23343_v41 = vld.sshfl [vmem:[#allocation1 + $0x8] sm:$0xff pattern:$0x75316420]  ;;  %v1967_v7 = vld [vmem:[%s20307_s9 + $0x29c8] sm:$0x3]  ;;  %v1208_v50 = vld [vmem:[%s20307_s9 + $0x1210] sm:$0xff] }
 0x4a7   : > { %v14290_v53 = vpop.f32.mrf.mxu2  ;;  %v14310_v22 = vpop.f32.mrf.mxu3  ;;  %15668 = vmatpush.xpose.msrb.mxu3 %v1189_v4  ;;  %15628 = vmatpush.xpose.msrb.mxu1 %v1187_v18  ;;  %v23371_v19 = vld.sshfl [vmem:[#allocation1 + $0x10] sm:$0xff pattern:$0x75316420]  ;;  %v1972_v18 = vld [vmem:[%s20307_s9 + $0x29f0] sm:$0x3] }
 0x4a8   : > { %v14291_v14 = vadd.f32 %v14290_v53, %v14271_v8  ;;  %v1970_v53 = vld [vmem:[%s20307_s9 + $0x29e0] sm:$0x3] }
 0x4aa   : > { %15727 = vmatpush.xpose.msra.mxu2 %v1960_v23  ;;  %15687 = vmatpush.xpose.msra.mxu0 %v1958_v58  ;;  %v14311_v26 = vadd.f32 %v14310_v22, %v14291_v14  ;;  %v14330_v15 = vpop.f32.mrf.mxu0  ;;  %v14350_v30 = vpop.f32.mrf.mxu1  ;;  %v1198_v23 = vld [vmem:[%s20307_s9 + $0x11c0] sm:$0xff]  ;;  %v23374_v58 = vld.sshfl [vmem:[#allocation1 + $0x18] sm:$0xff pattern:$0x75316420] }
 0x4ab   : > { %15747 = vmatpush.xpose.msra.mxu3 %v1961_v24  ;;  %15707 = vmatpush.xpose.msra.mxu1 %v1959_v10  ;;  %v1199_v24 = vld [vmem:[%s20307_s9 + $0x11c8] sm:$0xff]  ;;  %3430 = vst [vmem:[#allocation1 + $0x10] ss:$2 sm:$0xff] %v539_v9  ;;  %v538_v14 = vld [vmem:[%s20300_s7 + $0x920] sm:$0xff]  ;;  %v1213_v9 = vld [vmem:[%s20307_s9 + $0x1238] sm:$0xff] }
 0x4ac   : > { %v14331_v40 = vadd.f32 %v14330_v15, %v14311_v26  ;;  %15649 = vmatmul.f32.vlgmr.msrb.gmra.mxu2 %v23261_v33  ;;  %15669 = vmatmul.f32.vlgmr.msrb.gmra.mxu3 %v23264_v43  ;;  %v534_v33 = vld [vmem:[%s20300_s7 + $0x900] sm:$0xff]  ;;  %v1973_v26 = vld [vmem:[%s20307_s9 + $0x29f8] sm:$0x3] }
 0x4ad   : > { %15609 = vmatmul.f32.vlgmr.msrb.gmra.mxu0 %v23274_v31  ;;  %15629 = vmatmul.f32.vlgmr.msrb.gmra.mxu1 %v23277_v36  ;;  %3417 = vst [vmem:[#allocation1] ss:$2 sm:$0xff] %v534_v33  ;;  %v1974_v33 = vld [vmem:[%s20307_s9 + $0x2a00] sm:$0x3] }
 0x4ae   : > { %v14351_v27 = vadd.f32 %v14350_v30, %v14331_v40  ;;  %15728 = vmatpush.xpose.msra.mxu2 %v1192_v11  ;;  %15688 = vmatpush.xpose.msra.mxu0 %v1190_v21  ;;  %v23393_v40 = vld.sshfl [vmem:[#allocation1 + $0x30] sm:$0xff pattern:$0x75316420] }
 0x4af   : > { %v14370_v43 = vpop.f32.mrf.mxu2  ;;  %v14390_v39 = vpop.f32.mrf.mxu3  ;;  %15748 = vmatpush.xpose.msra.mxu3 %v1193_v34  ;;  %15708 = vmatpush.xpose.msra.mxu1 %v1191_v25  ;;  %v1202_v25 = vld [vmem:[%s20307_s9 + $0x11e0] sm:$0xff] }
 0x4b0   : > { %v14371_v31 = vadd.f32 %v14370_v43, %v14351_v27  ;;  %v1977_v43 = vld [vmem:[%s20307_s9 + $0x2a18] sm:$0x3] }
 0x4b2   : > { %15807 = vmatpush.xpose.msrb.mxu2 %v1964_v28  ;;  %15767 = vmatpush.xpose.msrb.mxu0 %v1962_v29  ;;  %v14391_v36 = vadd.f32 %v14390_v39, %v14371_v31  ;;  %v14410_v46 = vpop.f32.mrf.mxu0  ;;  %v14430_v45 = vpop.f32.mrf.mxu1  ;;  %v1203_v28 = vld [vmem:[%s20307_s9 + $0x11e8] sm:$0xff]  ;;  %v23396_v29 = vld.sshfl [vmem:[#allocation1 + $0x38] sm:$0xff pattern:$0x75316420] }
 0x4b3   : > { %15827 = vmatpush.xpose.msrb.mxu3 %v1965_v44  ;;  %15787 = vmatpush.xpose.msrb.mxu1 %v1963_v32  ;;  %v541_v44 = vld [vmem:[%s20300_s7 + $0x938] sm:$0xff]  ;;  %v1976_v32 = vld [vmem:[%s20307_s9 + $0x2a10] sm:$0x3] }
 0x4b4   : > { %v14411_v3 = vadd.f32 %v14410_v46, %v14391_v36  ;;  %15729 = vmatmul.f32.vlgmr.msra.gmra.mxu2 %v23281_v63  ;;  %15749 = vmatmul.f32.vlgmr.msra.gmra.mxu3 %v23284_v56  ;;  %v23364_v56 = vld.sshfl [vmem:[#allocation1 + $0x20] sm:$0xff pattern:$0x75316420]  ;;  %v23385_v22 = vld.sshfl [vmem:[#allocation1 + $0x8] sm:$0xff pattern:$0x75316420] }
 0x4b5   : > { %15689 = vmatmul.f32.vlgmr.msra.gmra.mxu0 %v23298_v59  ;;  %15709 = vmatmul.f32.vlgmr.msra.gmra.mxu1 %v23300_v61  ;;  %v23366_v59 = vld.sshfl [vmem:[#allocation1 + $0x28] sm:$0xff pattern:$0x75316420]  ;;  %v23380_v10 = vld.sshfl [vmem:[#allocation1] sm:$0xff pattern:$0x75316420] }
 0x4b6   : > { %v14431_v1 = vadd.f32 %v14430_v45, %v14411_v3  ;;  %15808 = vmatpush.xpose.msrb.mxu2 %v1196_v48  ;;  %15768 = vmatpush.xpose.msrb.mxu0 %v1194_v47  ;;  %3419 = vst [vmem:[#allocation1 + $0x20] ss:$2 sm:$0xff] %v536_v52  ;;  %v1975_v36 = vld [vmem:[%s20307_s9 + $0x2a08] sm:$0x3]  ;;  %v1209_v52 = vld [vmem:[%s20307_s9 + $0x1218] sm:$0xff] }
 0x4b7   : > { %v14450_v57 = vpop.f32.mrf.mxu2  ;;  %v14470_v63 = vpop.f32.mrf.mxu3  ;;  %15828 = vmatpush.xpose.msrb.mxu3 %v1197_v49  ;;  %15788 = vmatpush.xpose.msrb.mxu1 %v1195_v55  ;;  %3429 = vst [vmem:[#allocation1] ss:$2 sm:$0xff] %v538_v14  ;;  %v23413_v3 = vld.sshfl [vmem:[#allocation1 + $0x10] sm:$0xff pattern:$0x75316420]  ;;  %v1206_v49 = vld [vmem:[%s20307_s9 + $0x1200] sm:$0xff] }
 0x4b8   : > { %v14451_v61 = vadd.f32 %v14450_v57, %v14431_v1  ;;  %3432 = vst [vmem:[#allocation1 + $0x30] ss:$2 sm:$0xff] %v541_v44  ;;  %v23416_v55 = vld.sshfl [vmem:[#allocation1 + $0x18] sm:$0xff pattern:$0x75316420]  ;;  %v1207_v1 = vld [vmem:[%s20307_s9 + $0x1208] sm:$0xff] }
 0x4b9   : > { %v542_v57 = vld [vmem:[%s20300_s7 + $0x940] sm:$0xff]  ;;  %v545_v14 = vld [vmem:[%s20300_s7 + $0x958] sm:$0xff] }
 0x4ba   : > { %15887 = vmatpush.xpose.msra.mxu2 %v1968_v54  ;;  %15847 = vmatpush.xpose.msra.mxu0 %v1966_v5  ;;  %v14471_v2 = vadd.f32 %v14470_v63, %v14451_v61  ;;  %v14490_v17 = vpop.f32.mrf.mxu0  ;;  %v14510_v4 = vpop.f32.mrf.mxu1  ;;  %v543_v54 = vld [vmem:[%s20300_s7 + $0x948] sm:$0xff]  ;;  %v1981_v61 = vld [vmem:[%s20307_s9 + $0x2a38] sm:$0x3] }
 0x4bb   : > { %15907 = vmatpush.xpose.msra.mxu3 %v1969_v0  ;;  %15867 = vmatpush.xpose.msra.mxu1 %v1967_v7  ;;  %3442 = vst [vmem:[#allocation1 + $0x10] ss:$2 sm:$0xff] %v543_v54  ;;  %v1980_v0 = vld [vmem:[%s20307_s9 + $0x2a30] sm:$0x3]  ;;  %v1978_v7 = vld [vmem:[%s20307_s9 + $0x2a20] sm:$0x3] }
 0x4bc   : > { %v14491_v8 = vadd.f32 %v14490_v17, %v14471_v2  ;;  %15809 = vmatmul.f32.vlgmr.msrb.gmra.mxu2 %v23305_v13  ;;  %15829 = vmatmul.f32.vlgmr.msrb.gmra.mxu3 %v23308_v60  ;;  %v1971_v13 = vld [vmem:[%s20307_s9 + $0x29e8] sm:$0x3]  ;;  %v1212_v17 = vld [vmem:[%s20307_s9 + $0x1230] sm:$0xff]  ;;  %v1217_v44 = vld [vmem:[%s20307_s9 + $0x1258] sm:$0xff] }
 0x4bd   : > { %15769 = vmatmul.f32.vlgmr.msrb.gmra.mxu0 %v23314_v20  ;;  %15789 = vmatmul.f32.vlgmr.msrb.gmra.mxu1 %v23319_v16  ;;  %v1204_v16 = vld [vmem:[%s20307_s9 + $0x11f0] sm:$0xff]  ;;  %v23406_v39 = vld.sshfl [vmem:[#allocation1 + $0x20] sm:$0xff pattern:$0x75316420] }
 0x4be   : > { %v14511_v11 = vadd.f32 %v14510_v4, %v14491_v8  ;;  %15888 = vmatpush.xpose.msra.mxu2 %v1200_v12  ;;  %15848 = vmatpush.xpose.msra.mxu0 %v1198_v23  ;;  %v23409_v46 = vld.sshfl [vmem:[#allocation1 + $0x28] sm:$0xff pattern:$0x75316420]  ;;  %v1979_v12 = vld [vmem:[%s20307_s9 + $0x2a28] sm:$0x3]  ;;  %v1220_v54 = vld [vmem:[%s20307_s9 + $0x1270] sm:$0xff] }
 0x4bf   : > { %v14530_v60 = vpop.f32.mrf.mxu2  ;;  %v14550_v15 = vpop.f32.mrf.mxu3  ;;  %15908 = vmatpush.xpose.msra.mxu3 %v1201_v6  ;;  %15868 = vmatpush.xpose.msra.mxu1 %v1199_v24  ;;  %v23437_v8 = vld.sshfl [vmem:[#allocation1 + $0x30] sm:$0xff pattern:$0x75316420]  ;;  %v1984_v24 = vld [vmem:[%s20307_s9 + $0x2a50] sm:$0x3] }
 0x4c0   : > { %v14531_v20 = vadd.f32 %v14530_v60, %v14511_v11  ;;  %v1982_v60 = vld [vmem:[%s20307_s9 + $0x2a40] sm:$0x3] }
 0x4c2   : > { %15967 = vmatpush.xpose.msrb.mxu2 %v1972_v18  ;;  %15927 = vmatpush.xpose.msrb.mxu0 %v1970_v53  ;;  %v14551_v30 = vadd.f32 %v14550_v15, %v14531_v20  ;;  %v14570_v21 = vpop.f32.mrf.mxu0  ;;  %v14590_v34 = vpop.f32.mrf.mxu1  ;;  %v1210_v18 = vld [vmem:[%s20307_s9 + $0x1220] sm:$0xff]  ;;  %v23440_v53 = vld.sshfl [vmem:[#allocation1 + $0x38] sm:$0xff pattern:$0x75316420] }
 0x4c3   : > { %15987 = vmatpush.xpose.msrb.mxu3 %v1973_v26  ;;  %15947 = vmatpush.xpose.msrb.mxu1 %v1971_v13  ;;  %v1211_v26 = vld [vmem:[%s20307_s9 + $0x1228] sm:$0xff]  ;;  %3444 = vst [vmem:[#allocation1 + $0x30] ss:$2 sm:$0xff] %v545_v14  ;;  %v544_v20 = vld [vmem:[%s20300_s7 + $0x950] sm:$0xff]  ;;  %v1225_v14 = vld [vmem:[%s20307_s9 + $0x1298] sm:$0xff] }
 0x4c4   : > { %v14571_v27 = vadd.f32 %v14570_v21, %v14551_v30  ;;  %15889 = vmatmul.f32.vlgmr.msra.gmra.mxu2 %v23327_v37  ;;  %15909 = vmatmul.f32.vlgmr.msra.gmra.mxu3 %v23330_v42  ;;  %v540_v37 = vld [vmem:[%s20300_s7 + $0x930] sm:$0xff]  ;;  %v1985_v30 = vld [vmem:[%s20307_s9 + $0x2a58] sm:$0x3] }
 0x4c5   : > { %15849 = vmatmul.f32.vlgmr.msra.gmra.mxu0 %v23340_v35  ;;  %15869 = vmatmul.f32.vlgmr.msra.gmra.mxu1 %v23343_v41  ;;  %3431 = vst [vmem:[#allocation1 + $0x20] ss:$2 sm:$0xff] %v540_v37  ;;  %v1986_v37 = vld [vmem:[%s20307_s9 + $0x2a60] sm:$0x3] }
 0x4c6   : > { %v14591_v31 = vadd.f32 %v14590_v34, %v14571_v27  ;;  %15968 = vmatpush.xpose.msrb.mxu2 %v1204_v16  ;;  %15928 = vmatpush.xpose.msrb.mxu0 %v1202_v25  ;;  %v23459_v27 = vld.sshfl [vmem:[#allocation1 + $0x10] sm:$0xff pattern:$0x75316420] }
 0x4c7   : > { %v14610_v42 = vpop.f32.mrf.mxu2  ;;  %v14630_v45 = vpop.f32.mrf.mxu3  ;;  %15988 = vmatpush.xpose.msrb.mxu3 %v1205_v38  ;;  %15948 = vmatpush.xpose.msrb.mxu1 %v1203_v28  ;;  %v1214_v28 = vld [vmem:[%s20307_s9 + $0x1240] sm:$0xff] }
 0x4c8   : > { %v14611_v35 = vadd.f32 %v14610_v42, %v14591_v31  ;;  %v1989_v42 = vld [vmem:[%s20307_s9 + $0x2a78] sm:$0x3] }
 0x4ca   : > { %16047 = vmatpush.xpose.msra.mxu2 %v1976_v32  ;;  %16007 = vmatpush.xpose.msra.mxu0 %v1974_v33  ;;  %v14631_v41 = vadd.f32 %v14630_v45, %v14611_v35  ;;  %v14650_v48 = vpop.f32.mrf.mxu0  ;;  %v14670_v47 = vpop.f32.mrf.mxu1  ;;  %v1215_v32 = vld [vmem:[%s20307_s9 + $0x1248] sm:$0xff]  ;;  %v23462_v33 = vld.sshfl [vmem:[#allocation1 + $0x18] sm:$0xff pattern:$0x75316420] }
 0x4cb   : > { %16067 = vmatpush.xpose.msra.mxu3 %v1977_v43  ;;  %16027 = vmatpush.xpose.msra.mxu1 %v1975_v36  ;;  %v547_v43 = vld [vmem:[%s20300_s7 + $0x968] sm:$0xff]  ;;  %v1988_v36 = vld [vmem:[%s20307_s9 + $0x2a70] sm:$0x3] }
 0x4cc   : > { %v14651_v5 = vadd.f32 %v14650_v48, %v14631_v41  ;;  %15969 = vmatmul.f32.vlgmr.msrb.gmra.mxu2 %v23347_v62  ;;  %15989 = vmatmul.f32.vlgmr.msrb.gmra.mxu3 %v23350_v51  ;;  %v23430_v51 = vld.sshfl [vmem:[#allocation1] sm:$0xff pattern:$0x75316420]  ;;  %v23451_v15 = vld.sshfl [vmem:[#allocation1 + $0x28] sm:$0xff pattern:$0x75316420] }
 0x4cd   : > { %15929 = vmatmul.f32.vlgmr.msrb.gmra.mxu0 %v23364_v56  ;;  %15949 = vmatmul.f32.vlgmr.msrb.gmra.mxu1 %v23366_v59  ;;  %v23432_v56 = vld.sshfl [vmem:[#allocation1 + $0x8] sm:$0xff pattern:$0x75316420]  ;;  %v23446_v13 = vld.sshfl [vmem:[#allocation1 + $0x20] sm:$0xff pattern:$0x75316420] }
 0x4ce   : > { %v14671_v63 = vadd.f32 %v14670_v47, %v14651_v5  ;;  %16048 = vmatpush.xpose.msra.mxu2 %v1208_v50  ;;  %16008 = vmatpush.xpose.msra.mxu0 %v1206_v49  ;;  %3441 = vst [vmem:[#allocation1] ss:$2 sm:$0xff] %v542_v57  ;;  %v1987_v41 = vld [vmem:[%s20307_s9 + $0x2a68] sm:$0x3]  ;;  %v1221_v57 = vld [vmem:[%s20307_s9 + $0x1278] sm:$0xff] }
 0x4cf   : > { %v14690_v2 = vpop.f32.mrf.mxu2  ;;  %v14710_v62 = vpop.f32.mrf.mxu3  ;;  %16068 = vmatpush.xpose.msra.mxu3 %v1209_v52  ;;  %16028 = vmatpush.xpose.msra.mxu1 %v1207_v1  ;;  %3443 = vst [vmem:[#allocation1 + $0x20] ss:$2 sm:$0xff] %v544_v20  ;;  %v23479_v5 = vld.sshfl [vmem:[#allocation1 + $0x30] sm:$0xff pattern:$0x75316420]  ;;  %v1218_v52 = vld [vmem:[%s20307_s9 + $0x1260] sm:$0xff] }
 0x4d0   : > { %v14691_v59 = vadd.f32 %v14690_v2, %v14671_v63  ;;  %3454 = vst [vmem:[#allocation1 + $0x10] ss:$2 sm:$0xff] %v547_v43  ;;  %v23482_v1 = vld.sshfl [vmem:[#allocation1 + $0x38] sm:$0xff pattern:$0x75316420]  ;;  %v1219_v63 = vld [vmem:[%s20307_s9 + $0x1268] sm:$0xff] }
 0x4d1   : > { %v548_v2 = vld [vmem:[%s20300_s7 + $0x970] sm:$0xff]  ;;  %v551_v20 = vld [vmem:[%s20300_s7 + $0x988] sm:$0xff]  ;;  %v1229_v43 = vld [vmem:[%s20307_s9 + $0x12b8] sm:$0xff] }
 0x4d2   : > { %16127 = vmatpush.xpose.msrb.mxu2 %v1980_v0  ;;  %16087 = vmatpush.xpose.msrb.mxu0 %v1978_v7  ;;  %v14711_v4 = vadd.f32 %v14710_v62, %v14691_v59  ;;  %v14730_v23 = vpop.f32.mrf.mxu0  ;;  %v14750_v6 = vpop.f32.mrf.mxu1  ;;  %v549_v0 = vld [vmem:[%s20300_s7 + $0x978] sm:$0xff] }
 0x4d3   : > { %16147 = vmatpush.xpose.msrb.mxu3 %v1981_v61  ;;  %16107 = vmatpush.xpose.msrb.mxu1 %v1979_v12  ;;  %3456 = vst [vmem:[#allocation1 + $0x30] ss:$2 sm:$0xff] %v549_v0  ;;  %v1992_v61 = vld [vmem:[%s20307_s9 + $0x2a90] sm:$0x3]  ;;  %v1990_v12 = vld [vmem:[%s20307_s9 + $0x2a80] sm:$0x3] }
 0x4d4   : > { %v14731_v11 = vadd.f32 %v14730_v23, %v14711_v4  ;;  %16049 = vmatmul.f32.vlgmr.msra.gmra.mxu2 %v23371_v19  ;;  %16069 = vmatmul.f32.vlgmr.msra.gmra.mxu3 %v23374_v58  ;;  %v1983_v19 = vld [vmem:[%s20307_s9 + $0x2a48] sm:$0x3]  ;;  %v1993_v59 = vld [vmem:[%s20307_s9 + $0x2a98] sm:$0x3]  ;;  %v1224_v23 = vld [vmem:[%s20307_s9 + $0x1290] sm:$0xff] }
 0x4d5   : > { %16009 = vmatmul.f32.vlgmr.msra.gmra.mxu0 %v23380_v10  ;;  %16029 = vmatmul.f32.vlgmr.msra.gmra.mxu1 %v23385_v22  ;;  %v1216_v22 = vld [vmem:[%s20307_s9 + $0x1250] sm:$0xff]  ;;  %v23472_v45 = vld.sshfl [vmem:[#allocation1] sm:$0xff pattern:$0x75316420] }
 0x4d6   : > { %v14751_v16 = vadd.f32 %v14750_v6, %v14731_v11  ;;  %16128 = vmatpush.xpose.msrb.mxu2 %v1212_v17  ;;  %16088 = vmatpush.xpose.msrb.mxu0 %v1210_v18  ;;  %v23475_v48 = vld.sshfl [vmem:[#allocation1 + $0x8] sm:$0xff pattern:$0x75316420]  ;;  %v1991_v17 = vld [vmem:[%s20307_s9 + $0x2a88] sm:$0x3]  ;;  %v1232_v0 = vld [vmem:[%s20307_s9 + $0x12d0] sm:$0xff] }
 0x4d7   : > { %v14770_v58 = vpop.f32.mrf.mxu2  ;;  %v14790_v21 = vpop.f32.mrf.mxu3  ;;  %16148 = vmatpush.xpose.msrb.mxu3 %v1213_v9  ;;  %16108 = vmatpush.xpose.msrb.mxu1 %v1211_v26  ;;  %v23503_v11 = vld.sshfl [vmem:[#allocation1 + $0x10] sm:$0xff pattern:$0x75316420]  ;;  %v1996_v26 = vld [vmem:[%s20307_s9 + $0x2ab0] sm:$0x3] }
 0x4d8   : > { %v14771_v10 = vadd.f32 %v14770_v58, %v14751_v16  ;;  %v1994_v58 = vld [vmem:[%s20307_s9 + $0x2aa0] sm:$0x3] }
 0x4da   : > { %16207 = vmatpush.xpose.msra.mxu2 %v1984_v24  ;;  %16167 = vmatpush.xpose.msra.mxu0 %v1982_v60  ;;  %v14791_v34 = vadd.f32 %v14790_v21, %v14771_v10  ;;  %v14810_v25 = vpop.f32.mrf.mxu0  ;;  %v14830_v38 = vpop.f32.mrf.mxu1  ;;  %v1222_v24 = vld [vmem:[%s20307_s9 + $0x1280] sm:$0xff]  ;;  %v23506_v60 = vld.sshfl [vmem:[#allocation1 + $0x18] sm:$0xff pattern:$0x75316420] }
 0x4db   : > { %16227 = vmatpush.xpose.msra.mxu3 %v1985_v30  ;;  %16187 = vmatpush.xpose.msra.mxu1 %v1983_v19  ;;  %v1223_v30 = vld [vmem:[%s20307_s9 + $0x1288] sm:$0xff]  ;;  %3466 = vst [vmem:[#allocation1 + $0x10] ss:$2 sm:$0xff] %v551_v20  ;;  %v550_v10 = vld [vmem:[%s20300_s7 + $0x980] sm:$0xff]  ;;  %v1237_v20 = vld [vmem:[%s20307_s9 + $0x12f8] sm:$0xff] }
 0x4dc   : > { %v14811_v31 = vadd.f32 %v14810_v25, %v14791_v34  ;;  %16129 = vmatmul.f32.vlgmr.msrb.gmra.mxu2 %v23393_v40  ;;  %16149 = vmatmul.f32.vlgmr.msrb.gmra.mxu3 %v23396_v29  ;;  %v546_v40 = vld [vmem:[%s20300_s7 + $0x960] sm:$0xff]  ;;  %v1997_v34 = vld [vmem:[%s20307_s9 + $0x2ab8] sm:$0x3] }
 0x4dd   : > { %16089 = vmatmul.f32.vlgmr.msrb.gmra.mxu0 %v23406_v39  ;;  %16109 = vmatmul.f32.vlgmr.msrb.gmra.mxu1 %v23409_v46  ;;  %3453 = vst [vmem:[#allocation1] ss:$2 sm:$0xff] %v546_v40  ;;  %v1998_v40 = vld [vmem:[%s20307_s9 + $0x2ac0] sm:$0x3] }
 0x4de   : > { %v14831_v35 = vadd.f32 %v14830_v38, %v14811_v31  ;;  %16208 = vmatpush.xpose.msra.mxu2 %v1216_v22  ;;  %16168 = vmatpush.xpose.msra.mxu0 %v1214_v28  ;;  %v23525_v31 = vld.sshfl [vmem:[#allocation1 + $0x30] sm:$0xff pattern:$0x75316420] }
 0x4df   : > { %v14850_v29 = vpop.f32.mrf.mxu2  ;;  %v14870_v47 = vpop.f32.mrf.mxu3  ;;  %16228 = vmatpush.xpose.msra.mxu3 %v1217_v44  ;;  %16188 = vmatpush.xpose.msra.mxu1 %v1215_v32  ;;  %v1226_v32 = vld [vmem:[%s20307_s9 + $0x12a0] sm:$0xff] }
 0x4e0   : > { %v14851_v39 = vadd.f32 %v14850_v29, %v14831_v35  ;;  %v2001_v29 = vld [vmem:[%s20307_s9 + $0x2ad8] sm:$0x3] }
 0x4e2   : > { %16287 = vmatpush.xpose.msrb.mxu2 %v1988_v36  ;;  %16247 = vmatpush.xpose.msrb.mxu0 %v1986_v37  ;;  %v14871_v46 = vadd.f32 %v14870_v47, %v14851_v39  ;;  %v14890_v50 = vpop.f32.mrf.mxu0  ;;  %v14910_v49 = vpop.f32.mrf.mxu1  ;;  %v1227_v36 = vld [vmem:[%s20307_s9 + $0x12a8] sm:$0xff]  ;;  %v23528_v37 = vld.sshfl [vmem:[#allocation1 + $0x38] sm:$0xff pattern:$0x75316420] }
 0x4e3   : > { %16307 = vmatpush.xpose.msrb.mxu3 %v1989_v42  ;;  %16267 = vmatpush.xpose.msrb.mxu1 %v1987_v41  ;;  %v553_v42 = vld [vmem:[%s20300_s7 + $0x998] sm:$0xff]  ;;  %v2000_v41 = vld [vmem:[%s20307_s9 + $0x2ad0] sm:$0x3] }
 0x4e4   : > { %v14891_v7 = vadd.f32 %v14890_v50, %v14871_v46  ;;  %16209 = vmatmul.f32.vlgmr.msra.gmra.mxu2 %v23413_v3  ;;  %16229 = vmatmul.f32.vlgmr.msra.gmra.mxu3 %v23416_v55  ;;  %v23496_v55 = vld.sshfl [vmem:[#allocation1 + $0x20] sm:$0xff pattern:$0x75316420]  ;;  %v23517_v21 = vld.sshfl [vmem:[#allocation1 + $0x8] sm:$0xff pattern:$0x75316420] }
 0x4e5   : > { %16169 = vmatmul.f32.vlgmr.msra.gmra.mxu0 %v23430_v51  ;;  %16189 = vmatmul.f32.vlgmr.msra.gmra.mxu1 %v23432_v56  ;;  %v23498_v51 = vld.sshfl [vmem:[#allocation1 + $0x28] sm:$0xff pattern:$0x75316420]  ;;  %v23512_v19 = vld.sshfl [vmem:[#allocation1] sm:$0xff pattern:$0x75316420] }
 0x4e6   : > { %v14911_v62 = vadd.f32 %v14910_v49, %v14891_v7  ;;  %16288 = vmatpush.xpose.msrb.mxu2 %v1220_v54  ;;  %16248 = vmatpush.xpose.msrb.mxu0 %v1218_v52  ;;  %3455 = vst [vmem:[#allocation1 + $0x20] ss:$2 sm:$0xff] %v548_v2  ;;  %v1999_v46 = vld [vmem:[%s20307_s9 + $0x2ac8] sm:$0x3]  ;;  %v1233_v2 = vld [vmem:[%s20307_s9 + $0x12d8] sm:$0xff] }
 0x4e7   : > { %v14930_v4 = vpop.f32.mrf.mxu2  ;;  %v14950_v3 = vpop.f32.mrf.mxu3  ;;  %16308 = vmatpush.xpose.msrb.mxu3 %v1221_v57  ;;  %16268 = vmatpush.xpose.msrb.mxu1 %v1219_v63  ;;  %3465 = vst [vmem:[#allocation1] ss:$2 sm:$0xff] %v550_v10  ;;  %v23545_v7 = vld.sshfl [vmem:[#allocation1 + $0x10] sm:$0xff pattern:$0x75316420]  ;;  %v1230_v57 = vld [vmem:[%s20307_s9 + $0x12c0] sm:$0xff] }
 0x4e8   : > { %v14931_v56 = vadd.f32 %v14930_v4, %v14911_v62  ;;  %3468 = vst [vmem:[#allocation1 + $0x30] ss:$2 sm:$0xff] %v553_v42  ;;  %v23548_v63 = vld.sshfl [vmem:[#allocation1 + $0x18] sm:$0xff pattern:$0x75316420]  ;;  %v1231_v62 = vld [vmem:[%s20307_s9 + $0x12c8] sm:$0xff] }
 0x4e9   : > { %v554_v4 = vld [vmem:[%s20300_s7 + $0x9a0] sm:$0xff]  ;;  %v557_v10 = vld [vmem:[%s20300_s7 + $0x9b8] sm:$0xff] }
 0x4ea   : > { %16367 = vmatpush.xpose.msra.mxu2 %v1992_v61  ;;  %16327 = vmatpush.xpose.msra.mxu0 %v1990_v12  ;;  %v14951_v6 = vadd.f32 %v14950_v3, %v14931_v56  ;;  %v14970_v18 = vpop.f32.mrf.mxu0  ;;  %v14990_v9 = vpop.f32.mrf.mxu1  ;;  %v555_v61 = vld [vmem:[%s20300_s7 + $0x9a8] sm:$0xff]  ;;  %v2005_v56 = vld [vmem:[%s20307_s9 + $0x2af8] sm:$0x3] }
 0x4eb   : > { %16387 = vmatpush.xpose.msra.mxu3 %v1993_v59  ;;  %16347 = vmatpush.xpose.msra.mxu1 %v1991_v17  ;;  %3478 = vst [vmem:[#allocation1 + $0x10] ss:$2 sm:$0xff] %v555_v61  ;;  %v2004_v59 = vld [vmem:[%s20307_s9 + $0x2af0] sm:$0x3]  ;;  %v2002_v17 = vld [vmem:[%s20307_s9 + $0x2ae0] sm:$0x3] }
 0x4ec   : > { %v14971_v16 = vadd.f32 %v14970_v18, %v14951_v6  ;;  %16289 = vmatmul.f32.vlgmr.msrb.gmra.mxu2 %v23437_v8  ;;  %16309 = vmatmul.f32.vlgmr.msrb.gmra.mxu3 %v23440_v53  ;;  %v1995_v8 = vld [vmem:[%s20307_s9 + $0x2aa8] sm:$0x3]  ;;  %v1236_v18 = vld [vmem:[%s20307_s9 + $0x12f0] sm:$0xff]  ;;  %v1241_v42 = vld [vmem:[%s20307_s9 + $0x1318] sm:$0xff] }
 0x4ed   : > { %16249 = vmatmul.f32.vlgmr.msrb.gmra.mxu0 %v23446_v13  ;;  %16269 = vmatmul.f32.vlgmr.msrb.gmra.mxu1 %v23451_v15  ;;  %v1228_v15 = vld [vmem:[%s20307_s9 + $0x12b0] sm:$0xff]  ;;  %v23538_v47 = vld.sshfl [vmem:[#allocation1 + $0x20] sm:$0xff pattern:$0x75316420] }
 0x4ee   : > { %v14991_v22 = vadd.f32 %v14990_v9, %v14971_v16  ;;  %16368 = vmatpush.xpose.msra.mxu2 %v1224_v23  ;;  %16328 = vmatpush.xpose.msra.mxu0 %v1222_v24  ;;  %v23541_v50 = vld.sshfl [vmem:[#allocation1 + $0x28] sm:$0xff pattern:$0x75316420]  ;;  %v2003_v23 = vld [vmem:[%s20307_s9 + $0x2ae8] sm:$0x3]  ;;  %v1244_v61 = vld [vmem:[%s20307_s9 + $0x1330] sm:$0xff] }
 0x4ef   : > { %v15010_v53 = vpop.f32.mrf.mxu2  ;;  %v15030_v25 = vpop.f32.mrf.mxu3  ;;  %16388 = vmatpush.xpose.msra.mxu3 %v1225_v14  ;;  %16348 = vmatpush.xpose.msra.mxu1 %v1223_v30  ;;  %v23569_v16 = vld.sshfl [vmem:[#allocation1 + $0x30] sm:$0xff pattern:$0x75316420]  ;;  %v2008_v30 = vld [vmem:[%s20307_s9 + $0x2b10] sm:$0x3] }
 0x4f0   : > { %v15011_v13 = vadd.f32 %v15010_v53, %v14991_v22  ;;  %v2006_v53 = vld [vmem:[%s20307_s9 + $0x2b00] sm:$0x3] }
 0x4f2   : > { %16447 = vmatpush.xpose.msrb.mxu2 %v1996_v26  ;;  %16407 = vmatpush.xpose.msrb.mxu0 %v1994_v58  ;;  %v15031_v38 = vadd.f32 %v15030_v25, %v15011_v13  ;;  %v15050_v28 = vpop.f32.mrf.mxu0  ;;  %v15070_v44 = vpop.f32.mrf.mxu1  ;;  %v1234_v26 = vld [vmem:[%s20307_s9 + $0x12e0] sm:$0xff]  ;;  %v23572_v58 = vld.sshfl [vmem:[#allocation1 + $0x38] sm:$0xff pattern:$0x75316420] }
 0x4f3   : > { %16467 = vmatpush.xpose.msrb.mxu3 %v1997_v34  ;;  %16427 = vmatpush.xpose.msrb.mxu1 %v1995_v8  ;;  %v1235_v34 = vld [vmem:[%s20307_s9 + $0x12e8] sm:$0xff]  ;;  %3480 = vst [vmem:[#allocation1 + $0x30] ss:$2 sm:$0xff] %v557_v10  ;;  %v556_v13 = vld [vmem:[%s20300_s7 + $0x9b0] sm:$0xff]  ;;  %v1249_v10 = vld [vmem:[%s20307_s9 + $0x1358] sm:$0xff] }
 0x4f4   : > { %v15051_v35 = vadd.f32 %v15050_v28, %v15031_v38  ;;  %16369 = vmatmul.f32.vlgmr.msra.gmra.mxu2 %v23459_v27  ;;  %16389 = vmatmul.f32.vlgmr.msra.gmra.mxu3 %v23462_v33  ;;  %v552_v27 = vld [vmem:[%s20300_s7 + $0x990] sm:$0xff]  ;;  %v2009_v38 = vld [vmem:[%s20307_s9 + $0x2b18] sm:$0x3] }
 0x4f5   : > { %16329 = vmatmul.f32.vlgmr.msra.gmra.mxu0 %v23472_v45  ;;  %16349 = vmatmul.f32.vlgmr.msra.gmra.mxu1 %v23475_v48  ;;  %3467 = vst [vmem:[#allocation1 + $0x20] ss:$2 sm:$0xff] %v552_v27  ;;  %v2010_v27 = vld [vmem:[%s20307_s9 + $0x2b20] sm:$0x3] }
 0x4f6   : > { %v15071_v39 = vadd.f32 %v15070_v44, %v15051_v35  ;;  %16448 = vmatpush.xpose.msrb.mxu2 %v1228_v15  ;;  %16408 = vmatpush.xpose.msrb.mxu0 %v1226_v32  ;;  %v23591_v35 = vld.sshfl [vmem:[#allocation1 + $0x10] sm:$0xff pattern:$0x75316420] }
 0x4f7   : > { %v15090_v33 = vpop.f32.mrf.mxu2  ;;  %v15110_v49 = vpop.f32.mrf.mxu3  ;;  %16468 = vmatpush.xpose.msrb.mxu3 %v1229_v43  ;;  %16428 = vmatpush.xpose.msrb.mxu1 %v1227_v36  ;;  %v1238_v36 = vld [vmem:[%s20307_s9 + $0x1300] sm:$0xff] }
 0x4f8   : > { %v15091_v45 = vadd.f32 %v15090_v33, %v15071_v39  ;;  %v2013_v33 = vld [vmem:[%s20307_s9 + $0x2b38] sm:$0x3] }
 0x4fa   : > { %16527 = vmatpush.xpose.msra.mxu2 %v2000_v41  ;;  %16487 = vmatpush.xpose.msra.mxu0 %v1998_v40  ;;  %v15111_v48 = vadd.f32 %v15110_v49, %v15091_v45  ;;  %v15130_v54 = vpop.f32.mrf.mxu0  ;;  %v15150_v52 = vpop.f32.mrf.mxu1  ;;  %v1239_v41 = vld [vmem:[%s20307_s9 + $0x1308] sm:$0xff]  ;;  %v23594_v40 = vld.sshfl [vmem:[#allocation1 + $0x18] sm:$0xff pattern:$0x75316420] }
 0x4fb   : > { %16547 = vmatpush.xpose.msra.mxu3 %v2001_v29  ;;  %16507 = vmatpush.xpose.msra.mxu1 %v1999_v46  ;;  %v559_v29 = vld [vmem:[%s20300_s7 + $0x9c8] sm:$0xff]  ;;  %v2012_v46 = vld [vmem:[%s20307_s9 + $0x2b30] sm:$0x3] }
 0x4fc   : > { %v15131_v12 = vadd.f32 %v15130_v54, %v15111_v48  ;;  %16449 = vmatmul.f32.vlgmr.msrb.gmra.mxu2 %v23479_v5  ;;  %16469 = vmatmul.f32.vlgmr.msrb.gmra.mxu3 %v23482_v1  ;;  %v23562_v1 = vld.sshfl [vmem:[#allocation1] sm:$0xff pattern:$0x75316420]  ;;  %v23583_v25 = vld.sshfl [vmem:[#allocation1 + $0x28] sm:$0xff pattern:$0x75316420] }
 0x4fd   : > { %16409 = vmatmul.f32.vlgmr.msrb.gmra.mxu0 %v23496_v55  ;;  %16429 = vmatmul.f32.vlgmr.msrb.gmra.mxu1 %v23498_v51  ;;  %v23564_v55 = vld.sshfl [vmem:[#allocation1 + $0x8] sm:$0xff pattern:$0x75316420]  ;;  %v23578_v8 = vld.sshfl [vmem:[#allocation1 + $0x20] sm:$0xff pattern:$0x75316420] }
 0x4fe   : > { %v15151_v3 = vadd.f32 %v15150_v52, %v15131_v12  ;;  %16528 = vmatpush.xpose.msra.mxu2 %v1232_v0  ;;  %16488 = vmatpush.xpose.msra.mxu0 %v1230_v57  ;;  %3477 = vst [vmem:[#allocation1] ss:$2 sm:$0xff] %v554_v4  ;;  %v2011_v48 = vld [vmem:[%s20307_s9 + $0x2b28] sm:$0x3]  ;;  %v1245_v4 = vld [vmem:[%s20307_s9 + $0x1338] sm:$0xff] }
 0x4ff   : > { %v15170_v6 = vpop.f32.mrf.mxu2  ;;  %v15190_v5 = vpop.f32.mrf.mxu3  ;;  %16548 = vmatpush.xpose.msra.mxu3 %v1233_v2  ;;  %16508 = vmatpush.xpose.msra.mxu1 %v1231_v62  ;;  %3479 = vst [vmem:[#allocation1 + $0x20] ss:$2 sm:$0xff] %v556_v13  ;;  %v23611_v12 = vld.sshfl [vmem:[#allocation1 + $0x30] sm:$0xff pattern:$0x75316420]  ;;  %v1242_v2 = vld [vmem:[%s20307_s9 + $0x1320] sm:$0xff] }
 0x500   : > { %v15171_v51 = vadd.f32 %v15170_v6, %v15151_v3  ;;  %3490 = vst [vmem:[#allocation1 + $0x10] ss:$2 sm:$0xff] %v559_v29  ;;  %v23614_v62 = vld.sshfl [vmem:[#allocation1 + $0x38] sm:$0xff pattern:$0x75316420]  ;;  %v1243_v3 = vld [vmem:[%s20307_s9 + $0x1328] sm:$0xff] }
 0x501   : > { %v560_v6 = vld [vmem:[%s20300_s7 + $0x9d0] sm:$0xff]  ;;  %v563_v13 = vld [vmem:[%s20300_s7 + $0x9e8] sm:$0xff]  ;;  %v1253_v29 = vld [vmem:[%s20307_s9 + $0x1378] sm:$0xff] }
 0x502   : > { %16607 = vmatpush.xpose.msrb.mxu2 %v2004_v59  ;;  %16567 = vmatpush.xpose.msrb.mxu0 %v2002_v17  ;;  %v15191_v9 = vadd.f32 %v15190_v5, %v15171_v51  ;;  %v15210_v24 = vpop.f32.mrf.mxu0  ;;  %v15230_v14 = vpop.f32.mrf.mxu1  ;;  %v561_v59 = vld [vmem:[%s20300_s7 + $0x9d8] sm:$0xff] }
 0x503   : > { %16627 = vmatpush.xpose.msrb.mxu3 %v2005_v56  ;;  %16587 = vmatpush.xpose.msrb.mxu1 %v2003_v23  ;;  %3492 = vst [vmem:[#allocation1 + $0x30] ss:$2 sm:$0xff] %v561_v59  ;;  %v2016_v56 = vld [vmem:[%s20307_s9 + $0x2b50] sm:$0x3]  ;;  %v2014_v23 = vld [vmem:[%s20307_s9 + $0x2b40] sm:$0x3] }
 0x504   : > { %v15211_v22 = vadd.f32 %v15210_v24, %v15191_v9  ;;  %16529 = vmatmul.f32.vlgmr.msra.gmra.mxu2 %v23503_v11  ;;  %16549 = vmatmul.f32.vlgmr.msra.gmra.mxu3 %v23506_v60  ;;  %v2007_v11 = vld [vmem:[%s20307_s9 + $0x2b08] sm:$0x3]  ;;  %v2017_v51 = vld [vmem:[%s20307_s9 + $0x2b58] sm:$0x3]  ;;  %v1248_v24 = vld [vmem:[%s20307_s9 + $0x1350] sm:$0xff] }
 0x505   : > { %16489 = vmatmul.f32.vlgmr.msra.gmra.mxu0 %v23512_v19  ;;  %16509 = vmatmul.f32.vlgmr.msra.gmra.mxu1 %v23517_v21  ;;  %v1240_v21 = vld [vmem:[%s20307_s9 + $0x1310] sm:$0xff]  ;;  %v23604_v49 = vld.sshfl [vmem:[#allocation1] sm:$0xff pattern:$0x75316420] }
 0x506   : > { %v15231_v15 = vadd.f32 %v15230_v14, %v15211_v22  ;;  %16608 = vmatpush.xpose.msrb.mxu2 %v1236_v18  ;;  %16568 = vmatpush.xpose.msrb.mxu0 %v1234_v26  ;;  %v23607_v54 = vld.sshfl [vmem:[#allocation1 + $0x8] sm:$0xff pattern:$0x75316420]  ;;  %v2015_v18 = vld [vmem:[%s20307_s9 + $0x2b48] sm:$0x3]  ;;  %v1256_v59 = vld [vmem:[%s20307_s9 + $0x1390] sm:$0xff] }
 0x507   : > { %v15250_v60 = vpop.f32.mrf.mxu2  ;;  %v15270_v28 = vpop.f32.mrf.mxu3  ;;  %16628 = vmatpush.xpose.msrb.mxu3 %v1237_v20  ;;  %16588 = vmatpush.xpose.msrb.mxu1 %v1235_v34  ;;  %v23635_v22 = vld.sshfl [vmem:[#allocation1 + $0x10] sm:$0xff pattern:$0x75316420]  ;;  %v2020_v34 = vld [vmem:[%s20307_s9 + $0x2b70] sm:$0x3] }
 0x508   : > { %v15251_v19 = vadd.f32 %v15250_v60, %v15231_v15  ;;  %v2018_v60 = vld [vmem:[%s20307_s9 + $0x2b60] sm:$0x3] }
 0x50a   : > { %16687 = vmatpush.xpose.msra.mxu2 %v2008_v30  ;;  %16647 = vmatpush.xpose.msra.mxu0 %v2006_v53  ;;  %v15271_v44 = vadd.f32 %v15270_v28, %v15251_v19  ;;  %v15290_v32 = vpop.f32.mrf.mxu0  ;;  %v15310_v43 = vpop.f32.mrf.mxu1  ;;  %v1246_v30 = vld [vmem:[%s20307_s9 + $0x1340] sm:$0xff]  ;;  %v23638_v53 = vld.sshfl [vmem:[#allocation1 + $0x18] sm:$0xff pattern:$0x75316420] }
 0x50b   : > { %16707 = vmatpush.xpose.msra.mxu3 %v2009_v38  ;;  %16667 = vmatpush.xpose.msra.mxu1 %v2007_v11  ;;  %v1247_v38 = vld [vmem:[%s20307_s9 + $0x1348] sm:$0xff]  ;;  %3502 = vst [vmem:[#allocation1 + $0x10] ss:$2 sm:$0xff] %v563_v13  ;;  %v562_v19 = vld [vmem:[%s20300_s7 + $0x9e0] sm:$0xff]  ;;  %v1261_v13 = vld [vmem:[%s20307_s9 + $0x13b8] sm:$0xff] }
 0x50c   : > { %v15291_v39 = vadd.f32 %v15290_v32, %v15271_v44  ;;  %16609 = vmatmul.f32.vlgmr.msrb.gmra.mxu2 %v23525_v31  ;;  %16629 = vmatmul.f32.vlgmr.msrb.gmra.mxu3 %v23528_v37  ;;  %v558_v31 = vld [vmem:[%s20300_s7 + $0x9c0] sm:$0xff]  ;;  %v2021_v44 = vld [vmem:[%s20307_s9 + $0x2b78] sm:$0x3] }
 0x50d   : > { %16569 = vmatmul.f32.vlgmr.msrb.gmra.mxu0 %v23538_v47  ;;  %16589 = vmatmul.f32.vlgmr.msrb.gmra.mxu1 %v23541_v50  ;;  %3489 = vst [vmem:[#allocation1] ss:$2 sm:$0xff] %v558_v31  ;;  %v2022_v31 = vld [vmem:[%s20307_s9 + $0x2b80] sm:$0x3] }
 0x50e   : > { %v15311_v45 = vadd.f32 %v15310_v43, %v15291_v39  ;;  %16688 = vmatpush.xpose.msra.mxu2 %v1240_v21  ;;  %16648 = vmatpush.xpose.msra.mxu0 %v1238_v36  ;;  %v23657_v39 = vld.sshfl [vmem:[#allocation1 + $0x30] sm:$0xff pattern:$0x75316420] }
 0x50f   : > { %v15330_v37 = vpop.f32.mrf.mxu2  ;;  %v15350_v52 = vpop.f32.mrf.mxu3  ;;  %16708 = vmatpush.xpose.msra.mxu3 %v1241_v42  ;;  %16668 = vmatpush.xpose.msra.mxu1 %v1239_v41  ;;  %v1250_v41 = vld [vmem:[%s20307_s9 + $0x1360] sm:$0xff] }
 0x510   : > { %v15331_v47 = vadd.f32 %v15330_v37, %v15311_v45  ;;  %v2025_v37 = vld [vmem:[%s20307_s9 + $0x2b98] sm:$0x3] }
 0x512   : > { %16767 = vmatpush.xpose.msrb.mxu2 %v2012_v46  ;;  %16727 = vmatpush.xpose.msrb.mxu0 %v2010_v27  ;;  %v15351_v50 = vadd.f32 %v15350_v52, %v15331_v47  ;;  %v15370_v0 = vpop.f32.mrf.mxu0  ;;  %v15390_v57 = vpop.f32.mrf.mxu1  ;;  %v1251_v46 = vld [vmem:[%s20307_s9 + $0x1368] sm:$0xff]  ;;  %v23660_v27 = vld.sshfl [vmem:[#allocation1 + $0x38] sm:$0xff pattern:$0x75316420] }
 0x513   : > { %16787 = vmatpush.xpose.msrb.mxu3 %v2013_v33  ;;  %16747 = vmatpush.xpose.msrb.mxu1 %v2011_v48  ;;  %v565_v33 = vld [vmem:[%s20300_s7 + $0x9f8] sm:$0xff]  ;;  %v2024_v48 = vld [vmem:[%s20307_s9 + $0x2b90] sm:$0x3] }
 0x514   : > { %v15371_v17 = vadd.f32 %v15370_v0, %v15351_v50  ;;  %16689 = vmatmul.f32.vlgmr.msra.gmra.mxu2 %v23545_v7  ;;  %16709 = vmatmul.f32.vlgmr.msra.gmra.mxu3 %v23548_v63  ;;  %v23628_v63 = vld.sshfl [vmem:[#allocation1 + $0x20] sm:$0xff pattern:$0x75316420]  ;;  %v23649_v28 = vld.sshfl [vmem:[#allocation1 + $0x8] sm:$0xff pattern:$0x75316420] }
 0x515   : > { %16649 = vmatmul.f32.vlgmr.msra.gmra.mxu0 %v23562_v1  ;;  %16669 = vmatmul.f32.vlgmr.msra.gmra.mxu1 %v23564_v55  ;;  %v23630_v1 = vld.sshfl [vmem:[#allocation1 + $0x28] sm:$0xff pattern:$0x75316420]  ;;  %v23644_v11 = vld.sshfl [vmem:[#allocation1] sm:$0xff pattern:$0x75316420] }
 0x516   : > { %v15391_v5 = vadd.f32 %v15390_v57, %v15371_v17  ;;  %16768 = vmatpush.xpose.msrb.mxu2 %v1244_v61  ;;  %16728 = vmatpush.xpose.msrb.mxu0 %v1242_v2  ;;  %3491 = vst [vmem:[#allocation1 + $0x20] ss:$2 sm:$0xff] %v560_v6  ;;  %v2023_v50 = vld [vmem:[%s20307_s9 + $0x2b88] sm:$0x3]  ;;  %v1257_v6 = vld [vmem:[%s20307_s9 + $0x1398] sm:$0xff] }
 0x517   : > { %v15410_v9 = vpop.f32.mrf.mxu2  ;;  %v15430_v7 = vpop.f32.mrf.mxu3  ;;  %16788 = vmatpush.xpose.msrb.mxu3 %v1245_v4  ;;  %16748 = vmatpush.xpose.msrb.mxu1 %v1243_v3  ;;  %3501 = vst [vmem:[#allocation1] ss:$2 sm:$0xff] %v562_v19  ;;  %v23677_v17 = vld.sshfl [vmem:[#allocation1 + $0x10] sm:$0xff pattern:$0x75316420]  ;;  %v1254_v4 = vld [vmem:[%s20307_s9 + $0x1380] sm:$0xff] }
 0x518   : > { %v15411_v55 = vadd.f32 %v15410_v9, %v15391_v5  ;;  %3504 = vst [vmem:[#allocation1 + $0x30] ss:$2 sm:$0xff] %v565_v33  ;;  %v23680_v3 = vld.sshfl [vmem:[#allocation1 + $0x18] sm:$0xff pattern:$0x75316420]  ;;  %v1255_v5 = vld [vmem:[%s20307_s9 + $0x1388] sm:$0xff] }
 0x519   : > { %v566_v9 = vld [vmem:[%s20300_s7 + $0xa00] sm:$0xff]  ;;  %v569_v19 = vld [vmem:[%s20300_s7 + $0xa18] sm:$0xff] }
 0x51a   : > { %16847 = vmatpush.xpose.msra.mxu2 %v2016_v56  ;;  %16807 = vmatpush.xpose.msra.mxu0 %v2014_v23  ;;  %v15431_v14 = vadd.f32 %v15430_v7, %v15411_v55  ;;  %v15450_v26 = vpop.f32.mrf.mxu0  ;;  %v15470_v20 = vpop.f32.mrf.mxu1  ;;  %v567_v56 = vld [vmem:[%s20300_s7 + $0xa08] sm:$0xff]  ;;  %v2029_v55 = vld [vmem:[%s20307_s9 + $0x2bb8] sm:$0x3] }
 0x51b   : > { %16867 = vmatpush.xpose.msra.mxu3 %v2017_v51  ;;  %16827 = vmatpush.xpose.msra.mxu1 %v2015_v18  ;;  %3514 = vst [vmem:[#allocation1 + $0x10] ss:$2 sm:$0xff] %v567_v56  ;;  %v2028_v51 = vld [vmem:[%s20307_s9 + $0x2bb0] sm:$0x3]  ;;  %v2026_v18 = vld [vmem:[%s20307_s9 + $0x2ba0] sm:$0x3] }
 0x51c   : > { %v15451_v15 = vadd.f32 %v15450_v26, %v15431_v14  ;;  %16769 = vmatmul.f32.vlgmr.msrb.gmra.mxu2 %v23569_v16  ;;  %16789 = vmatmul.f32.vlgmr.msrb.gmra.mxu3 %v23572_v58  ;;  %v2019_v16 = vld [vmem:[%s20307_s9 + $0x2b68] sm:$0x3]  ;;  %v1260_v26 = vld [vmem:[%s20307_s9 + $0x13b0] sm:$0xff]  ;;  %v1265_v33 = vld [vmem:[%s20307_s9 + $0x13d8] sm:$0xff] }
 0x51d   : > { %16729 = vmatmul.f32.vlgmr.msrb.gmra.mxu0 %v23578_v8  ;;  %16749 = vmatmul.f32.vlgmr.msrb.gmra.mxu1 %v23583_v25  ;;  %v1252_v25 = vld [vmem:[%s20307_s9 + $0x1370] sm:$0xff]  ;;  %v23670_v52 = vld.sshfl [vmem:[#allocation1 + $0x20] sm:$0xff pattern:$0x75316420] }
 0x51e   : > { %v15471_v21 = vadd.f32 %v15470_v20, %v15451_v15  ;;  %16848 = vmatpush.xpose.msra.mxu2 %v1248_v24  ;;  %16808 = vmatpush.xpose.msra.mxu0 %v1246_v30  ;;  %v23673_v0 = vld.sshfl [vmem:[#allocation1 + $0x28] sm:$0xff pattern:$0x75316420]  ;;  %v2027_v24 = vld [vmem:[%s20307_s9 + $0x2ba8] sm:$0x3]  ;;  %v1268_v56 = vld [vmem:[%s20307_s9 + $0x13f0] sm:$0xff] }
 0x51f   : > { %v15490_v58 = vpop.f32.mrf.mxu2  ;;  %v15510_v32 = vpop.f32.mrf.mxu3  ;;  %16868 = vmatpush.xpose.msra.mxu3 %v1249_v10  ;;  %16828 = vmatpush.xpose.msra.mxu1 %v1247_v38  ;;  %v23701_v15 = vld.sshfl [vmem:[#allocation1 + $0x30] sm:$0xff pattern:$0x75316420]  ;;  %v2032_v38 = vld [vmem:[%s20307_s9 + $0x2bd0] sm:$0x3] }
 0x520   : > { %v15491_v8 = vadd.f32 %v15490_v58, %v15471_v21  ;;  %v2030_v58 = vld [vmem:[%s20307_s9 + $0x2bc0] sm:$0x3] }
 0x522   : > { %16927 = vmatpush.xpose.msrb.mxu2 %v2020_v34  ;;  %16887 = vmatpush.xpose.msrb.mxu0 %v2018_v60  ;;  %v15511_v43 = vadd.f32 %v15510_v32, %v15491_v8  ;;  %v15530_v36 = vpop.f32.mrf.mxu0  ;;  %v15550_v42 = vpop.f32.mrf.mxu1  ;;  %v1258_v34 = vld [vmem:[%s20307_s9 + $0x13a0] sm:$0xff]  ;;  %v23704_v60 = vld.sshfl [vmem:[#allocation1 + $0x38] sm:$0xff pattern:$0x75316420] }
 0x523   : > { %16947 = vmatpush.xpose.msrb.mxu3 %v2021_v44  ;;  %16907 = vmatpush.xpose.msrb.mxu1 %v2019_v16  ;;  %v1259_v44 = vld [vmem:[%s20307_s9 + $0x13a8] sm:$0xff]  ;;  %3516 = vst [vmem:[#allocation1 + $0x30] ss:$2 sm:$0xff] %v569_v19  ;;  %v568_v8 = vld [vmem:[%s20300_s7 + $0xa10] sm:$0xff]  ;;  %v1273_v19 = vld [vmem:[%s20307_s9 + $0x1418] sm:$0xff] }
 0x524   : > { %v15531_v45 = vadd.f32 %v15530_v36, %v15511_v43  ;;  %16849 = vmatmul.f32.vlgmr.msra.gmra.mxu2 %v23591_v35  ;;  %16869 = vmatmul.f32.vlgmr.msra.gmra.mxu3 %v23594_v40  ;;  %v564_v35 = vld [vmem:[%s20300_s7 + $0x9f0] sm:$0xff]  ;;  %v2033_v43 = vld [vmem:[%s20307_s9 + $0x2bd8] sm:$0x3] }
 0x525   : > { %16809 = vmatmul.f32.vlgmr.msra.gmra.mxu0 %v23604_v49  ;;  %16829 = vmatmul.f32.vlgmr.msra.gmra.mxu1 %v23607_v54  ;;  %3503 = vst [vmem:[#allocation1 + $0x20] ss:$2 sm:$0xff] %v564_v35  ;;  %v2034_v35 = vld [vmem:[%s20307_s9 + $0x2be0] sm:$0x3] }
 0x526   : > { %v15551_v47 = vadd.f32 %v15550_v42, %v15531_v45  ;;  %16928 = vmatpush.xpose.msrb.mxu2 %v1252_v25  ;;  %16888 = vmatpush.xpose.msrb.mxu0 %v1250_v41  ;;  %v23723_v45 = vld.sshfl [vmem:[#allocation1 + $0x10] sm:$0xff pattern:$0x75316420] }
 0x527   : > { %v15570_v40 = vpop.f32.mrf.mxu2  ;;  %v15590_v57 = vpop.f32.mrf.mxu3  ;;  %16948 = vmatpush.xpose.msrb.mxu3 %v1253_v29  ;;  %16908 = vmatpush.xpose.msrb.mxu1 %v1251_v46  ;;  %v1262_v46 = vld [vmem:[%s20307_s9 + $0x13c0] sm:$0xff] }
 0x528   : > { %v15571_v49 = vadd.f32 %v15570_v40, %v15551_v47  ;;  %v2037_v40 = vld [vmem:[%s20307_s9 + $0x2bf8] sm:$0x3] }
 0x52a   : > { %17007 = vmatpush.xpose.msra.mxu2 %v2024_v48  ;;  %16967 = vmatpush.xpose.msra.mxu0 %v2022_v31  ;;  %v15591_v54 = vadd.f32 %v15590_v57, %v15571_v49  ;;  %v15610_v61 = vpop.f32.mrf.mxu0  ;;  %v15630_v2 = vpop.f32.mrf.mxu1  ;;  %v1263_v48 = vld [vmem:[%s20307_s9 + $0x13c8] sm:$0xff]  ;;  %v23726_v31 = vld.sshfl [vmem:[#allocation1 + $0x18] sm:$0xff pattern:$0x75316420] }
 0x52b   : > { %17027 = vmatpush.xpose.msra.mxu3 %v2025_v37  ;;  %16987 = vmatpush.xpose.msra.mxu1 %v2023_v50  ;;  %v571_v37 = vld [vmem:[%s20300_s7 + $0xa28] sm:$0xff]  ;;  %v2036_v50 = vld [vmem:[%s20307_s9 + $0x2bf0] sm:$0x3] }
 0x52c   : > { %v15611_v23 = vadd.f32 %v15610_v61, %v15591_v54  ;;  %16929 = vmatmul.f32.vlgmr.msrb.gmra.mxu2 %v23611_v12  ;;  %16949 = vmatmul.f32.vlgmr.msrb.gmra.mxu3 %v23614_v62  ;;  %v23694_v62 = vld.sshfl [vmem:[#allocation1] sm:$0xff pattern:$0x75316420]  ;;  %v23715_v32 = vld.sshfl [vmem:[#allocation1 + $0x28] sm:$0xff pattern:$0x75316420] }
 0x52d   : > { %16889 = vmatmul.f32.vlgmr.msrb.gmra.mxu0 %v23628_v63  ;;  %16909 = vmatmul.f32.vlgmr.msrb.gmra.mxu1 %v23630_v1  ;;  %v23696_v63 = vld.sshfl [vmem:[#allocation1 + $0x8] sm:$0xff pattern:$0x75316420]  ;;  %v23710_v16 = vld.sshfl [vmem:[#allocation1 + $0x20] sm:$0xff pattern:$0x75316420] }
 0x52e   : > { %v15631_v7 = vadd.f32 %v15630_v2, %v15611_v23  ;;  %17008 = vmatpush.xpose.msra.mxu2 %v1256_v59  ;;  %16968 = vmatpush.xpose.msra.mxu0 %v1254_v4  ;;  %3513 = vst [vmem:[#allocation1] ss:$2 sm:$0xff] %v566_v9  ;;  %v2035_v54 = vld [vmem:[%s20307_s9 + $0x2be8] sm:$0x3]  ;;  %v1269_v9 = vld [vmem:[%s20307_s9 + $0x13f8] sm:$0xff] }
 0x52f   : > { %v15650_v14 = vpop.f32.mrf.mxu2  ;;  %v15670_v12 = vpop.f32.mrf.mxu3  ;;  %17028 = vmatpush.xpose.msra.mxu3 %v1257_v6  ;;  %16988 = vmatpush.xpose.msra.mxu1 %v1255_v5  ;;  %3515 = vst [vmem:[#allocation1 + $0x20] ss:$2 sm:$0xff] %v568_v8  ;;  %v23743_v23 = vld.sshfl [vmem:[#allocation1 + $0x30] sm:$0xff pattern:$0x75316420]  ;;  %v1266_v6 = vld [vmem:[%s20307_s9 + $0x13e0] sm:$0xff] }
 0x530   : > { %v15651_v1 = vadd.f32 %v15650_v14, %v15631_v7  ;;  %3526 = vst [vmem:[#allocation1 + $0x10] ss:$2 sm:$0xff] %v571_v37  ;;  %v23746_v5 = vld.sshfl [vmem:[#allocation1 + $0x38] sm:$0xff pattern:$0x75316420]  ;;  %v1267_v7 = vld [vmem:[%s20307_s9 + $0x13e8] sm:$0xff] }
 0x531   : > { %v572_v14 = vld [vmem:[%s20300_s7 + $0xa30] sm:$0xff]  ;;  %v575_v8 = vld [vmem:[%s20300_s7 + $0xa48] sm:$0xff]  ;;  %v1277_v37 = vld [vmem:[%s20307_s9 + $0x1438] sm:$0xff] }
 0x532   : > { %17087 = vmatpush.xpose.msrb.mxu2 %v2028_v51  ;;  %17047 = vmatpush.xpose.msrb.mxu0 %v2026_v18  ;;  %v15671_v20 = vadd.f32 %v15670_v12, %v15651_v1  ;;  %v15690_v30 = vpop.f32.mrf.mxu0  ;;  %v15710_v10 = vpop.f32.mrf.mxu1  ;;  %v573_v51 = vld [vmem:[%s20300_s7 + $0xa38] sm:$0xff] }
 0x533   : > { %17107 = vmatpush.xpose.msrb.mxu3 %v2029_v55  ;;  %17067 = vmatpush.xpose.msrb.mxu1 %v2027_v24  ;;  %3528 = vst [vmem:[#allocation1 + $0x30] ss:$2 sm:$0xff] %v573_v51  ;;  %v2040_v55 = vld [vmem:[%s20307_s9 + $0x2c10] sm:$0x3]  ;;  %v2038_v24 = vld [vmem:[%s20307_s9 + $0x2c00] sm:$0x3] }
 0x534   : > { %v15691_v21 = vadd.f32 %v15690_v30, %v15671_v20  ;;  %17009 = vmatmul.f32.vlgmr.msra.gmra.mxu2 %v23635_v22  ;;  %17029 = vmatmul.f32.vlgmr.msra.gmra.mxu3 %v23638_v53  ;;  %v2031_v22 = vld [vmem:[%s20307_s9 + $0x2bc8] sm:$0x3]  ;;  %v2041_v1 = vld [vmem:[%s20307_s9 + $0x2c18] sm:$0x3]  ;;  %v1272_v30 = vld [vmem:[%s20307_s9 + $0x1410] sm:$0xff] }
 0x535   : > { %16969 = vmatmul.f32.vlgmr.msra.gmra.mxu0 %v23644_v11  ;;  %16989 = vmatmul.f32.vlgmr.msra.gmra.mxu1 %v23649_v28  ;;  %v1264_v28 = vld [vmem:[%s20307_s9 + $0x13d0] sm:$0xff]  ;;  %v23736_v57 = vld.sshfl [vmem:[#allocation1] sm:$0xff pattern:$0x75316420] }
 0x536   : > { %v15711_v25 = vadd.f32 %v15710_v10, %v15691_v21  ;;  %17088 = vmatpush.xpose.msrb.mxu2 %v1260_v26  ;;  %17048 = vmatpush.xpose.msrb.mxu0 %v1258_v34  ;;  %v23739_v61 = vld.sshfl [vmem:[#allocation1 + $0x8] sm:$0xff pattern:$0x75316420]  ;;  %v2039_v26 = vld [vmem:[%s20307_s9 + $0x2c08] sm:$0x3]  ;;  %v1280_v51 = vld [vmem:[%s20307_s9 + $0x1450] sm:$0xff] }
 0x537   : > { %v15730_v53 = vpop.f32.mrf.mxu2  ;;  %v15750_v36 = vpop.f32.mrf.mxu3  ;;  %17108 = vmatpush.xpose.msrb.mxu3 %v1261_v13  ;;  %17068 = vmatpush.xpose.msrb.mxu1 %v1259_v44  ;;  %v23767_v21 = vld.sshfl [vmem:[#allocation1 + $0x10] sm:$0xff pattern:$0x75316420]  ;;  %v2044_v44 = vld [vmem:[%s20307_s9 + $0x2c30] sm:$0x3] }
 0x538   : > { %v15731_v11 = vadd.f32 %v15730_v53, %v15711_v25  ;;  %v2042_v53 = vld [vmem:[%s20307_s9 + $0x2c20] sm:$0x3] }
 0x53a   : > { %17167 = vmatpush.xpose.msra.mxu2 %v2032_v38  ;;  %17127 = vmatpush.xpose.msra.mxu0 %v2030_v58  ;;  %v15751_v42 = vadd.f32 %v15750_v36, %v15731_v11  ;;  %v15770_v41 = vpop.f32.mrf.mxu0  ;;  %v15790_v29 = vpop.f32.mrf.mxu1  ;;  %v1270_v38 = vld [vmem:[%s20307_s9 + $0x1400] sm:$0xff]  ;;  %v23770_v58 = vld.sshfl [vmem:[#allocation1 + $0x18] sm:$0xff pattern:$0x75316420] }
 0x53b   : > { %17187 = vmatpush.xpose.msra.mxu3 %v2033_v43  ;;  %17147 = vmatpush.xpose.msra.mxu1 %v2031_v22  ;;  %v1271_v43 = vld [vmem:[%s20307_s9 + $0x1408] sm:$0xff]  ;;  %3538 = vst [vmem:[#allocation1 + $0x10] ss:$2 sm:$0xff] %v575_v8  ;;  %v574_v11 = vld [vmem:[%s20300_s7 + $0xa40] sm:$0xff]  ;;  %v1285_v8 = vld [vmem:[%s20307_s9 + $0x1478] sm:$0xff] }
 0x53c   : > { %v15771_v47 = vadd.f32 %v15770_v41, %v15751_v42  ;;  %17089 = vmatmul.f32.vlgmr.msrb.gmra.mxu2 %v23657_v39  ;;  %17109 = vmatmul.f32.vlgmr.msrb.gmra.mxu3 %v23660_v27  ;;  %v570_v39 = vld [vmem:[%s20300_s7 + $0xa20] sm:$0xff]  ;;  %v2045_v42 = vld [vmem:[%s20307_s9 + $0x2c38] sm:$0x3] }
 0x53d   : > { %17049 = vmatmul.f32.vlgmr.msrb.gmra.mxu0 %v23670_v52  ;;  %17069 = vmatmul.f32.vlgmr.msrb.gmra.mxu1 %v23673_v0  ;;  %3525 = vst [vmem:[#allocation1] ss:$2 sm:$0xff] %v570_v39  ;;  %v2046_v39 = vld [vmem:[%s20307_s9 + $0x2c40] sm:$0x3] }
 0x53e   : > { %v15791_v49 = vadd.f32 %v15790_v29, %v15771_v47  ;;  %17168 = vmatpush.xpose.msra.mxu2 %v1264_v28  ;;  %17128 = vmatpush.xpose.msra.mxu0 %v1262_v46  ;;  %v23789_v47 = vld.sshfl [vmem:[#allocation1 + $0x30] sm:$0xff pattern:$0x75316420] }
 0x53f   : > { %v15810_v27 = vpop.f32.mrf.mxu2  ;;  %v15830_v2 = vpop.f32.mrf.mxu3  ;;  %17188 = vmatpush.xpose.msra.mxu3 %v1265_v33  ;;  %17148 = vmatpush.xpose.msra.mxu1 %v1263_v48  ;;  %v1274_v48 = vld [vmem:[%s20307_s9 + $0x1420] sm:$0xff] }
 0x540   : > { %v15811_v52 = vadd.f32 %v15810_v27, %v15791_v49  ;;  %v2049_v27 = vld [vmem:[%s20307_s9 + $0x2c58] sm:$0x3] }
 0x542   : > { %17247 = vmatpush.xpose.msrb.mxu2 %v2036_v50  ;;  %17207 = vmatpush.xpose.msrb.mxu0 %v2034_v35  ;;  %v15831_v0 = vadd.f32 %v15830_v2, %v15811_v52  ;;  %v15850_v59 = vpop.f32.mrf.mxu0  ;;  %v15870_v4 = vpop.f32.mrf.mxu1  ;;  %v1275_v50 = vld [vmem:[%s20307_s9 + $0x1428] sm:$0xff]  ;;  %v23792_v35 = vld.sshfl [vmem:[#allocation1 + $0x38] sm:$0xff pattern:$0x75316420] }
 0x543   : > { %17267 = vmatpush.xpose.msrb.mxu3 %v2037_v40  ;;  %17227 = vmatpush.xpose.msrb.mxu1 %v2035_v54  ;;  %v577_v40 = vld [vmem:[%s20300_s7 + $0xa58] sm:$0xff]  ;;  %v2048_v54 = vld [vmem:[%s20307_s9 + $0x2c50] sm:$0x3] }
 0x544   : > { %v15851_v18 = vadd.f32 %v15850_v59, %v15831_v0  ;;  %17169 = vmatmul.f32.vlgmr.msra.gmra.mxu2 %v23677_v17  ;;  %17189 = vmatmul.f32.vlgmr.msra.gmra.mxu3 %v23680_v3  ;;  %v23760_v3 = vld.sshfl [vmem:[#allocation1 + $0x20] sm:$0xff pattern:$0x75316420]  ;;  %v23781_v36 = vld.sshfl [vmem:[#allocation1 + $0x8] sm:$0xff pattern:$0x75316420] }
 0x545   : > { %17129 = vmatmul.f32.vlgmr.msra.gmra.mxu0 %v23694_v62  ;;  %17149 = vmatmul.f32.vlgmr.msra.gmra.mxu1 %v23696_v63  ;;  %v23762_v62 = vld.sshfl [vmem:[#allocation1 + $0x28] sm:$0xff pattern:$0x75316420]  ;;  %v23776_v22 = vld.sshfl [vmem:[#allocation1] sm:$0xff pattern:$0x75316420] }
 0x546   : > { %v15871_v12 = vadd.f32 %v15870_v4, %v15851_v18  ;;  %17248 = vmatpush.xpose.msrb.mxu2 %v1268_v56  ;;  %17208 = vmatpush.xpose.msrb.mxu0 %v1266_v6  ;;  %3527 = vst [vmem:[#allocation1 + $0x20] ss:$2 sm:$0xff] %v572_v14  ;;  %v2047_v0 = vld [vmem:[%s20307_s9 + $0x2c48] sm:$0x3]  ;;  %v1281_v14 = vld [vmem:[%s20307_s9 + $0x1458] sm:$0xff] }
 0x547   : > { %v15890_v20 = vpop.f32.mrf.mxu2  ;;  %v15910_v17 = vpop.f32.mrf.mxu3  ;;  %17268 = vmatpush.xpose.msrb.mxu3 %v1269_v9  ;;  %17228 = vmatpush.xpose.msrb.mxu1 %v1267_v7  ;;  %3537 = vst [vmem:[#allocation1] ss:$2 sm:$0xff] %v574_v11  ;;  %v23809_v18 = vld.sshfl [vmem:[#allocation1 + $0x10] sm:$0xff pattern:$0x75316420]  ;;  %v1278_v9 = vld [vmem:[%s20307_s9 + $0x1440] sm:$0xff] }
 0x548   : > { %v15891_v63 = vadd.f32 %v15890_v20, %v15871_v12  ;;  %3540 = vst [vmem:[#allocation1 + $0x30] ss:$2 sm:$0xff] %v577_v40  ;;  %v23812_v7 = vld.sshfl [vmem:[#allocation1 + $0x18] sm:$0xff pattern:$0x75316420]  ;;  %v1279_v12 = vld [vmem:[%s20307_s9 + $0x1448] sm:$0xff] }
 0x549   : > { %v578_v20 = vld [vmem:[%s20300_s7 + $0xa60] sm:$0xff]  ;;  %v581_v11 = vld [vmem:[%s20300_s7 + $0xa78] sm:$0xff] }
 0x54a   : > { %17327 = vmatpush.xpose.msra.mxu2 %v2040_v55  ;;  %17287 = vmatpush.xpose.msra.mxu0 %v2038_v24  ;;  %v15911_v10 = vadd.f32 %v15910_v17, %v15891_v63  ;;  %v15930_v34 = vpop.f32.mrf.mxu0  ;;  %v15950_v13 = vpop.f32.mrf.mxu1  ;;  %v579_v55 = vld [vmem:[%s20300_s7 + $0xa68] sm:$0xff]  ;;  %v2053_v63 = vld [vmem:[%s20307_s9 + $0x2c78] sm:$0x3] }
 0x54b   : > { %17347 = vmatpush.xpose.msra.mxu3 %v2041_v1  ;;  %17307 = vmatpush.xpose.msra.mxu1 %v2039_v26  ;;  %3550 = vst [vmem:[#allocation1 + $0x10] ss:$2 sm:$0xff] %v579_v55  ;;  %v2052_v1 = vld [vmem:[%s20307_s9 + $0x2c70] sm:$0x3]  ;;  %v2050_v26 = vld [vmem:[%s20307_s9 + $0x2c60] sm:$0x3] }
 0x54c   : > { %v15931_v25 = vadd.f32 %v15930_v34, %v15911_v10  ;;  %17249 = vmatmul.f32.vlgmr.msrb.gmra.mxu2 %v23701_v15  ;;  %17269 = vmatmul.f32.vlgmr.msrb.gmra.mxu3 %v23704_v60  ;;  %v2043_v15 = vld [vmem:[%s20307_s9 + $0x2c28] sm:$0x3]  ;;  %v1284_v34 = vld [vmem:[%s20307_s9 + $0x1470] sm:$0xff]  ;;  %v1289_v40 = vld [vmem:[%s20307_s9 + $0x1498] sm:$0xff] }
 0x54d   : > { %17209 = vmatmul.f32.vlgmr.msrb.gmra.mxu0 %v23710_v16  ;;  %17229 = vmatmul.f32.vlgmr.msrb.gmra.mxu1 %v23715_v32  ;;  %v1276_v32 = vld [vmem:[%s20307_s9 + $0x1430] sm:$0xff]  ;;  %v23802_v2 = vld.sshfl [vmem:[#allocation1 + $0x20] sm:$0xff pattern:$0x75316420] }
 0x54e   : > { %v15951_v28 = vadd.f32 %v15950_v13, %v15931_v25  ;;  %17328 = vmatpush.xpose.msra.mxu2 %v1272_v30  ;;  %17288 = vmatpush.xpose.msra.mxu0 %v1270_v38  ;;  %v23805_v59 = vld.sshfl [vmem:[#allocation1 + $0x28] sm:$0xff pattern:$0x75316420]  ;;  %v2051_v30 = vld [vmem:[%s20307_s9 + $0x2c68] sm:$0x3]  ;;  %v1292_v55 = vld [vmem:[%s20307_s9 + $0x14b0] sm:$0xff] }
 0x54f   : > { %v15970_v60 = vpop.f32.mrf.mxu2  ;;  %v15990_v41 = vpop.f32.mrf.mxu3  ;;  %17348 = vmatpush.xpose.msra.mxu3 %v1273_v19  ;;  %17308 = vmatpush.xpose.msra.mxu1 %v1271_v43  ;;  %v23833_v25 = vld.sshfl [vmem:[#allocation1 + $0x30] sm:$0xff pattern:$0x75316420]  ;;  %v2056_v43 = vld [vmem:[%s20307_s9 + $0x2c90] sm:$0x3] }
 0x550   : > { %v15971_v16 = vadd.f32 %v15970_v60, %v15951_v28  ;;  %v2054_v60 = vld [vmem:[%s20307_s9 + $0x2c80] sm:$0x3] }
 0x552   : > { %17407 = vmatpush.xpose.msrb.mxu2 %v2044_v44  ;;  %17367 = vmatpush.xpose.msrb.mxu0 %v2042_v53  ;;  %v15991_v29 = vadd.f32 %v15990_v41, %v15971_v16  ;;  %v16010_v46 = vpop.f32.mrf.mxu0  ;;  %v16030_v33 = vpop.f32.mrf.mxu1  ;;  %v1282_v44 = vld [vmem:[%s20307_s9 + $0x1460] sm:$0xff]  ;;  %v23836_v53 = vld.sshfl [vmem:[#allocation1 + $0x38] sm:$0xff pattern:$0x75316420] }
 0x553   : > { %17427 = vmatpush.xpose.msrb.mxu3 %v2045_v42  ;;  %17387 = vmatpush.xpose.msrb.mxu1 %v2043_v15  ;;  %v1283_v42 = vld [vmem:[%s20307_s9 + $0x1468] sm:$0xff]  ;;  %3552 = vst [vmem:[#allocation1 + $0x30] ss:$2 sm:$0xff] %v581_v11  ;;  %v580_v16 = vld [vmem:[%s20300_s7 + $0xa70] sm:$0xff]  ;;  %v1297_v11 = vld [vmem:[%s20307_s9 + $0x14d8] sm:$0xff] }
 0x554   : > { %v16011_v49 = vadd.f32 %v16010_v46, %v15991_v29  ;;  %17329 = vmatmul.f32.vlgmr.msra.gmra.mxu2 %v23723_v45  ;;  %17349 = vmatmul.f32.vlgmr.msra.gmra.mxu3 %v23726_v31  ;;  %v576_v45 = vld [vmem:[%s20300_s7 + $0xa50] sm:$0xff]  ;;  %v2057_v29 = vld [vmem:[%s20307_s9 + $0x2c98] sm:$0x3] }
 0x555   : > { %17289 = vmatmul.f32.vlgmr.msra.gmra.mxu0 %v23736_v57  ;;  %17309 = vmatmul.f32.vlgmr.msra.gmra.mxu1 %v23739_v61  ;;  %3539 = vst [vmem:[#allocation1 + $0x20] ss:$2 sm:$0xff] %v576_v45  ;;  %v2058_v45 = vld [vmem:[%s20307_s9 + $0x2ca0] sm:$0x3] }
 0x556   : > { %v16031_v52 = vadd.f32 %v16030_v33, %v16011_v49  ;;  %17408 = vmatpush.xpose.msrb.mxu2 %v1276_v32  ;;  %17368 = vmatpush.xpose.msrb.mxu0 %v1274_v48  ;;  %v23855_v49 = vld.sshfl [vmem:[#allocation1 + $0x10] sm:$0xff pattern:$0x75316420] }
 0x557   : > { %v16050_v31 = vpop.f32.mrf.mxu2  ;;  %v16070_v4 = vpop.f32.mrf.mxu3  ;;  %17428 = vmatpush.xpose.msrb.mxu3 %v1277_v37  ;;  %17388 = vmatpush.xpose.msrb.mxu1 %v1275_v50  ;;  %v1286_v50 = vld [vmem:[%s20307_s9 + $0x1480] sm:$0xff] }
 0x558   : > { %v16051_v57 = vadd.f32 %v16050_v31, %v16031_v52  ;;  %v2061_v31 = vld [vmem:[%s20307_s9 + $0x2cb8] sm:$0x3] }
 0x55a   : > { %17487 = vmatpush.xpose.msra.mxu2 %v2048_v54  ;;  %17447 = vmatpush.xpose.msra.mxu0 %v2046_v39  ;;  %v16071_v61 = vadd.f32 %v16070_v4, %v16051_v57  ;;  %v16090_v56 = vpop.f32.mrf.mxu0  ;;  %v16110_v6 = vpop.f32.mrf.mxu1  ;;  %v1287_v54 = vld [vmem:[%s20307_s9 + $0x1488] sm:$0xff]  ;;  %v23858_v39 = vld.sshfl [vmem:[#allocation1 + $0x18] sm:$0xff pattern:$0x75316420] }
 0x55b   : > { %17507 = vmatpush.xpose.msra.mxu3 %v2049_v27  ;;  %17467 = vmatpush.xpose.msra.mxu1 %v2047_v0  ;;  %v583_v27 = vld [vmem:[%s20300_s7 + $0xa88] sm:$0xff]  ;;  %v2060_v0 = vld [vmem:[%s20307_s9 + $0x2cb0] sm:$0x3] }
 0x55c   : > { %v16091_v24 = vadd.f32 %v16090_v56, %v16071_v61  ;;  %17409 = vmatmul.f32.vlgmr.msrb.gmra.mxu2 %v23743_v23  ;;  %17429 = vmatmul.f32.vlgmr.msrb.gmra.mxu3 %v23746_v5  ;;  %v23826_v5 = vld.sshfl [vmem:[#allocation1] sm:$0xff pattern:$0x75316420]  ;;  %v23847_v41 = vld.sshfl [vmem:[#allocation1 + $0x28] sm:$0xff pattern:$0x75316420] }
 0x55d   : > { %17369 = vmatmul.f32.vlgmr.msrb.gmra.mxu0 %v23760_v3  ;;  %17389 = vmatmul.f32.vlgmr.msrb.gmra.mxu1 %v23762_v62  ;;  %v23828_v3 = vld.sshfl [vmem:[#allocation1 + $0x8] sm:$0xff pattern:$0x75316420]  ;;  %v23842_v15 = vld.sshfl [vmem:[#allocation1 + $0x20] sm:$0xff pattern:$0x75316420] }
 0x55e   : > { %v16111_v17 = vadd.f32 %v16110_v6, %v16091_v24  ;;  %17488 = vmatpush.xpose.msra.mxu2 %v1280_v51  ;;  %17448 = vmatpush.xpose.msra.mxu0 %v1278_v9  ;;  %3549 = vst [vmem:[#allocation1] ss:$2 sm:$0xff] %v578_v20  ;;  %v2059_v61 = vld [vmem:[%s20307_s9 + $0x2ca8] sm:$0x3]  ;;  %v1293_v20 = vld [vmem:[%s20307_s9 + $0x14b8] sm:$0xff] }
 0x55f   : > { %v16130_v10 = vpop.f32.mrf.mxu2  ;;  %v16150_v23 = vpop.f32.mrf.mxu3  ;;  %17508 = vmatpush.xpose.msra.mxu3 %v1281_v14  ;;  %17468 = vmatpush.xpose.msra.mxu1 %v1279_v12  ;;  %3551 = vst [vmem:[#allocation1 + $0x20] ss:$2 sm:$0xff] %v580_v16  ;;  %v23875_v24 = vld.sshfl [vmem:[#allocation1 + $0x30] sm:$0xff pattern:$0x75316420]  ;;  %v1290_v14 = vld [vmem:[%s20307_s9 + $0x14a0] sm:$0xff] }
 0x560   : > { %v16131_v62 = vadd.f32 %v16130_v10, %v16111_v17  ;;  %3562 = vst [vmem:[#allocation1 + $0x10] ss:$2 sm:$0xff] %v583_v27  ;;  %v23878_v12 = vld.sshfl [vmem:[#allocation1 + $0x38] sm:$0xff pattern:$0x75316420]  ;;  %v1291_v17 = vld [vmem:[%s20307_s9 + $0x14a8] sm:$0xff] }
 0x561   : > { %v584_v10 = vld [vmem:[%s20300_s7 + $0xa90] sm:$0xff]  ;;  %v587_v16 = vld [vmem:[%s20300_s7 + $0xaa8] sm:$0xff]  ;;  %v1301_v27 = vld [vmem:[%s20307_s9 + $0x14f8] sm:$0xff] }
 0x562   : > { %17567 = vmatpush.xpose.msrb.mxu2 %v2052_v1  ;;  %17527 = vmatpush.xpose.msrb.mxu0 %v2050_v26  ;;  %v16151_v13 = vadd.f32 %v16150_v23, %v16131_v62  ;;  %v16170_v38 = vpop.f32.mrf.mxu0  ;;  %v16190_v19 = vpop.f32.mrf.mxu1  ;;  %v585_v1 = vld [vmem:[%s20300_s7 + $0xa98] sm:$0xff] }
 0x563   : > { %17587 = vmatpush.xpose.msrb.mxu3 %v2053_v63  ;;  %17547 = vmatpush.xpose.msrb.mxu1 %v2051_v30  ;;  %3564 = vst [vmem:[#allocation1 + $0x30] ss:$2 sm:$0xff] %v585_v1  ;;  %v2064_v63 = vld [vmem:[%s20307_s9 + $0x2cd0] sm:$0x3]  ;;  %v2062_v30 = vld [vmem:[%s20307_s9 + $0x2cc0] sm:$0x3] }
 0x564   : > { %v16171_v28 = vadd.f32 %v16170_v38, %v16151_v13  ;;  %17489 = vmatmul.f32.vlgmr.msra.gmra.mxu2 %v23767_v21  ;;  %17509 = vmatmul.f32.vlgmr.msra.gmra.mxu3 %v23770_v58  ;;  %v2055_v21 = vld [vmem:[%s20307_s9 + $0x2c88] sm:$0x3]  ;;  %v2065_v62 = vld [vmem:[%s20307_s9 + $0x2cd8] sm:$0x3]  ;;  %v1296_v38 = vld [vmem:[%s20307_s9 + $0x14d0] sm:$0xff] }
 0x565   : > { %17449 = vmatmul.f32.vlgmr.msra.gmra.mxu0 %v23776_v22  ;;  %17469 = vmatmul.f32.vlgmr.msra.gmra.mxu1 %v23781_v36  ;;  %v1288_v36 = vld [vmem:[%s20307_s9 + $0x1490] sm:$0xff]  ;;  %v23868_v4 = vld.sshfl [vmem:[#allocation1] sm:$0xff pattern:$0x75316420] }
 0x566   : > { %v16191_v32 = vadd.f32 %v16190_v19, %v16171_v28  ;;  %17568 = vmatpush.xpose.msrb.mxu2 %v1284_v34  ;;  %17528 = vmatpush.xpose.msrb.mxu0 %v1282_v44  ;;  %v23871_v56 = vld.sshfl [vmem:[#allocation1 + $0x8] sm:$0xff pattern:$0x75316420]  ;;  %v2063_v34 = vld [vmem:[%s20307_s9 + $0x2cc8] sm:$0x3]  ;;  %v1304_v1 = vld [vmem:[%s20307_s9 + $0x1510] sm:$0xff] }
 0x567   : > { %v16210_v58 = vpop.f32.mrf.mxu2  ;;  %v16230_v46 = vpop.f32.mrf.mxu3  ;;  %17588 = vmatpush.xpose.msrb.mxu3 %v1285_v8  ;;  %17548 = vmatpush.xpose.msrb.mxu1 %v1283_v42  ;;  %v23899_v28 = vld.sshfl [vmem:[#allocation1 + $0x10] sm:$0xff pattern:$0x75316420]  ;;  %v2068_v42 = vld [vmem:[%s20307_s9 + $0x2cf0] sm:$0x3] }
 0x568   : > { %v16211_v22 = vadd.f32 %v16210_v58, %v16191_v32  ;;  %v2066_v58 = vld [vmem:[%s20307_s9 + $0x2ce0] sm:$0x3] }
 0x56a   : > { %17647 = vmatpush.xpose.msra.mxu2 %v2056_v43  ;;  %17607 = vmatpush.xpose.msra.mxu0 %v2054_v60  ;;  %v16231_v33 = vadd.f32 %v16230_v46, %v16211_v22  ;;  %v16250_v48 = vpop.f32.mrf.mxu0  ;;  %v16270_v37 = vpop.f32.mrf.mxu1  ;;  %v1294_v43 = vld [vmem:[%s20307_s9 + $0x14c0] sm:$0xff]  ;;  %v23902_v60 = vld.sshfl [vmem:[#allocation1 + $0x18] sm:$0xff pattern:$0x75316420] }
 0x56b   : > { %17667 = vmatpush.xpose.msra.mxu3 %v2057_v29  ;;  %17627 = vmatpush.xpose.msra.mxu1 %v2055_v21  ;;  %v1295_v29 = vld [vmem:[%s20307_s9 + $0x14c8] sm:$0xff]  ;;  %3574 = vst [vmem:[#allocation1 + $0x10] ss:$2 sm:$0xff] %v587_v16  ;;  %v586_v22 = vld [vmem:[%s20300_s7 + $0xaa0] sm:$0xff]  ;;  %v1309_v16 = vld [vmem:[%s20307_s9 + $0x1538] sm:$0xff] }
 0x56c   : > { %v16251_v52 = vadd.f32 %v16250_v48, %v16231_v33  ;;  %17569 = vmatmul.f32.vlgmr.msrb.gmra.mxu2 %v23789_v47  ;;  %17589 = vmatmul.f32.vlgmr.msrb.gmra.mxu3 %v23792_v35  ;;  %v582_v47 = vld [vmem:[%s20300_s7 + $0xa80] sm:$0xff]  ;;  %v2069_v33 = vld [vmem:[%s20307_s9 + $0x2cf8] sm:$0x3] }
 0x56d   : > { %17529 = vmatmul.f32.vlgmr.msrb.gmra.mxu0 %v23802_v2  ;;  %17549 = vmatmul.f32.vlgmr.msrb.gmra.mxu1 %v23805_v59  ;;  %3561 = vst [vmem:[#allocation1] ss:$2 sm:$0xff] %v582_v47  ;;  %v2070_v47 = vld [vmem:[%s20307_s9 + $0x2d00] sm:$0x3] }
 0x56e   : > { %v16271_v57 = vadd.f32 %v16270_v37, %v16251_v52  ;;  %17648 = vmatpush.xpose.msra.mxu2 %v1288_v36  ;;  %17608 = vmatpush.xpose.msra.mxu0 %v1286_v50  ;;  %v23921_v52 = vld.sshfl [vmem:[#allocation1 + $0x30] sm:$0xff pattern:$0x75316420] }
 0x56f   : > { %v16290_v35 = vpop.f32.mrf.mxu2  ;;  %v16310_v6 = vpop.f32.mrf.mxu3  ;;  %17668 = vmatpush.xpose.msra.mxu3 %v1289_v40  ;;  %17628 = vmatpush.xpose.msra.mxu1 %v1287_v54  ;;  %v1298_v54 = vld [vmem:[%s20307_s9 + $0x14e0] sm:$0xff] }
 0x570   : > { %v16291_v2 = vadd.f32 %v16290_v35, %v16271_v57  ;;  %v2073_v35 = vld [vmem:[%s20307_s9 + $0x2d18] sm:$0x3] }
 0x572   : > { %17727 = vmatpush.xpose.msrb.mxu2 %v2060_v0  ;;  %17687 = vmatpush.xpose.msrb.mxu0 %v2058_v45  ;;  %v16311_v59 = vadd.f32 %v16310_v6, %v16291_v2  ;;  %v16330_v51 = vpop.f32.mrf.mxu0  ;;  %v16350_v9 = vpop.f32.mrf.mxu1  ;;  %v1299_v0 = vld [vmem:[%s20307_s9 + $0x14e8] sm:$0xff]  ;;  %v23924_v45 = vld.sshfl [vmem:[#allocation1 + $0x38] sm:$0xff pattern:$0x75316420] }
 0x573   : > { %17747 = vmatpush.xpose.msrb.mxu3 %v2061_v31  ;;  %17707 = vmatpush.xpose.msrb.mxu1 %v2059_v61  ;;  %v589_v31 = vld [vmem:[%s20300_s7 + $0xab8] sm:$0xff]  ;;  %v2072_v61 = vld [vmem:[%s20307_s9 + $0x2d10] sm:$0x3] }
 0x574   : > { %v16331_v26 = vadd.f32 %v16330_v51, %v16311_v59  ;;  %17649 = vmatmul.f32.vlgmr.msra.gmra.mxu2 %v23809_v18  ;;  %17669 = vmatmul.f32.vlgmr.msra.gmra.mxu3 %v23812_v7  ;;  %v23892_v7 = vld.sshfl [vmem:[#allocation1 + $0x20] sm:$0xff pattern:$0x75316420]  ;;  %v23913_v46 = vld.sshfl [vmem:[#allocation1 + $0x8] sm:$0xff pattern:$0x75316420] }
 0x575   : > { %17609 = vmatmul.f32.vlgmr.msra.gmra.mxu0 %v23826_v5  ;;  %17629 = vmatmul.f32.vlgmr.msra.gmra.mxu1 %v23828_v3  ;;  %v23894_v5 = vld.sshfl [vmem:[#allocation1 + $0x28] sm:$0xff pattern:$0x75316420]  ;;  %v23908_v21 = vld.sshfl [vmem:[#allocation1] sm:$0xff pattern:$0x75316420] }
 0x576   : > { %v16351_v23 = vadd.f32 %v16350_v9, %v16331_v26  ;;  %17728 = vmatpush.xpose.msrb.mxu2 %v1292_v55  ;;  %17688 = vmatpush.xpose.msrb.mxu0 %v1290_v14  ;;  %3563 = vst [vmem:[#allocation1 + $0x20] ss:$2 sm:$0xff] %v584_v10  ;;  %v2071_v59 = vld [vmem:[%s20307_s9 + $0x2d08] sm:$0x3]  ;;  %v1305_v10 = vld [vmem:[%s20307_s9 + $0x1518] sm:$0xff] }
 0x577   : > { %v16370_v13 = vpop.f32.mrf.mxu2  ;;  %v16390_v18 = vpop.f32.mrf.mxu3  ;;  %17748 = vmatpush.xpose.msrb.mxu3 %v1293_v20  ;;  %17708 = vmatpush.xpose.msrb.mxu1 %v1291_v17  ;;  %3573 = vst [vmem:[#allocation1] ss:$2 sm:$0xff] %v586_v22  ;;  %v23941_v26 = vld.sshfl [vmem:[#allocation1 + $0x10] sm:$0xff pattern:$0x75316420]  ;;  %v1302_v20 = vld [vmem:[%s20307_s9 + $0x1500] sm:$0xff] }
 0x578   : > { %v16371_v3 = vadd.f32 %v16370_v13, %v16351_v23  ;;  %3576 = vst [vmem:[#allocation1 + $0x30] ss:$2 sm:$0xff] %v589_v31  ;;  %v23944_v17 = vld.sshfl [vmem:[#allocation1 + $0x18] sm:$0xff pattern:$0x75316420]  ;;  %v1303_v23 = vld [vmem:[%s20307_s9 + $0x1508] sm:$0xff] }
 0x579   : > { %v590_v13 = vld [vmem:[%s20300_s7 + $0xac0] sm:$0xff]  ;;  %v593_v22 = vld [vmem:[%s20300_s7 + $0xad8] sm:$0xff] }
 0x57a   : > { %17807 = vmatpush.xpose.msra.mxu2 %v2064_v63  ;;  %17767 = vmatpush.xpose.msra.mxu0 %v2062_v30  ;;  %v16391_v19 = vadd.f32 %v16390_v18, %v16371_v3  ;;  %v16410_v44 = vpop.f32.mrf.mxu0  ;;  %v16430_v8 = vpop.f32.mrf.mxu1  ;;  %v591_v63 = vld [vmem:[%s20300_s7 + $0xac8] sm:$0xff]  ;;  %v2077_v3 = vld [vmem:[%s20307_s9 + $0x2d38] sm:$0x3] }
 0x57b   : > { %17827 = vmatpush.xpose.msra.mxu3 %v2065_v62  ;;  %17787 = vmatpush.xpose.msra.mxu1 %v2063_v34  ;;  %3586 = vst [vmem:[#allocation1 + $0x10] ss:$2 sm:$0xff] %v591_v63  ;;  %v2076_v62 = vld [vmem:[%s20307_s9 + $0x2d30] sm:$0x3]  ;;  %v2074_v34 = vld [vmem:[%s20307_s9 + $0x2d20] sm:$0x3] }
 0x57c   : > { %v16411_v32 = vadd.f32 %v16410_v44, %v16391_v19  ;;  %17729 = vmatmul.f32.vlgmr.msrb.gmra.mxu2 %v23833_v25  ;;  %17749 = vmatmul.f32.vlgmr.msrb.gmra.mxu3 %v23836_v53  ;;  %v2067_v25 = vld [vmem:[%s20307_s9 + $0x2ce8] sm:$0x3]  ;;  %v1308_v44 = vld [vmem:[%s20307_s9 + $0x1530] sm:$0xff]  ;;  %v1313_v31 = vld [vmem:[%s20307_s9 + $0x1558] sm:$0xff] }
 0x57d   : > { %17689 = vmatmul.f32.vlgmr.msrb.gmra.mxu0 %v23842_v15  ;;  %17709 = vmatmul.f32.vlgmr.msrb.gmra.mxu1 %v23847_v41  ;;  %v1300_v41 = vld [vmem:[%s20307_s9 + $0x14f0] sm:$0xff]  ;;  %v23934_v6 = vld.sshfl [vmem:[#allocation1 + $0x20] sm:$0xff pattern:$0x75316420] }
 0x57e   : > { %v16431_v36 = vadd.f32 %v16430_v8, %v16411_v32  ;;  %17808 = vmatpush.xpose.msra.mxu2 %v1296_v38  ;;  %17768 = vmatpush.xpose.msra.mxu0 %v1294_v43  ;;  %v23937_v51 = vld.sshfl [vmem:[#allocation1 + $0x28] sm:$0xff pattern:$0x75316420]  ;;  %v2075_v38 = vld [vmem:[%s20307_s9 + $0x2d28] sm:$0x3]  ;;  %v1316_v63 = vld [vmem:[%s20307_s9 + $0x1570] sm:$0xff] }
 0x57f   : > { %v16450_v53 = vpop.f32.mrf.mxu2  ;;  %v16470_v48 = vpop.f32.mrf.mxu3  ;;  %17828 = vmatpush.xpose.msra.mxu3 %v1297_v11  ;;  %17788 = vmatpush.xpose.msra.mxu1 %v1295_v29  ;;  %v23965_v32 = vld.sshfl [vmem:[#allocation1 + $0x30] sm:$0xff pattern:$0x75316420]  ;;  %v2080_v29 = vld [vmem:[%s20307_s9 + $0x2d50] sm:$0x3] }
 0x580   : > { %v16451_v15 = vadd.f32 %v16450_v53, %v16431_v36  ;;  %v2078_v53 = vld [vmem:[%s20307_s9 + $0x2d40] sm:$0x3] }
 0x582   : > { %17887 = vmatpush.xpose.msrb.mxu2 %v2068_v42  ;;  %17847 = vmatpush.xpose.msrb.mxu0 %v2066_v58  ;;  %v16471_v37 = vadd.f32 %v16470_v48, %v16451_v15  ;;  %v16490_v50 = vpop.f32.mrf.mxu0  ;;  %v16510_v40 = vpop.f32.mrf.mxu1  ;;  %v1306_v42 = vld [vmem:[%s20307_s9 + $0x1520] sm:$0xff]  ;;  %v23968_v58 = vld.sshfl [vmem:[#allocation1 + $0x38] sm:$0xff pattern:$0x75316420] }
 0x583   : > { %17907 = vmatpush.xpose.msrb.mxu3 %v2069_v33  ;;  %17867 = vmatpush.xpose.msrb.mxu1 %v2067_v25  ;;  %v1307_v33 = vld [vmem:[%s20307_s9 + $0x1528] sm:$0xff]  ;;  %3588 = vst [vmem:[#allocation1 + $0x30] ss:$2 sm:$0xff] %v593_v22  ;;  %v592_v15 = vld [vmem:[%s20300_s7 + $0xad0] sm:$0xff]  ;;  %v1321_v22 = vld [vmem:[%s20307_s9 + $0x1598] sm:$0xff] }
 0x584   : > { %v16491_v57 = vadd.f32 %v16490_v50, %v16471_v37  ;;  %17809 = vmatmul.f32.vlgmr.msra.gmra.mxu2 %v23855_v49  ;;  %17829 = vmatmul.f32.vlgmr.msra.gmra.mxu3 %v23858_v39  ;;  %v588_v49 = vld [vmem:[%s20300_s7 + $0xab0] sm:$0xff]  ;;  %v2081_v37 = vld [vmem:[%s20307_s9 + $0x2d58] sm:$0x3] }
 0x585   : > { %17769 = vmatmul.f32.vlgmr.msra.gmra.mxu0 %v23868_v4  ;;  %17789 = vmatmul.f32.vlgmr.msra.gmra.mxu1 %v23871_v56  ;;  %3575 = vst [vmem:[#allocation1 + $0x20] ss:$2 sm:$0xff] %v588_v49  ;;  %v2082_v49 = vld [vmem:[%s20307_s9 + $0x2d60] sm:$0x3] }
 0x586   : > { %v16511_v2 = vadd.f32 %v16510_v40, %v16491_v57  ;;  %17888 = vmatpush.xpose.msrb.mxu2 %v1300_v41  ;;  %17848 = vmatpush.xpose.msrb.mxu0 %v1298_v54  ;;  %v23987_v57 = vld.sshfl [vmem:[#allocation1 + $0x10] sm:$0xff pattern:$0x75316420] }
 0x587   : > { %v16530_v39 = vpop.f32.mrf.mxu2  ;;  %v16550_v9 = vpop.f32.mrf.mxu3  ;;  %17908 = vmatpush.xpose.msrb.mxu3 %v1301_v27  ;;  %17868 = vmatpush.xpose.msrb.mxu1 %v1299_v0  ;;  %v1310_v0 = vld [vmem:[%s20307_s9 + $0x1540] sm:$0xff] }
 0x588   : > { %v16531_v4 = vadd.f32 %v16530_v39, %v16511_v2  ;;  %v2085_v39 = vld [vmem:[%s20307_s9 + $0x2d78] sm:$0x3] }
 0x58a   : > { %17967 = vmatpush.xpose.msra.mxu2 %v2072_v61  ;;  %17927 = vmatpush.xpose.msra.mxu0 %v2070_v47  ;;  %v16551_v56 = vadd.f32 %v16550_v9, %v16531_v4  ;;  %v16570_v55 = vpop.f32.mrf.mxu0  ;;  %v16590_v14 = vpop.f32.mrf.mxu1  ;;  %v1311_v61 = vld [vmem:[%s20307_s9 + $0x1548] sm:$0xff]  ;;  %v23990_v47 = vld.sshfl [vmem:[#allocation1 + $0x18] sm:$0xff pattern:$0x75316420] }
 0x58b   : > { %17987 = vmatpush.xpose.msra.mxu3 %v2073_v35  ;;  %17947 = vmatpush.xpose.msra.mxu1 %v2071_v59  ;;  %v595_v35 = vld [vmem:[%s20300_s7 + $0xae8] sm:$0xff]  ;;  %v2084_v59 = vld [vmem:[%s20307_s9 + $0x2d70] sm:$0x3] }
 0x58c   : > { %v16571_v30 = vadd.f32 %v16570_v55, %v16551_v56  ;;  %17889 = vmatmul.f32.vlgmr.msrb.gmra.mxu2 %v23875_v24  ;;  %17909 = vmatmul.f32.vlgmr.msrb.gmra.mxu3 %v23878_v12  ;;  %v23958_v12 = vld.sshfl [vmem:[#allocation1] sm:$0xff pattern:$0x75316420]  ;;  %v23979_v48 = vld.sshfl [vmem:[#allocation1 + $0x28] sm:$0xff pattern:$0x75316420] }
 0x58d   : > { %17849 = vmatmul.f32.vlgmr.msrb.gmra.mxu0 %v23892_v7  ;;  %17869 = vmatmul.f32.vlgmr.msrb.gmra.mxu1 %v23894_v5  ;;  %v23960_v7 = vld.sshfl [vmem:[#allocation1 + $0x8] sm:$0xff pattern:$0x75316420]  ;;  %v23974_v25 = vld.sshfl [vmem:[#allocation1 + $0x20] sm:$0xff pattern:$0x75316420] }
 0x58e   : > { %v16591_v18 = vadd.f32 %v16590_v14, %v16571_v30  ;;  %17968 = vmatpush.xpose.msra.mxu2 %v1304_v1  ;;  %17928 = vmatpush.xpose.msra.mxu0 %v1302_v20  ;;  %3585 = vst [vmem:[#allocation1] ss:$2 sm:$0xff] %v590_v13  ;;  %v2083_v56 = vld [vmem:[%s20307_s9 + $0x2d68] sm:$0x3]  ;;  %v1317_v13 = vld [vmem:[%s20307_s9 + $0x1578] sm:$0xff] }
 0x58f   : > { %v16610_v19 = vpop.f32.mrf.mxu2  ;;  %v16630_v24 = vpop.f32.mrf.mxu3  ;;  %17988 = vmatpush.xpose.msra.mxu3 %v1305_v10  ;;  %17948 = vmatpush.xpose.msra.mxu1 %v1303_v23  ;;  %3587 = vst [vmem:[#allocation1 + $0x20] ss:$2 sm:$0xff] %v592_v15  ;;  %v24007_v30 = vld.sshfl [vmem:[#allocation1 + $0x30] sm:$0xff pattern:$0x75316420]  ;;  %v1314_v10 = vld [vmem:[%s20307_s9 + $0x1560] sm:$0xff] }
 0x590   : > { %v16611_v5 = vadd.f32 %v16610_v19, %v16591_v18  ;;  %3598 = vst [vmem:[#allocation1 + $0x10] ss:$2 sm:$0xff] %v595_v35  ;;  %v24010_v23 = vld.sshfl [vmem:[#allocation1 + $0x38] sm:$0xff pattern:$0x75316420]  ;;  %v1315_v18 = vld [vmem:[%s20307_s9 + $0x1568] sm:$0xff] }
 0x591   : > { %v596_v19 = vld [vmem:[%s20300_s7 + $0xaf0] sm:$0xff]  ;;  %v599_v15 = vld [vmem:[%s20300_s7 + $0xb08] sm:$0xff]  ;;  %v1325_v35 = vld [vmem:[%s20307_s9 + $0x15b8] sm:$0xff] }
 0x592   : > { %18047 = vmatpush.xpose.msrb.mxu2 %v2076_v62  ;;  %18007 = vmatpush.xpose.msrb.mxu0 %v2074_v34  ;;  %v16631_v8 = vadd.f32 %v16630_v24, %v16611_v5  ;;  %v16650_v43 = vpop.f32.mrf.mxu0  ;;  %v16670_v11 = vpop.f32.mrf.mxu1  ;;  %v597_v62 = vld [vmem:[%s20300_s7 + $0xaf8] sm:$0xff] }
 0x593   : > { %18067 = vmatpush.xpose.msrb.mxu3 %v2077_v3  ;;  %18027 = vmatpush.xpose.msrb.mxu1 %v2075_v38  ;;  %3600 = vst [vmem:[#allocation1 + $0x30] ss:$2 sm:$0xff] %v597_v62  ;;  %v2088_v3 = vld [vmem:[%s20307_s9 + $0x2d90] sm:$0x3]  ;;  %v2086_v38 = vld [vmem:[%s20307_s9 + $0x2d80] sm:$0x3] }
 0x594   : > { %v16651_v36 = vadd.f32 %v16650_v43, %v16631_v8  ;;  %17969 = vmatmul.f32.vlgmr.msra.gmra.mxu2 %v23899_v28  ;;  %17989 = vmatmul.f32.vlgmr.msra.gmra.mxu3 %v23902_v60  ;;  %v2079_v28 = vld [vmem:[%s20307_s9 + $0x2d48] sm:$0x3]  ;;  %v2089_v5 = vld [vmem:[%s20307_s9 + $0x2d98] sm:$0x3]  ;;  %v1320_v43 = vld [vmem:[%s20307_s9 + $0x1590] sm:$0xff] }
 0x595   : > { %17929 = vmatmul.f32.vlgmr.msra.gmra.mxu0 %v23908_v21  ;;  %17949 = vmatmul.f32.vlgmr.msra.gmra.mxu1 %v23913_v46  ;;  %v1312_v46 = vld [vmem:[%s20307_s9 + $0x1550] sm:$0xff]  ;;  %v24000_v9 = vld.sshfl [vmem:[#allocation1] sm:$0xff pattern:$0x75316420] }
 0x596   : > { %v16671_v41 = vadd.f32 %v16670_v11, %v16651_v36  ;;  %18048 = vmatpush.xpose.msrb.mxu2 %v1308_v44  ;;  %18008 = vmatpush.xpose.msrb.mxu0 %v1306_v42  ;;  %v24003_v55 = vld.sshfl [vmem:[#allocation1 + $0x8] sm:$0xff pattern:$0x75316420]  ;;  %v2087_v44 = vld [vmem:[%s20307_s9 + $0x2d88] sm:$0x3]  ;;  %v1328_v62 = vld [vmem:[%s20307_s9 + $0x15d0] sm:$0xff] }
 0x597   : > { %v16690_v60 = vpop.f32.mrf.mxu2  ;;  %v16710_v50 = vpop.f32.mrf.mxu3  ;;  %18068 = vmatpush.xpose.msrb.mxu3 %v1309_v16  ;;  %18028 = vmatpush.xpose.msrb.mxu1 %v1307_v33  ;;  %v24031_v36 = vld.sshfl [vmem:[#allocation1 + $0x10] sm:$0xff pattern:$0x75316420]  ;;  %v2092_v33 = vld [vmem:[%s20307_s9 + $0x2db0] sm:$0x3] }
 0x598   : > { %v16691_v21 = vadd.f32 %v16690_v60, %v16671_v41  ;;  %v2090_v60 = vld [vmem:[%s20307_s9 + $0x2da0] sm:$0x3] }
 0x59a   : > { %18127 = vmatpush.xpose.msra.mxu2 %v2080_v29  ;;  %18087 = vmatpush.xpose.msra.mxu0 %v2078_v53  ;;  %v16711_v40 = vadd.f32 %v16710_v50, %v16691_v21  ;;  %v16730_v54 = vpop.f32.mrf.mxu0  ;;  %v16750_v27 = vpop.f32.mrf.mxu1  ;;  %v1318_v29 = vld [vmem:[%s20307_s9 + $0x1580] sm:$0xff]  ;;  %v24034_v53 = vld.sshfl [vmem:[#allocation1 + $0x18] sm:$0xff pattern:$0x75316420] }
 0x59b   : > { %18147 = vmatpush.xpose.msra.mxu3 %v2081_v37  ;;  %18107 = vmatpush.xpose.msra.mxu1 %v2079_v28  ;;  %v1319_v37 = vld [vmem:[%s20307_s9 + $0x1588] sm:$0xff]  ;;  %3610 = vst [vmem:[#allocation1 + $0x10] ss:$2 sm:$0xff] %v599_v15  ;;  %v598_v21 = vld [vmem:[%s20300_s7 + $0xb00] sm:$0xff]  ;;  %v1333_v15 = vld [vmem:[%s20307_s9 + $0x15f8] sm:$0xff] }
 0x59c   : > { %v16731_v2 = vadd.f32 %v16730_v54, %v16711_v40  ;;  %18049 = vmatmul.f32.vlgmr.msrb.gmra.mxu2 %v23921_v52  ;;  %18069 = vmatmul.f32.vlgmr.msrb.gmra.mxu3 %v23924_v45  ;;  %v594_v52 = vld [vmem:[%s20300_s7 + $0xae0] sm:$0xff]  ;;  %v2093_v40 = vld [vmem:[%s20307_s9 + $0x2db8] sm:$0x3] }
 0x59d   : > { %18009 = vmatmul.f32.vlgmr.msrb.gmra.mxu0 %v23934_v6  ;;  %18029 = vmatmul.f32.vlgmr.msrb.gmra.mxu1 %v23937_v51  ;;  %3597 = vst [vmem:[#allocation1] ss:$2 sm:$0xff] %v594_v52  ;;  %v2094_v52 = vld [vmem:[%s20307_s9 + $0x2dc0] sm:$0x3] }
 0x59e   : > { %v16751_v4 = vadd.f32 %v16750_v27, %v16731_v2  ;;  %18128 = vmatpush.xpose.msra.mxu2 %v1312_v46  ;;  %18088 = vmatpush.xpose.msra.mxu0 %v1310_v0  ;;  %v24053_v2 = vld.sshfl [vmem:[#allocation1 + $0x30] sm:$0xff pattern:$0x75316420] }
 0x59f   : > { %v16770_v45 = vpop.f32.mrf.mxu2  ;;  %v16790_v14 = vpop.f32.mrf.mxu3  ;;  %18148 = vmatpush.xpose.msra.mxu3 %v1313_v31  ;;  %18108 = vmatpush.xpose.msra.mxu1 %v1311_v61  ;;  %v1322_v61 = vld [vmem:[%s20307_s9 + $0x15a0] sm:$0xff] }
 0x5a0   : > { %v16771_v6 = vadd.f32 %v16770_v45, %v16751_v4  ;;  %v2097_v45 = vld [vmem:[%s20307_s9 + $0x2dd8] sm:$0x3] }
 0x5a2   : > { %18207 = vmatpush.xpose.msrb.mxu2 %v2084_v59  ;;  %18167 = vmatpush.xpose.msrb.mxu0 %v2082_v49  ;;  %v16791_v51 = vadd.f32 %v16790_v14, %v16771_v6  ;;  %v16810_v1 = vpop.f32.mrf.mxu0  ;;  %v16830_v20 = vpop.f32.mrf.mxu1  ;;  %v1323_v59 = vld [vmem:[%s20307_s9 + $0x15a8] sm:$0xff]  ;;  %v24056_v49 = vld.sshfl [vmem:[#allocation1 + $0x38] sm:$0xff pattern:$0x75316420] }
 0x5a3   : > { %18227 = vmatpush.xpose.msrb.mxu3 %v2085_v39  ;;  %18187 = vmatpush.xpose.msrb.mxu1 %v2083_v56  ;;  %v601_v39 = vld [vmem:[%s20300_s7 + $0xb18] sm:$0xff]  ;;  %v2096_v56 = vld [vmem:[%s20307_s9 + $0x2dd0] sm:$0x3] }
 0x5a4   : > { %v16811_v34 = vadd.f32 %v16810_v1, %v16791_v51  ;;  %18129 = vmatmul.f32.vlgmr.msra.gmra.mxu2 %v23941_v26  ;;  %18149 = vmatmul.f32.vlgmr.msra.gmra.mxu3 %v23944_v17  ;;  %v24024_v17 = vld.sshfl [vmem:[#allocation1 + $0x20] sm:$0xff pattern:$0x75316420]  ;;  %v24045_v50 = vld.sshfl [vmem:[#allocation1 + $0x8] sm:$0xff pattern:$0x75316420] }
 0x5a5   : > { %18089 = vmatmul.f32.vlgmr.msra.gmra.mxu0 %v23958_v12  ;;  %18109 = vmatmul.f32.vlgmr.msra.gmra.mxu1 %v23960_v7  ;;  %v24026_v12 = vld.sshfl [vmem:[#allocation1 + $0x28] sm:$0xff pattern:$0x75316420]  ;;  %v24040_v28 = vld.sshfl [vmem:[#allocation1] sm:$0xff pattern:$0x75316420] }
 0x5a6   : > { %v16831_v24 = vadd.f32 %v16830_v20, %v16811_v34  ;;  %18208 = vmatpush.xpose.msrb.mxu2 %v1316_v63  ;;  %18168 = vmatpush.xpose.msrb.mxu0 %v1314_v10  ;;  %3599 = vst [vmem:[#allocation1 + $0x20] ss:$2 sm:$0xff] %v596_v19  ;;  %v2095_v51 = vld [vmem:[%s20307_s9 + $0x2dc8] sm:$0x3]  ;;  %v1329_v19 = vld [vmem:[%s20307_s9 + $0x15d8] sm:$0xff] }
 0x5a7   : > { %v16850_v8 = vpop.f32.mrf.mxu2  ;;  %v16870_v26 = vpop.f32.mrf.mxu3  ;;  %18228 = vmatpush.xpose.msrb.mxu3 %v1317_v13  ;;  %18188 = vmatpush.xpose.msrb.mxu1 %v1315_v18  ;;  %3609 = vst [vmem:[#allocation1] ss:$2 sm:$0xff] %v598_v21  ;;  %v24073_v34 = vld.sshfl [vmem:[#allocation1 + $0x10] sm:$0xff pattern:$0x75316420]  ;;  %v1326_v13 = vld [vmem:[%s20307_s9 + $0x15c0] sm:$0xff] }
 0x5a8   : > { %v16851_v7 = vadd.f32 %v16850_v8, %v16831_v24  ;;  %3612 = vst [vmem:[#allocation1 + $0x30] ss:$2 sm:$0xff] %v601_v39  ;;  %v24076_v18 = vld.sshfl [vmem:[#allocation1 + $0x18] sm:$0xff pattern:$0x75316420]  ;;  %v1327_v24 = vld [vmem:[%s20307_s9 + $0x15c8] sm:$0xff] }
 0x5a9   : > { %v602_v8 = vld [vmem:[%s20300_s7 + $0xb20] sm:$0xff]  ;;  %v605_v21 = vld [vmem:[%s20300_s7 + $0xb38] sm:$0xff] }
 0x5aa   : > { %18287 = vmatpush.xpose.msra.mxu2 %v2088_v3  ;;  %18247 = vmatpush.xpose.msra.mxu0 %v2086_v38  ;;  %v16871_v11 = vadd.f32 %v16870_v26, %v16851_v7  ;;  %v16890_v42 = vpop.f32.mrf.mxu0  ;;  %v16910_v16 = vpop.f32.mrf.mxu1  ;;  %v603_v3 = vld [vmem:[%s20300_s7 + $0xb28] sm:$0xff]  ;;  %v2101_v7 = vld [vmem:[%s20307_s9 + $0x2df8] sm:$0x3] }
 0x5ab   : > { %18307 = vmatpush.xpose.msra.mxu3 %v2089_v5  ;;  %18267 = vmatpush.xpose.msra.mxu1 %v2087_v44  ;;  %3622 = vst [vmem:[#allocation1 + $0x10] ss:$2 sm:$0xff] %v603_v3  ;;  %v2100_v5 = vld [vmem:[%s20307_s9 + $0x2df0] sm:$0x3]  ;;  %v2098_v44 = vld [vmem:[%s20307_s9 + $0x2de0] sm:$0x3] }
 0x5ac   : > { %v16891_v41 = vadd.f32 %v16890_v42, %v16871_v11  ;;  %18209 = vmatmul.f32.vlgmr.msrb.gmra.mxu2 %v23965_v32  ;;  %18229 = vmatmul.f32.vlgmr.msrb.gmra.mxu3 %v23968_v58  ;;  %v2091_v32 = vld [vmem:[%s20307_s9 + $0x2da8] sm:$0x3]  ;;  %v1332_v42 = vld [vmem:[%s20307_s9 + $0x15f0] sm:$0xff]  ;;  %v1337_v39 = vld [vmem:[%s20307_s9 + $0x1618] sm:$0xff] }
 0x5ad   : > { %18169 = vmatmul.f32.vlgmr.msrb.gmra.mxu0 %v23974_v25  ;;  %18189 = vmatmul.f32.vlgmr.msrb.gmra.mxu1 %v23979_v48  ;;  %v1324_v48 = vld [vmem:[%s20307_s9 + $0x15b0] sm:$0xff]  ;;  %v24066_v14 = vld.sshfl [vmem:[#allocation1 + $0x20] sm:$0xff pattern:$0x75316420] }
 0x5ae   : > { %v16911_v46 = vadd.f32 %v16910_v16, %v16891_v41  ;;  %18288 = vmatpush.xpose.msra.mxu2 %v1320_v43  ;;  %18248 = vmatpush.xpose.msra.mxu0 %v1318_v29  ;;  %v24069_v1 = vld.sshfl [vmem:[#allocation1 + $0x28] sm:$0xff pattern:$0x75316420]  ;;  %v2099_v43 = vld [vmem:[%s20307_s9 + $0x2de8] sm:$0x3]  ;;  %v1340_v3 = vld [vmem:[%s20307_s9 + $0x1630] sm:$0xff] }
 0x5af   : > { %v16930_v58 = vpop.f32.mrf.mxu2  ;;  %v16950_v54 = vpop.f32.mrf.mxu3  ;;  %18308 = vmatpush.xpose.msra.mxu3 %v1321_v22  ;;  %18268 = vmatpush.xpose.msra.mxu1 %v1319_v37  ;;  %v24097_v41 = vld.sshfl [vmem:[#allocation1 + $0x30] sm:$0xff pattern:$0x75316420]  ;;  %v2104_v37 = vld [vmem:[%s20307_s9 + $0x2e10] sm:$0x3] }
 0x5b0   : > { %v16931_v25 = vadd.f32 %v16930_v58, %v16911_v46  ;;  %v2102_v58 = vld [vmem:[%s20307_s9 + $0x2e00] sm:$0x3] }
 0x5b2   : > { %18367 = vmatpush.xpose.msrb.mxu2 %v2092_v33  ;;  %18327 = vmatpush.xpose.msrb.mxu0 %v2090_v60  ;;  %v16951_v27 = vadd.f32 %v16950_v54, %v16931_v25  ;;  %v16970_v0 = vpop.f32.mrf.mxu0  ;;  %v16990_v31 = vpop.f32.mrf.mxu1  ;;  %v1330_v33 = vld [vmem:[%s20307_s9 + $0x15e0] sm:$0xff]  ;;  %v24100_v60 = vld.sshfl [vmem:[#allocation1 + $0x38] sm:$0xff pattern:$0x75316420] }
 0x5b3   : > { %18387 = vmatpush.xpose.msrb.mxu3 %v2093_v40  ;;  %18347 = vmatpush.xpose.msrb.mxu1 %v2091_v32  ;;  %v1331_v40 = vld [vmem:[%s20307_s9 + $0x15e8] sm:$0xff]  ;;  %3624 = vst [vmem:[#allocation1 + $0x30] ss:$2 sm:$0xff] %v605_v21  ;;  %v604_v25 = vld [vmem:[%s20300_s7 + $0xb30] sm:$0xff]  ;;  %v1345_v21 = vld [vmem:[%s20307_s9 + $0x1658] sm:$0xff] }
 0x5b4   : > { %v16971_v4 = vadd.f32 %v16970_v0, %v16951_v27  ;;  %18289 = vmatmul.f32.vlgmr.msra.gmra.mxu2 %v23987_v57  ;;  %18309 = vmatmul.f32.vlgmr.msra.gmra.mxu3 %v23990_v47  ;;  %v600_v57 = vld [vmem:[%s20300_s7 + $0xb10] sm:$0xff]  ;;  %v2105_v27 = vld [vmem:[%s20307_s9 + $0x2e18] sm:$0x3] }
 0x5b5   : > { %18249 = vmatmul.f32.vlgmr.msra.gmra.mxu0 %v24000_v9  ;;  %18269 = vmatmul.f32.vlgmr.msra.gmra.mxu1 %v24003_v55  ;;  %3611 = vst [vmem:[#allocation1 + $0x20] ss:$2 sm:$0xff] %v600_v57  ;;  %v2106_v57 = vld [vmem:[%s20307_s9 + $0x2e20] sm:$0x3] }
 0x5b6   : > { %v16991_v6 = vadd.f32 %v16990_v31, %v16971_v4  ;;  %18368 = vmatpush.xpose.msrb.mxu2 %v1324_v48  ;;  %18328 = vmatpush.xpose.msrb.mxu0 %v1322_v61  ;;  %v24119_v4 = vld.sshfl [vmem:[#allocation1 + $0x10] sm:$0xff pattern:$0x75316420] }
 0x5b7   : > { %v17010_v47 = vpop.f32.mrf.mxu2  ;;  %v17030_v20 = vpop.f32.mrf.mxu3  ;;  %18388 = vmatpush.xpose.msrb.mxu3 %v1325_v35  ;;  %18348 = vmatpush.xpose.msrb.mxu1 %v1323_v59  ;;  %v1334_v59 = vld [vmem:[%s20307_s9 + $0x1600] sm:$0xff] }
 0x5b8   : > { %v17011_v9 = vadd.f32 %v17010_v47, %v16991_v6  ;;  %v2109_v47 = vld [vmem:[%s20307_s9 + $0x2e38] sm:$0x3] }
 0x5ba   : > { %18447 = vmatpush.xpose.msra.mxu2 %v2096_v56  ;;  %18407 = vmatpush.xpose.msra.mxu0 %v2094_v52  ;;  %v17031_v55 = vadd.f32 %v17030_v20, %v17011_v9  ;;  %v17050_v63 = vpop.f32.mrf.mxu0  ;;  %v17070_v10 = vpop.f32.mrf.mxu1  ;;  %v1335_v56 = vld [vmem:[%s20307_s9 + $0x1608] sm:$0xff]  ;;  %v24122_v52 = vld.sshfl [vmem:[#allocation1 + $0x18] sm:$0xff pattern:$0x75316420] }
 0x5bb   : > { %18467 = vmatpush.xpose.msra.mxu3 %v2097_v45  ;;  %18427 = vmatpush.xpose.msra.mxu1 %v2095_v51  ;;  %v607_v45 = vld [vmem:[%s20300_s7 + $0xb48] sm:$0xff]  ;;  %v2108_v51 = vld [vmem:[%s20307_s9 + $0x2e30] sm:$0x3] }
 0x5bc   : > { %v17051_v38 = vadd.f32 %v17050_v63, %v17031_v55  ;;  %18369 = vmatmul.f32.vlgmr.msrb.gmra.mxu2 %v24007_v30  ;;  %18389 = vmatmul.f32.vlgmr.msrb.gmra.mxu3 %v24010_v23  ;;  %v24090_v23 = vld.sshfl [vmem:[#allocation1] sm:$0xff pattern:$0x75316420]  ;;  %v24111_v54 = vld.sshfl [vmem:[#allocation1 + $0x28] sm:$0xff pattern:$0x75316420] }
 0x5bd   : > { %18329 = vmatmul.f32.vlgmr.msrb.gmra.mxu0 %v24024_v17  ;;  %18349 = vmatmul.f32.vlgmr.msrb.gmra.mxu1 %v24026_v12  ;;  %v24092_v17 = vld.sshfl [vmem:[#allocation1 + $0x8] sm:$0xff pattern:$0x75316420]  ;;  %v24106_v32 = vld.sshfl [vmem:[#allocation1 + $0x20] sm:$0xff pattern:$0x75316420] }
 0x5be   : > { %v17071_v26 = vadd.f32 %v17070_v10, %v17051_v38  ;;  %18448 = vmatpush.xpose.msra.mxu2 %v1328_v62  ;;  %18408 = vmatpush.xpose.msra.mxu0 %v1326_v13  ;;  %3621 = vst [vmem:[#allocation1] ss:$2 sm:$0xff] %v602_v8  ;;  %v2107_v55 = vld [vmem:[%s20307_s9 + $0x2e28] sm:$0x3]  ;;  %v1341_v8 = vld [vmem:[%s20307_s9 + $0x1638] sm:$0xff] }
 0x5bf   : > { %v17090_v11 = vpop.f32.mrf.mxu2  ;;  %v17110_v30 = vpop.f32.mrf.mxu3  ;;  %18468 = vmatpush.xpose.msra.mxu3 %v1329_v19  ;;  %18428 = vmatpush.xpose.msra.mxu1 %v1327_v24  ;;  %3623 = vst [vmem:[#allocation1 + $0x20] ss:$2 sm:$0xff] %v604_v25  ;;  %v24139_v38 = vld.sshfl [vmem:[#allocation1 + $0x30] sm:$0xff pattern:$0x75316420]  ;;  %v1338_v19 = vld [vmem:[%s20307_s9 + $0x1620] sm:$0xff] }
 0x5c0   : > { %v17091_v12 = vadd.f32 %v17090_v11, %v17071_v26  ;;  %3634 = vst [vmem:[#allocation1 + $0x10] ss:$2 sm:$0xff] %v607_v45  ;;  %v24142_v24 = vld.sshfl [vmem:[#allocation1 + $0x38] sm:$0xff pattern:$0x75316420]  ;;  %v1339_v26 = vld [vmem:[%s20307_s9 + $0x1628] sm:$0xff] }
 0x5c1   : > { %v608_v11 = vld [vmem:[%s20300_s7 + $0xb50] sm:$0xff]  ;;  %v611_v25 = vld [vmem:[%s20300_s7 + $0xb68] sm:$0xff]  ;;  %v1349_v45 = vld [vmem:[%s20307_s9 + $0x1678] sm:$0xff] }
 0x5c2   : > { %18527 = vmatpush.xpose.msrb.mxu2 %v2100_v5  ;;  %18487 = vmatpush.xpose.msrb.mxu0 %v2098_v44  ;;  %v17111_v16 = vadd.f32 %v17110_v30, %v17091_v12  ;;  %v17130_v29 = vpop.f32.mrf.mxu0  ;;  %v17150_v22 = vpop.f32.mrf.mxu1  ;;  %v609_v5 = vld [vmem:[%s20300_s7 + $0xb58] sm:$0xff] }
 0x5c3   : > { %18547 = vmatpush.xpose.msrb.mxu3 %v2101_v7  ;;  %18507 = vmatpush.xpose.msrb.mxu1 %v2099_v43  ;;  %3636 = vst [vmem:[#allocation1 + $0x30] ss:$2 sm:$0xff] %v609_v5  ;;  %v2112_v7 = vld [vmem:[%s20307_s9 + $0x2e50] sm:$0x3]  ;;  %v2110_v43 = vld [vmem:[%s20307_s9 + $0x2e40] sm:$0x3] }
 0x5c4   : > { %v17131_v46 = vadd.f32 %v17130_v29, %v17111_v16  ;;  %18449 = vmatmul.f32.vlgmr.msra.gmra.mxu2 %v24031_v36  ;;  %18469 = vmatmul.f32.vlgmr.msra.gmra.mxu3 %v24034_v53  ;;  %v2103_v36 = vld [vmem:[%s20307_s9 + $0x2e08] sm:$0x3]  ;;  %v2113_v12 = vld [vmem:[%s20307_s9 + $0x2e58] sm:$0x3]  ;;  %v1344_v29 = vld [vmem:[%s20307_s9 + $0x1650] sm:$0xff] }
 0x5c5   : > { %18409 = vmatmul.f32.vlgmr.msra.gmra.mxu0 %v24040_v28  ;;  %18429 = vmatmul.f32.vlgmr.msra.gmra.mxu1 %v24045_v50  ;;  %v1336_v50 = vld [vmem:[%s20307_s9 + $0x1610] sm:$0xff]  ;;  %v24132_v20 = vld.sshfl [vmem:[#allocation1] sm:$0xff pattern:$0x75316420] }
 0x5c6   : > { %v17151_v48 = vadd.f32 %v17150_v22, %v17131_v46  ;;  %18528 = vmatpush.xpose.msrb.mxu2 %v1332_v42  ;;  %18488 = vmatpush.xpose.msrb.mxu0 %v1330_v33  ;;  %v24135_v63 = vld.sshfl [vmem:[#allocation1 + $0x8] sm:$0xff pattern:$0x75316420]  ;;  %v2111_v42 = vld [vmem:[%s20307_s9 + $0x2e48] sm:$0x3]  ;;  %v1352_v5 = vld [vmem:[%s20307_s9 + $0x1690] sm:$0xff] }
 0x5c7   : > { %v17170_v53 = vpop.f32.mrf.mxu2  ;;  %v17190_v0 = vpop.f32.mrf.mxu3  ;;  %18548 = vmatpush.xpose.msrb.mxu3 %v1333_v15  ;;  %18508 = vmatpush.xpose.msrb.mxu1 %v1331_v40  ;;  %v24163_v46 = vld.sshfl [vmem:[#allocation1 + $0x10] sm:$0xff pattern:$0x75316420]  ;;  %v2116_v40 = vld [vmem:[%s20307_s9 + $0x2e70] sm:$0x3] }
 0x5c8   : > { %v17171_v28 = vadd.f32 %v17170_v53, %v17151_v48  ;;  %v2114_v53 = vld [vmem:[%s20307_s9 + $0x2e60] sm:$0x3] }
 0x5ca   : > { %18607 = vmatpush.xpose.msra.mxu2 %v2104_v37  ;;  %18567 = vmatpush.xpose.msra.mxu0 %v2102_v58  ;;  %v17191_v31 = vadd.f32 %v17190_v0, %v17171_v28  ;;  %v17210_v61 = vpop.f32.mrf.mxu0  ;;  %v17230_v35 = vpop.f32.mrf.mxu1  ;;  %v1342_v37 = vld [vmem:[%s20307_s9 + $0x1640] sm:$0xff]  ;;  %v24166_v58 = vld.sshfl [vmem:[#allocation1 + $0x18] sm:$0xff pattern:$0x75316420] }
 0x5cb   : > { %18627 = vmatpush.xpose.msra.mxu3 %v2105_v27  ;;  %18587 = vmatpush.xpose.msra.mxu1 %v2103_v36  ;;  %v1343_v27 = vld [vmem:[%s20307_s9 + $0x1648] sm:$0xff]  ;;  %3646 = vst [vmem:[#allocation1 + $0x10] ss:$2 sm:$0xff] %v611_v25  ;;  %v610_v28 = vld [vmem:[%s20300_s7 + $0xb60] sm:$0xff]  ;;  %v1357_v25 = vld [vmem:[%s20307_s9 + $0x16b8] sm:$0xff] }
 0x5cc   : > { %v17211_v6 = vadd.f32 %v17210_v61, %v17191_v31  ;;  %18529 = vmatmul.f32.vlgmr.msrb.gmra.mxu2 %v24053_v2  ;;  %18549 = vmatmul.f32.vlgmr.msrb.gmra.mxu3 %v24056_v49  ;;  %v606_v2 = vld [vmem:[%s20300_s7 + $0xb40] sm:$0xff]  ;;  %v2117_v31 = vld [vmem:[%s20307_s9 + $0x2e78] sm:$0x3] }
 0x5cd   : > { %18489 = vmatmul.f32.vlgmr.msrb.gmra.mxu0 %v24066_v14  ;;  %18509 = vmatmul.f32.vlgmr.msrb.gmra.mxu1 %v24069_v1  ;;  %3633 = vst [vmem:[#allocation1] ss:$2 sm:$0xff] %v606_v2  ;;  %v2118_v2 = vld [vmem:[%s20307_s9 + $0x2e80] sm:$0x3] }
 0x5ce   : > { %v17231_v9 = vadd.f32 %v17230_v35, %v17211_v6  ;;  %18608 = vmatpush.xpose.msra.mxu2 %v1336_v50  ;;  %18568 = vmatpush.xpose.msra.mxu0 %v1334_v59  ;;  %v24185_v6 = vld.sshfl [vmem:[#allocation1 + $0x30] sm:$0xff pattern:$0x75316420] }
 0x5cf   : > { %v17250_v49 = vpop.f32.mrf.mxu2  ;;  %v17270_v10 = vpop.f32.mrf.mxu3  ;;  %18628 = vmatpush.xpose.msra.mxu3 %v1337_v39  ;;  %18588 = vmatpush.xpose.msra.mxu1 %v1335_v56  ;;  %v1346_v56 = vld [vmem:[%s20307_s9 + $0x1660] sm:$0xff] }
 0x5d0   : > { %v17251_v14 = vadd.f32 %v17250_v49, %v17231_v9  ;;  %v2121_v49 = vld [vmem:[%s20307_s9 + $0x2e98] sm:$0x3] }
 0x5d2   : > { %18687 = vmatpush.xpose.msrb.mxu2 %v2108_v51  ;;  %18647 = vmatpush.xpose.msrb.mxu0 %v2106_v57  ;;  %v17271_v1 = vadd.f32 %v17270_v10, %v17251_v14  ;;  %v17290_v62 = vpop.f32.mrf.mxu0  ;;  %v17310_v13 = vpop.f32.mrf.mxu1  ;;  %v1347_v51 = vld [vmem:[%s20307_s9 + $0x1668] sm:$0xff]  ;;  %v24188_v57 = vld.sshfl [vmem:[#allocation1 + $0x38] sm:$0xff pattern:$0x75316420] }
 0x5d3   : > { %18707 = vmatpush.xpose.msrb.mxu3 %v2109_v47  ;;  %18667 = vmatpush.xpose.msrb.mxu1 %v2107_v55  ;;  %v613_v47 = vld [vmem:[%s20300_s7 + $0xb78] sm:$0xff]  ;;  %v2120_v55 = vld [vmem:[%s20307_s9 + $0x2e90] sm:$0x3] }
 0x5d4   : > { %v17291_v44 = vadd.f32 %v17290_v62, %v17271_v1  ;;  %18609 = vmatmul.f32.vlgmr.msra.gmra.mxu2 %v24073_v34  ;;  %18629 = vmatmul.f32.vlgmr.msra.gmra.mxu3 %v24076_v18  ;;  %v24156_v18 = vld.sshfl [vmem:[#allocation1 + $0x20] sm:$0xff pattern:$0x75316420]  ;;  %v24177_v0 = vld.sshfl [vmem:[#allocation1 + $0x8] sm:$0xff pattern:$0x75316420] }
 0x5d5   : > { %18569 = vmatmul.f32.vlgmr.msra.gmra.mxu0 %v24090_v23  ;;  %18589 = vmatmul.f32.vlgmr.msra.gmra.mxu1 %v24092_v17  ;;  %v24158_v23 = vld.sshfl [vmem:[#allocation1 + $0x28] sm:$0xff pattern:$0x75316420]  ;;  %v24172_v36 = vld.sshfl [vmem:[#allocation1] sm:$0xff pattern:$0x75316420] }
 0x5d6   : > { %v17311_v30 = vadd.f32 %v17310_v13, %v17291_v44  ;;  %18688 = vmatpush.xpose.msrb.mxu2 %v1340_v3  ;;  %18648 = vmatpush.xpose.msrb.mxu0 %v1338_v19  ;;  %3635 = vst [vmem:[#allocation1 + $0x20] ss:$2 sm:$0xff] %v608_v11  ;;  %v2119_v1 = vld [vmem:[%s20307_s9 + $0x2e88] sm:$0x3]  ;;  %v1353_v11 = vld [vmem:[%s20307_s9 + $0x1698] sm:$0xff] }
 0x5d7   : > { %v17330_v16 = vpop.f32.mrf.mxu2  ;;  %v17350_v34 = vpop.f32.mrf.mxu3  ;;  %18708 = vmatpush.xpose.msrb.mxu3 %v1341_v8  ;;  %18668 = vmatpush.xpose.msrb.mxu1 %v1339_v26  ;;  %3645 = vst [vmem:[#allocation1] ss:$2 sm:$0xff] %v610_v28  ;;  %v24205_v44 = vld.sshfl [vmem:[#allocation1 + $0x10] sm:$0xff pattern:$0x75316420]  ;;  %v1350_v8 = vld [vmem:[%s20307_s9 + $0x1680] sm:$0xff] }
 0x5d8   : > { %v17331_v17 = vadd.f32 %v17330_v16, %v17311_v30  ;;  %3648 = vst [vmem:[#allocation1 + $0x30] ss:$2 sm:$0xff] %v613_v47  ;;  %v24208_v26 = vld.sshfl [vmem:[#allocation1 + $0x18] sm:$0xff pattern:$0x75316420]  ;;  %v1351_v30 = vld [vmem:[%s20307_s9 + $0x1688] sm:$0xff] }
 0x5d9   : > { %v614_v16 = vld [vmem:[%s20300_s7 + $0xb80] sm:$0xff]  ;;  %v617_v28 = vld [vmem:[%s20300_s7 + $0xb98] sm:$0xff] }
 0x5da   : > { %18767 = vmatpush.xpose.msra.mxu2 %v2112_v7  ;;  %18727 = vmatpush.xpose.msra.mxu0 %v2110_v43  ;;  %v17351_v22 = vadd.f32 %v17350_v34, %v17331_v17  ;;  %v17370_v33 = vpop.f32.mrf.mxu0  ;;  %v17390_v15 = vpop.f32.mrf.mxu1  ;;  %v615_v7 = vld [vmem:[%s20300_s7 + $0xb88] sm:$0xff]  ;;  %v2125_v17 = vld [vmem:[%s20307_s9 + $0x2eb8] sm:$0x3] }
 0x5db   : > { %18787 = vmatpush.xpose.msra.mxu3 %v2113_v12  ;;  %18747 = vmatpush.xpose.msra.mxu1 %v2111_v42  ;;  %3658 = vst [vmem:[#allocation1 + $0x10] ss:$2 sm:$0xff] %v615_v7  ;;  %v2124_v12 = vld [vmem:[%s20307_s9 + $0x2eb0] sm:$0x3]  ;;  %v2122_v42 = vld [vmem:[%s20307_s9 + $0x2ea0] sm:$0x3] }
 0x5dc   : > { %v17371_v48 = vadd.f32 %v17370_v33, %v17351_v22  ;;  %18689 = vmatmul.f32.vlgmr.msrb.gmra.mxu2 %v24097_v41  ;;  %18709 = vmatmul.f32.vlgmr.msrb.gmra.mxu3 %v24100_v60  ;;  %v2115_v41 = vld [vmem:[%s20307_s9 + $0x2e68] sm:$0x3]  ;;  %v1356_v33 = vld [vmem:[%s20307_s9 + $0x16b0] sm:$0xff]  ;;  %v1361_v47 = vld [vmem:[%s20307_s9 + $0x16d8] sm:$0xff] }
 0x5dd   : > { %18649 = vmatmul.f32.vlgmr.msrb.gmra.mxu0 %v24106_v32  ;;  %18669 = vmatmul.f32.vlgmr.msrb.gmra.mxu1 %v24111_v54  ;;  %v1348_v54 = vld [vmem:[%s20307_s9 + $0x1670] sm:$0xff]  ;;  %v24198_v10 = vld.sshfl [vmem:[#allocation1 + $0x20] sm:$0xff pattern:$0x75316420] }
 0x5de   : > { %v17391_v50 = vadd.f32 %v17390_v15, %v17371_v48  ;;  %18768 = vmatpush.xpose.msra.mxu2 %v1344_v29  ;;  %18728 = vmatpush.xpose.msra.mxu0 %v1342_v37  ;;  %v24201_v62 = vld.sshfl [vmem:[#allocation1 + $0x28] sm:$0xff pattern:$0x75316420]  ;;  %v2123_v29 = vld [vmem:[%s20307_s9 + $0x2ea8] sm:$0x3]  ;;  %v1364_v7 = vld [vmem:[%s20307_s9 + $0x16f0] sm:$0xff] }
 0x5df   : > { %v17410_v60 = vpop.f32.mrf.mxu2  ;;  %v17430_v61 = vpop.f32.mrf.mxu3  ;;  %18788 = vmatpush.xpose.msra.mxu3 %v1345_v21  ;;  %18748 = vmatpush.xpose.msra.mxu1 %v1343_v27  ;;  %v24229_v48 = vld.sshfl [vmem:[#allocation1 + $0x30] sm:$0xff pattern:$0x75316420]  ;;  %v2128_v27 = vld [vmem:[%s20307_s9 + $0x2ed0] sm:$0x3] }
 0x5e0   : > { %v17411_v32 = vadd.f32 %v17410_v60, %v17391_v50  ;;  %v2126_v60 = vld [vmem:[%s20307_s9 + $0x2ec0] sm:$0x3] }
 0x5e2   : > { %18847 = vmatpush.xpose.msrb.mxu2 %v2116_v40  ;;  %18807 = vmatpush.xpose.msrb.mxu0 %v2114_v53  ;;  %v17431_v35 = vadd.f32 %v17430_v61, %v17411_v32  ;;  %v17450_v59 = vpop.f32.mrf.mxu0  ;;  %v17470_v39 = vpop.f32.mrf.mxu1  ;;  %v1354_v40 = vld [vmem:[%s20307_s9 + $0x16a0] sm:$0xff]  ;;  %v24232_v53 = vld.sshfl [vmem:[#allocation1 + $0x38] sm:$0xff pattern:$0x75316420] }
 0x5e3   : > { %18867 = vmatpush.xpose.msrb.mxu3 %v2117_v31  ;;  %18827 = vmatpush.xpose.msrb.mxu1 %v2115_v41  ;;  %v1355_v31 = vld [vmem:[%s20307_s9 + $0x16a8] sm:$0xff]  ;;  %3660 = vst [vmem:[#allocation1 + $0x30] ss:$2 sm:$0xff] %v617_v28  ;;  %v616_v32 = vld [vmem:[%s20300_s7 + $0xb90] sm:$0xff]  ;;  %v1369_v28 = vld [vmem:[%s20307_s9 + $0x1718] sm:$0xff] }
 0x5e4   : > { %v17451_v9 = vadd.f32 %v17450_v59, %v17431_v35  ;;  %18769 = vmatmul.f32.vlgmr.msra.gmra.mxu2 %v24119_v4  ;;  %18789 = vmatmul.f32.vlgmr.msra.gmra.mxu3 %v24122_v52  ;;  %v612_v4 = vld [vmem:[%s20300_s7 + $0xb70] sm:$0xff]  ;;  %v2129_v35 = vld [vmem:[%s20307_s9 + $0x2ed8] sm:$0x3] }
 0x5e5   : > { %18729 = vmatmul.f32.vlgmr.msra.gmra.mxu0 %v24132_v20  ;;  %18749 = vmatmul.f32.vlgmr.msra.gmra.mxu1 %v24135_v63  ;;  %3647 = vst [vmem:[#allocation1 + $0x20] ss:$2 sm:$0xff] %v612_v4  ;;  %v2130_v4 = vld [vmem:[%s20307_s9 + $0x2ee0] sm:$0x3] }
 0x5e6   : > { %v17471_v14 = vadd.f32 %v17470_v39, %v17451_v9  ;;  %18848 = vmatpush.xpose.msrb.mxu2 %v1348_v54  ;;  %18808 = vmatpush.xpose.msrb.mxu0 %v1346_v56  ;;  %v24251_v9 = vld.sshfl [vmem:[#allocation1 + $0x10] sm:$0xff pattern:$0x75316420] }
 0x5e7   : > { %v17490_v52 = vpop.f32.mrf.mxu2  ;;  %v17510_v13 = vpop.f32.mrf.mxu3  ;;  %18868 = vmatpush.xpose.msrb.mxu3 %v1349_v45  ;;  %18828 = vmatpush.xpose.msrb.mxu1 %v1347_v51  ;;  %v1358_v51 = vld [vmem:[%s20307_s9 + $0x16c0] sm:$0xff] }
 0x5e8   : > { %v17491_v20 = vadd.f32 %v17490_v52, %v17471_v14  ;;  %v2133_v52 = vld [vmem:[%s20307_s9 + $0x2ef8] sm:$0x3] }
 0x5ea   : > { %18927 = vmatpush.xpose.msra.mxu2 %v2120_v55  ;;  %18887 = vmatpush.xpose.msra.mxu0 %v2118_v2  ;;  %v17511_v63 = vadd.f32 %v17510_v13, %v17491_v20  ;;  %v17530_v3 = vpop.f32.mrf.mxu0  ;;  %v17550_v19 = vpop.f32.mrf.mxu1  ;;  %v1359_v55 = vld [vmem:[%s20307_s9 + $0x16c8] sm:$0xff]  ;;  %v24254_v2 = vld.sshfl [vmem:[#allocation1 + $0x18] sm:$0xff pattern:$0x75316420] }
 0x5eb   : > { %18947 = vmatpush.xpose.msra.mxu3 %v2121_v49  ;;  %18907 = vmatpush.xpose.msra.mxu1 %v2119_v1  ;;  %v619_v49 = vld [vmem:[%s20300_s7 + $0xba8] sm:$0xff]  ;;  %v2132_v1 = vld [vmem:[%s20307_s9 + $0x2ef0] sm:$0x3] }
 0x5ec   : > { %v17531_v43 = vadd.f32 %v17530_v3, %v17511_v63  ;;  %18849 = vmatmul.f32.vlgmr.msrb.gmra.mxu2 %v24139_v38  ;;  %18869 = vmatmul.f32.vlgmr.msrb.gmra.mxu3 %v24142_v24  ;;  %v24222_v24 = vld.sshfl [vmem:[#allocation1] sm:$0xff pattern:$0x75316420]  ;;  %v24243_v61 = vld.sshfl [vmem:[#allocation1 + $0x28] sm:$0xff pattern:$0x75316420] }
 0x5ed   : > { %18809 = vmatmul.f32.vlgmr.msrb.gmra.mxu0 %v24156_v18  ;;  %18829 = vmatmul.f32.vlgmr.msrb.gmra.mxu1 %v24158_v23  ;;  %v24224_v18 = vld.sshfl [vmem:[#allocation1 + $0x8] sm:$0xff pattern:$0x75316420]  ;;  %v24238_v41 = vld.sshfl [vmem:[#allocation1 + $0x20] sm:$0xff pattern:$0x75316420] }
 0x5ee   : > { %v17551_v34 = vadd.f32 %v17550_v19, %v17531_v43  ;;  %18928 = vmatpush.xpose.msra.mxu2 %v1352_v5  ;;  %18888 = vmatpush.xpose.msra.mxu0 %v1350_v8  ;;  %3657 = vst [vmem:[#allocation1] ss:$2 sm:$0xff] %v614_v16  ;;  %v2131_v63 = vld [vmem:[%s20307_s9 + $0x2ee8] sm:$0x3]  ;;  %v1365_v16 = vld [vmem:[%s20307_s9 + $0x16f8] sm:$0xff] }
 0x5ef   : > { %v17570_v22 = vpop.f32.mrf.mxu2  ;;  %v17590_v38 = vpop.f32.mrf.mxu3  ;;  %18948 = vmatpush.xpose.msra.mxu3 %v1353_v11  ;;  %18908 = vmatpush.xpose.msra.mxu1 %v1351_v30  ;;  %3659 = vst [vmem:[#allocation1 + $0x20] ss:$2 sm:$0xff] %v616_v32  ;;  %v24271_v43 = vld.sshfl [vmem:[#allocation1 + $0x30] sm:$0xff pattern:$0x75316420]  ;;  %v1362_v11 = vld [vmem:[%s20307_s9 + $0x16e0] sm:$0xff] }
 0x5f0   : > { %v17571_v23 = vadd.f32 %v17570_v22, %v17551_v34  ;;  %3670 = vst [vmem:[#allocation1 + $0x10] ss:$2 sm:$0xff] %v619_v49  ;;  %v24274_v30 = vld.sshfl [vmem:[#allocation1 + $0x38] sm:$0xff pattern:$0x75316420]  ;;  %v1363_v34 = vld [vmem:[%s20307_s9 + $0x16e8] sm:$0xff] }
 0x5f1   : > { %v620_v22 = vld [vmem:[%s20300_s7 + $0xbb0] sm:$0xff]  ;;  %v623_v32 = vld [vmem:[%s20300_s7 + $0xbc8] sm:$0xff]  ;;  %v1373_v49 = vld [vmem:[%s20307_s9 + $0x1738] sm:$0xff] }
 0x5f2   : > { %19007 = vmatpush.xpose.msrb.mxu2 %v2124_v12  ;;  %18967 = vmatpush.xpose.msrb.mxu0 %v2122_v42  ;;  %v17591_v15 = vadd.f32 %v17590_v38, %v17571_v23  ;;  %v17610_v37 = vpop.f32.mrf.mxu0  ;;  %v17630_v21 = vpop.f32.mrf.mxu1  ;;  %v621_v12 = vld [vmem:[%s20300_s7 + $0xbb8] sm:$0xff] }
 0x5f3   : > { %19027 = vmatpush.xpose.msrb.mxu3 %v2125_v17  ;;  %18987 = vmatpush.xpose.msrb.mxu1 %v2123_v29  ;;  %3672 = vst [vmem:[#allocation1 + $0x30] ss:$2 sm:$0xff] %v621_v12  ;;  %v2136_v17 = vld [vmem:[%s20307_s9 + $0x2f10] sm:$0x3]  ;;  %v2134_v29 = vld [vmem:[%s20307_s9 + $0x2f00] sm:$0x3] }
 0x5f4   : > { %v17611_v50 = vadd.f32 %v17610_v37, %v17591_v15  ;;  %18929 = vmatmul.f32.vlgmr.msra.gmra.mxu2 %v24163_v46  ;;  %18949 = vmatmul.f32.vlgmr.msra.gmra.mxu3 %v24166_v58  ;;  %v2127_v46 = vld [vmem:[%s20307_s9 + $0x2ec8] sm:$0x3]  ;;  %v2137_v23 = vld [vmem:[%s20307_s9 + $0x2f18] sm:$0x3]  ;;  %v1368_v37 = vld [vmem:[%s20307_s9 + $0x1710] sm:$0xff] }
 0x5f5   : > { %18889 = vmatmul.f32.vlgmr.msra.gmra.mxu0 %v24172_v36  ;;  %18909 = vmatmul.f32.vlgmr.msra.gmra.mxu1 %v24177_v0  ;;  %v1360_v0 = vld [vmem:[%s20307_s9 + $0x16d0] sm:$0xff]  ;;  %v24264_v13 = vld.sshfl [vmem:[#allocation1] sm:$0xff pattern:$0x75316420] }
 0x5f6   : > { %v17631_v54 = vadd.f32 %v17630_v21, %v17611_v50  ;;  %19008 = vmatpush.xpose.msrb.mxu2 %v1356_v33  ;;  %18968 = vmatpush.xpose.msrb.mxu0 %v1354_v40  ;;  %v24267_v3 = vld.sshfl [vmem:[#allocation1 + $0x8] sm:$0xff pattern:$0x75316420]  ;;  %v2135_v33 = vld [vmem:[%s20307_s9 + $0x2f08] sm:$0x3]  ;;  %v1376_v12 = vld [vmem:[%s20307_s9 + $0x1750] sm:$0xff] }
 0x5f7   : > { %v17650_v58 = vpop.f32.mrf.mxu2  ;;  %v17670_v59 = vpop.f32.mrf.mxu3  ;;  %19028 = vmatpush.xpose.msrb.mxu3 %v1357_v25  ;;  %18988 = vmatpush.xpose.msrb.mxu1 %v1355_v31  ;;  %v24295_v50 = vld.sshfl [vmem:[#allocation1 + $0x10] sm:$0xff pattern:$0x75316420]  ;;  %v2140_v31 = vld [vmem:[%s20307_s9 + $0x2f30] sm:$0x3] }
 0x5f8   : > { %v17651_v36 = vadd.f32 %v17650_v58, %v17631_v54  ;;  %v2138_v58 = vld [vmem:[%s20307_s9 + $0x2f20] sm:$0x3] }
 0x5fa   : > { %19087 = vmatpush.xpose.msra.mxu2 %v2128_v27  ;;  %19047 = vmatpush.xpose.msra.mxu0 %v2126_v60  ;;  %v17671_v39 = vadd.f32 %v17670_v59, %v17651_v36  ;;  %v17690_v56 = vpop.f32.mrf.mxu0  ;;  %v17710_v45 = vpop.f32.mrf.mxu1  ;;  %v1366_v27 = vld [vmem:[%s20307_s9 + $0x1700] sm:$0xff]  ;;  %v24298_v60 = vld.sshfl [vmem:[#allocation1 + $0x18] sm:$0xff pattern:$0x75316420] }
 0x5fb   : > { %19107 = vmatpush.xpose.msra.mxu3 %v2129_v35  ;;  %19067 = vmatpush.xpose.msra.mxu1 %v2127_v46  ;;  %v1367_v35 = vld [vmem:[%s20307_s9 + $0x1708] sm:$0xff]  ;;  %3682 = vst [vmem:[#allocation1 + $0x10] ss:$2 sm:$0xff] %v623_v32  ;;  %v622_v36 = vld [vmem:[%s20300_s7 + $0xbc0] sm:$0xff]  ;;  %v1381_v32 = vld [vmem:[%s20307_s9 + $0x1778] sm:$0xff] }
 0x5fc   : > { %v17691_v14 = vadd.f32 %v17690_v56, %v17671_v39  ;;  %19009 = vmatmul.f32.vlgmr.msrb.gmra.mxu2 %v24185_v6  ;;  %19029 = vmatmul.f32.vlgmr.msrb.gmra.mxu3 %v24188_v57  ;;  %v618_v6 = vld [vmem:[%s20300_s7 + $0xba0] sm:$0xff]  ;;  %v2141_v39 = vld [vmem:[%s20307_s9 + $0x2f38] sm:$0x3] }
 0x5fd   : > { %18969 = vmatmul.f32.vlgmr.msrb.gmra.mxu0 %v24198_v10  ;;  %18989 = vmatmul.f32.vlgmr.msrb.gmra.mxu1 %v24201_v62  ;;  %3669 = vst [vmem:[#allocation1] ss:$2 sm:$0xff] %v618_v6  ;;  %v2142_v6 = vld [vmem:[%s20307_s9 + $0x2f40] sm:$0x3] }
 0x5fe   : > { %v17711_v20 = vadd.f32 %v17710_v45, %v17691_v14  ;;  %19088 = vmatpush.xpose.msra.mxu2 %v1360_v0  ;;  %19048 = vmatpush.xpose.msra.mxu0 %v1358_v51  ;;  %v24317_v14 = vld.sshfl [vmem:[#allocation1 + $0x30] sm:$0xff pattern:$0x75316420] }
 0x5ff   : > { %v17730_v57 = vpop.f32.mrf.mxu2  ;;  %v17750_v19 = vpop.f32.mrf.mxu3  ;;  %19108 = vmatpush.xpose.msra.mxu3 %v1361_v47  ;;  %19068 = vmatpush.xpose.msra.mxu1 %v1359_v55  ;;  %v1370_v55 = vld [vmem:[%s20307_s9 + $0x1720] sm:$0xff] }
 0x600   : > { %v17731_v10 = vadd.f32 %v17730_v57, %v17711_v20  ;;  %v2145_v57 = vld [vmem:[%s20307_s9 + $0x2f58] sm:$0x3] }
 0x602   : > { %19167 = vmatpush.xpose.msrb.mxu2 %v2132_v1  ;;  %19127 = vmatpush.xpose.msrb.mxu0 %v2130_v4  ;;  %v17751_v62 = vadd.f32 %v17750_v19, %v17731_v10  ;;  %v17770_v5 = vpop.f32.mrf.mxu0  ;;  %v17790_v8 = vpop.f32.mrf.mxu1  ;;  %v1371_v1 = vld [vmem:[%s20307_s9 + $0x1728] sm:$0xff]  ;;  %v24320_v4 = vld.sshfl [vmem:[#allocation1 + $0x38] sm:$0xff pattern:$0x75316420] }
 0x603   : > { %19187 = vmatpush.xpose.msrb.mxu3 %v2133_v52  ;;  %19147 = vmatpush.xpose.msrb.mxu1 %v2131_v63  ;;  %v625_v52 = vld [vmem:[%s20300_s7 + $0xbd8] sm:$0xff]  ;;  %v2144_v63 = vld [vmem:[%s20307_s9 + $0x2f50] sm:$0x3] }
 0x604   : > { %v17771_v42 = vadd.f32 %v17770_v5, %v17751_v62  ;;  %19089 = vmatmul.f32.vlgmr.msra.gmra.mxu2 %v24205_v44  ;;  %19109 = vmatmul.f32.vlgmr.msra.gmra.mxu3 %v24208_v26  ;;  %v24288_v26 = vld.sshfl [vmem:[#allocation1 + $0x20] sm:$0xff pattern:$0x75316420]  ;;  %v24309_v59 = vld.sshfl [vmem:[#allocation1 + $0x8] sm:$0xff pattern:$0x75316420] }
 0x605   : > { %19049 = vmatmul.f32.vlgmr.msra.gmra.mxu0 %v24222_v24  ;;  %19069 = vmatmul.f32.vlgmr.msra.gmra.mxu1 %v24224_v18  ;;  %v24290_v24 = vld.sshfl [vmem:[#allocation1 + $0x28] sm:$0xff pattern:$0x75316420]  ;;  %v24304_v46 = vld.sshfl [vmem:[#allocation1] sm:$0xff pattern:$0x75316420] }
 0x606   : > { %v17791_v38 = vadd.f32 %v17790_v8, %v17771_v42  ;;  %19168 = vmatpush.xpose.msrb.mxu2 %v1364_v7  ;;  %19128 = vmatpush.xpose.msrb.mxu0 %v1362_v11  ;;  %3671 = vst [vmem:[#allocation1 + $0x20] ss:$2 sm:$0xff] %v620_v22  ;;  %v2143_v62 = vld [vmem:[%s20307_s9 + $0x2f48] sm:$0x3]  ;;  %v1377_v22 = vld [vmem:[%s20307_s9 + $0x1758] sm:$0xff] }
 0x607   : > { %v17810_v15 = vpop.f32.mrf.mxu2  ;;  %v17830_v44 = vpop.f32.mrf.mxu3  ;;  %19188 = vmatpush.xpose.msrb.mxu3 %v1365_v16  ;;  %19148 = vmatpush.xpose.msrb.mxu1 %v1363_v34  ;;  %3681 = vst [vmem:[#allocation1] ss:$2 sm:$0xff] %v622_v36  ;;  %v24337_v42 = vld.sshfl [vmem:[#allocation1 + $0x10] sm:$0xff pattern:$0x75316420]  ;;  %v1374_v16 = vld [vmem:[%s20307_s9 + $0x1740] sm:$0xff] }
 0x608   : > { %v17811_v18 = vadd.f32 %v17810_v15, %v17791_v38  ;;  %3684 = vst [vmem:[#allocation1 + $0x30] ss:$2 sm:$0xff] %v625_v52  ;;  %v24340_v34 = vld.sshfl [vmem:[#allocation1 + $0x18] sm:$0xff pattern:$0x75316420]  ;;  %v1375_v38 = vld [vmem:[%s20307_s9 + $0x1748] sm:$0xff] }
 0x609   : > { %v626_v15 = vld [vmem:[%s20300_s7 + $0xbe0] sm:$0xff]  ;;  %v629_v36 = vld [vmem:[%s20300_s7 + $0xbf8] sm:$0xff] }
 0x60a   : > { %19247 = vmatpush.xpose.msra.mxu2 %v2136_v17  ;;  %19207 = vmatpush.xpose.msra.mxu0 %v2134_v29  ;;  %v17831_v21 = vadd.f32 %v17830_v44, %v17811_v18  ;;  %v17850_v40 = vpop.f32.mrf.mxu0  ;;  %v17870_v25 = vpop.f32.mrf.mxu1  ;;  %v627_v17 = vld [vmem:[%s20300_s7 + $0xbe8] sm:$0xff]  ;;  %v2149_v18 = vld [vmem:[%s20307_s9 + $0x2f78] sm:$0x3] }
 0x60b   : > { %19267 = vmatpush.xpose.msra.mxu3 %v2137_v23  ;;  %19227 = vmatpush.xpose.msra.mxu1 %v2135_v33  ;;  %3694 = vst [vmem:[#allocation1 + $0x10] ss:$2 sm:$0xff] %v627_v17  ;;  %v2148_v23 = vld [vmem:[%s20307_s9 + $0x2f70] sm:$0x3]  ;;  %v2146_v33 = vld [vmem:[%s20307_s9 + $0x2f60] sm:$0x3] }
 0x60c   : > { %v17851_v54 = vadd.f32 %v17850_v40, %v17831_v21  ;;  %19169 = vmatmul.f32.vlgmr.msrb.gmra.mxu2 %v24229_v48  ;;  %19189 = vmatmul.f32.vlgmr.msrb.gmra.mxu3 %v24232_v53  ;;  %v2139_v48 = vld [vmem:[%s20307_s9 + $0x2f28] sm:$0x3]  ;;  %v1380_v40 = vld [vmem:[%s20307_s9 + $0x1770] sm:$0xff]  ;;  %v2158_v17 = vld [vmem:[%s20307_s9 + $0x2fc0] sm:$0x3] }
 0x60d   : > { %19129 = vmatmul.f32.vlgmr.msrb.gmra.mxu0 %v24238_v41  ;;  %19149 = vmatmul.f32.vlgmr.msrb.gmra.mxu1 %v24243_v61  ;;  %v1372_v61 = vld [vmem:[%s20307_s9 + $0x1730] sm:$0xff]  ;;  %v24330_v19 = vld.sshfl [vmem:[#allocation1 + $0x20] sm:$0xff pattern:$0x75316420] }
 0x60e   : > { %v17871_v0 = vadd.f32 %v17870_v25, %v17851_v54  ;;  %19248 = vmatpush.xpose.msra.mxu2 %v1368_v37  ;;  %19208 = vmatpush.xpose.msra.mxu0 %v1366_v27  ;;  %v24333_v5 = vld.sshfl [vmem:[#allocation1 + $0x28] sm:$0xff pattern:$0x75316420]  ;;  %v2147_v37 = vld [vmem:[%s20307_s9 + $0x2f68] sm:$0x3] }
 0x60f   : > { %v17890_v53 = vpop.f32.mrf.mxu2  ;;  %v17910_v56 = vpop.f32.mrf.mxu3  ;;  %19268 = vmatpush.xpose.msra.mxu3 %v1369_v28  ;;  %19228 = vmatpush.xpose.msra.mxu1 %v1367_v35  ;;  %v24361_v54 = vld.sshfl [vmem:[#allocation1 + $0x30] sm:$0xff pattern:$0x75316420]  ;;  %v2152_v35 = vld [vmem:[%s20307_s9 + $0x2f90] sm:$0x3] }
 0x610   : > { %v17891_v41 = vadd.f32 %v17890_v53, %v17871_v0  ;;  %v2150_v53 = vld [vmem:[%s20307_s9 + $0x2f80] sm:$0x3] }
 0x612   : > { %19327 = vmatpush.xpose.msrb.mxu2 %v2140_v31  ;;  %19287 = vmatpush.xpose.msrb.mxu0 %v2138_v58  ;;  %v17911_v45 = vadd.f32 %v17910_v56, %v17891_v41  ;;  %v17930_v51 = vpop.f32.mrf.mxu0  ;;  %v17950_v47 = vpop.f32.mrf.mxu1  ;;  %v1378_v31 = vld [vmem:[%s20307_s9 + $0x1760] sm:$0xff]  ;;  %v24364_v58 = vld.sshfl [vmem:[#allocation1 + $0x38] sm:$0xff pattern:$0x75316420] }
 0x613   : > { %19347 = vmatpush.xpose.msrb.mxu3 %v2141_v39  ;;  %19307 = vmatpush.xpose.msrb.mxu1 %v2139_v48  ;;  %v1379_v39 = vld [vmem:[%s20307_s9 + $0x1768] sm:$0xff]  ;;  %3696 = vst [vmem:[#allocation1 + $0x30] ss:$2 sm:$0xff] %v629_v36  ;;  %v628_v41 = vld [vmem:[%s20300_s7 + $0xbf0] sm:$0xff] }
 0x614   : > { %v17931_v20 = vadd.f32 %v17930_v51, %v17911_v45  ;;  %19249 = vmatmul.f32.vlgmr.msra.gmra.mxu2 %v24251_v9  ;;  %19269 = vmatmul.f32.vlgmr.msra.gmra.mxu3 %v24254_v2  ;;  %v624_v9 = vld [vmem:[%s20300_s7 + $0xbd0] sm:$0xff]  ;;  %v2153_v45 = vld [vmem:[%s20307_s9 + $0x2f98] sm:$0x3] }
 0x615   : > { %19209 = vmatmul.f32.vlgmr.msra.gmra.mxu0 %v24264_v13  ;;  %19229 = vmatmul.f32.vlgmr.msra.gmra.mxu1 %v24267_v3  ;;  %3683 = vst [vmem:[#allocation1 + $0x20] ss:$2 sm:$0xff] %v624_v9  ;;  %v2155_v9 = vld [vmem:[%s20307_s9 + $0x2fa8] sm:$0x3] }
 0x616   : > { %v17951_v10 = vadd.f32 %v17950_v47, %v17931_v20  ;;  %19328 = vmatpush.xpose.msrb.mxu2 %v1372_v61  ;;  %19288 = vmatpush.xpose.msrb.mxu0 %v1370_v55  ;;  %v1385_v20 = vld [vmem:[%s20307_s9 + $0x1798] sm:$0xff] }
 0x617   : > { %v17970_v2 = vpop.f32.mrf.mxu2  ;;  %v17990_v8 = vpop.f32.mrf.mxu3  ;;  %19348 = vmatpush.xpose.msrb.mxu3 %v1373_v49  ;;  %19308 = vmatpush.xpose.msrb.mxu1 %v1371_v1  ;;  %v1384_v49 = vld [vmem:[%s20307_s9 + $0x1790] sm:$0xff]  ;;  %v1382_v1 = vld [vmem:[%s20307_s9 + $0x1780] sm:$0xff] }
 0x618   : > { %v17971_v13 = vadd.f32 %v17970_v2, %v17951_v10 }
 0x61a   : > { %19407 = vmatpush.xpose.msra.mxu2 %v2144_v63  ;;  %19367 = vmatpush.xpose.msra.mxu0 %v2142_v6  ;;  %v17991_v3 = vadd.f32 %v17990_v8, %v17971_v13  ;;  %v18010_v7 = vpop.f32.mrf.mxu0  ;;  %v18030_v11 = vpop.f32.mrf.mxu1  ;;  %v1383_v63 = vld [vmem:[%s20307_s9 + $0x1788] sm:$0xff]  ;;  %v2156_v6 = vld [vmem:[%s20307_s9 + $0x2fb0] sm:$0x3] }
 0x61b   : > { %19427 = vmatpush.xpose.msra.mxu3 %v2145_v57  ;;  %19387 = vmatpush.xpose.msra.mxu1 %v2143_v62  ;;  %v2154_v57 = vld [vmem:[%s20307_s9 + $0x2fa0] sm:$0x3]  ;;  %v2157_v62 = vld [vmem:[%s20307_s9 + $0x2fb8] sm:$0x3]  ;;  %v1388_v13 = vld [vmem:[%s20307_s9 + $0x17b0] sm:$0xff] }
 0x61c   : > { %v18011_v29 = vadd.f32 %v18010_v7, %v17991_v3  ;;  %19329 = vmatmul.f32.vlgmr.msrb.gmra.mxu2 %v24271_v43  ;;  %19349 = vmatmul.f32.vlgmr.msrb.gmra.mxu3 %v24274_v30  ;;  %v24354_v30 = vld.sshfl [vmem:[#allocation1] sm:$0xff pattern:$0x75316420]  ;;  %v24375_v56 = vld.sshfl [vmem:[#allocation1 + $0x28] sm:$0xff pattern:$0x75316420] }
 0x61d   : > { %19289 = vmatmul.f32.vlgmr.msrb.gmra.mxu0 %v24288_v26  ;;  %19309 = vmatmul.f32.vlgmr.msrb.gmra.mxu1 %v24290_v24  ;;  %v24356_v26 = vld.sshfl [vmem:[#allocation1 + $0x8] sm:$0xff pattern:$0x75316420]  ;;  %v24370_v48 = vld.sshfl [vmem:[#allocation1 + $0x20] sm:$0xff pattern:$0x75316420] }
 0x61e   : > { %v18031_v44 = vadd.f32 %v18030_v11, %v18011_v29  ;;  %19408 = vmatpush.xpose.msra.mxu2 %v1376_v12  ;;  %19368 = vmatpush.xpose.msra.mxu0 %v1374_v16  ;;  %3693 = vst [vmem:[#allocation1] ss:$2 sm:$0xff] %v626_v15  ;;  %v1386_v3 = vld [vmem:[%s20307_s9 + $0x17a0] sm:$0xff]  ;;  %v1389_v11 = vld [vmem:[%s20307_s9 + $0x17b8] sm:$0xff]  ;;  %v1387_v12 = vld [vmem:[%s20307_s9 + $0x17a8] sm:$0xff] }
 0x61f   : > { %v18050_v21 = vpop.f32.mrf.mxu2  ;;  %v18070_v43 = vpop.f32.mrf.mxu3  ;;  %19428 = vmatpush.xpose.msra.mxu3 %v1377_v22  ;;  %19388 = vmatpush.xpose.msra.mxu1 %v1375_v38  ;;  %3695 = vst [vmem:[#allocation1 + $0x20] ss:$2 sm:$0xff] %v628_v41  ;;  %v2160_v16 = vld [vmem:[%s20307_s9 + $0x2fd0] sm:$0x3]  ;;  %v2161_v22 = vld [vmem:[%s20307_s9 + $0x2fd8] sm:$0x3] }
 0x620   : > { %v18051_v24 = vadd.f32 %v18050_v21, %v18031_v44  ;;  %v2159_v38 = vld [vmem:[%s20307_s9 + $0x2fc8] sm:$0x3] }
 0x622   : > { %19487 = vmatpush.xpose.msrb.mxu2 %v2148_v23  ;;  %19447 = vmatpush.xpose.msrb.mxu0 %v2146_v33  ;;  %v18071_v25 = vadd.f32 %v18070_v43, %v18051_v24  ;;  %v18090_v27 = vpop.f32.mrf.mxu0  ;;  %v18110_v28 = vpop.f32.mrf.mxu1  ;;  %v1393_v43 = vld [vmem:[%s20307_s9 + $0x17d8] sm:$0xff]  ;;  %v2162_v24 = vld [vmem:[%s20307_s9 + $0x2fe0] sm:$0x3] }
 0x623   : > { %19507 = vmatpush.xpose.msrb.mxu3 %v2149_v18  ;;  %19467 = vmatpush.xpose.msrb.mxu1 %v2147_v37  ;;  %v1392_v18 = vld [vmem:[%s20307_s9 + $0x17d0] sm:$0xff]  ;;  %v1390_v37 = vld [vmem:[%s20307_s9 + $0x17c0] sm:$0xff] }
 0x624   : > { %v18091_v0 = vadd.f32 %v18090_v27, %v18071_v25  ;;  %19409 = vmatmul.f32.vlgmr.msra.gmra.mxu2 %v24295_v50  ;;  %19429 = vmatmul.f32.vlgmr.msra.gmra.mxu3 %v24298_v60  ;;  %v2151_v50 = vld [vmem:[%s20307_s9 + $0x2f88] sm:$0x3]  ;;  %v2165_v25 = vld [vmem:[%s20307_s9 + $0x2ff8] sm:$0x3] }
 0x625   : > { %19369 = vmatmul.f32.vlgmr.msra.gmra.mxu0 %v24304_v46  ;;  %19389 = vmatmul.f32.vlgmr.msra.gmra.mxu1 %v24309_v59  ;;  %v2163_v27 = vld [vmem:[%s20307_s9 + $0x2fe8] sm:$0x3] }
 0x626   : > { %v18111_v61 = vadd.f32 %v18110_v28, %v18091_v0  ;;  %19488 = vmatpush.xpose.msrb.mxu2 %v1380_v40  ;;  %19448 = vmatpush.xpose.msrb.mxu0 %v1378_v31 }
 0x627   : > { %v18130_v60 = vpop.f32.mrf.mxu2  ;;  %v18150_v51 = vpop.f32.mrf.mxu3  ;;  %19508 = vmatpush.xpose.msrb.mxu3 %v1381_v32  ;;  %19468 = vmatpush.xpose.msrb.mxu1 %v1379_v39  ;;  %v3697_v39 = vld.sshfl [vmem:[#allocation1] sm:$0xff pattern:$0x75316420] }
 0x628   : > { %v18131_v46 = vadd.f32 %v18130_v60, %v18111_v61  ;;  %v1397_v61 = vld [vmem:[%s20307_s9 + $0x17f8] sm:$0xff] }
 0x62a   : > { %19567 = vmatpush.xpose.msra.mxu2 %v2152_v35  ;;  %19527 = vmatpush.xpose.msra.mxu0 %v2150_v53  ;;  %v18151_v59 = vadd.f32 %v18150_v51, %v18131_v46  ;;  %v18170_v47 = vpop.f32.mrf.mxu0  ;;  %v18190_v55 = vpop.f32.mrf.mxu1  ;;  %v3700_v35 = vld.sshfl [vmem:[#allocation1 + $0x18] sm:$0xff pattern:$0x75316420] }
 0x62b   : > { %19587 = vmatpush.xpose.msra.mxu3 %v2153_v45  ;;  %19547 = vmatpush.xpose.msra.mxu1 %v2151_v50  ;;  %v1396_v53 = vld [vmem:[%s20307_s9 + $0x17f0] sm:$0xff]  ;;  %v1395_v45 = vld [vmem:[%s20307_s9 + $0x17e8] sm:$0xff] }
 0x62c   : > { %v18171_v52 = vadd.f32 %v18170_v47, %v18151_v59  ;;  %19489 = vmatmul.f32.vlgmr.msrb.gmra.mxu2 %v24317_v14  ;;  %19509 = vmatmul.f32.vlgmr.msrb.gmra.mxu3 %v24320_v4  ;;  %v3703_v59 = vld.sshfl [vmem:[#allocation1 + $0x30] sm:$0xff pattern:$0x75316420]  ;;  %v3704_v47 = vld.sshfl [vmem:[#allocation1 + $0x38] sm:$0xff pattern:$0x75316420] }
 0x62d   : > { %19449 = vmatmul.f32.vlgmr.msrb.gmra.mxu0 %v24330_v19  ;;  %19469 = vmatmul.f32.vlgmr.msrb.gmra.mxu1 %v24333_v5 }
 0x62e   : > { %v18191_v10 = vadd.f32 %v18190_v55, %v18171_v52  ;;  %19568 = vmatpush.xpose.msra.mxu2 %v1384_v49  ;;  %19528 = vmatpush.xpose.msra.mxu0 %v1382_v1  ;;  %v3701_v52 = vld.sshfl [vmem:[#allocation1 + $0x20] sm:$0xff pattern:$0x75316420] }
 0x62f   : > { %v18210_v2 = vpop.f32.mrf.mxu2  ;;  %v18230_v8 = vpop.f32.mrf.mxu3  ;;  %19588 = vmatpush.xpose.msra.mxu3 %v1385_v20  ;;  %19548 = vmatpush.xpose.msra.mxu1 %v1383_v63  ;;  %v3702_v20 = vld.sshfl [vmem:[#allocation1 + $0x28] sm:$0xff pattern:$0x75316420] }
 0x630   : > { %v18211_v14 = vadd.f32 %v18210_v2, %v18191_v10 }
 0x632   : > { %19647 = vmatpush.xpose.msrb.mxu2 %v2156_v6  ;;  %19607 = vmatpush.xpose.msrb.mxu0 %v2154_v57  ;;  %v18231_v4 = vadd.f32 %v18230_v8, %v18211_v14  ;;  %v18250_v19 = vpop.f32.mrf.mxu0  ;;  %v18270_v5 = vpop.f32.mrf.mxu1 }
 0x633   : > { %19667 = vmatpush.xpose.msrb.mxu3 %v2157_v62  ;;  %19627 = vmatpush.xpose.msrb.mxu1 %v2155_v9 }
 0x634   : > { %v18251_v7 = vadd.f32 %v18250_v19, %v18231_v4  ;;  %19569 = vmatmul.f32.vlgmr.msra.gmra.mxu2 %v24337_v42  ;;  %19589 = vmatmul.f32.vlgmr.msra.gmra.mxu3 %v24340_v34 }
 0x635   : > { %19529 = vmatmul.f32.vlgmr.msra.gmra.mxu0 %v24354_v30  ;;  %19549 = vmatmul.f32.vlgmr.msra.gmra.mxu1 %v24356_v26  ;;  %v1391_v30 = vld [vmem:[%s20307_s9 + $0x17c8] sm:$0xff]  ;;  %v2164_v26 = vld [vmem:[%s20307_s9 + $0x2ff0] sm:$0x3] }
 0x636   : > { %v18271_v29 = vadd.f32 %v18270_v5, %v18251_v7  ;;  %19648 = vmatpush.xpose.msrb.mxu2 %v1388_v13  ;;  %19608 = vmatpush.xpose.msrb.mxu0 %v1386_v3 }
 0x637   : > { %v18290_v23 = vpop.f32.mrf.mxu2  ;;  %v18310_v33 = vpop.f32.mrf.mxu3  ;;  %19668 = vmatpush.xpose.msrb.mxu3 %v1389_v11  ;;  %19628 = vmatpush.xpose.msrb.mxu1 %v1387_v12 }
 0x638   : > { %v18291_v42 = vadd.f32 %v18290_v23, %v18271_v29 }
 0x63a   : > { %19727 = vmatpush.xpose.msra.mxu2 %v2160_v16  ;;  %19687 = vmatpush.xpose.msra.mxu0 %v2158_v17  ;;  %v18311_v34 = vadd.f32 %v18310_v33, %v18291_v42  ;;  %v18330_v15 = vpop.f32.mrf.mxu0  ;;  %v18350_v44 = vpop.f32.mrf.mxu1 }
 0x63b   : > { %19747 = vmatpush.xpose.msra.mxu3 %v2161_v22  ;;  %19707 = vmatpush.xpose.msra.mxu1 %v2159_v38 }
 0x63c   : > { %v18331_v21 = vadd.f32 %v18330_v15, %v18311_v34  ;;  %19649 = vmatmul.f32.vlgmr.msrb.gmra.mxu2 %v24361_v54  ;;  %19669 = vmatmul.f32.vlgmr.msrb.gmra.mxu3 %v24364_v58  ;;  %v3699_v54 = vld.sshfl [vmem:[#allocation1 + $0x10] sm:$0xff pattern:$0x75316420] }
 0x63d   : > { %19609 = vmatmul.f32.vlgmr.msrb.gmra.mxu0 %v24370_v48  ;;  %19629 = vmatmul.f32.vlgmr.msrb.gmra.mxu1 %v24375_v56  ;;  %v3698_v48 = vld.sshfl [vmem:[#allocation1 + $0x8] sm:$0xff pattern:$0x75316420] }
 0x63e   : > { %v18351_v40 = vadd.f32 %v18350_v44, %v18331_v21  ;;  %19728 = vmatpush.xpose.msra.mxu2 %v1392_v18  ;;  %19688 = vmatpush.xpose.msra.mxu0 %v1390_v37  ;;  %v1394_v56 = vld [vmem:[%s20307_s9 + $0x17e0] sm:$0xff] }
 0x63f   : > { %v18370_v28 = vpop.f32.mrf.mxu2  ;;  %v18390_v31 = vpop.f32.mrf.mxu3  ;;  %19748 = vmatpush.xpose.msra.mxu3 %v1393_v43  ;;  %19708 = vmatpush.xpose.msra.mxu1 %v1391_v30 }
 0x640   : > { %v18371_v32 = vadd.f32 %v18370_v28, %v18351_v40 }
 0x642   : > { %19807 = vmatpush.xpose.msrb.mxu2 %v2164_v26  ;;  %19767 = vmatpush.xpose.msrb.mxu0 %v2162_v24  ;;  %v18391_v58 = vadd.f32 %v18390_v31, %v18371_v32  ;;  %v18410_v36 = vpop.f32.mrf.mxu0  ;;  %v18430_v0 = vpop.f32.mrf.mxu1 }
 0x643   : > { %19827 = vmatpush.xpose.msrb.mxu3 %v2165_v25  ;;  %19787 = vmatpush.xpose.msrb.mxu1 %v2163_v27 }
 0x644   : > { %v18411_v41 = vadd.f32 %v18410_v36, %v18391_v58  ;;  %19729 = vmatmul.f32.vlgmr.msra.gmra.mxu2 %v3699_v54  ;;  %19749 = vmatmul.f32.vlgmr.msra.gmra.mxu3 %v3700_v35 }
 0x645   : > { %19689 = vmatmul.f32.vlgmr.msra.gmra.mxu0 %v3697_v39  ;;  %19709 = vmatmul.f32.vlgmr.msra.gmra.mxu1 %v3698_v48 }
 0x646   : > { %v18431_v50 = vadd.f32 %v18430_v0, %v18411_v41  ;;  %19808 = vmatpush.xpose.msrb.mxu2 %v1396_v53  ;;  %19768 = vmatpush.xpose.msrb.mxu0 %v1394_v56 }
 0x647   : > { %v18450_v60 = vpop.f32.mrf.mxu2  ;;  %v18470_v51 = vpop.f32.mrf.mxu3  ;;  %19828 = vmatpush.xpose.msrb.mxu3 %v1397_v61  ;;  %19788 = vmatpush.xpose.msrb.mxu1 %v1395_v45 }
 0x648   : > { %v18451_v46 = vadd.f32 %v18450_v60, %v18431_v50 }
 0x64a   : > { %v18471_v55 = vadd.f32 %v18470_v51, %v18451_v46  ;;  %v18490_v49 = vpop.f32.mrf.mxu0  ;;  %v18510_v1 = vpop.f32.mrf.mxu1 }
 0x64c   : > { %v18491_v63 = vadd.f32 %v18490_v49, %v18471_v55  ;;  %19809 = vmatmul.f32.vlgmr.msrb.gmra.mxu2 %v3703_v59  ;;  %19829 = vmatmul.f32.vlgmr.msrb.gmra.mxu3 %v3704_v47 }
 0x64d   : > { %19769 = vmatmul.f32.vlgmr.msrb.gmra.mxu0 %v3701_v52  ;;  %19789 = vmatmul.f32.vlgmr.msrb.gmra.mxu1 %v3702_v20 }
 0x64e   : > { %v18511_v6 = vadd.f32 %v18510_v1, %v18491_v63 }
 0x64f   : > { %v18530_v57 = vpop.f32.mrf.mxu2  ;;  %v18550_v10 = vpop.f32.mrf.mxu3 }
 0x650   : > { %v18531_v62 = vadd.f32 %v18530_v57, %v18511_v6 }
 0x652   : > { %v18551_v9 = vadd.f32 %v18550_v10, %v18531_v62  ;;  %v18570_v2 = vpop.f32.mrf.mxu0  ;;  %v18590_v8 = vpop.f32.mrf.mxu1 }
 0x654   : > { %v18571_v14 = vadd.f32 %v18570_v2, %v18551_v9 }
 0x656   : > { %v18591_v4 = vadd.f32 %v18590_v8, %v18571_v14 }
 0x657   : > { %v18610_v19 = vpop.f32.mrf.mxu2  ;;  %v18630_v5 = vpop.f32.mrf.mxu3 }
 0x658   : > { %v18611_v13 = vadd.f32 %v18610_v19, %v18591_v4 }
 0x65a   : > { %v18631_v3 = vadd.f32 %v18630_v5, %v18611_v13  ;;  %v18650_v7 = vpop.f32.mrf.mxu0  ;;  %v18670_v11 = vpop.f32.mrf.mxu1 }
 0x65c   : > { %v18651_v12 = vadd.f32 %v18650_v7, %v18631_v3 }
 0x65e   : > { %v18671_v16 = vadd.f32 %v18670_v11, %v18651_v12 }
 0x65f   : > { %v18690_v17 = vpop.f32.mrf.mxu2  ;;  %v18710_v29 = vpop.f32.mrf.mxu3 }
 0x660   : > { %v18691_v22 = vadd.f32 %v18690_v17, %v18671_v16 }
 0x662   : > { %v18711_v38 = vadd.f32 %v18710_v29, %v18691_v22  ;;  %v18730_v23 = vpop.f32.mrf.mxu0  ;;  %v18750_v33 = vpop.f32.mrf.mxu1 }
 0x664   : > { %v18731_v42 = vadd.f32 %v18730_v23, %v18711_v38 }
 0x666   : > { %v18751_v34 = vadd.f32 %v18750_v33, %v18731_v42 }
 0x667   : > { %v18770_v15 = vpop.f32.mrf.mxu2  ;;  %v18790_v44 = vpop.f32.mrf.mxu3 }
 0x668   : > { %v18771_v18 = vadd.f32 %v18770_v15, %v18751_v34 }
 0x66a   : > { %v18791_v37 = vadd.f32 %v18790_v44, %v18771_v18  ;;  %v18810_v21 = vpop.f32.mrf.mxu0  ;;  %v18830_v43 = vpop.f32.mrf.mxu1 }
 0x66c   : > { %v18811_v30 = vadd.f32 %v18810_v21, %v18791_v37 }
 0x66e   : > { %v18831_v26 = vadd.f32 %v18830_v43, %v18811_v30 }
 0x66f   : > { %v18850_v24 = vpop.f32.mrf.mxu2  ;;  %v18870_v40 = vpop.f32.mrf.mxu3 }
 0x670   : > { %v18851_v25 = vadd.f32 %v18850_v24, %v18831_v26 }
 0x672   : > { %v18871_v27 = vadd.f32 %v18870_v40, %v18851_v25  ;;  %v18890_v28 = vpop.f32.mrf.mxu0  ;;  %v18910_v31 = vpop.f32.mrf.mxu1 }
 0x674   : > { %v18891_v32 = vadd.f32 %v18890_v28, %v18871_v27 }
 0x676   : > { %v18911_v54 = vadd.f32 %v18910_v31, %v18891_v32 }
 0x677   : > { %v18930_v35 = vpop.f32.mrf.mxu2  ;;  %v18950_v58 = vpop.f32.mrf.mxu3 }
 0x678   : > { %v18931_v36 = vadd.f32 %v18930_v35, %v18911_v54 }
 0x67a   : > { %v18951_v0 = vadd.f32 %v18950_v58, %v18931_v36  ;;  %v18970_v39 = vpop.f32.mrf.mxu0  ;;  %v18990_v48 = vpop.f32.mrf.mxu1 }
 0x67c   : > { %v18971_v53 = vadd.f32 %v18970_v39, %v18951_v0 }
 0x67e   : > { %v18991_v56 = vadd.f32 %v18990_v48, %v18971_v53 }
 0x67f   : > { %v19010_v41 = vpop.f32.mrf.mxu2  ;;  %v19030_v61 = vpop.f32.mrf.mxu3 }
 0x680   : > { %v19011_v45 = vadd.f32 %v19010_v41, %v18991_v56 }
 0x682   : > { %v19031_v50 = vadd.f32 %v19030_v61, %v19011_v45  ;;  %v19050_v60 = vpop.f32.mrf.mxu0  ;;  %v19070_v51 = vpop.f32.mrf.mxu1 }
 0x684   : > { %v19051_v46 = vadd.f32 %v19050_v60, %v19031_v50 }
 0x686   : > { %v19071_v59 = vadd.f32 %v19070_v51, %v19051_v46 }
 0x687   : > { %v19090_v47 = vpop.f32.mrf.mxu2  ;;  %v19110_v55 = vpop.f32.mrf.mxu3 }
 0x688   : > { %v19091_v49 = vadd.f32 %v19090_v47, %v19071_v59 }
 0x68a   : > { %v19111_v1 = vadd.f32 %v19110_v55, %v19091_v49  ;;  %v19130_v52 = vpop.f32.mrf.mxu0  ;;  %v19150_v20 = vpop.f32.mrf.mxu1 }
 0x68c   : > { %v19131_v63 = vadd.f32 %v19130_v52, %v19111_v1 }
 0x68e   : > { %v19151_v6 = vadd.f32 %v19150_v20, %v19131_v63 }
 0x68f   : > { %v19170_v57 = vpop.f32.mrf.mxu2  ;;  %v19190_v10 = vpop.f32.mrf.mxu3 }
 0x690   : > { %v19171_v62 = vadd.f32 %v19170_v57, %v19151_v6 }
 0x692   : > { %v19191_v9 = vadd.f32 %v19190_v10, %v19171_v62  ;;  %v19210_v2 = vpop.f32.mrf.mxu0  ;;  %v19230_v8 = vpop.f32.mrf.mxu1 }
 0x694   : > { %v19211_v14 = vadd.f32 %v19210_v2, %v19191_v9  ;;  %v245_v9 = vld [vmem:[#allocation8] sm:$0xf] }
 0x696   : > { %v19231_v4 = vadd.f32 %v19230_v8, %v19211_v14 }
 0x697   : > { %v19250_v19 = vpop.f32.mrf.mxu2  ;;  %v19270_v5 = vpop.f32.mrf.mxu3 }
 0x698   : > { %v19251_v13 = vadd.f32 %v19250_v19, %v19231_v4 }
 0x69a   : > { %v19271_v3 = vadd.f32 %v19270_v5, %v19251_v13  ;;  %v19290_v7 = vpop.f32.mrf.mxu0  ;;  %v19310_v11 = vpop.f32.mrf.mxu1 }
 0x69c   : > { %v19291_v12 = vadd.f32 %v19290_v7, %v19271_v3 }
 0x69e   : > { %v19311_v16 = vadd.f32 %v19310_v11, %v19291_v12 }
 0x69f   : > { %v19330_v17 = vpop.f32.mrf.mxu2  ;;  %v19350_v29 = vpop.f32.mrf.mxu3 }
 0x6a0   : > { %v19331_v22 = vadd.f32 %v19330_v17, %v19311_v16 }
 0x6a2   : > { %v19351_v38 = vadd.f32 %v19350_v29, %v19331_v22  ;;  %v19370_v23 = vpop.f32.mrf.mxu0  ;;  %v19390_v33 = vpop.f32.mrf.mxu1 }
 0x6a4   : > { %v19371_v42 = vadd.f32 %v19370_v23, %v19351_v38 }
 0x6a6   : > { %v19391_v34 = vadd.f32 %v19390_v33, %v19371_v42 }
 0x6a7   : > { %v19410_v15 = vpop.f32.mrf.mxu2  ;;  %v19430_v44 = vpop.f32.mrf.mxu3 }
 0x6a8   : > { %v19411_v18 = vadd.f32 %v19410_v15, %v19391_v34 }
 0x6aa   : > { %v19431_v37 = vadd.f32 %v19430_v44, %v19411_v18  ;;  %v19450_v21 = vpop.f32.mrf.mxu0  ;;  %v19470_v43 = vpop.f32.mrf.mxu1 }
 0x6ac   : > { %v19451_v30 = vadd.f32 %v19450_v21, %v19431_v37 }
 0x6ae   : > { %v19471_v26 = vadd.f32 %v19470_v43, %v19451_v30 }
 0x6af   : > { %v19490_v24 = vpop.f32.mrf.mxu2  ;;  %v19510_v40 = vpop.f32.mrf.mxu3 }
 0x6b0   : > { %v19491_v25 = vadd.f32 %v19490_v24, %v19471_v26 }
 0x6b2   : > { %v19511_v27 = vadd.f32 %v19510_v40, %v19491_v25  ;;  %v19530_v28 = vpop.f32.mrf.mxu0  ;;  %v19550_v31 = vpop.f32.mrf.mxu1 }
 0x6b4   : > { %v19531_v32 = vadd.f32 %v19530_v28, %v19511_v27 }
 0x6b6   : > { %v19551_v54 = vadd.f32 %v19550_v31, %v19531_v32 }
 0x6b7   : > { %v19570_v35 = vpop.f32.mrf.mxu2  ;;  %v19590_v58 = vpop.f32.mrf.mxu3 }
 0x6b8   : > { %v19571_v36 = vadd.f32 %v19570_v35, %v19551_v54 }
 0x6ba   : > { %v19591_v0 = vadd.f32 %v19590_v58, %v19571_v36  ;;  %v19610_v39 = vpop.f32.mrf.mxu0  ;;  %v19630_v48 = vpop.f32.mrf.mxu1 }
 0x6bc   : > { %v19611_v53 = vadd.f32 %v19610_v39, %v19591_v0 }
 0x6be   : > { %v19631_v56 = vadd.f32 %v19630_v48, %v19611_v53 }
 0x6bf   : > { %v19650_v41 = vpop.f32.mrf.mxu2  ;;  %v19670_v61 = vpop.f32.mrf.mxu3 }
 0x6c0   : > { %v19651_v45 = vadd.f32 %v19650_v41, %v19631_v56 }
 0x6c2   : > { %v19671_v50 = vadd.f32 %v19670_v61, %v19651_v45  ;;  %v19690_v60 = vpop.f32.mrf.mxu0  ;;  %v19710_v51 = vpop.f32.mrf.mxu1 }
 0x6c4   : > { %v19691_v46 = vadd.f32 %v19690_v60, %v19671_v50 }
 0x6c6   : > { %v19711_v59 = vadd.f32 %v19710_v51, %v19691_v46 }
 0x6c7   : > { %v19730_v47 = vpop.f32.mrf.mxu2  ;;  %v19750_v55 = vpop.f32.mrf.mxu3 }
 0x6c8   : > { %v19731_v49 = vadd.f32 %v19730_v47, %v19711_v59 }
 0x6ca   : > { %v19751_v1 = vadd.f32 %v19750_v55, %v19731_v49  ;;  %v19770_v52 = vpop.f32.mrf.mxu0  ;;  %v19790_v20 = vpop.f32.mrf.mxu1 }
 0x6cc   : > { %v19771_v63 = vadd.f32 %v19770_v52, %v19751_v1 }
 0x6ce   : > { %v19791_v6 = vadd.f32 %v19790_v20, %v19771_v63 }
 0x6cf   : > { %v19810_v57 = vpop.f32.mrf.mxu2  ;;  %v19830_v10 = vpop.f32.mrf.mxu3 }
 0x6d0   : > { %v19811_v62 = vadd.f32 %v19810_v57, %v19791_v6 }
 0x6d2   : > { %v19831_v2 = vadd.f32 %v19830_v10, %v19811_v62 }
 0x6d4   : > { %v19833_v8 = vadd.f32 %v19831_v2, %v245_v9 }
 0x6d6   : > { %19835 = vst.msk [vmem:[#allocation8] sm:$0xf] %vm19834_vm1, %v19833_v8 }
 0x6d7   : > { %19955 = dma.vmem_to_hbm [thread:$0]  (%p19972_p1), %s19843_s21, 64, %s19845_s20, [#allocation4]  }
 0x6d8   : > { %20159 = dma.done.wait (%p19972_p1), [#allocation4], 64  }
 0x6d9   : > { %20161 = vsyncadd (%p19972_p1), [#allocation4], 4294967232 }
 0x6da PF: > { %p17_p4 = scmp.ge.s32.totalorder %s20247_s24, 4   ;;  %s24444_s12 = smov %s20168_s13 }
 0x6db   : > { %s24445_s13 = smov %s20172_s14  ;;  %s24446_s14 = smov %s20257_s27 }
 0x6dc   : > { %s24447_s15 = smov %s20247_s24  ;;  %19 = sbr.rel (!%p17_p4) target bundleno = 6 (0x6), region = 93 }
 0x6e1   :  { %19858 = vsyncpa [#allocation3], 1 }
 0x6e2   :  { %19860 = vsyncpa [#allocation3 + $0x1], 1 }
 0x6e3   :  { %19861 = vsyncpa [#allocation6], 1 }
 0x6e4   :  { %19863 = vsyncpa [#allocation6 + $0x1], 1 }
 0x6e5   :  { %19864 = vsyncpa [#allocation4], 1 }
 0x6e6   :  { %19866 = vsyncpa [#allocation4 + $0x1], 1 }

</bundles_post_ra>
